<compile_context>
chip_gen: v5e
topology: v5e:2x2
jax: 0.10.0
libtpu: 0.0.40
codegen_flags: <defaults>
</compile_context>

<pallas_src>
import jax
import jax.numpy as jnp
from jax import lax
from jax.experimental import pallas as pl
from jax.experimental.pallas import tpu as pltpu

# ------------------------------------------------------------------
# Configuration (small shapes consistent with the module)
# ------------------------------------------------------------------
VOCAB    = 128         # vocab_size (kept at 128 so the one-hot embedding matmul has K=128)
EMB_DIM  = 32          # emb_dim
CONV_H   = 32          # conv_hidden  -> sentence vector dim = 3*CONV_H
ENC_H    = 32          # encoder_hidden (BiLSTM -> enc_out_dim = 2*ENC_H); decoder hidden too
N_HOP    = 1
N_SENT   = 8           # sentences in the article (T of the article BiLSTM)
SENT_LEN = 16          # words per sentence
N_TGT    = 4           # len(target) -> pointer-decoder query length = N_TGT + 1

SENT_VEC = 3 * CONV_H  # 96
ENC_OUT  = 2 * ENC_H   # 64
N_WORDS  = N_SENT * SENT_LEN  # 128


# ------------------------------------------------------------------
# The fused forward kernel
# ------------------------------------------------------------------
def _summarizer_kernel(tgt_ref,                                    # SMEM (N_TGT,) int32
                       tokens_ref, emb_tab_ref,                    # (N_WORDS,1) int32, (VOCAB,E)
                       w3_ref, w4_ref, w5_ref, b3_ref, b4_ref, b5_ref,
                       wihf_ref, whhf_ref, bf_ref,
                       wihb_ref, whhb_ref, bb_ref,
                       eh0_ref, ec0_ref,
                       awm_ref, awq_ref, av_ref,
                       hwm_ref, hwq_ref, hv_ref,
                       pwih_ref, pwhh_ref, pb_ref, ph0_ref, pc0_ref,
                       out_ref):
    f32 = jnp.float32

    # ---- 1. Embedding lookup for ALL words as one one-hot matmul (128x128 @ 128x32) ----
    tok = tokens_ref[...]                                           # (N_WORDS, 1) int32
    vocab_iota = lax.broadcasted_iota(jnp.int32, (N_WORDS, VOCAB), 1)
    onehot_w = (vocab_iota == tok).astype(f32)                      # (N_WORDS, VOCAB)
    emb_flat = jnp.dot(onehot_w, emb_tab_ref[...],
                       preferred_element_type=f32)                  # (N_WORDS, E)

    # ---- 2. ConvSentEncoder: each tap is one M=128 matmul; shifted adds + ReLU + max ----
    sent_chunks = []
    for w_ref, b_ref, k in ((w3_ref, b3_ref, 3),
                            (w4_ref, b4_ref, 4),
                            (w5_ref, b5_ref, 5)):
        lout = SENT_LEN - k + 1
        projs = [jnp.dot(emb_flat, w_ref[dk], preferred_element_type=f32)
                 for dk in range(k)]                                # k x (N_WORDS, CONV_H)
        pooled = []
        for s in range(N_SENT):
            base = s * SENT_LEN
            acc = projs[0][base:base + lout, :]
            for dk in range(1, k):
                acc = acc + projs[dk][base + dk:base + dk + lout, :]
            acc = jnp.maximum(acc + b_ref[...], 0.0)                # (lout, CONV_H)
            pooled.append(jnp.max(acc, axis=0, keepdims=True))      # (1, CONV_H)
        sent_chunks.append(jnp.concatenate(pooled, axis=0))         # (N_SENT, CONV_H)
    sent_vec = jnp.concatenate(sent_chunks, axis=-1)                # (N_SENT, 3*CONV_H)

    # ---- shared single-step LSTM cell, gate columns ordered (i, f, o | g) ----
    def lstm_step(gx_row, h, c, whh):
        gates = gx_row + jnp.dot(h, whh, preferred_element_type=f32)   # (1, 4H)
        sig = jax.nn.sigmoid(gates[:, :3 * ENC_H])
        i_g = sig[:, 0 * ENC_H:1 * ENC_H]
        f_g = sig[:, 1 * ENC_H:2 * ENC_H]
        o_g = sig[:, 2 * ENC_H:3 * ENC_H]
        g_g = jnp.tanh(gates[:, 3 * ENC_H:4 * ENC_H])
        c_new = f_g * c + i_g * g_g
        h_new = o_g * jnp.tanh(c_new)
        return h_new, c_new

    # ---- 3. BiLSTM article encoder: hoisted input projections, fused fwd/bwd loop ----
    gx_f = jnp.dot(sent_vec, wihf_ref[...], preferred_element_type=f32) + bf_ref[...]
    gx_b = jnp.dot(sent_vec, wihb_ref[...], preferred_element_type=f32) + bb_ref[...]
    whh_f = whhf_ref[...]
    whh_b = whhb_ref[...]
    h_f, c_f = eh0_ref[0:1], ec0_ref[0:1]
    h_b, c_b = eh0_ref[1:2], ec0_ref[1:2]
    out_f = [None] * N_SENT
    out_b = [None] * N_SENT
    for s in range(N_SENT):                                         # unrolled, T = N_SENT
        h_f, c_f = lstm_step(gx_f[s:s + 1], h_f, c_f, whh_f)
        out_f[s] = h_f
        tb = N_SENT - 1 - s
        h_b, c_b = lstm_step(gx_b[tb:tb + 1], h_b, c_b, whh_b)
        out_b[tb] = h_b
    enc_out = jnp.concatenate([jnp.concatenate(out_f, axis=0),
                               jnp.concatenate(out_b, axis=0)], axis=1)   # (N_SENT, ENC_OUT)

    # ---- 4. LSTMPointerNet._prepare ----
    mem = enc_out
    attn_feat = jnp.dot(mem, awm_ref[...], preferred_element_type=f32)    # (Ns, H)
    hop_feat = jnp.dot(mem, hwm_ref[...], preferred_element_type=f32)     # (Ns, H)
    init_i = jnp.max(mem, axis=0, keepdims=True)                          # (1, ENC_OUT)

    # ---- 5. ptr_in gather (torch.gather) as a one-hot matmul driven by SMEM scalars ----
    oh_rows = []
    for j in range(N_TGT):
        idx = tgt_ref[j]
        oh_rows.append((lax.broadcasted_iota(jnp.int32, (1, N_SENT), 1) == idx).astype(f32))
    onehot_t = jnp.concatenate(oh_rows, axis=0)                           # (N_TGT, N_SENT)
    ptr_in = jnp.dot(onehot_t, mem, preferred_element_type=f32)           # (N_TGT, ENC_OUT)

    # ---- 6. pointer decoder LSTM (hoisted input projection, unrolled) ----
    lstm_in = jnp.concatenate([init_i, ptr_in], axis=0)                   # (N_TGT+1, ENC_OUT)
    gx_p = jnp.dot(lstm_in, pwih_ref[...], preferred_element_type=f32) + pb_ref[...]
    whh_p = pwhh_ref[...]
    h_p, c_p = ph0_ref[...], pc0_ref[...]
    q_rows = []
    for t in range(N_TGT + 1):
        h_p, c_p = lstm_step(gx_p[t:t + 1], h_p, c_p, whh_p)
        q_rows.append(h_p)
    query = jnp.concatenate(q_rows, axis=0)                               # (N_TGT+1, ENC_H)

    # ---- 7/8. glimpse hop(s) + final unnormalized attention scores ----
    def attn_scores(feat, q, wq, v_row):
        # score[q, s] = v . tanh(feat[s] + (q @ wq)[q])
        q2 = jnp.dot(q, wq, preferred_element_type=f32)                   # (Nq, H)
        s = jnp.tanh(feat[None, :, :] + q2[:, None, :])                   # (Nq, Ns, H)
        return jnp.sum(s * v_row[None, :, :], axis=-1)                    # (Nq, Ns)

    for _ in range(N_HOP):
        sc = attn_scores(hop_feat, query, hwq_ref[...], hv_ref[...])
        sc = sc - jnp.max(sc, axis=-1, keepdims=True)
        p = jnp.exp(sc)
        norm = p * pl.reciprocal(jnp.sum(p, axis=-1, keepdims=True), approx=True)
        query = jnp.dot(norm, hop_feat, preferred_element_type=f32)       # (Nq, H)

    out_ref[...] = attn_scores(attn_feat, query, awq_ref[...], av_ref[...])


# ------------------------------------------------------------------
# Host wrapper: one pallas_call for the whole forward
# ------------------------------------------------------------------
def summarizer_forward(params, article_tokens, target):
    tokens = article_tokens.reshape(N_WORDS, 1).astype(jnp.int32)
    tgt = target.reshape(N_TGT).astype(jnp.int32)

    ordered = [
        tokens, params['emb_table'],
        params['conv_w3'], params['conv_w4'], params['conv_w5'],
        params['conv_b3'], params['conv_b4'], params['conv_b5'],
        params['enc_wih_f'], params['enc_whh_f'], params['enc_b_f'],
        params['enc_wih_b'], params['enc_whh_b'], params['enc_b_b'],
        params['enc_init_h'], params['enc_init_c'],
        params['attn_wm'], params['attn_wq'], params['attn_v'],
        params['hop_wm'], params['hop_wq'], params['hop_v'],
        params['ptr_wih'], params['ptr_whh'], params['ptr_b'],
        params['ptr_init_h'], params['ptr_init_c'],
    ]

    def full_spec(arr):
        nd = arr.ndim
        return pl.BlockSpec(arr.shape, lambda i, t, _nd=nd: (0,) * _nd)

    grid_spec = pltpu.PrefetchScalarGridSpec(
        num_scalar_prefetch=1,
        grid=(1,),
        in_specs=[full_spec(a) for a in ordered],
        out_specs=pl.BlockSpec((N_TGT + 1, N_SENT), lambda i, t: (0, 0)),
    )
    score = pl.pallas_call(
        _summarizer_kernel,
        out_shape=jax.ShapeDtypeStruct((N_TGT + 1, N_SENT), jnp.float32),
        grid_spec=grid_spec,
        compiler_params=pltpu.CompilerParams(dimension_semantics=("arbitrary",)),
    )(tgt, *ordered)
    return score[None]                                                    # (1, N_TGT+1, N_SENT)


# ------------------------------------------------------------------
# Pure-JAX reference (same math, same gate-column convention) for validation
# ------------------------------------------------------------------
def summarizer_reference(params, article_tokens, target):
    emb = params['emb_table'][article_tokens]                             # (S, L, E)
    chunks = []
    for wn, bn, k in (('conv_w3', 'conv_b3', 3), ('conv_w4', 'conv_b4', 4),
                      ('conv_w5', 'conv_b5', 5)):
        w, b = params[wn], params[bn]
        lout = SENT_LEN - k + 1
        acc = jnp.zeros((N_SENT, lout, CONV_H), jnp.float32)
        for dk in range(k):
            acc = acc + jnp.einsum('sle,eh->slh', emb[:, dk:dk + lout, :], w[dk])
        acc = jnp.maximum(acc + b[None], 0.0)
        chunks.append(jnp.max(acc, axis=1))
    sent_vec = jnp.concatenate(chunks, axis=-1)                           # (S, 96)

    def lstm(xs, wih, whh, b, h0, c0):
        H = whh.shape[0]

        def step(carry, x):
            h, c = carry
            g = x @ wih + h @ whh + b
            i = jax.nn.sigmoid(g[:, 0 * H:1 * H]); f = jax.nn.sigmoid(g[:, 1 * H:2 * H])
            o = jax.nn.sigmoid(g[:, 2 * H:3 * H]); gg = jnp.tanh(g[:, 3 * H:4 * H])
            c = f * c + i * gg
            h = o * jnp.tanh(c)
            return (h, c), h

        _, hs = lax.scan(step, (h0, c0), xs[:, None, :])
        return hs[:, 0, :]

    out_f = lstm(sent_vec, params['enc_wih_f'], params['enc_whh_f'], params['enc_b_f'],
                 params['enc_init_h'][0:1], params['enc_init_c'][0:1])
    out_b = lstm(sent_vec[::-1], params['enc_wih_b'], params['enc_whh_b'], params['enc_b_b'],
                 params['enc_init_h'][1:2], params['enc_init_c'][1:2])[::-1]
    enc_out = jnp.concatenate([out_f, out_b], axis=-1)                    # (S, 64)

    ptr_in = enc_out[target[0]]                                           # (nt, 64)
    attn_feat = enc_out @ params['attn_wm']
    hop_feat = enc_out @ params['hop_wm']
    init_i = jnp.max(enc_out, axis=0, keepdims=True)
    lstm_in = jnp.concatenate([init_i, ptr_in], axis=0)
    query = lstm(lstm_in, params['ptr_wih'], params['ptr_whh'], params['ptr_b'],
                 params['ptr_init_h'], params['ptr_init_c'])              # (nt+1, 32)

    def scores(feat, q, wq, v):
        s = jnp.tanh(feat[None] + (q @ wq)[:, None])
        return jnp.sum(s * v[None], axis=-1)

    for _ in range(N_HOP):
        sc = scores(hop_feat, query, params['hop_wq'], params['hop_v'])
        query = jax.nn.softmax(sc, axis=-1) @ hop_feat
    return scores(attn_feat, query, params['attn_wq'], params['attn_v'])[None]


# ------------------------------------------------------------------
# Deterministic parameter init (shapes follow the nn.Module __init__)
# ------------------------------------------------------------------
def init_params(key):
    ks = iter(jax.random.split(key, 32))

    def u(shape, scale=0.1):
        return jax.random.uniform(next(ks), shape, jnp.float32, -scale, scale)

    emb_table = u((VOCAB, EMB_DIM)).at[0].set(0.0)   # nn.Embedding padding_idx=0
    return dict(
        emb_table=emb_table,
        # Conv1d weights: PyTorch (H, E, k) stored here as (k, E, H)
        conv_w3=u((3, EMB_DIM, CONV_H)), conv_b3=u((1, CONV_H)),
        conv_w4=u((4, EMB_DIM, CONV_H)), conv_b4=u((1, CONV_H)),
        conv_w5=u((5, EMB_DIM, CONV_H)), conv_b5=u((1, CONV_H)),
        # BiLSTM article encoder (1 layer); weights transposed to (in, 4H),
        # gate columns ordered (i, f, o, g); b = b_ih + b_hh merged.
        enc_wih_f=u((SENT_VEC, 4 * ENC_H)), enc_whh_f=u((ENC_H, 4 * ENC_H)),
        enc_b_f=u((1, 4 * ENC_H)),
        enc_wih_b=u((SENT_VEC, 4 * ENC_H)), enc_whh_b=u((ENC_H, 4 * ENC_H)),
        enc_b_b=u((1, 4 * ENC_H)),
        enc_init_h=u((2, ENC_H), 0.01), enc_init_c=u((2, ENC_H), 0.01),
        # LSTMPointerNet
        attn_wm=u((ENC_OUT, ENC_H)), attn_wq=u((ENC_H, ENC_H)), attn_v=u((1, ENC_H), 0.01),
        hop_wm=u((ENC_OUT, ENC_H)), hop_wq=u((ENC_H, ENC_H)), hop_v=u((1, ENC_H), 0.01),
        ptr_wih=u((ENC_OUT, 4 * ENC_H)), ptr_whh=u((ENC_H, 4 * ENC_H)),
        ptr_b=u((1, 4 * ENC_H)),
        ptr_init_h=u((1, ENC_H), 0.01), ptr_init_c=u((1, ENC_H), 0.01),
    )


if __name__ == "__main__":
    pkey, tkey, gkey = jax.random.split(jax.random.PRNGKey(0), 3)
    params = init_params(pkey)
    # article_sents[0]: (n_sent, sent_len) word ids (avoid padding id 0 for simplicity)
    article_tokens = jax.random.randint(tkey, (N_SENT, SENT_LEN), 1, VOCAB, dtype=jnp.int32)
    # target: (batch=1, nt) sentence indices to extract
    target = jax.random.randint(gkey, (1, N_TGT), 0, N_SENT, dtype=jnp.int32)

    fwd = jax.jit(summarizer_forward)
    out = jax.block_until_ready(fwd(params, article_tokens, target))

    assert out.shape == (1, N_TGT + 1, N_SENT), out.shape
    assert out.dtype == jnp.float32
    assert bool(jnp.all(jnp.isfinite(out)))

    ref = jax.block_until_ready(jax.jit(summarizer_reference)(params, article_tokens, target))
    assert bool(jnp.allclose(out, ref, rtol=2e-2, atol=2e-2)), (out, ref)

    print("KERNEL_OK")
</pallas_src>

<mosaic_0001>
module attributes {stable_mosaic.version = 11 : i64} {
  func.func @_summarizer_kernel(%arg0: i32, %arg1: memref<4xi32, #tpu.memory_space<smem>>, %arg2: memref<128x1xi32, #tpu.memory_space<vmem>>, %arg3: memref<128x32xf32, #tpu.memory_space<vmem>>, %arg4: memref<3x32x32xf32, #tpu.memory_space<vmem>>, %arg5: memref<4x32x32xf32, #tpu.memory_space<vmem>>, %arg6: memref<5x32x32xf32, #tpu.memory_space<vmem>>, %arg7: memref<1x32xf32, #tpu.memory_space<vmem>>, %arg8: memref<1x32xf32, #tpu.memory_space<vmem>>, %arg9: memref<1x32xf32, #tpu.memory_space<vmem>>, %arg10: memref<96x128xf32, #tpu.memory_space<vmem>>, %arg11: memref<32x128xf32, #tpu.memory_space<vmem>>, %arg12: memref<1x128xf32, #tpu.memory_space<vmem>>, %arg13: memref<96x128xf32, #tpu.memory_space<vmem>>, %arg14: memref<32x128xf32, #tpu.memory_space<vmem>>, %arg15: memref<1x128xf32, #tpu.memory_space<vmem>>, %arg16: memref<2x32xf32, #tpu.memory_space<vmem>>, %arg17: memref<2x32xf32, #tpu.memory_space<vmem>>, %arg18: memref<64x32xf32, #tpu.memory_space<vmem>>, %arg19: memref<32x32xf32, #tpu.memory_space<vmem>>, %arg20: memref<1x32xf32, #tpu.memory_space<vmem>>, %arg21: memref<64x32xf32, #tpu.memory_space<vmem>>, %arg22: memref<32x32xf32, #tpu.memory_space<vmem>>, %arg23: memref<1x32xf32, #tpu.memory_space<vmem>>, %arg24: memref<64x128xf32, #tpu.memory_space<vmem>>, %arg25: memref<32x128xf32, #tpu.memory_space<vmem>>, %arg26: memref<1x128xf32, #tpu.memory_space<vmem>>, %arg27: memref<1x32xf32, #tpu.memory_space<vmem>>, %arg28: memref<1x32xf32, #tpu.memory_space<vmem>>, %arg29: memref<5x8xf32, #tpu.memory_space<vmem>>) attributes {dimension_semantics = [#tpu.dimension_semantics<arbitrary>], iteration_bounds = array<i64: 1>, scalar_prefetch = 1 : i64, scratch_operands = 0 : i64, tpu.core_type = #tpu.core_type<tc>, window_params = [{pipeline_mode = #tpu.pipeline_mode<synchronous>, transform_indices = @transform_0, window_bounds = array<i64: 128, 1>}, {pipeline_mode = #tpu.pipeline_mode<synchronous>, transform_indices = @transform_1, window_bounds = array<i64: 128, 32>}, {pipeline_mode = #tpu.pipeline_mode<synchronous>, transform_indices = @transform_2, window_bounds = array<i64: 3, 32, 32>}, {pipeline_mode = #tpu.pipeline_mode<synchronous>, transform_indices = @transform_3, window_bounds = array<i64: 4, 32, 32>}, {pipeline_mode = #tpu.pipeline_mode<synchronous>, transform_indices = @transform_4, window_bounds = array<i64: 5, 32, 32>}, {pipeline_mode = #tpu.pipeline_mode<synchronous>, transform_indices = @transform_5, window_bounds = array<i64: 1, 32>}, {pipeline_mode = #tpu.pipeline_mode<synchronous>, transform_indices = @transform_6, window_bounds = array<i64: 1, 32>}, {pipeline_mode = #tpu.pipeline_mode<synchronous>, transform_indices = @transform_7, window_bounds = array<i64: 1, 32>}, {pipeline_mode = #tpu.pipeline_mode<synchronous>, transform_indices = @transform_8, window_bounds = array<i64: 96, 128>}, {pipeline_mode = #tpu.pipeline_mode<synchronous>, transform_indices = @transform_9, window_bounds = array<i64: 32, 128>}, {pipeline_mode = #tpu.pipeline_mode<synchronous>, transform_indices = @transform_10, window_bounds = array<i64: 1, 128>}, {pipeline_mode = #tpu.pipeline_mode<synchronous>, transform_indices = @transform_11, window_bounds = array<i64: 96, 128>}, {pipeline_mode = #tpu.pipeline_mode<synchronous>, transform_indices = @transform_12, window_bounds = array<i64: 32, 128>}, {pipeline_mode = #tpu.pipeline_mode<synchronous>, transform_indices = @transform_13, window_bounds = array<i64: 1, 128>}, {pipeline_mode = #tpu.pipeline_mode<synchronous>, transform_indices = @transform_14, window_bounds = array<i64: 2, 32>}, {pipeline_mode = #tpu.pipeline_mode<synchronous>, transform_indices = @transform_15, window_bounds = array<i64: 2, 32>}, {pipeline_mode = #tpu.pipeline_mode<synchronous>, transform_indices = @transform_16, window_bounds = array<i64: 64, 32>}, {pipeline_mode = #tpu.pipeline_mode<synchronous>, transform_indices = @transform_17, window_bounds = array<i64: 32, 32>}, {pipeline_mode = #tpu.pipeline_mode<synchronous>, transform_indices = @transform_18, window_bounds = array<i64: 1, 32>}, {pipeline_mode = #tpu.pipeline_mode<synchronous>, transform_indices = @transform_19, window_bounds = array<i64: 64, 32>}, {pipeline_mode = #tpu.pipeline_mode<synchronous>, transform_indices = @transform_20, window_bounds = array<i64: 32, 32>}, {pipeline_mode = #tpu.pipeline_mode<synchronous>, transform_indices = @transform_21, window_bounds = array<i64: 1, 32>}, {pipeline_mode = #tpu.pipeline_mode<synchronous>, transform_indices = @transform_22, window_bounds = array<i64: 64, 128>}, {pipeline_mode = #tpu.pipeline_mode<synchronous>, transform_indices = @transform_23, window_bounds = array<i64: 32, 128>}, {pipeline_mode = #tpu.pipeline_mode<synchronous>, transform_indices = @transform_24, window_bounds = array<i64: 1, 128>}, {pipeline_mode = #tpu.pipeline_mode<synchronous>, transform_indices = @transform_25, window_bounds = array<i64: 1, 32>}, {pipeline_mode = #tpu.pipeline_mode<synchronous>, transform_indices = @transform_26, window_bounds = array<i64: 1, 32>}, {pipeline_mode = #tpu.pipeline_mode<synchronous>, transform_indices = @transform_27, window_bounds = array<i64: 5, 8>}]} {
    %c0 = arith.constant 0 : index
    %c0_0 = arith.constant 0 : index
    %0 = vector.load %arg2[%c0, %c0_0] : memref<128x1xi32, #tpu.memory_space<vmem>>, vector<128x1xi32>
    %1 = tpu.iota {dimensions = array<i32: 1>} : vector<128x128xi32>
    %2 = vector.broadcast %0 : vector<128x1xi32> to vector<128x128xi32>
    %3 = arith.cmpi eq, %1, %2 : vector<128x128xi32>
    %4 = arith.extui %3 : vector<128x128xi1> to vector<128x128xi32>
    %5 = arith.sitofp %4 : vector<128x128xi32> to vector<128x128xf32>
    %c0_1 = arith.constant 0 : index
    %c0_2 = arith.constant 0 : index
    %6 = vector.load %arg3[%c0_1, %c0_2] : memref<128x32xf32, #tpu.memory_space<vmem>>, vector<128x32xf32>
    %cst = arith.constant dense<0.000000e+00> : vector<128x32xf32>
    %7 = tpu.matmul %5, %6, %cst {dimension_numbers = #tpu.dot_dimension_numbers<[1], [0], [0], [1], [0, 0, 1, 1], [], []>} : vector<128x128xf32>, vector<128x32xf32>, vector<128x32xf32> -> vector<128x32xf32>
    %c0_3 = arith.constant 0 : index
    %c0_4 = arith.constant 0 : index
    %c0_5 = arith.constant 0 : index
    %8 = vector.load %arg4[%c0_3, %c0_4, %c0_5] : memref<3x32x32xf32, #tpu.memory_space<vmem>>, vector<1x32x32xf32>
    %9 = vector.shape_cast %8 : vector<1x32x32xf32> to vector<32x32xf32>
    %cst_6 = arith.constant dense<0.000000e+00> : vector<128x32xf32>
    %10 = tpu.matmul %7, %9, %cst_6 {dimension_numbers = #tpu.dot_dimension_numbers<[1], [0], [0], [1], [0, 0, 1, 1], [], []>} : vector<128x32xf32>, vector<32x32xf32>, vector<128x32xf32> -> vector<128x32xf32>
    %c1 = arith.constant 1 : index
    %c0_7 = arith.constant 0 : index
    %c0_8 = arith.constant 0 : index
    %11 = vector.load %arg4[%c1, %c0_7, %c0_8] : memref<3x32x32xf32, #tpu.memory_space<vmem>>, vector<1x32x32xf32>
    %12 = vector.shape_cast %11 : vector<1x32x32xf32> to vector<32x32xf32>
    %cst_9 = arith.constant dense<0.000000e+00> : vector<128x32xf32>
    %13 = tpu.matmul %7, %12, %cst_9 {dimension_numbers = #tpu.dot_dimension_numbers<[1], [0], [0], [1], [0, 0, 1, 1], [], []>} : vector<128x32xf32>, vector<32x32xf32>, vector<128x32xf32> -> vector<128x32xf32>
    %c2 = arith.constant 2 : index
    %c0_10 = arith.constant 0 : index
    %c0_11 = arith.constant 0 : index
    %14 = vector.load %arg4[%c2, %c0_10, %c0_11] : memref<3x32x32xf32, #tpu.memory_space<vmem>>, vector<1x32x32xf32>
    %15 = vector.shape_cast %14 : vector<1x32x32xf32> to vector<32x32xf32>
    %cst_12 = arith.constant dense<0.000000e+00> : vector<128x32xf32>
    %16 = tpu.matmul %7, %15, %cst_12 {dimension_numbers = #tpu.dot_dimension_numbers<[1], [0], [0], [1], [0, 0, 1, 1], [], []>} : vector<128x32xf32>, vector<32x32xf32>, vector<128x32xf32> -> vector<128x32xf32>
    %17 = vector.extract_strided_slice %10 {offsets = [0, 0], sizes = [14, 32], strides = [1, 1]} : vector<128x32xf32> to vector<14x32xf32>
    %18 = vector.extract_strided_slice %13 {offsets = [1, 0], sizes = [14, 32], strides = [1, 1]} : vector<128x32xf32> to vector<14x32xf32>
    %19 = arith.addf %17, %18 : vector<14x32xf32>
    %20 = vector.extract_strided_slice %16 {offsets = [2, 0], sizes = [14, 32], strides = [1, 1]} : vector<128x32xf32> to vector<14x32xf32>
    %21 = arith.addf %19, %20 : vector<14x32xf32>
    %c0_13 = arith.constant 0 : index
    %c0_14 = arith.constant 0 : index
    %22 = vector.load %arg7[%c0_13, %c0_14] : memref<1x32xf32, #tpu.memory_space<vmem>>, vector<1x32xf32>
    %23 = vector.broadcast %22 : vector<1x32xf32> to vector<14x32xf32>
    %24 = arith.addf %21, %23 : vector<14x32xf32>
    %cst_15 = arith.constant 0.000000e+00 : f32
    %25 = vector.broadcast %cst_15 : f32 to vector<14x32xf32>
    %26 = arith.maximumf %24, %25 : vector<14x32xf32>
    %cst_16 = arith.constant dense<0xFF800000> : vector<32xf32>
    %27 = vector.multi_reduction <maximumf>, %26, %cst_16 [0] : vector<14x32xf32> to vector<32xf32>
    %28 = vector.shape_cast %27 : vector<32xf32> to vector<1x32xf32>
    %29 = vector.extract_strided_slice %10 {offsets = [16, 0], sizes = [14, 32], strides = [1, 1]} : vector<128x32xf32> to vector<14x32xf32>
    %30 = vector.extract_strided_slice %13 {offsets = [17, 0], sizes = [14, 32], strides = [1, 1]} : vector<128x32xf32> to vector<14x32xf32>
    %31 = arith.addf %29, %30 : vector<14x32xf32>
    %32 = vector.extract_strided_slice %16 {offsets = [18, 0], sizes = [14, 32], strides = [1, 1]} : vector<128x32xf32> to vector<14x32xf32>
    %33 = arith.addf %31, %32 : vector<14x32xf32>
    %c0_17 = arith.constant 0 : index
    %c0_18 = arith.constant 0 : index
    %34 = vector.load %arg7[%c0_17, %c0_18] : memref<1x32xf32, #tpu.memory_space<vmem>>, vector<1x32xf32>
    %35 = vector.broadcast %34 : vector<1x32xf32> to vector<14x32xf32>
    %36 = arith.addf %33, %35 : vector<14x32xf32>
    %cst_19 = arith.constant 0.000000e+00 : f32
    %37 = vector.broadcast %cst_19 : f32 to vector<14x32xf32>
    %38 = arith.maximumf %36, %37 : vector<14x32xf32>
    %cst_20 = arith.constant dense<0xFF800000> : vector<32xf32>
    %39 = vector.multi_reduction <maximumf>, %38, %cst_20 [0] : vector<14x32xf32> to vector<32xf32>
    %40 = vector.shape_cast %39 : vector<32xf32> to vector<1x32xf32>
    %41 = vector.extract_strided_slice %10 {offsets = [32, 0], sizes = [14, 32], strides = [1, 1]} : vector<128x32xf32> to vector<14x32xf32>
    %42 = vector.extract_strided_slice %13 {offsets = [33, 0], sizes = [14, 32], strides = [1, 1]} : vector<128x32xf32> to vector<14x32xf32>
    %43 = arith.addf %41, %42 : vector<14x32xf32>
    %44 = vector.extract_strided_slice %16 {offsets = [34, 0], sizes = [14, 32], strides = [1, 1]} : vector<128x32xf32> to vector<14x32xf32>
    %45 = arith.addf %43, %44 : vector<14x32xf32>
    %c0_21 = arith.constant 0 : index
    %c0_22 = arith.constant 0 : index
    %46 = vector.load %arg7[%c0_21, %c0_22] : memref<1x32xf32, #tpu.memory_space<vmem>>, vector<1x32xf32>
    %47 = vector.broadcast %46 : vector<1x32xf32> to vector<14x32xf32>
    %48 = arith.addf %45, %47 : vector<14x32xf32>
    %cst_23 = arith.constant 0.000000e+00 : f32
    %49 = vector.broadcast %cst_23 : f32 to vector<14x32xf32>
    %50 = arith.maximumf %48, %49 : vector<14x32xf32>
    %cst_24 = arith.constant dense<0xFF800000> : vector<32xf32>
    %51 = vector.multi_reduction <maximumf>, %50, %cst_24 [0] : vector<14x32xf32> to vector<32xf32>
    %52 = vector.shape_cast %51 : vector<32xf32> to vector<1x32xf32>
    %53 = vector.extract_strided_slice %10 {offsets = [48, 0], sizes = [14, 32], strides = [1, 1]} : vector<128x32xf32> to vector<14x32xf32>
    %54 = vector.extract_strided_slice %13 {offsets = [49, 0], sizes = [14, 32], strides = [1, 1]} : vector<128x32xf32> to vector<14x32xf32>
    %55 = arith.addf %53, %54 : vector<14x32xf32>
    %56 = vector.extract_strided_slice %16 {offsets = [50, 0], sizes = [14, 32], strides = [1, 1]} : vector<128x32xf32> to vector<14x32xf32>
    %57 = arith.addf %55, %56 : vector<14x32xf32>
    %c0_25 = arith.constant 0 : index
    %c0_26 = arith.constant 0 : index
    %58 = vector.load %arg7[%c0_25, %c0_26] : memref<1x32xf32, #tpu.memory_space<vmem>>, vector<1x32xf32>
    %59 = vector.broadcast %58 : vector<1x32xf32> to vector<14x32xf32>
    %60 = arith.addf %57, %59 : vector<14x32xf32>
    %cst_27 = arith.constant 0.000000e+00 : f32
    %61 = vector.broadcast %cst_27 : f32 to vector<14x32xf32>
    %62 = arith.maximumf %60, %61 : vector<14x32xf32>
    %cst_28 = arith.constant dense<0xFF800000> : vector<32xf32>
    %63 = vector.multi_reduction <maximumf>, %62, %cst_28 [0] : vector<14x32xf32> to vector<32xf32>
    %64 = vector.shape_cast %63 : vector<32xf32> to vector<1x32xf32>
    %65 = vector.extract_strided_slice %10 {offsets = [64, 0], sizes = [14, 32], strides = [1, 1]} : vector<128x32xf32> to vector<14x32xf32>
    %66 = vector.extract_strided_slice %13 {offsets = [65, 0], sizes = [14, 32], strides = [1, 1]} : vector<128x32xf32> to vector<14x32xf32>
    %67 = arith.addf %65, %66 : vector<14x32xf32>
    %68 = vector.extract_strided_slice %16 {offsets = [66, 0], sizes = [14, 32], strides = [1, 1]} : vector<128x32xf32> to vector<14x32xf32>
    %69 = arith.addf %67, %68 : vector<14x32xf32>
    %c0_29 = arith.constant 0 : index
    %c0_30 = arith.constant 0 : index
    %70 = vector.load %arg7[%c0_29, %c0_30] : memref<1x32xf32, #tpu.memory_space<vmem>>, vector<1x32xf32>
    %71 = vector.broadcast %70 : vector<1x32xf32> to vector<14x32xf32>
    %72 = arith.addf %69, %71 : vector<14x32xf32>
    %cst_31 = arith.constant 0.000000e+00 : f32
    %73 = vector.broadcast %cst_31 : f32 to vector<14x32xf32>
    %74 = arith.maximumf %72, %73 : vector<14x32xf32>
    %cst_32 = arith.constant dense<0xFF800000> : vector<32xf32>
    %75 = vector.multi_reduction <maximumf>, %74, %cst_32 [0] : vector<14x32xf32> to vector<32xf32>
    %76 = vector.shape_cast %75 : vector<32xf32> to vector<1x32xf32>
    %77 = vector.extract_strided_slice %10 {offsets = [80, 0], sizes = [14, 32], strides = [1, 1]} : vector<128x32xf32> to vector<14x32xf32>
    %78 = vector.extract_strided_slice %13 {offsets = [81, 0], sizes = [14, 32], strides = [1, 1]} : vector<128x32xf32> to vector<14x32xf32>
    %79 = arith.addf %77, %78 : vector<14x32xf32>
    %80 = vector.extract_strided_slice %16 {offsets = [82, 0], sizes = [14, 32], strides = [1, 1]} : vector<128x32xf32> to vector<14x32xf32>
    %81 = arith.addf %79, %80 : vector<14x32xf32>
    %c0_33 = arith.constant 0 : index
    %c0_34 = arith.constant 0 : index
    %82 = vector.load %arg7[%c0_33, %c0_34] : memref<1x32xf32, #tpu.memory_space<vmem>>, vector<1x32xf32>
    %83 = vector.broadcast %82 : vector<1x32xf32> to vector<14x32xf32>
    %84 = arith.addf %81, %83 : vector<14x32xf32>
    %cst_35 = arith.constant 0.000000e+00 : f32
    %85 = vector.broadcast %cst_35 : f32 to vector<14x32xf32>
    %86 = arith.maximumf %84, %85 : vector<14x32xf32>
    %cst_36 = arith.constant dense<0xFF800000> : vector<32xf32>
    %87 = vector.multi_reduction <maximumf>, %86, %cst_36 [0] : vector<14x32xf32> to vector<32xf32>
    %88 = vector.shape_cast %87 : vector<32xf32> to vector<1x32xf32>
    %89 = vector.extract_strided_slice %10 {offsets = [96, 0], sizes = [14, 32], strides = [1, 1]} : vector<128x32xf32> to vector<14x32xf32>
    %90 = vector.extract_strided_slice %13 {offsets = [97, 0], sizes = [14, 32], strides = [1, 1]} : vector<128x32xf32> to vector<14x32xf32>
    %91 = arith.addf %89, %90 : vector<14x32xf32>
    %92 = vector.extract_strided_slice %16 {offsets = [98, 0], sizes = [14, 32], strides = [1, 1]} : vector<128x32xf32> to vector<14x32xf32>
    %93 = arith.addf %91, %92 : vector<14x32xf32>
    %c0_37 = arith.constant 0 : index
    %c0_38 = arith.constant 0 : index
    %94 = vector.load %arg7[%c0_37, %c0_38] : memref<1x32xf32, #tpu.memory_space<vmem>>, vector<1x32xf32>
    %95 = vector.broadcast %94 : vector<1x32xf32> to vector<14x32xf32>
    %96 = arith.addf %93, %95 : vector<14x32xf32>
    %cst_39 = arith.constant 0.000000e+00 : f32
    %97 = vector.broadcast %cst_39 : f32 to vector<14x32xf32>
    %98 = arith.maximumf %96, %97 : vector<14x32xf32>
    %cst_40 = arith.constant dense<0xFF800000> : vector<32xf32>
    %99 = vector.multi_reduction <maximumf>, %98, %cst_40 [0] : vector<14x32xf32> to vector<32xf32>
    %100 = vector.shape_cast %99 : vector<32xf32> to vector<1x32xf32>
    %101 = vector.extract_strided_slice %10 {offsets = [112, 0], sizes = [14, 32], strides = [1, 1]} : vector<128x32xf32> to vector<14x32xf32>
    %102 = vector.extract_strided_slice %13 {offsets = [113, 0], sizes = [14, 32], strides = [1, 1]} : vector<128x32xf32> to vector<14x32xf32>
    %103 = arith.addf %101, %102 : vector<14x32xf32>
    %104 = vector.extract_strided_slice %16 {offsets = [114, 0], sizes = [14, 32], strides = [1, 1]} : vector<128x32xf32> to vector<14x32xf32>
    %105 = arith.addf %103, %104 : vector<14x32xf32>
    %c0_41 = arith.constant 0 : index
    %c0_42 = arith.constant 0 : index
    %106 = vector.load %arg7[%c0_41, %c0_42] : memref<1x32xf32, #tpu.memory_space<vmem>>, vector<1x32xf32>
    %107 = vector.broadcast %106 : vector<1x32xf32> to vector<14x32xf32>
    %108 = arith.addf %105, %107 : vector<14x32xf32>
    %cst_43 = arith.constant 0.000000e+00 : f32
    %109 = vector.broadcast %cst_43 : f32 to vector<14x32xf32>
    %110 = arith.maximumf %108, %109 : vector<14x32xf32>
    %cst_44 = arith.constant dense<0xFF800000> : vector<32xf32>
    %111 = vector.multi_reduction <maximumf>, %110, %cst_44 [0] : vector<14x32xf32> to vector<32xf32>
    %112 = vector.shape_cast %111 : vector<32xf32> to vector<1x32xf32>
    %113 = tpu.concatenate %28, %40, %52, %64, %76, %88, %100, %112 in 0 : vector<1x32xf32>, vector<1x32xf32>, vector<1x32xf32>, vector<1x32xf32>, vector<1x32xf32>, vector<1x32xf32>, vector<1x32xf32>, vector<1x32xf32> -> vector<8x32xf32>
    %c0_45 = arith.constant 0 : index
    %c0_46 = arith.constant 0 : index
    %c0_47 = arith.constant 0 : index
    %114 = vector.load %arg5[%c0_45, %c0_46, %c0_47] : memref<4x32x32xf32, #tpu.memory_space<vmem>>, vector<1x32x32xf32>
    %115 = vector.shape_cast %114 : vector<1x32x32xf32> to vector<32x32xf32>
    %cst_48 = arith.constant dense<0.000000e+00> : vector<128x32xf32>
    %116 = tpu.matmul %7, %115, %cst_48 {dimension_numbers = #tpu.dot_dimension_numbers<[1], [0], [0], [1], [0, 0, 1, 1], [], []>} : vector<128x32xf32>, vector<32x32xf32>, vector<128x32xf32> -> vector<128x32xf32>
    %c1_49 = arith.constant 1 : index
    %c0_50 = arith.constant 0 : index
    %c0_51 = arith.constant 0 : index
    %117 = vector.load %arg5[%c1_49, %c0_50, %c0_51] : memref<4x32x32xf32, #tpu.memory_space<vmem>>, vector<1x32x32xf32>
    %118 = vector.shape_cast %117 : vector<1x32x32xf32> to vector<32x32xf32>
    %cst_52 = arith.constant dense<0.000000e+00> : vector<128x32xf32>
    %119 = tpu.matmul %7, %118, %cst_52 {dimension_numbers = #tpu.dot_dimension_numbers<[1], [0], [0], [1], [0, 0, 1, 1], [], []>} : vector<128x32xf32>, vector<32x32xf32>, vector<128x32xf32> -> vector<128x32xf32>
    %c2_53 = arith.constant 2 : index
    %c0_54 = arith.constant 0 : index
    %c0_55 = arith.constant 0 : index
    %120 = vector.load %arg5[%c2_53, %c0_54, %c0_55] : memref<4x32x32xf32, #tpu.memory_space<vmem>>, vector<1x32x32xf32>
    %121 = vector.shape_cast %120 : vector<1x32x32xf32> to vector<32x32xf32>
    %cst_56 = arith.constant dense<0.000000e+00> : vector<128x32xf32>
    %122 = tpu.matmul %7, %121, %cst_56 {dimension_numbers = #tpu.dot_dimension_numbers<[1], [0], [0], [1], [0, 0, 1, 1], [], []>} : vector<128x32xf32>, vector<32x32xf32>, vector<128x32xf32> -> vector<128x32xf32>
    %c3 = arith.constant 3 : index
    %c0_57 = arith.constant 0 : index
    %c0_58 = arith.constant 0 : index
    %123 = vector.load %arg5[%c3, %c0_57, %c0_58] : memref<4x32x32xf32, #tpu.memory_space<vmem>>, vector<1x32x32xf32>
    %124 = vector.shape_cast %123 : vector<1x32x32xf32> to vector<32x32xf32>
    %cst_59 = arith.constant dense<0.000000e+00> : vector<128x32xf32>
    %125 = tpu.matmul %7, %124, %cst_59 {dimension_numbers = #tpu.dot_dimension_numbers<[1], [0], [0], [1], [0, 0, 1, 1], [], []>} : vector<128x32xf32>, vector<32x32xf32>, vector<128x32xf32> -> vector<128x32xf32>
    %126 = vector.extract_strided_slice %116 {offsets = [0, 0], sizes = [13, 32], strides = [1, 1]} : vector<128x32xf32> to vector<13x32xf32>
    %127 = vector.extract_strided_slice %119 {offsets = [1, 0], sizes = [13, 32], strides = [1, 1]} : vector<128x32xf32> to vector<13x32xf32>
    %128 = arith.addf %126, %127 : vector<13x32xf32>
    %129 = vector.extract_strided_slice %122 {offsets = [2, 0], sizes = [13, 32], strides = [1, 1]} : vector<128x32xf32> to vector<13x32xf32>
    %130 = arith.addf %128, %129 : vector<13x32xf32>
    %131 = vector.extract_strided_slice %125 {offsets = [3, 0], sizes = [13, 32], strides = [1, 1]} : vector<128x32xf32> to vector<13x32xf32>
    %132 = arith.addf %130, %131 : vector<13x32xf32>
    %c0_60 = arith.constant 0 : index
    %c0_61 = arith.constant 0 : index
    %133 = vector.load %arg8[%c0_60, %c0_61] : memref<1x32xf32, #tpu.memory_space<vmem>>, vector<1x32xf32>
    %134 = vector.broadcast %133 : vector<1x32xf32> to vector<13x32xf32>
    %135 = arith.addf %132, %134 : vector<13x32xf32>
    %cst_62 = arith.constant 0.000000e+00 : f32
    %136 = vector.broadcast %cst_62 : f32 to vector<13x32xf32>
    %137 = arith.maximumf %135, %136 : vector<13x32xf32>
    %cst_63 = arith.constant dense<0xFF800000> : vector<32xf32>
    %138 = vector.multi_reduction <maximumf>, %137, %cst_63 [0] : vector<13x32xf32> to vector<32xf32>
    %139 = vector.shape_cast %138 : vector<32xf32> to vector<1x32xf32>
    %140 = vector.extract_strided_slice %116 {offsets = [16, 0], sizes = [13, 32], strides = [1, 1]} : vector<128x32xf32> to vector<13x32xf32>
    %141 = vector.extract_strided_slice %119 {offsets = [17, 0], sizes = [13, 32], strides = [1, 1]} : vector<128x32xf32> to vector<13x32xf32>
    %142 = arith.addf %140, %141 : vector<13x32xf32>
    %143 = vector.extract_strided_slice %122 {offsets = [18, 0], sizes = [13, 32], strides = [1, 1]} : vector<128x32xf32> to vector<13x32xf32>
    %144 = arith.addf %142, %143 : vector<13x32xf32>
    %145 = vector.extract_strided_slice %125 {offsets = [19, 0], sizes = [13, 32], strides = [1, 1]} : vector<128x32xf32> to vector<13x32xf32>
    %146 = arith.addf %144, %145 : vector<13x32xf32>
    %c0_64 = arith.constant 0 : index
    %c0_65 = arith.constant 0 : index
    %147 = vector.load %arg8[%c0_64, %c0_65] : memref<1x32xf32, #tpu.memory_space<vmem>>, vector<1x32xf32>
    %148 = vector.broadcast %147 : vector<1x32xf32> to vector<13x32xf32>
    %149 = arith.addf %146, %148 : vector<13x32xf32>
    %cst_66 = arith.constant 0.000000e+00 : f32
    %150 = vector.broadcast %cst_66 : f32 to vector<13x32xf32>
    %151 = arith.maximumf %149, %150 : vector<13x32xf32>
    %cst_67 = arith.constant dense<0xFF800000> : vector<32xf32>
    %152 = vector.multi_reduction <maximumf>, %151, %cst_67 [0] : vector<13x32xf32> to vector<32xf32>
    %153 = vector.shape_cast %152 : vector<32xf32> to vector<1x32xf32>
    %154 = vector.extract_strided_slice %116 {offsets = [32, 0], sizes = [13, 32], strides = [1, 1]} : vector<128x32xf32> to vector<13x32xf32>
    %155 = vector.extract_strided_slice %119 {offsets = [33, 0], sizes = [13, 32], strides = [1, 1]} : vector<128x32xf32> to vector<13x32xf32>
    %156 = arith.addf %154, %155 : vector<13x32xf32>
    %157 = vector.extract_strided_slice %122 {offsets = [34, 0], sizes = [13, 32], strides = [1, 1]} : vector<128x32xf32> to vector<13x32xf32>
    %158 = arith.addf %156, %157 : vector<13x32xf32>
    %159 = vector.extract_strided_slice %125 {offsets = [35, 0], sizes = [13, 32], strides = [1, 1]} : vector<128x32xf32> to vector<13x32xf32>
    %160 = arith.addf %158, %159 : vector<13x32xf32>
    %c0_68 = arith.constant 0 : index
    %c0_69 = arith.constant 0 : index
    %161 = vector.load %arg8[%c0_68, %c0_69] : memref<1x32xf32, #tpu.memory_space<vmem>>, vector<1x32xf32>
    %162 = vector.broadcast %161 : vector<1x32xf32> to vector<13x32xf32>
    %163 = arith.addf %160, %162 : vector<13x32xf32>
    %cst_70 = arith.constant 0.000000e+00 : f32
    %164 = vector.broadcast %cst_70 : f32 to vector<13x32xf32>
    %165 = arith.maximumf %163, %164 : vector<13x32xf32>
    %cst_71 = arith.constant dense<0xFF800000> : vector<32xf32>
    %166 = vector.multi_reduction <maximumf>, %165, %cst_71 [0] : vector<13x32xf32> to vector<32xf32>
    %167 = vector.shape_cast %166 : vector<32xf32> to vector<1x32xf32>
    %168 = vector.extract_strided_slice %116 {offsets = [48, 0], sizes = [13, 32], strides = [1, 1]} : vector<128x32xf32> to vector<13x32xf32>
    %169 = vector.extract_strided_slice %119 {offsets = [49, 0], sizes = [13, 32], strides = [1, 1]} : vector<128x32xf32> to vector<13x32xf32>
    %170 = arith.addf %168, %169 : vector<13x32xf32>
    %171 = vector.extract_strided_slice %122 {offsets = [50, 0], sizes = [13, 32], strides = [1, 1]} : vector<128x32xf32> to vector<13x32xf32>
    %172 = arith.addf %170, %171 : vector<13x32xf32>
    %173 = vector.extract_strided_slice %125 {offsets = [51, 0], sizes = [13, 32], strides = [1, 1]} : vector<128x32xf32> to vector<13x32xf32>
    %174 = arith.addf %172, %173 : vector<13x32xf32>
    %c0_72 = arith.constant 0 : index
    %c0_73 = arith.constant 0 : index
    %175 = vector.load %arg8[%c0_72, %c0_73] : memref<1x32xf32, #tpu.memory_space<vmem>>, vector<1x32xf32>
    %176 = vector.broadcast %175 : vector<1x32xf32> to vector<13x32xf32>
    %177 = arith.addf %174, %176 : vector<13x32xf32>
    %cst_74 = arith.constant 0.000000e+00 : f32
    %178 = vector.broadcast %cst_74 : f32 to vector<13x32xf32>
    %179 = arith.maximumf %177, %178 : vector<13x32xf32>
    %cst_75 = arith.constant dense<0xFF800000> : vector<32xf32>
    %180 = vector.multi_reduction <maximumf>, %179, %cst_75 [0] : vector<13x32xf32> to vector<32xf32>
    %181 = vector.shape_cast %180 : vector<32xf32> to vector<1x32xf32>
    %182 = vector.extract_strided_slice %116 {offsets = [64, 0], sizes = [13, 32], strides = [1, 1]} : vector<128x32xf32> to vector<13x32xf32>
    %183 = vector.extract_strided_slice %119 {offsets = [65, 0], sizes = [13, 32], strides = [1, 1]} : vector<128x32xf32> to vector<13x32xf32>
    %184 = arith.addf %182, %183 : vector<13x32xf32>
    %185 = vector.extract_strided_slice %122 {offsets = [66, 0], sizes = [13, 32], strides = [1, 1]} : vector<128x32xf32> to vector<13x32xf32>
    %186 = arith.addf %184, %185 : vector<13x32xf32>
    %187 = vector.extract_strided_slice %125 {offsets = [67, 0], sizes = [13, 32], strides = [1, 1]} : vector<128x32xf32> to vector<13x32xf32>
    %188 = arith.addf %186, %187 : vector<13x32xf32>
    %c0_76 = arith.constant 0 : index
    %c0_77 = arith.constant 0 : index
    %189 = vector.load %arg8[%c0_76, %c0_77] : memref<1x32xf32, #tpu.memory_space<vmem>>, vector<1x32xf32>
    %190 = vector.broadcast %189 : vector<1x32xf32> to vector<13x32xf32>
    %191 = arith.addf %188, %190 : vector<13x32xf32>
    %cst_78 = arith.constant 0.000000e+00 : f32
    %192 = vector.broadcast %cst_78 : f32 to vector<13x32xf32>
    %193 = arith.maximumf %191, %192 : vector<13x32xf32>
    %cst_79 = arith.constant dense<0xFF800000> : vector<32xf32>
    %194 = vector.multi_reduction <maximumf>, %193, %cst_79 [0] : vector<13x32xf32> to vector<32xf32>
    %195 = vector.shape_cast %194 : vector<32xf32> to vector<1x32xf32>
    %196 = vector.extract_strided_slice %116 {offsets = [80, 0], sizes = [13, 32], strides = [1, 1]} : vector<128x32xf32> to vector<13x32xf32>
    %197 = vector.extract_strided_slice %119 {offsets = [81, 0], sizes = [13, 32], strides = [1, 1]} : vector<128x32xf32> to vector<13x32xf32>
    %198 = arith.addf %196, %197 : vector<13x32xf32>
    %199 = vector.extract_strided_slice %122 {offsets = [82, 0], sizes = [13, 32], strides = [1, 1]} : vector<128x32xf32> to vector<13x32xf32>
    %200 = arith.addf %198, %199 : vector<13x32xf32>
    %201 = vector.extract_strided_slice %125 {offsets = [83, 0], sizes = [13, 32], strides = [1, 1]} : vector<128x32xf32> to vector<13x32xf32>
    %202 = arith.addf %200, %201 : vector<13x32xf32>
    %c0_80 = arith.constant 0 : index
    %c0_81 = arith.constant 0 : index
    %203 = vector.load %arg8[%c0_80, %c0_81] : memref<1x32xf32, #tpu.memory_space<vmem>>, vector<1x32xf32>
    %204 = vector.broadcast %203 : vector<1x32xf32> to vector<13x32xf32>
    %205 = arith.addf %202, %204 : vector<13x32xf32>
    %cst_82 = arith.constant 0.000000e+00 : f32
    %206 = vector.broadcast %cst_82 : f32 to vector<13x32xf32>
    %207 = arith.maximumf %205, %206 : vector<13x32xf32>
    %cst_83 = arith.constant dense<0xFF800000> : vector<32xf32>
    %208 = vector.multi_reduction <maximumf>, %207, %cst_83 [0] : vector<13x32xf32> to vector<32xf32>
    %209 = vector.shape_cast %208 : vector<32xf32> to vector<1x32xf32>
    %210 = vector.extract_strided_slice %116 {offsets = [96, 0], sizes = [13, 32], strides = [1, 1]} : vector<128x32xf32> to vector<13x32xf32>
    %211 = vector.extract_strided_slice %119 {offsets = [97, 0], sizes = [13, 32], strides = [1, 1]} : vector<128x32xf32> to vector<13x32xf32>
    %212 = arith.addf %210, %211 : vector<13x32xf32>
    %213 = vector.extract_strided_slice %122 {offsets = [98, 0], sizes = [13, 32], strides = [1, 1]} : vector<128x32xf32> to vector<13x32xf32>
    %214 = arith.addf %212, %213 : vector<13x32xf32>
    %215 = vector.extract_strided_slice %125 {offsets = [99, 0], sizes = [13, 32], strides = [1, 1]} : vector<128x32xf32> to vector<13x32xf32>
    %216 = arith.addf %214, %215 : vector<13x32xf32>
    %c0_84 = arith.constant 0 : index
    %c0_85 = arith.constant 0 : index
    %217 = vector.load %arg8[%c0_84, %c0_85] : memref<1x32xf32, #tpu.memory_space<vmem>>, vector<1x32xf32>
    %218 = vector.broadcast %217 : vector<1x32xf32> to vector<13x32xf32>
    %219 = arith.addf %216, %218 : vector<13x32xf32>
    %cst_86 = arith.constant 0.000000e+00 : f32
    %220 = vector.broadcast %cst_86 : f32 to vector<13x32xf32>
    %221 = arith.maximumf %219, %220 : vector<13x32xf32>
    %cst_87 = arith.constant dense<0xFF800000> : vector<32xf32>
    %222 = vector.multi_reduction <maximumf>, %221, %cst_87 [0] : vector<13x32xf32> to vector<32xf32>
    %223 = vector.shape_cast %222 : vector<32xf32> to vector<1x32xf32>
    %224 = vector.extract_strided_slice %116 {offsets = [112, 0], sizes = [13, 32], strides = [1, 1]} : vector<128x32xf32> to vector<13x32xf32>
    %225 = vector.extract_strided_slice %119 {offsets = [113, 0], sizes = [13, 32], strides = [1, 1]} : vector<128x32xf32> to vector<13x32xf32>
    %226 = arith.addf %224, %225 : vector<13x32xf32>
    %227 = vector.extract_strided_slice %122 {offsets = [114, 0], sizes = [13, 32], strides = [1, 1]} : vector<128x32xf32> to vector<13x32xf32>
    %228 = arith.addf %226, %227 : vector<13x32xf32>
    %229 = vector.extract_strided_slice %125 {offsets = [115, 0], sizes = [13, 32], strides = [1, 1]} : vector<128x32xf32> to vector<13x32xf32>
    %230 = arith.addf %228, %229 : vector<13x32xf32>
    %c0_88 = arith.constant 0 : index
    %c0_89 = arith.constant 0 : index
    %231 = vector.load %arg8[%c0_88, %c0_89] : memref<1x32xf32, #tpu.memory_space<vmem>>, vector<1x32xf32>
    %232 = vector.broadcast %231 : vector<1x32xf32> to vector<13x32xf32>
    %233 = arith.addf %230, %232 : vector<13x32xf32>
    %cst_90 = arith.constant 0.000000e+00 : f32
    %234 = vector.broadcast %cst_90 : f32 to vector<13x32xf32>
    %235 = arith.maximumf %233, %234 : vector<13x32xf32>
    %cst_91 = arith.constant dense<0xFF800000> : vector<32xf32>
    %236 = vector.multi_reduction <maximumf>, %235, %cst_91 [0] : vector<13x32xf32> to vector<32xf32>
    %237 = vector.shape_cast %236 : vector<32xf32> to vector<1x32xf32>
    %238 = tpu.concatenate %139, %153, %167, %181, %195, %209, %223, %237 in 0 : vector<1x32xf32>, vector<1x32xf32>, vector<1x32xf32>, vector<1x32xf32>, vector<1x32xf32>, vector<1x32xf32>, vector<1x32xf32>, vector<1x32xf32> -> vector<8x32xf32>
    %c0_92 = arith.constant 0 : index
    %c0_93 = arith.constant 0 : index
    %c0_94 = arith.constant 0 : index
    %239 = vector.load %arg6[%c0_92, %c0_93, %c0_94] : memref<5x32x32xf32, #tpu.memory_space<vmem>>, vector<1x32x32xf32>
    %240 = vector.shape_cast %239 : vector<1x32x32xf32> to vector<32x32xf32>
    %cst_95 = arith.constant dense<0.000000e+00> : vector<128x32xf32>
    %241 = tpu.matmul %7, %240, %cst_95 {dimension_numbers = #tpu.dot_dimension_numbers<[1], [0], [0], [1], [0, 0, 1, 1], [], []>} : vector<128x32xf32>, vector<32x32xf32>, vector<128x32xf32> -> vector<128x32xf32>
    %c1_96 = arith.constant 1 : index
    %c0_97 = arith.constant 0 : index
    %c0_98 = arith.constant 0 : index
    %242 = vector.load %arg6[%c1_96, %c0_97, %c0_98] : memref<5x32x32xf32, #tpu.memory_space<vmem>>, vector<1x32x32xf32>
    %243 = vector.shape_cast %242 : vector<1x32x32xf32> to vector<32x32xf32>
    %cst_99 = arith.constant dense<0.000000e+00> : vector<128x32xf32>
    %244 = tpu.matmul %7, %243, %cst_99 {dimension_numbers = #tpu.dot_dimension_numbers<[1], [0], [0], [1], [0, 0, 1, 1], [], []>} : vector<128x32xf32>, vector<32x32xf32>, vector<128x32xf32> -> vector<128x32xf32>
    %c2_100 = arith.constant 2 : index
    %c0_101 = arith.constant 0 : index
    %c0_102 = arith.constant 0 : index
    %245 = vector.load %arg6[%c2_100, %c0_101, %c0_102] : memref<5x32x32xf32, #tpu.memory_space<vmem>>, vector<1x32x32xf32>
    %246 = vector.shape_cast %245 : vector<1x32x32xf32> to vector<32x32xf32>
    %cst_103 = arith.constant dense<0.000000e+00> : vector<128x32xf32>
    %247 = tpu.matmul %7, %246, %cst_103 {dimension_numbers = #tpu.dot_dimension_numbers<[1], [0], [0], [1], [0, 0, 1, 1], [], []>} : vector<128x32xf32>, vector<32x32xf32>, vector<128x32xf32> -> vector<128x32xf32>
    %c3_104 = arith.constant 3 : index
    %c0_105 = arith.constant 0 : index
    %c0_106 = arith.constant 0 : index
    %248 = vector.load %arg6[%c3_104, %c0_105, %c0_106] : memref<5x32x32xf32, #tpu.memory_space<vmem>>, vector<1x32x32xf32>
    %249 = vector.shape_cast %248 : vector<1x32x32xf32> to vector<32x32xf32>
    %cst_107 = arith.constant dense<0.000000e+00> : vector<128x32xf32>
    %250 = tpu.matmul %7, %249, %cst_107 {dimension_numbers = #tpu.dot_dimension_numbers<[1], [0], [0], [1], [0, 0, 1, 1], [], []>} : vector<128x32xf32>, vector<32x32xf32>, vector<128x32xf32> -> vector<128x32xf32>
    %c4 = arith.constant 4 : index
    %c0_108 = arith.constant 0 : index
    %c0_109 = arith.constant 0 : index
    %251 = vector.load %arg6[%c4, %c0_108, %c0_109] : memref<5x32x32xf32, #tpu.memory_space<vmem>>, vector<1x32x32xf32>
    %252 = vector.shape_cast %251 : vector<1x32x32xf32> to vector<32x32xf32>
    %cst_110 = arith.constant dense<0.000000e+00> : vector<128x32xf32>
    %253 = tpu.matmul %7, %252, %cst_110 {dimension_numbers = #tpu.dot_dimension_numbers<[1], [0], [0], [1], [0, 0, 1, 1], [], []>} : vector<128x32xf32>, vector<32x32xf32>, vector<128x32xf32> -> vector<128x32xf32>
    %254 = vector.extract_strided_slice %241 {offsets = [0, 0], sizes = [12, 32], strides = [1, 1]} : vector<128x32xf32> to vector<12x32xf32>
    %255 = vector.extract_strided_slice %244 {offsets = [1, 0], sizes = [12, 32], strides = [1, 1]} : vector<128x32xf32> to vector<12x32xf32>
    %256 = arith.addf %254, %255 : vector<12x32xf32>
    %257 = vector.extract_strided_slice %247 {offsets = [2, 0], sizes = [12, 32], strides = [1, 1]} : vector<128x32xf32> to vector<12x32xf32>
    %258 = arith.addf %256, %257 : vector<12x32xf32>
    %259 = vector.extract_strided_slice %250 {offsets = [3, 0], sizes = [12, 32], strides = [1, 1]} : vector<128x32xf32> to vector<12x32xf32>
    %260 = arith.addf %258, %259 : vector<12x32xf32>
    %261 = vector.extract_strided_slice %253 {offsets = [4, 0], sizes = [12, 32], strides = [1, 1]} : vector<128x32xf32> to vector<12x32xf32>
    %262 = arith.addf %260, %261 : vector<12x32xf32>
    %c0_111 = arith.constant 0 : index
    %c0_112 = arith.constant 0 : index
    %263 = vector.load %arg9[%c0_111, %c0_112] : memref<1x32xf32, #tpu.memory_space<vmem>>, vector<1x32xf32>
    %264 = vector.broadcast %263 : vector<1x32xf32> to vector<12x32xf32>
    %265 = arith.addf %262, %264 : vector<12x32xf32>
    %cst_113 = arith.constant 0.000000e+00 : f32
    %266 = vector.broadcast %cst_113 : f32 to vector<12x32xf32>
    %267 = arith.maximumf %265, %266 : vector<12x32xf32>
    %cst_114 = arith.constant dense<0xFF800000> : vector<32xf32>
    %268 = vector.multi_reduction <maximumf>, %267, %cst_114 [0] : vector<12x32xf32> to vector<32xf32>
    %269 = vector.shape_cast %268 : vector<32xf32> to vector<1x32xf32>
    %270 = vector.extract_strided_slice %241 {offsets = [16, 0], sizes = [12, 32], strides = [1, 1]} : vector<128x32xf32> to vector<12x32xf32>
    %271 = vector.extract_strided_slice %244 {offsets = [17, 0], sizes = [12, 32], strides = [1, 1]} : vector<128x32xf32> to vector<12x32xf32>
    %272 = arith.addf %270, %271 : vector<12x32xf32>
    %273 = vector.extract_strided_slice %247 {offsets = [18, 0], sizes = [12, 32], strides = [1, 1]} : vector<128x32xf32> to vector<12x32xf32>
    %274 = arith.addf %272, %273 : vector<12x32xf32>
    %275 = vector.extract_strided_slice %250 {offsets = [19, 0], sizes = [12, 32], strides = [1, 1]} : vector<128x32xf32> to vector<12x32xf32>
    %276 = arith.addf %274, %275 : vector<12x32xf32>
    %277 = vector.extract_strided_slice %253 {offsets = [20, 0], sizes = [12, 32], strides = [1, 1]} : vector<128x32xf32> to vector<12x32xf32>
    %278 = arith.addf %276, %277 : vector<12x32xf32>
    %c0_115 = arith.constant 0 : index
    %c0_116 = arith.constant 0 : index
    %279 = vector.load %arg9[%c0_115, %c0_116] : memref<1x32xf32, #tpu.memory_space<vmem>>, vector<1x32xf32>
    %280 = vector.broadcast %279 : vector<1x32xf32> to vector<12x32xf32>
    %281 = arith.addf %278, %280 : vector<12x32xf32>
    %cst_117 = arith.constant 0.000000e+00 : f32
    %282 = vector.broadcast %cst_117 : f32 to vector<12x32xf32>
    %283 = arith.maximumf %281, %282 : vector<12x32xf32>
    %cst_118 = arith.constant dense<0xFF800000> : vector<32xf32>
    %284 = vector.multi_reduction <maximumf>, %283, %cst_118 [0] : vector<12x32xf32> to vector<32xf32>
    %285 = vector.shape_cast %284 : vector<32xf32> to vector<1x32xf32>
    %286 = vector.extract_strided_slice %241 {offsets = [32, 0], sizes = [12, 32], strides = [1, 1]} : vector<128x32xf32> to vector<12x32xf32>
    %287 = vector.extract_strided_slice %244 {offsets = [33, 0], sizes = [12, 32], strides = [1, 1]} : vector<128x32xf32> to vector<12x32xf32>
    %288 = arith.addf %286, %287 : vector<12x32xf32>
    %289 = vector.extract_strided_slice %247 {offsets = [34, 0], sizes = [12, 32], strides = [1, 1]} : vector<128x32xf32> to vector<12x32xf32>
    %290 = arith.addf %288, %289 : vector<12x32xf32>
    %291 = vector.extract_strided_slice %250 {offsets = [35, 0], sizes = [12, 32], strides = [1, 1]} : vector<128x32xf32> to vector<12x32xf32>
    %292 = arith.addf %290, %291 : vector<12x32xf32>
    %293 = vector.extract_strided_slice %253 {offsets = [36, 0], sizes = [12, 32], strides = [1, 1]} : vector<128x32xf32> to vector<12x32xf32>
    %294 = arith.addf %292, %293 : vector<12x32xf32>
    %c0_119 = arith.constant 0 : index
    %c0_120 = arith.constant 0 : index
    %295 = vector.load %arg9[%c0_119, %c0_120] : memref<1x32xf32, #tpu.memory_space<vmem>>, vector<1x32xf32>
    %296 = vector.broadcast %295 : vector<1x32xf32> to vector<12x32xf32>
    %297 = arith.addf %294, %296 : vector<12x32xf32>
    %cst_121 = arith.constant 0.000000e+00 : f32
    %298 = vector.broadcast %cst_121 : f32 to vector<12x32xf32>
    %299 = arith.maximumf %297, %298 : vector<12x32xf32>
    %cst_122 = arith.constant dense<0xFF800000> : vector<32xf32>
    %300 = vector.multi_reduction <maximumf>, %299, %cst_122 [0] : vector<12x32xf32> to vector<32xf32>
    %301 = vector.shape_cast %300 : vector<32xf32> to vector<1x32xf32>
    %302 = vector.extract_strided_slice %241 {offsets = [48, 0], sizes = [12, 32], strides = [1, 1]} : vector<128x32xf32> to vector<12x32xf32>
    %303 = vector.extract_strided_slice %244 {offsets = [49, 0], sizes = [12, 32], strides = [1, 1]} : vector<128x32xf32> to vector<12x32xf32>
    %304 = arith.addf %302, %303 : vector<12x32xf32>
    %305 = vector.extract_strided_slice %247 {offsets = [50, 0], sizes = [12, 32], strides = [1, 1]} : vector<128x32xf32> to vector<12x32xf32>
    %306 = arith.addf %304, %305 : vector<12x32xf32>
    %307 = vector.extract_strided_slice %250 {offsets = [51, 0], sizes = [12, 32], strides = [1, 1]} : vector<128x32xf32> to vector<12x32xf32>
    %308 = arith.addf %306, %307 : vector<12x32xf32>
    %309 = vector.extract_strided_slice %253 {offsets = [52, 0], sizes = [12, 32], strides = [1, 1]} : vector<128x32xf32> to vector<12x32xf32>
    %310 = arith.addf %308, %309 : vector<12x32xf32>
    %c0_123 = arith.constant 0 : index
    %c0_124 = arith.constant 0 : index
    %311 = vector.load %arg9[%c0_123, %c0_124] : memref<1x32xf32, #tpu.memory_space<vmem>>, vector<1x32xf32>
    %312 = vector.broadcast %311 : vector<1x32xf32> to vector<12x32xf32>
    %313 = arith.addf %310, %312 : vector<12x32xf32>
    %cst_125 = arith.constant 0.000000e+00 : f32
    %314 = vector.broadcast %cst_125 : f32 to vector<12x32xf32>
    %315 = arith.maximumf %313, %314 : vector<12x32xf32>
    %cst_126 = arith.constant dense<0xFF800000> : vector<32xf32>
    %316 = vector.multi_reduction <maximumf>, %315, %cst_126 [0] : vector<12x32xf32> to vector<32xf32>
    %317 = vector.shape_cast %316 : vector<32xf32> to vector<1x32xf32>
    %318 = vector.extract_strided_slice %241 {offsets = [64, 0], sizes = [12, 32], strides = [1, 1]} : vector<128x32xf32> to vector<12x32xf32>
    %319 = vector.extract_strided_slice %244 {offsets = [65, 0], sizes = [12, 32], strides = [1, 1]} : vector<128x32xf32> to vector<12x32xf32>
    %320 = arith.addf %318, %319 : vector<12x32xf32>
    %321 = vector.extract_strided_slice %247 {offsets = [66, 0], sizes = [12, 32], strides = [1, 1]} : vector<128x32xf32> to vector<12x32xf32>
    %322 = arith.addf %320, %321 : vector<12x32xf32>
    %323 = vector.extract_strided_slice %250 {offsets = [67, 0], sizes = [12, 32], strides = [1, 1]} : vector<128x32xf32> to vector<12x32xf32>
    %324 = arith.addf %322, %323 : vector<12x32xf32>
    %325 = vector.extract_strided_slice %253 {offsets = [68, 0], sizes = [12, 32], strides = [1, 1]} : vector<128x32xf32> to vector<12x32xf32>
    %326 = arith.addf %324, %325 : vector<12x32xf32>
    %c0_127 = arith.constant 0 : index
    %c0_128 = arith.constant 0 : index
    %327 = vector.load %arg9[%c0_127, %c0_128] : memref<1x32xf32, #tpu.memory_space<vmem>>, vector<1x32xf32>
    %328 = vector.broadcast %327 : vector<1x32xf32> to vector<12x32xf32>
    %329 = arith.addf %326, %328 : vector<12x32xf32>
    %cst_129 = arith.constant 0.000000e+00 : f32
    %330 = vector.broadcast %cst_129 : f32 to vector<12x32xf32>
    %331 = arith.maximumf %329, %330 : vector<12x32xf32>
    %cst_130 = arith.constant dense<0xFF800000> : vector<32xf32>
    %332 = vector.multi_reduction <maximumf>, %331, %cst_130 [0] : vector<12x32xf32> to vector<32xf32>
    %333 = vector.shape_cast %332 : vector<32xf32> to vector<1x32xf32>
    %334 = vector.extract_strided_slice %241 {offsets = [80, 0], sizes = [12, 32], strides = [1, 1]} : vector<128x32xf32> to vector<12x32xf32>
    %335 = vector.extract_strided_slice %244 {offsets = [81, 0], sizes = [12, 32], strides = [1, 1]} : vector<128x32xf32> to vector<12x32xf32>
    %336 = arith.addf %334, %335 : vector<12x32xf32>
    %337 = vector.extract_strided_slice %247 {offsets = [82, 0], sizes = [12, 32], strides = [1, 1]} : vector<128x32xf32> to vector<12x32xf32>
    %338 = arith.addf %336, %337 : vector<12x32xf32>
    %339 = vector.extract_strided_slice %250 {offsets = [83, 0], sizes = [12, 32], strides = [1, 1]} : vector<128x32xf32> to vector<12x32xf32>
    %340 = arith.addf %338, %339 : vector<12x32xf32>
    %341 = vector.extract_strided_slice %253 {offsets = [84, 0], sizes = [12, 32], strides = [1, 1]} : vector<128x32xf32> to vector<12x32xf32>
    %342 = arith.addf %340, %341 : vector<12x32xf32>
    %c0_131 = arith.constant 0 : index
    %c0_132 = arith.constant 0 : index
    %343 = vector.load %arg9[%c0_131, %c0_132] : memref<1x32xf32, #tpu.memory_space<vmem>>, vector<1x32xf32>
    %344 = vector.broadcast %343 : vector<1x32xf32> to vector<12x32xf32>
    %345 = arith.addf %342, %344 : vector<12x32xf32>
    %cst_133 = arith.constant 0.000000e+00 : f32
    %346 = vector.broadcast %cst_133 : f32 to vector<12x32xf32>
    %347 = arith.maximumf %345, %346 : vector<12x32xf32>
    %cst_134 = arith.constant dense<0xFF800000> : vector<32xf32>
    %348 = vector.multi_reduction <maximumf>, %347, %cst_134 [0] : vector<12x32xf32> to vector<32xf32>
    %349 = vector.shape_cast %348 : vector<32xf32> to vector<1x32xf32>
    %350 = vector.extract_strided_slice %241 {offsets = [96, 0], sizes = [12, 32], strides = [1, 1]} : vector<128x32xf32> to vector<12x32xf32>
    %351 = vector.extract_strided_slice %244 {offsets = [97, 0], sizes = [12, 32], strides = [1, 1]} : vector<128x32xf32> to vector<12x32xf32>
    %352 = arith.addf %350, %351 : vector<12x32xf32>
    %353 = vector.extract_strided_slice %247 {offsets = [98, 0], sizes = [12, 32], strides = [1, 1]} : vector<128x32xf32> to vector<12x32xf32>
    %354 = arith.addf %352, %353 : vector<12x32xf32>
    %355 = vector.extract_strided_slice %250 {offsets = [99, 0], sizes = [12, 32], strides = [1, 1]} : vector<128x32xf32> to vector<12x32xf32>
    %356 = arith.addf %354, %355 : vector<12x32xf32>
    %357 = vector.extract_strided_slice %253 {offsets = [100, 0], sizes = [12, 32], strides = [1, 1]} : vector<128x32xf32> to vector<12x32xf32>
    %358 = arith.addf %356, %357 : vector<12x32xf32>
    %c0_135 = arith.constant 0 : index
    %c0_136 = arith.constant 0 : index
    %359 = vector.load %arg9[%c0_135, %c0_136] : memref<1x32xf32, #tpu.memory_space<vmem>>, vector<1x32xf32>
    %360 = vector.broadcast %359 : vector<1x32xf32> to vector<12x32xf32>
    %361 = arith.addf %358, %360 : vector<12x32xf32>
    %cst_137 = arith.constant 0.000000e+00 : f32
    %362 = vector.broadcast %cst_137 : f32 to vector<12x32xf32>
    %363 = arith.maximumf %361, %362 : vector<12x32xf32>
    %cst_138 = arith.constant dense<0xFF800000> : vector<32xf32>
    %364 = vector.multi_reduction <maximumf>, %363, %cst_138 [0] : vector<12x32xf32> to vector<32xf32>
    %365 = vector.shape_cast %364 : vector<32xf32> to vector<1x32xf32>
    %366 = vector.extract_strided_slice %241 {offsets = [112, 0], sizes = [12, 32], strides = [1, 1]} : vector<128x32xf32> to vector<12x32xf32>
    %367 = vector.extract_strided_slice %244 {offsets = [113, 0], sizes = [12, 32], strides = [1, 1]} : vector<128x32xf32> to vector<12x32xf32>
    %368 = arith.addf %366, %367 : vector<12x32xf32>
    %369 = vector.extract_strided_slice %247 {offsets = [114, 0], sizes = [12, 32], strides = [1, 1]} : vector<128x32xf32> to vector<12x32xf32>
    %370 = arith.addf %368, %369 : vector<12x32xf32>
    %371 = vector.extract_strided_slice %250 {offsets = [115, 0], sizes = [12, 32], strides = [1, 1]} : vector<128x32xf32> to vector<12x32xf32>
    %372 = arith.addf %370, %371 : vector<12x32xf32>
    %373 = vector.extract_strided_slice %253 {offsets = [116, 0], sizes = [12, 32], strides = [1, 1]} : vector<128x32xf32> to vector<12x32xf32>
    %374 = arith.addf %372, %373 : vector<12x32xf32>
    %c0_139 = arith.constant 0 : index
    %c0_140 = arith.constant 0 : index
    %375 = vector.load %arg9[%c0_139, %c0_140] : memref<1x32xf32, #tpu.memory_space<vmem>>, vector<1x32xf32>
    %376 = vector.broadcast %375 : vector<1x32xf32> to vector<12x32xf32>
    %377 = arith.addf %374, %376 : vector<12x32xf32>
    %cst_141 = arith.constant 0.000000e+00 : f32
    %378 = vector.broadcast %cst_141 : f32 to vector<12x32xf32>
    %379 = arith.maximumf %377, %378 : vector<12x32xf32>
    %cst_142 = arith.constant dense<0xFF800000> : vector<32xf32>
    %380 = vector.multi_reduction <maximumf>, %379, %cst_142 [0] : vector<12x32xf32> to vector<32xf32>
    %381 = vector.shape_cast %380 : vector<32xf32> to vector<1x32xf32>
    %382 = tpu.concatenate %269, %285, %301, %317, %333, %349, %365, %381 in 0 : vector<1x32xf32>, vector<1x32xf32>, vector<1x32xf32>, vector<1x32xf32>, vector<1x32xf32>, vector<1x32xf32>, vector<1x32xf32>, vector<1x32xf32> -> vector<8x32xf32>
    %383 = tpu.concatenate %113, %238, %382 in 1 : vector<8x32xf32>, vector<8x32xf32>, vector<8x32xf32> -> vector<8x96xf32>
    %c0_143 = arith.constant 0 : index
    %c0_144 = arith.constant 0 : index
    %384 = vector.load %arg10[%c0_143, %c0_144] : memref<96x128xf32, #tpu.memory_space<vmem>>, vector<96x128xf32>
    %cst_145 = arith.constant dense<0.000000e+00> : vector<8x128xf32>
    %385 = tpu.matmul %383, %384, %cst_145 {dimension_numbers = #tpu.dot_dimension_numbers<[1], [0], [0], [1], [0, 0, 1, 1], [], []>} : vector<8x96xf32>, vector<96x128xf32>, vector<8x128xf32> -> vector<8x128xf32>
    %c0_146 = arith.constant 0 : index
    %c0_147 = arith.constant 0 : index
    %386 = vector.load %arg12[%c0_146, %c0_147] : memref<1x128xf32, #tpu.memory_space<vmem>>, vector<1x128xf32>
    %387 = vector.broadcast %386 : vector<1x128xf32> to vector<8x128xf32>
    %388 = arith.addf %385, %387 : vector<8x128xf32>
    %c0_148 = arith.constant 0 : index
    %c0_149 = arith.constant 0 : index
    %389 = vector.load %arg13[%c0_148, %c0_149] : memref<96x128xf32, #tpu.memory_space<vmem>>, vector<96x128xf32>
    %cst_150 = arith.constant dense<0.000000e+00> : vector<8x128xf32>
    %390 = tpu.matmul %383, %389, %cst_150 {dimension_numbers = #tpu.dot_dimension_numbers<[1], [0], [0], [1], [0, 0, 1, 1], [], []>} : vector<8x96xf32>, vector<96x128xf32>, vector<8x128xf32> -> vector<8x128xf32>
    %c0_151 = arith.constant 0 : index
    %c0_152 = arith.constant 0 : index
    %391 = vector.load %arg15[%c0_151, %c0_152] : memref<1x128xf32, #tpu.memory_space<vmem>>, vector<1x128xf32>
    %392 = vector.broadcast %391 : vector<1x128xf32> to vector<8x128xf32>
    %393 = arith.addf %390, %392 : vector<8x128xf32>
    %c0_153 = arith.constant 0 : index
    %c0_154 = arith.constant 0 : index
    %394 = vector.load %arg11[%c0_153, %c0_154] : memref<32x128xf32, #tpu.memory_space<vmem>>, vector<32x128xf32>
    %c0_155 = arith.constant 0 : index
    %c0_156 = arith.constant 0 : index
    %395 = vector.load %arg14[%c0_155, %c0_156] : memref<32x128xf32, #tpu.memory_space<vmem>>, vector<32x128xf32>
    %c0_157 = arith.constant 0 : index
    %c0_158 = arith.constant 0 : index
    %396 = vector.load %arg16[%c0_157, %c0_158] : memref<2x32xf32, #tpu.memory_space<vmem>>, vector<1x32xf32>
    %c0_159 = arith.constant 0 : index
    %c0_160 = arith.constant 0 : index
    %397 = vector.load %arg17[%c0_159, %c0_160] : memref<2x32xf32, #tpu.memory_space<vmem>>, vector<1x32xf32>
    %c1_161 = arith.constant 1 : index
    %c0_162 = arith.constant 0 : index
    %398 = vector.load %arg16[%c1_161, %c0_162] : memref<2x32xf32, #tpu.memory_space<vmem>>, vector<1x32xf32>
    %c1_163 = arith.constant 1 : index
    %c0_164 = arith.constant 0 : index
    %399 = vector.load %arg17[%c1_163, %c0_164] : memref<2x32xf32, #tpu.memory_space<vmem>>, vector<1x32xf32>
    %400 = vector.extract_strided_slice %388 {offsets = [0, 0], sizes = [1, 128], strides = [1, 1]} : vector<8x128xf32> to vector<1x128xf32>
    %cst_165 = arith.constant dense<0.000000e+00> : vector<1x128xf32>
    %401 = tpu.matmul %396, %394, %cst_165 {dimension_numbers = #tpu.dot_dimension_numbers<[1], [0], [0], [1], [0, 0, 1, 1], [], []>} : vector<1x32xf32>, vector<32x128xf32>, vector<1x128xf32> -> vector<1x128xf32>
    %402 = arith.addf %400, %401 : vector<1x128xf32>
    %403 = vector.extract_strided_slice %402 {offsets = [0, 0], sizes = [1, 96], strides = [1, 1]} : vector<1x128xf32> to vector<1x96xf32>
    %404 = arith.negf %403 : vector<1x96xf32>
    %405 = math.exp %404 : vector<1x96xf32>
    %cst_166 = arith.constant 1.000000e+00 : f32
    %406 = vector.broadcast %cst_166 : f32 to vector<1x96xf32>
    %407 = arith.addf %406, %405 : vector<1x96xf32>
    %408 = arith.divf %406, %407 : vector<1x96xf32>
    %409 = vector.extract_strided_slice %408 {offsets = [0, 0], sizes = [1, 32], strides = [1, 1]} : vector<1x96xf32> to vector<1x32xf32>
    %410 = vector.extract_strided_slice %408 {offsets = [0, 32], sizes = [1, 32], strides = [1, 1]} : vector<1x96xf32> to vector<1x32xf32>
    %411 = vector.extract_strided_slice %408 {offsets = [0, 64], sizes = [1, 32], strides = [1, 1]} : vector<1x96xf32> to vector<1x32xf32>
    %412 = vector.extract_strided_slice %402 {offsets = [0, 96], sizes = [1, 32], strides = [1, 1]} : vector<1x128xf32> to vector<1x32xf32>
    %413 = math.tanh %412 : vector<1x32xf32>
    %414 = arith.mulf %410, %397 : vector<1x32xf32>
    %415 = arith.mulf %409, %413 : vector<1x32xf32>
    %416 = arith.addf %414, %415 : vector<1x32xf32>
    %417 = math.tanh %416 : vector<1x32xf32>
    %418 = arith.mulf %411, %417 : vector<1x32xf32>
    %419 = vector.extract_strided_slice %393 {offsets = [7, 0], sizes = [1, 128], strides = [1, 1]} : vector<8x128xf32> to vector<1x128xf32>
    %cst_167 = arith.constant dense<0.000000e+00> : vector<1x128xf32>
    %420 = tpu.matmul %398, %395, %cst_167 {dimension_numbers = #tpu.dot_dimension_numbers<[1], [0], [0], [1], [0, 0, 1, 1], [], []>} : vector<1x32xf32>, vector<32x128xf32>, vector<1x128xf32> -> vector<1x128xf32>
    %421 = arith.addf %419, %420 : vector<1x128xf32>
    %422 = vector.extract_strided_slice %421 {offsets = [0, 0], sizes = [1, 96], strides = [1, 1]} : vector<1x128xf32> to vector<1x96xf32>
    %423 = arith.negf %422 : vector<1x96xf32>
    %424 = math.exp %423 : vector<1x96xf32>
    %cst_168 = arith.constant 1.000000e+00 : f32
    %425 = vector.broadcast %cst_168 : f32 to vector<1x96xf32>
    %426 = arith.addf %425, %424 : vector<1x96xf32>
    %427 = arith.divf %425, %426 : vector<1x96xf32>
    %428 = vector.extract_strided_slice %427 {offsets = [0, 0], sizes = [1, 32], strides = [1, 1]} : vector<1x96xf32> to vector<1x32xf32>
    %429 = vector.extract_strided_slice %427 {offsets = [0, 32], sizes = [1, 32], strides = [1, 1]} : vector<1x96xf32> to vector<1x32xf32>
    %430 = vector.extract_strided_slice %427 {offsets = [0, 64], sizes = [1, 32], strides = [1, 1]} : vector<1x96xf32> to vector<1x32xf32>
    %431 = vector.extract_strided_slice %421 {offsets = [0, 96], sizes = [1, 32], strides = [1, 1]} : vector<1x128xf32> to vector<1x32xf32>
    %432 = math.tanh %431 : vector<1x32xf32>
    %433 = arith.mulf %429, %399 : vector<1x32xf32>
    %434 = arith.mulf %428, %432 : vector<1x32xf32>
    %435 = arith.addf %433, %434 : vector<1x32xf32>
    %436 = math.tanh %435 : vector<1x32xf32>
    %437 = arith.mulf %430, %436 : vector<1x32xf32>
    %438 = vector.extract_strided_slice %388 {offsets = [1, 0], sizes = [1, 128], strides = [1, 1]} : vector<8x128xf32> to vector<1x128xf32>
    %cst_169 = arith.constant dense<0.000000e+00> : vector<1x128xf32>
    %439 = tpu.matmul %418, %394, %cst_169 {dimension_numbers = #tpu.dot_dimension_numbers<[1], [0], [0], [1], [0, 0, 1, 1], [], []>} : vector<1x32xf32>, vector<32x128xf32>, vector<1x128xf32> -> vector<1x128xf32>
    %440 = arith.addf %438, %439 : vector<1x128xf32>
    %441 = vector.extract_strided_slice %440 {offsets = [0, 0], sizes = [1, 96], strides = [1, 1]} : vector<1x128xf32> to vector<1x96xf32>
    %442 = arith.negf %441 : vector<1x96xf32>
    %443 = math.exp %442 : vector<1x96xf32>
    %cst_170 = arith.constant 1.000000e+00 : f32
    %444 = vector.broadcast %cst_170 : f32 to vector<1x96xf32>
    %445 = arith.addf %444, %443 : vector<1x96xf32>
    %446 = arith.divf %444, %445 : vector<1x96xf32>
    %447 = vector.extract_strided_slice %446 {offsets = [0, 0], sizes = [1, 32], strides = [1, 1]} : vector<1x96xf32> to vector<1x32xf32>
    %448 = vector.extract_strided_slice %446 {offsets = [0, 32], sizes = [1, 32], strides = [1, 1]} : vector<1x96xf32> to vector<1x32xf32>
    %449 = vector.extract_strided_slice %446 {offsets = [0, 64], sizes = [1, 32], strides = [1, 1]} : vector<1x96xf32> to vector<1x32xf32>
    %450 = vector.extract_strided_slice %440 {offsets = [0, 96], sizes = [1, 32], strides = [1, 1]} : vector<1x128xf32> to vector<1x32xf32>
    %451 = math.tanh %450 : vector<1x32xf32>
    %452 = arith.mulf %448, %416 : vector<1x32xf32>
    %453 = arith.mulf %447, %451 : vector<1x32xf32>
    %454 = arith.addf %452, %453 : vector<1x32xf32>
    %455 = math.tanh %454 : vector<1x32xf32>
    %456 = arith.mulf %449, %455 : vector<1x32xf32>
    %457 = vector.extract_strided_slice %393 {offsets = [6, 0], sizes = [1, 128], strides = [1, 1]} : vector<8x128xf32> to vector<1x128xf32>
    %cst_171 = arith.constant dense<0.000000e+00> : vector<1x128xf32>
    %458 = tpu.matmul %437, %395, %cst_171 {dimension_numbers = #tpu.dot_dimension_numbers<[1], [0], [0], [1], [0, 0, 1, 1], [], []>} : vector<1x32xf32>, vector<32x128xf32>, vector<1x128xf32> -> vector<1x128xf32>
    %459 = arith.addf %457, %458 : vector<1x128xf32>
    %460 = vector.extract_strided_slice %459 {offsets = [0, 0], sizes = [1, 96], strides = [1, 1]} : vector<1x128xf32> to vector<1x96xf32>
    %461 = arith.negf %460 : vector<1x96xf32>
    %462 = math.exp %461 : vector<1x96xf32>
    %cst_172 = arith.constant 1.000000e+00 : f32
    %463 = vector.broadcast %cst_172 : f32 to vector<1x96xf32>
    %464 = arith.addf %463, %462 : vector<1x96xf32>
    %465 = arith.divf %463, %464 : vector<1x96xf32>
    %466 = vector.extract_strided_slice %465 {offsets = [0, 0], sizes = [1, 32], strides = [1, 1]} : vector<1x96xf32> to vector<1x32xf32>
    %467 = vector.extract_strided_slice %465 {offsets = [0, 32], sizes = [1, 32], strides = [1, 1]} : vector<1x96xf32> to vector<1x32xf32>
    %468 = vector.extract_strided_slice %465 {offsets = [0, 64], sizes = [1, 32], strides = [1, 1]} : vector<1x96xf32> to vector<1x32xf32>
    %469 = vector.extract_strided_slice %459 {offsets = [0, 96], sizes = [1, 32], strides = [1, 1]} : vector<1x128xf32> to vector<1x32xf32>
    %470 = math.tanh %469 : vector<1x32xf32>
    %471 = arith.mulf %467, %435 : vector<1x32xf32>
    %472 = arith.mulf %466, %470 : vector<1x32xf32>
    %473 = arith.addf %471, %472 : vector<1x32xf32>
    %474 = math.tanh %473 : vector<1x32xf32>
    %475 = arith.mulf %468, %474 : vector<1x32xf32>
    %476 = vector.extract_strided_slice %388 {offsets = [2, 0], sizes = [1, 128], strides = [1, 1]} : vector<8x128xf32> to vector<1x128xf32>
    %cst_173 = arith.constant dense<0.000000e+00> : vector<1x128xf32>
    %477 = tpu.matmul %456, %394, %cst_173 {dimension_numbers = #tpu.dot_dimension_numbers<[1], [0], [0], [1], [0, 0, 1, 1], [], []>} : vector<1x32xf32>, vector<32x128xf32>, vector<1x128xf32> -> vector<1x128xf32>
    %478 = arith.addf %476, %477 : vector<1x128xf32>
    %479 = vector.extract_strided_slice %478 {offsets = [0, 0], sizes = [1, 96], strides = [1, 1]} : vector<1x128xf32> to vector<1x96xf32>
    %480 = arith.negf %479 : vector<1x96xf32>
    %481 = math.exp %480 : vector<1x96xf32>
    %cst_174 = arith.constant 1.000000e+00 : f32
    %482 = vector.broadcast %cst_174 : f32 to vector<1x96xf32>
    %483 = arith.addf %482, %481 : vector<1x96xf32>
    %484 = arith.divf %482, %483 : vector<1x96xf32>
    %485 = vector.extract_strided_slice %484 {offsets = [0, 0], sizes = [1, 32], strides = [1, 1]} : vector<1x96xf32> to vector<1x32xf32>
    %486 = vector.extract_strided_slice %484 {offsets = [0, 32], sizes = [1, 32], strides = [1, 1]} : vector<1x96xf32> to vector<1x32xf32>
    %487 = vector.extract_strided_slice %484 {offsets = [0, 64], sizes = [1, 32], strides = [1, 1]} : vector<1x96xf32> to vector<1x32xf32>
    %488 = vector.extract_strided_slice %478 {offsets = [0, 96], sizes = [1, 32], strides = [1, 1]} : vector<1x128xf32> to vector<1x32xf32>
    %489 = math.tanh %488 : vector<1x32xf32>
    %490 = arith.mulf %486, %454 : vector<1x32xf32>
    %491 = arith.mulf %485, %489 : vector<1x32xf32>
    %492 = arith.addf %490, %491 : vector<1x32xf32>
    %493 = math.tanh %492 : vector<1x32xf32>
    %494 = arith.mulf %487, %493 : vector<1x32xf32>
    %495 = vector.extract_strided_slice %393 {offsets = [5, 0], sizes = [1, 128], strides = [1, 1]} : vector<8x128xf32> to vector<1x128xf32>
    %cst_175 = arith.constant dense<0.000000e+00> : vector<1x128xf32>
    %496 = tpu.matmul %475, %395, %cst_175 {dimension_numbers = #tpu.dot_dimension_numbers<[1], [0], [0], [1], [0, 0, 1, 1], [], []>} : vector<1x32xf32>, vector<32x128xf32>, vector<1x128xf32> -> vector<1x128xf32>
    %497 = arith.addf %495, %496 : vector<1x128xf32>
    %498 = vector.extract_strided_slice %497 {offsets = [0, 0], sizes = [1, 96], strides = [1, 1]} : vector<1x128xf32> to vector<1x96xf32>
    %499 = arith.negf %498 : vector<1x96xf32>
    %500 = math.exp %499 : vector<1x96xf32>
    %cst_176 = arith.constant 1.000000e+00 : f32
    %501 = vector.broadcast %cst_176 : f32 to vector<1x96xf32>
    %502 = arith.addf %501, %500 : vector<1x96xf32>
    %503 = arith.divf %501, %502 : vector<1x96xf32>
    %504 = vector.extract_strided_slice %503 {offsets = [0, 0], sizes = [1, 32], strides = [1, 1]} : vector<1x96xf32> to vector<1x32xf32>
    %505 = vector.extract_strided_slice %503 {offsets = [0, 32], sizes = [1, 32], strides = [1, 1]} : vector<1x96xf32> to vector<1x32xf32>
    %506 = vector.extract_strided_slice %503 {offsets = [0, 64], sizes = [1, 32], strides = [1, 1]} : vector<1x96xf32> to vector<1x32xf32>
    %507 = vector.extract_strided_slice %497 {offsets = [0, 96], sizes = [1, 32], strides = [1, 1]} : vector<1x128xf32> to vector<1x32xf32>
    %508 = math.tanh %507 : vector<1x32xf32>
    %509 = arith.mulf %505, %473 : vector<1x32xf32>
    %510 = arith.mulf %504, %508 : vector<1x32xf32>
    %511 = arith.addf %509, %510 : vector<1x32xf32>
    %512 = math.tanh %511 : vector<1x32xf32>
    %513 = arith.mulf %506, %512 : vector<1x32xf32>
    %514 = vector.extract_strided_slice %388 {offsets = [3, 0], sizes = [1, 128], strides = [1, 1]} : vector<8x128xf32> to vector<1x128xf32>
    %cst_177 = arith.constant dense<0.000000e+00> : vector<1x128xf32>
    %515 = tpu.matmul %494, %394, %cst_177 {dimension_numbers = #tpu.dot_dimension_numbers<[1], [0], [0], [1], [0, 0, 1, 1], [], []>} : vector<1x32xf32>, vector<32x128xf32>, vector<1x128xf32> -> vector<1x128xf32>
    %516 = arith.addf %514, %515 : vector<1x128xf32>
    %517 = vector.extract_strided_slice %516 {offsets = [0, 0], sizes = [1, 96], strides = [1, 1]} : vector<1x128xf32> to vector<1x96xf32>
    %518 = arith.negf %517 : vector<1x96xf32>
    %519 = math.exp %518 : vector<1x96xf32>
    %cst_178 = arith.constant 1.000000e+00 : f32
    %520 = vector.broadcast %cst_178 : f32 to vector<1x96xf32>
    %521 = arith.addf %520, %519 : vector<1x96xf32>
    %522 = arith.divf %520, %521 : vector<1x96xf32>
    %523 = vector.extract_strided_slice %522 {offsets = [0, 0], sizes = [1, 32], strides = [1, 1]} : vector<1x96xf32> to vector<1x32xf32>
    %524 = vector.extract_strided_slice %522 {offsets = [0, 32], sizes = [1, 32], strides = [1, 1]} : vector<1x96xf32> to vector<1x32xf32>
    %525 = vector.extract_strided_slice %522 {offsets = [0, 64], sizes = [1, 32], strides = [1, 1]} : vector<1x96xf32> to vector<1x32xf32>
    %526 = vector.extract_strided_slice %516 {offsets = [0, 96], sizes = [1, 32], strides = [1, 1]} : vector<1x128xf32> to vector<1x32xf32>
    %527 = math.tanh %526 : vector<1x32xf32>
    %528 = arith.mulf %524, %492 : vector<1x32xf32>
    %529 = arith.mulf %523, %527 : vector<1x32xf32>
    %530 = arith.addf %528, %529 : vector<1x32xf32>
    %531 = math.tanh %530 : vector<1x32xf32>
    %532 = arith.mulf %525, %531 : vector<1x32xf32>
    %533 = vector.extract_strided_slice %393 {offsets = [4, 0], sizes = [1, 128], strides = [1, 1]} : vector<8x128xf32> to vector<1x128xf32>
    %cst_179 = arith.constant dense<0.000000e+00> : vector<1x128xf32>
    %534 = tpu.matmul %513, %395, %cst_179 {dimension_numbers = #tpu.dot_dimension_numbers<[1], [0], [0], [1], [0, 0, 1, 1], [], []>} : vector<1x32xf32>, vector<32x128xf32>, vector<1x128xf32> -> vector<1x128xf32>
    %535 = arith.addf %533, %534 : vector<1x128xf32>
    %536 = vector.extract_strided_slice %535 {offsets = [0, 0], sizes = [1, 96], strides = [1, 1]} : vector<1x128xf32> to vector<1x96xf32>
    %537 = arith.negf %536 : vector<1x96xf32>
    %538 = math.exp %537 : vector<1x96xf32>
    %cst_180 = arith.constant 1.000000e+00 : f32
    %539 = vector.broadcast %cst_180 : f32 to vector<1x96xf32>
    %540 = arith.addf %539, %538 : vector<1x96xf32>
    %541 = arith.divf %539, %540 : vector<1x96xf32>
    %542 = vector.extract_strided_slice %541 {offsets = [0, 0], sizes = [1, 32], strides = [1, 1]} : vector<1x96xf32> to vector<1x32xf32>
    %543 = vector.extract_strided_slice %541 {offsets = [0, 32], sizes = [1, 32], strides = [1, 1]} : vector<1x96xf32> to vector<1x32xf32>
    %544 = vector.extract_strided_slice %541 {offsets = [0, 64], sizes = [1, 32], strides = [1, 1]} : vector<1x96xf32> to vector<1x32xf32>
    %545 = vector.extract_strided_slice %535 {offsets = [0, 96], sizes = [1, 32], strides = [1, 1]} : vector<1x128xf32> to vector<1x32xf32>
    %546 = math.tanh %545 : vector<1x32xf32>
    %547 = arith.mulf %543, %511 : vector<1x32xf32>
    %548 = arith.mulf %542, %546 : vector<1x32xf32>
    %549 = arith.addf %547, %548 : vector<1x32xf32>
    %550 = math.tanh %549 : vector<1x32xf32>
    %551 = arith.mulf %544, %550 : vector<1x32xf32>
    %552 = vector.extract_strided_slice %388 {offsets = [4, 0], sizes = [1, 128], strides = [1, 1]} : vector<8x128xf32> to vector<1x128xf32>
    %cst_181 = arith.constant dense<0.000000e+00> : vector<1x128xf32>
    %553 = tpu.matmul %532, %394, %cst_181 {dimension_numbers = #tpu.dot_dimension_numbers<[1], [0], [0], [1], [0, 0, 1, 1], [], []>} : vector<1x32xf32>, vector<32x128xf32>, vector<1x128xf32> -> vector<1x128xf32>
    %554 = arith.addf %552, %553 : vector<1x128xf32>
    %555 = vector.extract_strided_slice %554 {offsets = [0, 0], sizes = [1, 96], strides = [1, 1]} : vector<1x128xf32> to vector<1x96xf32>
    %556 = arith.negf %555 : vector<1x96xf32>
    %557 = math.exp %556 : vector<1x96xf32>
    %cst_182 = arith.constant 1.000000e+00 : f32
    %558 = vector.broadcast %cst_182 : f32 to vector<1x96xf32>
    %559 = arith.addf %558, %557 : vector<1x96xf32>
    %560 = arith.divf %558, %559 : vector<1x96xf32>
    %561 = vector.extract_strided_slice %560 {offsets = [0, 0], sizes = [1, 32], strides = [1, 1]} : vector<1x96xf32> to vector<1x32xf32>
    %562 = vector.extract_strided_slice %560 {offsets = [0, 32], sizes = [1, 32], strides = [1, 1]} : vector<1x96xf32> to vector<1x32xf32>
    %563 = vector.extract_strided_slice %560 {offsets = [0, 64], sizes = [1, 32], strides = [1, 1]} : vector<1x96xf32> to vector<1x32xf32>
    %564 = vector.extract_strided_slice %554 {offsets = [0, 96], sizes = [1, 32], strides = [1, 1]} : vector<1x128xf32> to vector<1x32xf32>
    %565 = math.tanh %564 : vector<1x32xf32>
    %566 = arith.mulf %562, %530 : vector<1x32xf32>
    %567 = arith.mulf %561, %565 : vector<1x32xf32>
    %568 = arith.addf %566, %567 : vector<1x32xf32>
    %569 = math.tanh %568 : vector<1x32xf32>
    %570 = arith.mulf %563, %569 : vector<1x32xf32>
    %571 = vector.extract_strided_slice %393 {offsets = [3, 0], sizes = [1, 128], strides = [1, 1]} : vector<8x128xf32> to vector<1x128xf32>
    %cst_183 = arith.constant dense<0.000000e+00> : vector<1x128xf32>
    %572 = tpu.matmul %551, %395, %cst_183 {dimension_numbers = #tpu.dot_dimension_numbers<[1], [0], [0], [1], [0, 0, 1, 1], [], []>} : vector<1x32xf32>, vector<32x128xf32>, vector<1x128xf32> -> vector<1x128xf32>
    %573 = arith.addf %571, %572 : vector<1x128xf32>
    %574 = vector.extract_strided_slice %573 {offsets = [0, 0], sizes = [1, 96], strides = [1, 1]} : vector<1x128xf32> to vector<1x96xf32>
    %575 = arith.negf %574 : vector<1x96xf32>
    %576 = math.exp %575 : vector<1x96xf32>
    %cst_184 = arith.constant 1.000000e+00 : f32
    %577 = vector.broadcast %cst_184 : f32 to vector<1x96xf32>
    %578 = arith.addf %577, %576 : vector<1x96xf32>
    %579 = arith.divf %577, %578 : vector<1x96xf32>
    %580 = vector.extract_strided_slice %579 {offsets = [0, 0], sizes = [1, 32], strides = [1, 1]} : vector<1x96xf32> to vector<1x32xf32>
    %581 = vector.extract_strided_slice %579 {offsets = [0, 32], sizes = [1, 32], strides = [1, 1]} : vector<1x96xf32> to vector<1x32xf32>
    %582 = vector.extract_strided_slice %579 {offsets = [0, 64], sizes = [1, 32], strides = [1, 1]} : vector<1x96xf32> to vector<1x32xf32>
    %583 = vector.extract_strided_slice %573 {offsets = [0, 96], sizes = [1, 32], strides = [1, 1]} : vector<1x128xf32> to vector<1x32xf32>
    %584 = math.tanh %583 : vector<1x32xf32>
    %585 = arith.mulf %581, %549 : vector<1x32xf32>
    %586 = arith.mulf %580, %584 : vector<1x32xf32>
    %587 = arith.addf %585, %586 : vector<1x32xf32>
    %588 = math.tanh %587 : vector<1x32xf32>
    %589 = arith.mulf %582, %588 : vector<1x32xf32>
    %590 = vector.extract_strided_slice %388 {offsets = [5, 0], sizes = [1, 128], strides = [1, 1]} : vector<8x128xf32> to vector<1x128xf32>
    %cst_185 = arith.constant dense<0.000000e+00> : vector<1x128xf32>
    %591 = tpu.matmul %570, %394, %cst_185 {dimension_numbers = #tpu.dot_dimension_numbers<[1], [0], [0], [1], [0, 0, 1, 1], [], []>} : vector<1x32xf32>, vector<32x128xf32>, vector<1x128xf32> -> vector<1x128xf32>
    %592 = arith.addf %590, %591 : vector<1x128xf32>
    %593 = vector.extract_strided_slice %592 {offsets = [0, 0], sizes = [1, 96], strides = [1, 1]} : vector<1x128xf32> to vector<1x96xf32>
    %594 = arith.negf %593 : vector<1x96xf32>
    %595 = math.exp %594 : vector<1x96xf32>
    %cst_186 = arith.constant 1.000000e+00 : f32
    %596 = vector.broadcast %cst_186 : f32 to vector<1x96xf32>
    %597 = arith.addf %596, %595 : vector<1x96xf32>
    %598 = arith.divf %596, %597 : vector<1x96xf32>
    %599 = vector.extract_strided_slice %598 {offsets = [0, 0], sizes = [1, 32], strides = [1, 1]} : vector<1x96xf32> to vector<1x32xf32>
    %600 = vector.extract_strided_slice %598 {offsets = [0, 32], sizes = [1, 32], strides = [1, 1]} : vector<1x96xf32> to vector<1x32xf32>
    %601 = vector.extract_strided_slice %598 {offsets = [0, 64], sizes = [1, 32], strides = [1, 1]} : vector<1x96xf32> to vector<1x32xf32>
    %602 = vector.extract_strided_slice %592 {offsets = [0, 96], sizes = [1, 32], strides = [1, 1]} : vector<1x128xf32> to vector<1x32xf32>
    %603 = math.tanh %602 : vector<1x32xf32>
    %604 = arith.mulf %600, %568 : vector<1x32xf32>
    %605 = arith.mulf %599, %603 : vector<1x32xf32>
    %606 = arith.addf %604, %605 : vector<1x32xf32>
    %607 = math.tanh %606 : vector<1x32xf32>
    %608 = arith.mulf %601, %607 : vector<1x32xf32>
    %609 = vector.extract_strided_slice %393 {offsets = [2, 0], sizes = [1, 128], strides = [1, 1]} : vector<8x128xf32> to vector<1x128xf32>
    %cst_187 = arith.constant dense<0.000000e+00> : vector<1x128xf32>
    %610 = tpu.matmul %589, %395, %cst_187 {dimension_numbers = #tpu.dot_dimension_numbers<[1], [0], [0], [1], [0, 0, 1, 1], [], []>} : vector<1x32xf32>, vector<32x128xf32>, vector<1x128xf32> -> vector<1x128xf32>
    %611 = arith.addf %609, %610 : vector<1x128xf32>
    %612 = vector.extract_strided_slice %611 {offsets = [0, 0], sizes = [1, 96], strides = [1, 1]} : vector<1x128xf32> to vector<1x96xf32>
    %613 = arith.negf %612 : vector<1x96xf32>
    %614 = math.exp %613 : vector<1x96xf32>
    %cst_188 = arith.constant 1.000000e+00 : f32
    %615 = vector.broadcast %cst_188 : f32 to vector<1x96xf32>
    %616 = arith.addf %615, %614 : vector<1x96xf32>
    %617 = arith.divf %615, %616 : vector<1x96xf32>
    %618 = vector.extract_strided_slice %617 {offsets = [0, 0], sizes = [1, 32], strides = [1, 1]} : vector<1x96xf32> to vector<1x32xf32>
    %619 = vector.extract_strided_slice %617 {offsets = [0, 32], sizes = [1, 32], strides = [1, 1]} : vector<1x96xf32> to vector<1x32xf32>
    %620 = vector.extract_strided_slice %617 {offsets = [0, 64], sizes = [1, 32], strides = [1, 1]} : vector<1x96xf32> to vector<1x32xf32>
    %621 = vector.extract_strided_slice %611 {offsets = [0, 96], sizes = [1, 32], strides = [1, 1]} : vector<1x128xf32> to vector<1x32xf32>
    %622 = math.tanh %621 : vector<1x32xf32>
    %623 = arith.mulf %619, %587 : vector<1x32xf32>
    %624 = arith.mulf %618, %622 : vector<1x32xf32>
    %625 = arith.addf %623, %624 : vector<1x32xf32>
    %626 = math.tanh %625 : vector<1x32xf32>
    %627 = arith.mulf %620, %626 : vector<1x32xf32>
    %628 = vector.extract_strided_slice %388 {offsets = [6, 0], sizes = [1, 128], strides = [1, 1]} : vector<8x128xf32> to vector<1x128xf32>
    %cst_189 = arith.constant dense<0.000000e+00> : vector<1x128xf32>
    %629 = tpu.matmul %608, %394, %cst_189 {dimension_numbers = #tpu.dot_dimension_numbers<[1], [0], [0], [1], [0, 0, 1, 1], [], []>} : vector<1x32xf32>, vector<32x128xf32>, vector<1x128xf32> -> vector<1x128xf32>
    %630 = arith.addf %628, %629 : vector<1x128xf32>
    %631 = vector.extract_strided_slice %630 {offsets = [0, 0], sizes = [1, 96], strides = [1, 1]} : vector<1x128xf32> to vector<1x96xf32>
    %632 = arith.negf %631 : vector<1x96xf32>
    %633 = math.exp %632 : vector<1x96xf32>
    %cst_190 = arith.constant 1.000000e+00 : f32
    %634 = vector.broadcast %cst_190 : f32 to vector<1x96xf32>
    %635 = arith.addf %634, %633 : vector<1x96xf32>
    %636 = arith.divf %634, %635 : vector<1x96xf32>
    %637 = vector.extract_strided_slice %636 {offsets = [0, 0], sizes = [1, 32], strides = [1, 1]} : vector<1x96xf32> to vector<1x32xf32>
    %638 = vector.extract_strided_slice %636 {offsets = [0, 32], sizes = [1, 32], strides = [1, 1]} : vector<1x96xf32> to vector<1x32xf32>
    %639 = vector.extract_strided_slice %636 {offsets = [0, 64], sizes = [1, 32], strides = [1, 1]} : vector<1x96xf32> to vector<1x32xf32>
    %640 = vector.extract_strided_slice %630 {offsets = [0, 96], sizes = [1, 32], strides = [1, 1]} : vector<1x128xf32> to vector<1x32xf32>
    %641 = math.tanh %640 : vector<1x32xf32>
    %642 = arith.mulf %638, %606 : vector<1x32xf32>
    %643 = arith.mulf %637, %641 : vector<1x32xf32>
    %644 = arith.addf %642, %643 : vector<1x32xf32>
    %645 = math.tanh %644 : vector<1x32xf32>
    %646 = arith.mulf %639, %645 : vector<1x32xf32>
    %647 = vector.extract_strided_slice %393 {offsets = [1, 0], sizes = [1, 128], strides = [1, 1]} : vector<8x128xf32> to vector<1x128xf32>
    %cst_191 = arith.constant dense<0.000000e+00> : vector<1x128xf32>
    %648 = tpu.matmul %627, %395, %cst_191 {dimension_numbers = #tpu.dot_dimension_numbers<[1], [0], [0], [1], [0, 0, 1, 1], [], []>} : vector<1x32xf32>, vector<32x128xf32>, vector<1x128xf32> -> vector<1x128xf32>
    %649 = arith.addf %647, %648 : vector<1x128xf32>
    %650 = vector.extract_strided_slice %649 {offsets = [0, 0], sizes = [1, 96], strides = [1, 1]} : vector<1x128xf32> to vector<1x96xf32>
    %651 = arith.negf %650 : vector<1x96xf32>
    %652 = math.exp %651 : vector<1x96xf32>
    %cst_192 = arith.constant 1.000000e+00 : f32
    %653 = vector.broadcast %cst_192 : f32 to vector<1x96xf32>
    %654 = arith.addf %653, %652 : vector<1x96xf32>
    %655 = arith.divf %653, %654 : vector<1x96xf32>
    %656 = vector.extract_strided_slice %655 {offsets = [0, 0], sizes = [1, 32], strides = [1, 1]} : vector<1x96xf32> to vector<1x32xf32>
    %657 = vector.extract_strided_slice %655 {offsets = [0, 32], sizes = [1, 32], strides = [1, 1]} : vector<1x96xf32> to vector<1x32xf32>
    %658 = vector.extract_strided_slice %655 {offsets = [0, 64], sizes = [1, 32], strides = [1, 1]} : vector<1x96xf32> to vector<1x32xf32>
    %659 = vector.extract_strided_slice %649 {offsets = [0, 96], sizes = [1, 32], strides = [1, 1]} : vector<1x128xf32> to vector<1x32xf32>
    %660 = math.tanh %659 : vector<1x32xf32>
    %661 = arith.mulf %657, %625 : vector<1x32xf32>
    %662 = arith.mulf %656, %660 : vector<1x32xf32>
    %663 = arith.addf %661, %662 : vector<1x32xf32>
    %664 = math.tanh %663 : vector<1x32xf32>
    %665 = arith.mulf %658, %664 : vector<1x32xf32>
    %666 = vector.extract_strided_slice %388 {offsets = [7, 0], sizes = [1, 128], strides = [1, 1]} : vector<8x128xf32> to vector<1x128xf32>
    %cst_193 = arith.constant dense<0.000000e+00> : vector<1x128xf32>
    %667 = tpu.matmul %646, %394, %cst_193 {dimension_numbers = #tpu.dot_dimension_numbers<[1], [0], [0], [1], [0, 0, 1, 1], [], []>} : vector<1x32xf32>, vector<32x128xf32>, vector<1x128xf32> -> vector<1x128xf32>
    %668 = arith.addf %666, %667 : vector<1x128xf32>
    %669 = vector.extract_strided_slice %668 {offsets = [0, 0], sizes = [1, 96], strides = [1, 1]} : vector<1x128xf32> to vector<1x96xf32>
    %670 = arith.negf %669 : vector<1x96xf32>
    %671 = math.exp %670 : vector<1x96xf32>
    %cst_194 = arith.constant 1.000000e+00 : f32
    %672 = vector.broadcast %cst_194 : f32 to vector<1x96xf32>
    %673 = arith.addf %672, %671 : vector<1x96xf32>
    %674 = arith.divf %672, %673 : vector<1x96xf32>
    %675 = vector.extract_strided_slice %674 {offsets = [0, 0], sizes = [1, 32], strides = [1, 1]} : vector<1x96xf32> to vector<1x32xf32>
    %676 = vector.extract_strided_slice %674 {offsets = [0, 32], sizes = [1, 32], strides = [1, 1]} : vector<1x96xf32> to vector<1x32xf32>
    %677 = vector.extract_strided_slice %674 {offsets = [0, 64], sizes = [1, 32], strides = [1, 1]} : vector<1x96xf32> to vector<1x32xf32>
    %678 = vector.extract_strided_slice %668 {offsets = [0, 96], sizes = [1, 32], strides = [1, 1]} : vector<1x128xf32> to vector<1x32xf32>
    %679 = math.tanh %678 : vector<1x32xf32>
    %680 = arith.mulf %676, %644 : vector<1x32xf32>
    %681 = arith.mulf %675, %679 : vector<1x32xf32>
    %682 = arith.addf %680, %681 : vector<1x32xf32>
    %683 = math.tanh %682 : vector<1x32xf32>
    %684 = arith.mulf %677, %683 : vector<1x32xf32>
    %685 = vector.extract_strided_slice %393 {offsets = [0, 0], sizes = [1, 128], strides = [1, 1]} : vector<8x128xf32> to vector<1x128xf32>
    %cst_195 = arith.constant dense<0.000000e+00> : vector<1x128xf32>
    %686 = tpu.matmul %665, %395, %cst_195 {dimension_numbers = #tpu.dot_dimension_numbers<[1], [0], [0], [1], [0, 0, 1, 1], [], []>} : vector<1x32xf32>, vector<32x128xf32>, vector<1x128xf32> -> vector<1x128xf32>
    %687 = arith.addf %685, %686 : vector<1x128xf32>
    %688 = vector.extract_strided_slice %687 {offsets = [0, 0], sizes = [1, 96], strides = [1, 1]} : vector<1x128xf32> to vector<1x96xf32>
    %689 = arith.negf %688 : vector<1x96xf32>
    %690 = math.exp %689 : vector<1x96xf32>
    %cst_196 = arith.constant 1.000000e+00 : f32
    %691 = vector.broadcast %cst_196 : f32 to vector<1x96xf32>
    %692 = arith.addf %691, %690 : vector<1x96xf32>
    %693 = arith.divf %691, %692 : vector<1x96xf32>
    %694 = vector.extract_strided_slice %693 {offsets = [0, 0], sizes = [1, 32], strides = [1, 1]} : vector<1x96xf32> to vector<1x32xf32>
    %695 = vector.extract_strided_slice %693 {offsets = [0, 32], sizes = [1, 32], strides = [1, 1]} : vector<1x96xf32> to vector<1x32xf32>
    %696 = vector.extract_strided_slice %693 {offsets = [0, 64], sizes = [1, 32], strides = [1, 1]} : vector<1x96xf32> to vector<1x32xf32>
    %697 = vector.extract_strided_slice %687 {offsets = [0, 96], sizes = [1, 32], strides = [1, 1]} : vector<1x128xf32> to vector<1x32xf32>
    %698 = math.tanh %697 : vector<1x32xf32>
    %699 = arith.mulf %695, %663 : vector<1x32xf32>
    %700 = arith.mulf %694, %698 : vector<1x32xf32>
    %701 = arith.addf %699, %700 : vector<1x32xf32>
    %702 = math.tanh %701 : vector<1x32xf32>
    %703 = arith.mulf %696, %702 : vector<1x32xf32>
    %704 = tpu.concatenate %418, %456, %494, %532, %570, %608, %646, %684 in 0 : vector<1x32xf32>, vector<1x32xf32>, vector<1x32xf32>, vector<1x32xf32>, vector<1x32xf32>, vector<1x32xf32>, vector<1x32xf32>, vector<1x32xf32> -> vector<8x32xf32>
    %705 = tpu.concatenate %703, %665, %627, %589, %551, %513, %475, %437 in 0 : vector<1x32xf32>, vector<1x32xf32>, vector<1x32xf32>, vector<1x32xf32>, vector<1x32xf32>, vector<1x32xf32>, vector<1x32xf32>, vector<1x32xf32> -> vector<8x32xf32>
    %706 = tpu.concatenate %704, %705 in 1 : vector<8x32xf32>, vector<8x32xf32> -> vector<8x64xf32>
    %c0_197 = arith.constant 0 : index
    %c0_198 = arith.constant 0 : index
    %707 = vector.load %arg18[%c0_197, %c0_198] : memref<64x32xf32, #tpu.memory_space<vmem>>, vector<64x32xf32>
    %cst_199 = arith.constant dense<0.000000e+00> : vector<8x32xf32>
    %708 = tpu.matmul %706, %707, %cst_199 {dimension_numbers = #tpu.dot_dimension_numbers<[1], [0], [0], [1], [0, 0, 1, 1], [], []>} : vector<8x64xf32>, vector<64x32xf32>, vector<8x32xf32> -> vector<8x32xf32>
    %c0_200 = arith.constant 0 : index
    %c0_201 = arith.constant 0 : index
    %709 = vector.load %arg21[%c0_200, %c0_201] : memref<64x32xf32, #tpu.memory_space<vmem>>, vector<64x32xf32>
    %cst_202 = arith.constant dense<0.000000e+00> : vector<8x32xf32>
    %710 = tpu.matmul %706, %709, %cst_202 {dimension_numbers = #tpu.dot_dimension_numbers<[1], [0], [0], [1], [0, 0, 1, 1], [], []>} : vector<8x64xf32>, vector<64x32xf32>, vector<8x32xf32> -> vector<8x32xf32>
    %cst_203 = arith.constant dense<0xFF800000> : vector<64xf32>
    %711 = vector.multi_reduction <maximumf>, %706, %cst_203 [0] : vector<8x64xf32> to vector<64xf32>
    %712 = vector.shape_cast %711 : vector<64xf32> to vector<1x64xf32>
    %c0_204 = arith.constant 0 : index
    %713 = memref.load %arg1[%c0_204] : memref<4xi32, #tpu.memory_space<smem>>
    %714 = tpu.iota {dimensions = array<i32: 1>} : vector<1x8xi32>
    %715 = vector.broadcast %713 : i32 to vector<1x8xi32>
    %716 = arith.cmpi eq, %714, %715 : vector<1x8xi32>
    %717 = arith.extui %716 : vector<1x8xi1> to vector<1x8xi32>
    %718 = arith.sitofp %717 : vector<1x8xi32> to vector<1x8xf32>
    %c1_205 = arith.constant 1 : index
    %719 = memref.load %arg1[%c1_205] : memref<4xi32, #tpu.memory_space<smem>>
    %720 = tpu.iota {dimensions = array<i32: 1>} : vector<1x8xi32>
    %721 = vector.broadcast %719 : i32 to vector<1x8xi32>
    %722 = arith.cmpi eq, %720, %721 : vector<1x8xi32>
    %723 = arith.extui %722 : vector<1x8xi1> to vector<1x8xi32>
    %724 = arith.sitofp %723 : vector<1x8xi32> to vector<1x8xf32>
    %c2_206 = arith.constant 2 : index
    %725 = memref.load %arg1[%c2_206] : memref<4xi32, #tpu.memory_space<smem>>
    %726 = tpu.iota {dimensions = array<i32: 1>} : vector<1x8xi32>
    %727 = vector.broadcast %725 : i32 to vector<1x8xi32>
    %728 = arith.cmpi eq, %726, %727 : vector<1x8xi32>
    %729 = arith.extui %728 : vector<1x8xi1> to vector<1x8xi32>
    %730 = arith.sitofp %729 : vector<1x8xi32> to vector<1x8xf32>
    %c3_207 = arith.constant 3 : index
    %731 = memref.load %arg1[%c3_207] : memref<4xi32, #tpu.memory_space<smem>>
    %732 = tpu.iota {dimensions = array<i32: 1>} : vector<1x8xi32>
    %733 = vector.broadcast %731 : i32 to vector<1x8xi32>
    %734 = arith.cmpi eq, %732, %733 : vector<1x8xi32>
    %735 = arith.extui %734 : vector<1x8xi1> to vector<1x8xi32>
    %736 = arith.sitofp %735 : vector<1x8xi32> to vector<1x8xf32>
    %737 = tpu.concatenate %718, %724, %730, %736 in 0 : vector<1x8xf32>, vector<1x8xf32>, vector<1x8xf32>, vector<1x8xf32> -> vector<4x8xf32>
    %cst_208 = arith.constant dense<0.000000e+00> : vector<4x64xf32>
    %738 = tpu.matmul %737, %706, %cst_208 {dimension_numbers = #tpu.dot_dimension_numbers<[1], [0], [0], [1], [0, 0, 1, 1], [], []>} : vector<4x8xf32>, vector<8x64xf32>, vector<4x64xf32> -> vector<4x64xf32>
    %739 = tpu.concatenate %712, %738 in 0 : vector<1x64xf32>, vector<4x64xf32> -> vector<5x64xf32>
    %c0_209 = arith.constant 0 : index
    %c0_210 = arith.constant 0 : index
    %740 = vector.load %arg24[%c0_209, %c0_210] : memref<64x128xf32, #tpu.memory_space<vmem>>, vector<64x128xf32>
    %cst_211 = arith.constant dense<0.000000e+00> : vector<5x128xf32>
    %741 = tpu.matmul %739, %740, %cst_211 {dimension_numbers = #tpu.dot_dimension_numbers<[1], [0], [0], [1], [0, 0, 1, 1], [], []>} : vector<5x64xf32>, vector<64x128xf32>, vector<5x128xf32> -> vector<5x128xf32>
    %c0_212 = arith.constant 0 : index
    %c0_213 = arith.constant 0 : index
    %742 = vector.load %arg26[%c0_212, %c0_213] : memref<1x128xf32, #tpu.memory_space<vmem>>, vector<1x128xf32>
    %743 = vector.broadcast %742 : vector<1x128xf32> to vector<5x128xf32>
    %744 = arith.addf %741, %743 : vector<5x128xf32>
    %c0_214 = arith.constant 0 : index
    %c0_215 = arith.constant 0 : index
    %745 = vector.load %arg25[%c0_214, %c0_215] : memref<32x128xf32, #tpu.memory_space<vmem>>, vector<32x128xf32>
    %c0_216 = arith.constant 0 : index
    %c0_217 = arith.constant 0 : index
    %746 = vector.load %arg27[%c0_216, %c0_217] : memref<1x32xf32, #tpu.memory_space<vmem>>, vector<1x32xf32>
    %c0_218 = arith.constant 0 : index
    %c0_219 = arith.constant 0 : index
    %747 = vector.load %arg28[%c0_218, %c0_219] : memref<1x32xf32, #tpu.memory_space<vmem>>, vector<1x32xf32>
    %748 = vector.extract_strided_slice %744 {offsets = [0, 0], sizes = [1, 128], strides = [1, 1]} : vector<5x128xf32> to vector<1x128xf32>
    %cst_220 = arith.constant dense<0.000000e+00> : vector<1x128xf32>
    %749 = tpu.matmul %746, %745, %cst_220 {dimension_numbers = #tpu.dot_dimension_numbers<[1], [0], [0], [1], [0, 0, 1, 1], [], []>} : vector<1x32xf32>, vector<32x128xf32>, vector<1x128xf32> -> vector<1x128xf32>
    %750 = arith.addf %748, %749 : vector<1x128xf32>
    %751 = vector.extract_strided_slice %750 {offsets = [0, 0], sizes = [1, 96], strides = [1, 1]} : vector<1x128xf32> to vector<1x96xf32>
    %752 = arith.negf %751 : vector<1x96xf32>
    %753 = math.exp %752 : vector<1x96xf32>
    %cst_221 = arith.constant 1.000000e+00 : f32
    %754 = vector.broadcast %cst_221 : f32 to vector<1x96xf32>
    %755 = arith.addf %754, %753 : vector<1x96xf32>
    %756 = arith.divf %754, %755 : vector<1x96xf32>
    %757 = vector.extract_strided_slice %756 {offsets = [0, 0], sizes = [1, 32], strides = [1, 1]} : vector<1x96xf32> to vector<1x32xf32>
    %758 = vector.extract_strided_slice %756 {offsets = [0, 32], sizes = [1, 32], strides = [1, 1]} : vector<1x96xf32> to vector<1x32xf32>
    %759 = vector.extract_strided_slice %756 {offsets = [0, 64], sizes = [1, 32], strides = [1, 1]} : vector<1x96xf32> to vector<1x32xf32>
    %760 = vector.extract_strided_slice %750 {offsets = [0, 96], sizes = [1, 32], strides = [1, 1]} : vector<1x128xf32> to vector<1x32xf32>
    %761 = math.tanh %760 : vector<1x32xf32>
    %762 = arith.mulf %758, %747 : vector<1x32xf32>
    %763 = arith.mulf %757, %761 : vector<1x32xf32>
    %764 = arith.addf %762, %763 : vector<1x32xf32>
    %765 = math.tanh %764 : vector<1x32xf32>
    %766 = arith.mulf %759, %765 : vector<1x32xf32>
    %767 = vector.extract_strided_slice %744 {offsets = [1, 0], sizes = [1, 128], strides = [1, 1]} : vector<5x128xf32> to vector<1x128xf32>
    %cst_222 = arith.constant dense<0.000000e+00> : vector<1x128xf32>
    %768 = tpu.matmul %766, %745, %cst_222 {dimension_numbers = #tpu.dot_dimension_numbers<[1], [0], [0], [1], [0, 0, 1, 1], [], []>} : vector<1x32xf32>, vector<32x128xf32>, vector<1x128xf32> -> vector<1x128xf32>
    %769 = arith.addf %767, %768 : vector<1x128xf32>
    %770 = vector.extract_strided_slice %769 {offsets = [0, 0], sizes = [1, 96], strides = [1, 1]} : vector<1x128xf32> to vector<1x96xf32>
    %771 = arith.negf %770 : vector<1x96xf32>
    %772 = math.exp %771 : vector<1x96xf32>
    %cst_223 = arith.constant 1.000000e+00 : f32
    %773 = vector.broadcast %cst_223 : f32 to vector<1x96xf32>
    %774 = arith.addf %773, %772 : vector<1x96xf32>
    %775 = arith.divf %773, %774 : vector<1x96xf32>
    %776 = vector.extract_strided_slice %775 {offsets = [0, 0], sizes = [1, 32], strides = [1, 1]} : vector<1x96xf32> to vector<1x32xf32>
    %777 = vector.extract_strided_slice %775 {offsets = [0, 32], sizes = [1, 32], strides = [1, 1]} : vector<1x96xf32> to vector<1x32xf32>
    %778 = vector.extract_strided_slice %775 {offsets = [0, 64], sizes = [1, 32], strides = [1, 1]} : vector<1x96xf32> to vector<1x32xf32>
    %779 = vector.extract_strided_slice %769 {offsets = [0, 96], sizes = [1, 32], strides = [1, 1]} : vector<1x128xf32> to vector<1x32xf32>
    %780 = math.tanh %779 : vector<1x32xf32>
    %781 = arith.mulf %777, %764 : vector<1x32xf32>
    %782 = arith.mulf %776, %780 : vector<1x32xf32>
    %783 = arith.addf %781, %782 : vector<1x32xf32>
    %784 = math.tanh %783 : vector<1x32xf32>
    %785 = arith.mulf %778, %784 : vector<1x32xf32>
    %786 = vector.extract_strided_slice %744 {offsets = [2, 0], sizes = [1, 128], strides = [1, 1]} : vector<5x128xf32> to vector<1x128xf32>
    %cst_224 = arith.constant dense<0.000000e+00> : vector<1x128xf32>
    %787 = tpu.matmul %785, %745, %cst_224 {dimension_numbers = #tpu.dot_dimension_numbers<[1], [0], [0], [1], [0, 0, 1, 1], [], []>} : vector<1x32xf32>, vector<32x128xf32>, vector<1x128xf32> -> vector<1x128xf32>
    %788 = arith.addf %786, %787 : vector<1x128xf32>
    %789 = vector.extract_strided_slice %788 {offsets = [0, 0], sizes = [1, 96], strides = [1, 1]} : vector<1x128xf32> to vector<1x96xf32>
    %790 = arith.negf %789 : vector<1x96xf32>
    %791 = math.exp %790 : vector<1x96xf32>
    %cst_225 = arith.constant 1.000000e+00 : f32
    %792 = vector.broadcast %cst_225 : f32 to vector<1x96xf32>
    %793 = arith.addf %792, %791 : vector<1x96xf32>
    %794 = arith.divf %792, %793 : vector<1x96xf32>
    %795 = vector.extract_strided_slice %794 {offsets = [0, 0], sizes = [1, 32], strides = [1, 1]} : vector<1x96xf32> to vector<1x32xf32>
    %796 = vector.extract_strided_slice %794 {offsets = [0, 32], sizes = [1, 32], strides = [1, 1]} : vector<1x96xf32> to vector<1x32xf32>
    %797 = vector.extract_strided_slice %794 {offsets = [0, 64], sizes = [1, 32], strides = [1, 1]} : vector<1x96xf32> to vector<1x32xf32>
    %798 = vector.extract_strided_slice %788 {offsets = [0, 96], sizes = [1, 32], strides = [1, 1]} : vector<1x128xf32> to vector<1x32xf32>
    %799 = math.tanh %798 : vector<1x32xf32>
    %800 = arith.mulf %796, %783 : vector<1x32xf32>
    %801 = arith.mulf %795, %799 : vector<1x32xf32>
    %802 = arith.addf %800, %801 : vector<1x32xf32>
    %803 = math.tanh %802 : vector<1x32xf32>
    %804 = arith.mulf %797, %803 : vector<1x32xf32>
    %805 = vector.extract_strided_slice %744 {offsets = [3, 0], sizes = [1, 128], strides = [1, 1]} : vector<5x128xf32> to vector<1x128xf32>
    %cst_226 = arith.constant dense<0.000000e+00> : vector<1x128xf32>
    %806 = tpu.matmul %804, %745, %cst_226 {dimension_numbers = #tpu.dot_dimension_numbers<[1], [0], [0], [1], [0, 0, 1, 1], [], []>} : vector<1x32xf32>, vector<32x128xf32>, vector<1x128xf32> -> vector<1x128xf32>
    %807 = arith.addf %805, %806 : vector<1x128xf32>
    %808 = vector.extract_strided_slice %807 {offsets = [0, 0], sizes = [1, 96], strides = [1, 1]} : vector<1x128xf32> to vector<1x96xf32>
    %809 = arith.negf %808 : vector<1x96xf32>
    %810 = math.exp %809 : vector<1x96xf32>
    %cst_227 = arith.constant 1.000000e+00 : f32
    %811 = vector.broadcast %cst_227 : f32 to vector<1x96xf32>
    %812 = arith.addf %811, %810 : vector<1x96xf32>
    %813 = arith.divf %811, %812 : vector<1x96xf32>
    %814 = vector.extract_strided_slice %813 {offsets = [0, 0], sizes = [1, 32], strides = [1, 1]} : vector<1x96xf32> to vector<1x32xf32>
    %815 = vector.extract_strided_slice %813 {offsets = [0, 32], sizes = [1, 32], strides = [1, 1]} : vector<1x96xf32> to vector<1x32xf32>
    %816 = vector.extract_strided_slice %813 {offsets = [0, 64], sizes = [1, 32], strides = [1, 1]} : vector<1x96xf32> to vector<1x32xf32>
    %817 = vector.extract_strided_slice %807 {offsets = [0, 96], sizes = [1, 32], strides = [1, 1]} : vector<1x128xf32> to vector<1x32xf32>
    %818 = math.tanh %817 : vector<1x32xf32>
    %819 = arith.mulf %815, %802 : vector<1x32xf32>
    %820 = arith.mulf %814, %818 : vector<1x32xf32>
    %821 = arith.addf %819, %820 : vector<1x32xf32>
    %822 = math.tanh %821 : vector<1x32xf32>
    %823 = arith.mulf %816, %822 : vector<1x32xf32>
    %824 = vector.extract_strided_slice %744 {offsets = [4, 0], sizes = [1, 128], strides = [1, 1]} : vector<5x128xf32> to vector<1x128xf32>
    %cst_228 = arith.constant dense<0.000000e+00> : vector<1x128xf32>
    %825 = tpu.matmul %823, %745, %cst_228 {dimension_numbers = #tpu.dot_dimension_numbers<[1], [0], [0], [1], [0, 0, 1, 1], [], []>} : vector<1x32xf32>, vector<32x128xf32>, vector<1x128xf32> -> vector<1x128xf32>
    %826 = arith.addf %824, %825 : vector<1x128xf32>
    %827 = vector.extract_strided_slice %826 {offsets = [0, 0], sizes = [1, 96], strides = [1, 1]} : vector<1x128xf32> to vector<1x96xf32>
    %828 = arith.negf %827 : vector<1x96xf32>
    %829 = math.exp %828 : vector<1x96xf32>
    %cst_229 = arith.constant 1.000000e+00 : f32
    %830 = vector.broadcast %cst_229 : f32 to vector<1x96xf32>
    %831 = arith.addf %830, %829 : vector<1x96xf32>
    %832 = arith.divf %830, %831 : vector<1x96xf32>
    %833 = vector.extract_strided_slice %832 {offsets = [0, 0], sizes = [1, 32], strides = [1, 1]} : vector<1x96xf32> to vector<1x32xf32>
    %834 = vector.extract_strided_slice %832 {offsets = [0, 32], sizes = [1, 32], strides = [1, 1]} : vector<1x96xf32> to vector<1x32xf32>
    %835 = vector.extract_strided_slice %832 {offsets = [0, 64], sizes = [1, 32], strides = [1, 1]} : vector<1x96xf32> to vector<1x32xf32>
    %836 = vector.extract_strided_slice %826 {offsets = [0, 96], sizes = [1, 32], strides = [1, 1]} : vector<1x128xf32> to vector<1x32xf32>
    %837 = math.tanh %836 : vector<1x32xf32>
    %838 = arith.mulf %834, %821 : vector<1x32xf32>
    %839 = arith.mulf %833, %837 : vector<1x32xf32>
    %840 = arith.addf %838, %839 : vector<1x32xf32>
    %841 = math.tanh %840 : vector<1x32xf32>
    %842 = arith.mulf %835, %841 : vector<1x32xf32>
    %843 = tpu.concatenate %766, %785, %804, %823, %842 in 0 : vector<1x32xf32>, vector<1x32xf32>, vector<1x32xf32>, vector<1x32xf32>, vector<1x32xf32> -> vector<5x32xf32>
    %c0_230 = arith.constant 0 : index
    %c0_231 = arith.constant 0 : index
    %844 = vector.load %arg22[%c0_230, %c0_231] : memref<32x32xf32, #tpu.memory_space<vmem>>, vector<32x32xf32>
    %c0_232 = arith.constant 0 : index
    %c0_233 = arith.constant 0 : index
    %845 = vector.load %arg23[%c0_232, %c0_233] : memref<1x32xf32, #tpu.memory_space<vmem>>, vector<1x32xf32>
    %cst_234 = arith.constant dense<0.000000e+00> : vector<5x32xf32>
    %846 = tpu.matmul %843, %844, %cst_234 {dimension_numbers = #tpu.dot_dimension_numbers<[1], [0], [0], [1], [0, 0, 1, 1], [], []>} : vector<5x32xf32>, vector<32x32xf32>, vector<5x32xf32> -> vector<5x32xf32>
    %847 = vector.shape_cast %710 : vector<8x32xf32> to vector<1x8x32xf32>
    %848 = vector.shape_cast %846 : vector<5x32xf32> to vector<5x1x32xf32>
    %849 = vector.broadcast %847 : vector<1x8x32xf32> to vector<5x8x32xf32>
    %850 = vector.broadcast %848 : vector<5x1x32xf32> to vector<5x8x32xf32>
    %851 = arith.addf %849, %850 : vector<5x8x32xf32>
    %852 = math.tanh %851 : vector<5x8x32xf32>
    %853 = vector.shape_cast %845 : vector<1x32xf32> to vector<1x1x32xf32>
    %854 = vector.broadcast %853 : vector<1x1x32xf32> to vector<5x8x32xf32>
    %855 = arith.mulf %852, %854 : vector<5x8x32xf32>
    %cst_235 = arith.constant dense<0.000000e+00> : vector<5x8xf32>
    %856 = vector.multi_reduction <add>, %855, %cst_235 [2] : vector<5x8x32xf32> to vector<5x8xf32>
    %cst_236 = arith.constant dense<0xFF800000> : vector<5xf32>
    %857 = vector.multi_reduction <maximumf>, %856, %cst_236 [1] : vector<5x8xf32> to vector<5xf32>
    %858 = vector.shape_cast %857 : vector<5xf32> to vector<5x1xf32>
    %859 = vector.broadcast %858 : vector<5x1xf32> to vector<5x8xf32>
    %860 = arith.subf %856, %859 : vector<5x8xf32>
    %861 = math.exp %860 : vector<5x8xf32>
    %cst_237 = arith.constant dense<0.000000e+00> : vector<5xf32>
    %862 = vector.multi_reduction <add>, %861, %cst_237 [1] : vector<5x8xf32> to vector<5xf32>
    %863 = vector.shape_cast %862 : vector<5xf32> to vector<5x1xf32>
    %864 = tpu.reciprocal %863 {approx = true} : vector<5x1xf32> -> vector<5x1xf32>
    %865 = vector.broadcast %864 : vector<5x1xf32> to vector<5x8xf32>
    %866 = arith.mulf %861, %865 : vector<5x8xf32>
    %cst_238 = arith.constant dense<0.000000e+00> : vector<5x32xf32>
    %867 = tpu.matmul %866, %710, %cst_238 {dimension_numbers = #tpu.dot_dimension_numbers<[1], [0], [0], [1], [0, 0, 1, 1], [], []>} : vector<5x8xf32>, vector<8x32xf32>, vector<5x32xf32> -> vector<5x32xf32>
    %c0_239 = arith.constant 0 : index
    %c0_240 = arith.constant 0 : index
    %868 = vector.load %arg19[%c0_239, %c0_240] : memref<32x32xf32, #tpu.memory_space<vmem>>, vector<32x32xf32>
    %c0_241 = arith.constant 0 : index
    %c0_242 = arith.constant 0 : index
    %869 = vector.load %arg20[%c0_241, %c0_242] : memref<1x32xf32, #tpu.memory_space<vmem>>, vector<1x32xf32>
    %cst_243 = arith.constant dense<0.000000e+00> : vector<5x32xf32>
    %870 = tpu.matmul %867, %868, %cst_243 {dimension_numbers = #tpu.dot_dimension_numbers<[1], [0], [0], [1], [0, 0, 1, 1], [], []>} : vector<5x32xf32>, vector<32x32xf32>, vector<5x32xf32> -> vector<5x32xf32>
    %871 = vector.shape_cast %708 : vector<8x32xf32> to vector<1x8x32xf32>
    %872 = vector.shape_cast %870 : vector<5x32xf32> to vector<5x1x32xf32>
    %873 = vector.broadcast %871 : vector<1x8x32xf32> to vector<5x8x32xf32>
    %874 = vector.broadcast %872 : vector<5x1x32xf32> to vector<5x8x32xf32>
    %875 = arith.addf %873, %874 : vector<5x8x32xf32>
    %876 = math.tanh %875 : vector<5x8x32xf32>
    %877 = vector.shape_cast %869 : vector<1x32xf32> to vector<1x1x32xf32>
    %878 = vector.broadcast %877 : vector<1x1x32xf32> to vector<5x8x32xf32>
    %879 = arith.mulf %876, %878 : vector<5x8x32xf32>
    %cst_244 = arith.constant dense<0.000000e+00> : vector<5x8xf32>
    %880 = vector.multi_reduction <add>, %879, %cst_244 [2] : vector<5x8x32xf32> to vector<5x8xf32>
    %c0_245 = arith.constant 0 : index
    %c0_246 = arith.constant 0 : index
    %881 = vector.load %arg29[%c0_245, %c0_246] : memref<5x8xf32, #tpu.memory_space<vmem>>, vector<5x8xf32>
    tpu.vector_store %arg29[%c0_245, %c0_246], %880 {strides = array<i32>} : memref<5x8xf32, #tpu.memory_space<vmem>>, vector<5x8xf32>,
    return
  }
  func.func @transform_0(%arg0: i32, %arg1: memref<4xi32, #tpu.memory_space<smem>>) -> (i32, i32) {
    %c0_i32 = arith.constant 0 : i32
    %c0_i32_0 = arith.constant 0 : i32
    %c0_i32_1 = arith.constant 0 : i32
    return %c0_i32, %c0_i32_0 : i32, i32
  }
  func.func @transform_1(%arg0: i32, %arg1: memref<4xi32, #tpu.memory_space<smem>>) -> (i32, i32) {
    %c0_i32 = arith.constant 0 : i32
    %c0_i32_0 = arith.constant 0 : i32
    %c0_i32_1 = arith.constant 0 : i32
    return %c0_i32, %c0_i32_0 : i32, i32
  }
  func.func @transform_2(%arg0: i32, %arg1: memref<4xi32, #tpu.memory_space<smem>>) -> (i32, i32, i32) {
    %c0_i32 = arith.constant 0 : i32
    %c0_i32_0 = arith.constant 0 : i32
    %c0_i32_1 = arith.constant 0 : i32
    %c0_i32_2 = arith.constant 0 : i32
    return %c0_i32, %c0_i32_0, %c0_i32_1 : i32, i32, i32
  }
  func.func @transform_3(%arg0: i32, %arg1: memref<4xi32, #tpu.memory_space<smem>>) -> (i32, i32, i32) {
    %c0_i32 = arith.constant 0 : i32
    %c0_i32_0 = arith.constant 0 : i32
    %c0_i32_1 = arith.constant 0 : i32
    %c0_i32_2 = arith.constant 0 : i32
    return %c0_i32, %c0_i32_0, %c0_i32_1 : i32, i32, i32
  }
  func.func @transform_4(%arg0: i32, %arg1: memref<4xi32, #tpu.memory_space<smem>>) -> (i32, i32, i32) {
    %c0_i32 = arith.constant 0 : i32
    %c0_i32_0 = arith.constant 0 : i32
    %c0_i32_1 = arith.constant 0 : i32
    %c0_i32_2 = arith.constant 0 : i32
    return %c0_i32, %c0_i32_0, %c0_i32_1 : i32, i32, i32
  }
  func.func @transform_5(%arg0: i32, %arg1: memref<4xi32, #tpu.memory_space<smem>>) -> (i32, i32) {
    %c0_i32 = arith.constant 0 : i32
    %c0_i32_0 = arith.constant 0 : i32
    %c0_i32_1 = arith.constant 0 : i32
    return %c0_i32, %c0_i32_0 : i32, i32
  }
  func.func @transform_6(%arg0: i32, %arg1: memref<4xi32, #tpu.memory_space<smem>>) -> (i32, i32) {
    %c0_i32 = arith.constant 0 : i32
    %c0_i32_0 = arith.constant 0 : i32
    %c0_i32_1 = arith.constant 0 : i32
    return %c0_i32, %c0_i32_0 : i32, i32
  }
  func.func @transform_7(%arg0: i32, %arg1: memref<4xi32, #tpu.memory_space<smem>>) -> (i32, i32) {
    %c0_i32 = arith.constant 0 : i32
    %c0_i32_0 = arith.constant 0 : i32
    %c0_i32_1 = arith.constant 0 : i32
    return %c0_i32, %c0_i32_0 : i32, i32
  }
  func.func @transform_8(%arg0: i32, %arg1: memref<4xi32, #tpu.memory_space<smem>>) -> (i32, i32) {
    %c0_i32 = arith.constant 0 : i32
    %c0_i32_0 = arith.constant 0 : i32
    %c0_i32_1 = arith.constant 0 : i32
    return %c0_i32, %c0_i32_0 : i32, i32
  }
  func.func @transform_9(%arg0: i32, %arg1: memref<4xi32, #tpu.memory_space<smem>>) -> (i32, i32) {
    %c0_i32 = arith.constant 0 : i32
    %c0_i32_0 = arith.constant 0 : i32
    %c0_i32_1 = arith.constant 0 : i32
    return %c0_i32, %c0_i32_0 : i32, i32
  }
  func.func @transform_10(%arg0: i32, %arg1: memref<4xi32, #tpu.memory_space<smem>>) -> (i32, i32) {
    %c0_i32 = arith.constant 0 : i32
    %c0_i32_0 = arith.constant 0 : i32
    %c0_i32_1 = arith.constant 0 : i32
    return %c0_i32, %c0_i32_0 : i32, i32
  }
  func.func @transform_11(%arg0: i32, %arg1: memref<4xi32, #tpu.memory_space<smem>>) -> (i32, i32) {
    %c0_i32 = arith.constant 0 : i32
    %c0_i32_0 = arith.constant 0 : i32
    %c0_i32_1 = arith.constant 0 : i32
    return %c0_i32, %c0_i32_0 : i32, i32
  }
  func.func @transform_12(%arg0: i32, %arg1: memref<4xi32, #tpu.memory_space<smem>>) -> (i32, i32) {
    %c0_i32 = arith.constant 0 : i32
    %c0_i32_0 = arith.constant 0 : i32
    %c0_i32_1 = arith.constant 0 : i32
    return %c0_i32, %c0_i32_0 : i32, i32
  }
  func.func @transform_13(%arg0: i32, %arg1: memref<4xi32, #tpu.memory_space<smem>>) -> (i32, i32) {
    %c0_i32 = arith.constant 0 : i32
    %c0_i32_0 = arith.constant 0 : i32
    %c0_i32_1 = arith.constant 0 : i32
    return %c0_i32, %c0_i32_0 : i32, i32
  }
  func.func @transform_14(%arg0: i32, %arg1: memref<4xi32, #tpu.memory_space<smem>>) -> (i32, i32) {
    %c0_i32 = arith.constant 0 : i32
    %c0_i32_0 = arith.constant 0 : i32
    %c0_i32_1 = arith.constant 0 : i32
    return %c0_i32, %c0_i32_0 : i32, i32
  }
  func.func @transform_15(%arg0: i32, %arg1: memref<4xi32, #tpu.memory_space<smem>>) -> (i32, i32) {
    %c0_i32 = arith.constant 0 : i32
    %c0_i32_0 = arith.constant 0 : i32
    %c0_i32_1 = arith.constant 0 : i32
    return %c0_i32, %c0_i32_0 : i32, i32
  }
  func.func @transform_16(%arg0: i32, %arg1: memref<4xi32, #tpu.memory_space<smem>>) -> (i32, i32) {
    %c0_i32 = arith.constant 0 : i32
    %c0_i32_0 = arith.constant 0 : i32
    %c0_i32_1 = arith.constant 0 : i32
    return %c0_i32, %c0_i32_0 : i32, i32
  }
  func.func @transform_17(%arg0: i32, %arg1: memref<4xi32, #tpu.memory_space<smem>>) -> (i32, i32) {
    %c0_i32 = arith.constant 0 : i32
    %c0_i32_0 = arith.constant 0 : i32
    %c0_i32_1 = arith.constant 0 : i32
    return %c0_i32, %c0_i32_0 : i32, i32
  }
  func.func @transform_18(%arg0: i32, %arg1: memref<4xi32, #tpu.memory_space<smem>>) -> (i32, i32) {
    %c0_i32 = arith.constant 0 : i32
    %c0_i32_0 = arith.constant 0 : i32
    %c0_i32_1 = arith.constant 0 : i32
    return %c0_i32, %c0_i32_0 : i32, i32
  }
  func.func @transform_19(%arg0: i32, %arg1: memref<4xi32, #tpu.memory_space<smem>>) -> (i32, i32) {
    %c0_i32 = arith.constant 0 : i32
    %c0_i32_0 = arith.constant 0 : i32
    %c0_i32_1 = arith.constant 0 : i32
    return %c0_i32, %c0_i32_0 : i32, i32
  }
  func.func @transform_20(%arg0: i32, %arg1: memref<4xi32, #tpu.memory_space<smem>>) -> (i32, i32) {
    %c0_i32 = arith.constant 0 : i32
    %c0_i32_0 = arith.constant 0 : i32
    %c0_i32_1 = arith.constant 0 : i32
    return %c0_i32, %c0_i32_0 : i32, i32
  }
  func.func @transform_21(%arg0: i32, %arg1: memref<4xi32, #tpu.memory_space<smem>>) -> (i32, i32) {
    %c0_i32 = arith.constant 0 : i32
    %c0_i32_0 = arith.constant 0 : i32
    %c0_i32_1 = arith.constant 0 : i32
    return %c0_i32, %c0_i32_0 : i32, i32
  }
  func.func @transform_22(%arg0: i32, %arg1: memref<4xi32, #tpu.memory_space<smem>>) -> (i32, i32) {
    %c0_i32 = arith.constant 0 : i32
    %c0_i32_0 = arith.constant 0 : i32
    %c0_i32_1 = arith.constant 0 : i32
    return %c0_i32, %c0_i32_0 : i32, i32
  }
  func.func @transform_23(%arg0: i32, %arg1: memref<4xi32, #tpu.memory_space<smem>>) -> (i32, i32) {
    %c0_i32 = arith.constant 0 : i32
    %c0_i32_0 = arith.constant 0 : i32
    %c0_i32_1 = arith.constant 0 : i32
    return %c0_i32, %c0_i32_0 : i32, i32
  }
  func.func @transform_24(%arg0: i32, %arg1: memref<4xi32, #tpu.memory_space<smem>>) -> (i32, i32) {
    %c0_i32 = arith.constant 0 : i32
    %c0_i32_0 = arith.constant 0 : i32
    %c0_i32_1 = arith.constant 0 : i32
    return %c0_i32, %c0_i32_0 : i32, i32
  }
  func.func @transform_25(%arg0: i32, %arg1: memref<4xi32, #tpu.memory_space<smem>>) -> (i32, i32) {
    %c0_i32 = arith.constant 0 : i32
    %c0_i32_0 = arith.constant 0 : i32
    %c0_i32_1 = arith.constant 0 : i32
    return %c0_i32, %c0_i32_0 : i32, i32
  }
  func.func @transform_26(%arg0: i32, %arg1: memref<4xi32, #tpu.memory_space<smem>>) -> (i32, i32) {
    %c0_i32 = arith.constant 0 : i32
    %c0_i32_0 = arith.constant 0 : i32
    %c0_i32_1 = arith.constant 0 : i32
    return %c0_i32, %c0_i32_0 : i32, i32
  }
  func.func @transform_27(%arg0: i32, %arg1: memref<4xi32, #tpu.memory_space<smem>>) -> (i32, i32) {
    %c0_i32 = arith.constant 0 : i32
    %c0_i32_0 = arith.constant 0 : i32
    %c0_i32_1 = arith.constant 0 : i32
    return %c0_i32, %c0_i32_0 : i32, i32
  }
}

</mosaic_0001>

<bundles_post_ra>
// kernel: summarizer_forward.1
= control target key start
LH: loop header
LB: loop body
LE: loop exit
PB: predicated region body
PF: predicated region fallthrough
CT: control target
= control target key end

     0   :  { %s5305_s30 = smov [#allocation3]   ;;  %s7227_s0 = inlined_call_operand.vmem [shape: s32[4], index: 0, kind: input, shape index: {}]   ;;  %s7228_s1 = inlined_call_operand.vmem [shape: s32[128,1], index: 1, kind: input, shape index: {}]   ;;  %s7229_s2 = inlined_call_operand.vmem [shape: f32[128,32], index: 2, kind: input, shape index: {}]   ;;  %s7230_s3 = inlined_call_operand.vmem [shape: f32[3,32,32], index: 3, kind: input, shape index: {}]   ;;  %s7231_s4 = inlined_call_operand.vmem [shape: f32[4,32,32], index: 4, kind: input, shape index: {}]   ;;  %s7232_s5 = inlined_call_operand.vmem [shape: f32[5,32,32], index: 5, kind: input, shape index: {}]   ;;  %s7233_s6 = inlined_call_operand.hbm [shape: f32[1,32], index: 6, kind: input, shape index: {}]   ;;  %s7234_s7 = inlined_call_operand.hbm [shape: f32[1,32], index: 7, kind: input, shape index: {}]   ;;  %s7235_s8 = inlined_call_operand.hbm [shape: f32[1,32], index: 8, kind: input, shape index: {}]   ;;  %s7236_s9 = inlined_call_operand.hbm [shape: f32[96,128], index: 9, kind: input, shape index: {}]   ;;  %s7237_s10 = inlined_call_operand.vmem [shape: f32[32,128], index: 10, kind: input, shape index: {}]   ;;  %s7238_s11 = inlined_call_operand.vmem [shape: f32[1,128], index: 11, kind: input, shape index: {}]   ;;  %s7239_s12 = inlined_call_operand.hbm [shape: f32[96,128], index: 12, kind: input, shape index: {}]   ;;  %s7240_s13 = inlined_call_operand.hbm [shape: f32[32,128], index: 13, kind: input, shape index: {}]   ;;  %s7241_s14 = inlined_call_operand.hbm [shape: f32[1,128], index: 14, kind: input, shape index: {}]   ;;  %s7242_s15 = inlined_call_operand.vmem [shape: f32[2,32], index: 15, kind: input, shape index: {}]   ;;  %s7243_s16 = inlined_call_operand.vmem [shape: f32[2,32], index: 16, kind: input, shape index: {}]   ;;  %s7244_s17 = inlined_call_operand.vmem [shape: f32[64,32], index: 17, kind: input, shape index: {}]   ;;  %s7245_s18 = inlined_call_operand.hbm [shape: f32[32,32], index: 18, kind: input, shape index: {}]   ;;  %s7246_s19 = inlined_call_operand.hbm [shape: f32[1,32], index: 19, kind: input, shape index: {}]   ;;  %s7247_s20 = inlined_call_operand.vmem [shape: f32[64,32], index: 20, kind: input, shape index: {}]   ;;  %s7248_s21 = inlined_call_operand.hbm [shape: f32[32,32], index: 21, kind: input, shape index: {}]   ;;  %s7249_s22 = inlined_call_operand.vmem [shape: f32[1,32], index: 22, kind: input, shape index: {}]   ;;  %s7250_s23 = inlined_call_operand.hbm [shape: f32[64,128], index: 23, kind: input, shape index: {}]   ;;  %s7251_s24 = inlined_call_operand.hbm [shape: f32[32,128], index: 24, kind: input, shape index: {}]   ;;  %s7252_s25 = inlined_call_operand.vmem [shape: f32[1,128], index: 25, kind: input, shape index: {}]   ;;  %s7253_s26 = inlined_call_operand.vmem [shape: f32[1,32], index: 26, kind: input, shape index: {}]   ;;  %s7254_s27 = inlined_call_operand.vmem [shape: f32[1,32], index: 27, kind: input, shape index: {}]   ;;  %s7255_s28 = inlined_call_operand.vmem [shape: f32[5,8], index: 28, kind: output, shape index: {}]  }
   0x1   :  { %7269 = sst [smem:[#allocation49_spill]] %s7227_s0 }
   0x2   :  { %7270 = sst [smem:[#allocation50_spill]] %s7228_s1 }
   0x3   :  { %7271 = sst [smem:[#allocation51_spill]] %s7229_s2 }
   0x4   :  { %7272 = sst [smem:[#allocation52_spill]] %s7230_s3 }
   0x5   :  { %7273 = sst [smem:[#allocation53_spill]] %s7231_s4 }
   0x6   :  { %7274 = sst [smem:[#allocation54_spill]] %s7232_s5 }
   0x7   :  { %7275 = sst [smem:[#allocation55_spill]] %s7233_s6 }
   0x8   :  { %7276 = sst [smem:[#allocation56_spill]] %s7234_s7 }
   0x9   :  { %7277 = sst [smem:[#allocation57_spill]] %s7235_s8 }
   0xa   :  { %7278 = sst [smem:[#allocation58_spill]] %s7236_s9 }
   0xb   :  { %7279 = sst [smem:[#allocation59_spill]] %s7237_s10 }
   0xc   :  { %7280 = sst [smem:[#allocation60_spill]] %s7238_s11 }
   0xd   :  { %7281 = sst [smem:[#allocation61_spill]] %s7239_s12 }
   0xe   :  { %7282 = sst [smem:[#allocation62_spill]] %s7249_s22 }
   0xf   :  { %s7283_s9 = sld [smem:[#allocation49_spill]] }
  0x15   :  { %s34_s22 = sshll.u32 %s7283_s9, 4  ;;  %s35_s22 = int_to_ptr.vmem [resolvable:$true] %s34_s22 }
  0x16   :  { %37 = dma.vmem_to_smem %s35_s22, 16, %s5305_s30, [#allocation2] }
  0x17   :  { %5289 = dma.done.wait [#allocation2], 16 }
  0x18   :  { %5290 = vsyncadd [#allocation2], 4294967280 }
  0x19   :  { %40 = sfence }
  0x1a   :  { %41 = vsyncpa [#allocation5], 0 }
  0x1b   :  { %42 = vsyncpa [#allocation7], 0 }
  0x1c   :  { %43 = vsyncpa [#allocation10], 0 }
  0x1d   :  { %44 = vsyncpa [#allocation13], 0 }
  0x1e   :  { %45 = vsyncpa [#allocation16], 0 }
  0x1f   :  { %46 = vsyncpa [#allocation19], 0  ;;  %s7284_s10 = sld [smem:[#allocation56_spill]] }
  0x25   :  { %s74_s0 = sshll.u32 %s7284_s10, 4  ;;  %s75_s0 = int_to_ptr.hbm [resolvable:$true] %s74_s0 }
  0x26   :  { %47 = vsyncpa [#allocation22], 0  ;;  %s5306_s11 = smov [#allocation6]   ;;  %s7285_s7 = sld [smem:[#allocation58_spill]] }
  0x27   :  { %s76_s29 = sshll.u32 %s5306_s11, 4  ;;  %s5307_s1 = smov [#allocation9]   ;;  %s77_s29 = int_to_ptr.vmem [resolvable:$true] %s76_s29 }
  0x28   :  { %79 = dma.hbm_to_vmem [thread:$0]  %s75_s0, 16, %s77_s29, [#allocation7]  }
  0x29   :  { %s97_s4 = sshll.u32 %s5307_s1, 4  ;;  %s5308_s8 = smov 128   ;;  %s98_s4 = int_to_ptr.vmem [resolvable:$true] %s97_s4 }
  0x2a   :  { %s5309_s5 = smov 8   ;;  %s125_s3 = sshll.u32 %s7240_s13, 4  ;;  %s126_s3 = int_to_ptr.hbm [resolvable:$true] %s125_s3 }
  0x2b   :  { %s5310_s6 = smov [#allocation12]   ;;  %s155_s29 = sshll.u32 %s7245_s18, 4  ;;  %s156_s29 = int_to_ptr.hbm [resolvable:$true] %s155_s29 }
  0x2c   :  { %s95_s12 = sshll.u32 %s7285_s7, 4  ;;  %s127_s10 = sshll.u32 %s5310_s6, 4  ;;  %s96_s12 = int_to_ptr.hbm [resolvable:$true] %s95_s12  ;;  %s128_s10 = int_to_ptr.vmem [resolvable:$true] %s127_s10 }
  0x2d   :  { %103 = dma.hbm_to_vmem [thread:$0]  %s96_s12, 1536, %s98_s4, [#allocation10], %s5308_s8, %s5308_s8, %s5309_s5  }
  0x2e   :  { %133 = dma.hbm_to_vmem [thread:$0]  %s126_s3, 512, %s128_s10, [#allocation13], %s5308_s8, %s5308_s8, %s5309_s5  }
  0x2f   :  { %s5311_s2 = smov [#allocation15]   ;;  %s181_s1 = sshll.u32 %s7248_s21, 4  ;;  %s182_s1 = int_to_ptr.hbm [resolvable:$true] %s181_s1 }
  0x30   :  { %s157_s22 = sshll.u32 %s5311_s2, 4  ;;  %s7286_s18 = sld [smem:[#allocation55_spill]]  ;;  %s158_s22 = int_to_ptr.vmem [resolvable:$true] %s157_s22 }
  0x31   :  { %163 = dma.hbm_to_vmem [thread:$0]  %s156_s29, 512, %s158_s22, [#allocation16], %s5308_s8, %s5308_s8, %s5309_s5  }
  0x32   :  { %s5312_s30 = smov [#allocation18]   ;;  %s5313_s3 = smov [#allocation4]  }
  0x33   :  { %s183_s6 = sshll.u32 %s5312_s30, 4  ;;  %s65_s21 = sshll.u32 %s5313_s3, 4  ;;  %s184_s6 = int_to_ptr.vmem [resolvable:$true] %s183_s6  ;;  %s66_s21 = int_to_ptr.vmem [resolvable:$true] %s65_s21 }
  0x34   :  { %189 = dma.hbm_to_vmem [thread:$0]  %s182_s1, 512, %s184_s6, [#allocation19], %s5308_s8, %s5308_s8, %s5309_s5  }
  0x35   :  { %s7287_s0 = sld [smem:[#allocation57_spill]]  ;;  %s5314_s13 = smov [#allocation8]  }
  0x36   :  { %s63_s9 = sshll.u32 %s7286_s18, 4  ;;  %s7288_s7 = sld [smem:[#allocation61_spill]]  ;;  %s64_s9 = int_to_ptr.hbm [resolvable:$true] %s63_s9 }
  0x37   :  { %68 = dma.hbm_to_vmem [thread:$0]  %s64_s9, 16, %s66_s21, [#allocation5]  }
  0x38   :  { %s87_s4 = sshll.u32 %s5314_s13, 4  ;;  %s5315_s18 = smov [#allocation11]   ;;  %s88_s4 = int_to_ptr.vmem [resolvable:$true] %s87_s4 }
  0x39   :  { %s114_s1 = sshll.u32 %s5315_s18, 4  ;;  %s139_s3 = sshll.u32 %s7241_s14, 4  ;;  %s115_s1 = int_to_ptr.vmem [resolvable:$true] %s114_s1  ;;  %s140_s3 = int_to_ptr.hbm [resolvable:$true] %s139_s3 }
  0x3a   :  { %s169_s10 = sshll.u32 %s7246_s19, 4  ;;  %s5316_s11 = smov [#allocation14]   ;;  %s170_s10 = int_to_ptr.hbm [resolvable:$true] %s169_s10 }
  0x3b   :  { %s85_s2 = sshll.u32 %s7287_s0, 4  ;;  %s141_s0 = sshll.u32 %s5316_s11, 4  ;;  %s86_s2 = int_to_ptr.hbm [resolvable:$true] %s85_s2  ;;  %s142_s0 = int_to_ptr.vmem [resolvable:$true] %s141_s0 }
  0x3c   :  { %s112_s12 = sshll.u32 %s7288_s7, 4  ;;  %s196_s14 = sshll.u32 %s7250_s23, 4  ;;  %s113_s12 = int_to_ptr.hbm [resolvable:$true] %s112_s12  ;;  %s197_s14 = int_to_ptr.hbm [resolvable:$true] %s196_s14 }
  0x3d   :  { %90 = dma.hbm_to_vmem [thread:$0]  %s86_s2, 16, %s88_s4, [#allocation7]  }
  0x3e   :  { %120 = dma.hbm_to_vmem [thread:$0]  %s113_s12, 1536, %s115_s1, [#allocation10], %s5308_s8, %s5308_s8, %s5309_s5  }
  0x3f   :  { %144 = dma.hbm_to_vmem [thread:$0]  %s140_s3, 16, %s142_s0, [#allocation13]  }
  0x40   :  { %s5317_s2 = smov [#allocation17]   ;;  %s209_s4 = sshll.u32 %s7251_s24, 4  ;;  %s210_s4 = int_to_ptr.hbm [resolvable:$true] %s209_s4 }
  0x41   :  { %s171_s29 = sshll.u32 %s5317_s2, 4  ;;  %s5318_s18 = smov [#allocation20]   ;;  %s172_s29 = int_to_ptr.vmem [resolvable:$true] %s171_s29 }
  0x42   :  { %174 = dma.hbm_to_vmem [thread:$0]  %s170_s10, 16, %s172_s29, [#allocation16]  }
  0x43   :  { %s198_s19 = sshll.u32 %s5318_s18, 4  ;;  %s5319_s1 = smov [#allocation21]   ;;  %s199_s19 = int_to_ptr.vmem [resolvable:$true] %s198_s19 }
  0x44   :  { %204 = dma.hbm_to_vmem [thread:$0]  %s197_s14, 1024, %s199_s19, [#allocation19], %s5308_s8, %s5308_s8, %s5309_s5  }
  0x45   :  { %s211_s30 = sshll.u32 %s5319_s1, 4  ;;  %s212_s30 = int_to_ptr.vmem [resolvable:$true] %s211_s30 }
  0x46   :  { %217 = dma.hbm_to_vmem [thread:$0]  %s210_s4, 512, %s212_s30, [#allocation22], %s5308_s8, %s5308_s8, %s5309_s5  }
  0x47   :  { %5291 = dma.done.wait [#allocation5], 16  }
  0x48   :  { %5292 = vsyncadd [#allocation5], 4294967280 }
  0x49   :  { %5293 = dma.done.wait [#allocation7], 32  }
  0x4a   :  { %5294 = vsyncadd [#allocation7], 4294967264 }
  0x4b   :  { %5295 = dma.done.wait [#allocation10], 3072  }
  0x4c   :  { %5296 = vsyncadd [#allocation10], 4294964224 }
  0x4d   :  { %5297 = dma.done.wait [#allocation13], 528  }
  0x4e   :  { %5298 = vsyncadd [#allocation13], 4294966768 }
  0x4f   :  { %5299 = dma.done.wait [#allocation16], 528  }
  0x50   :  { %5300 = vsyncadd [#allocation16], 4294966768 }
  0x51   :  { %5301 = dma.done.wait [#allocation19], 1536  }
  0x52   :  { %5302 = vsyncadd [#allocation19], 4294965760 }
  0x53   :  { %5303 = dma.done.wait [#allocation22], 512  }
  0x54   :  { %5304 = vsyncadd [#allocation22], 4294966784  ;;  %v5320_v0 = vmov 0   ;;  %s7289_s8 = sld [smem:[#allocation50_spill]]  ;;  %v288_v33 = vlaneseq  ;;  %v5321_v36 = vmov 1.0   ;;  %s5323_s29 = smov 64  }
  0x55   :  { %4778 = vset.pattern.permute.xlu1 %v5320_v0  ;;  %4777 = vset.pattern.permute.xlu0 %v5320_v0  ;;  %s7290_s14 = sld [smem:[#allocation51_spill]] }
  0x56   :  { %4779 = vset.pattern.permute.xlu2 %v5320_v0  ;;  %v5627_v34 = vand.u32 127, %v288_v33  ;;  %s7292_s24 = sld [smem:[#allocation52_spill]] }
  0x57   :  { %s7293_s2 = sld [smem:[#allocation53_spill]] }
  0x58   :  { %7291 = vst [vmem:[#allocation31_spill] sm:$0xff] %v5627_v34  ;;  %s7331_s13 = sld [smem:[#allocation59_spill]] }
  0x59   :  { %s7332_s21 = sld [smem:[#allocation60_spill]] }
  0x5a   :  { %v274_v1 = vld [vmem:[%s7289_s8 + $0x10] sm:$0xff]  ;;  %v272_v2 = vld [vmem:[%s7289_s8] sm:$0xff]  ;;  %v275_v4 = vld [vmem:[%s7289_s8 + $0x18] sm:$0xff]  ;;  %s3654_s1 = sld [smem:[#allocation3]] }
  0x5b   :  { %297 = vperm.xlu1 %4778, %v274_v1   ;;  %291 = vperm.xlu0 %4777, %v272_v2   ;;  %v276_v3 = vld [vmem:[%s7289_s8 + $0x20] sm:$0xff]  ;;  %v273_v5 = vld [vmem:[%s7289_s8 + $0x8] sm:$0xff]  ;;  %v401_v7 = vld [vmem:[%s7290_s14 + $0x78] sm:$0xff]  ;;  %s4723_s30 = sld [smem:[#allocation3 + $0x1]] }
  0x5c   :  { %303 = vperm.xlu2 %4779, %v276_v3   ;;  %v277_v6 = vld [vmem:[%s7289_s8 + $0x28] sm:$0xff]  ;;  %402 = vmatpush.msra.mxu0 %v401_v7  ;;  %v400_v8 = vld [vmem:[%s7290_s14 + $0x70] sm:$0xff]  ;;  %v398_v10 = vld [vmem:[%s7290_s14 + $0x60] sm:$0xff]  ;;  %s4725_s23 = sld [smem:[#allocation3 + $0x2]] }
  0x5d   :  { %v399_v9 = vld [vmem:[%s7290_s14 + $0x68] sm:$0xff]  ;;  %v279_v11 = vld [vmem:[%s7289_s8 + $0x38] sm:$0xff]  ;;  %v278_v12 = vld [vmem:[%s7289_s8 + $0x30] sm:$0xff] }
  0x5e   :  { %403 = vmatpush.msra.mxu0 %v400_v8  ;;  %v397_v13 = vld [vmem:[%s7290_s14 + $0x58] sm:$0xff]  ;;  %v280_v14 = vld [vmem:[%s7289_s8 + $0x40] sm:$0xff]  ;;  %v396_v15 = vld [vmem:[%s7290_s14 + $0x50] sm:$0xff] }
  0x5f   :  { %v395_v16 = vld [vmem:[%s7290_s14 + $0x48] sm:$0xff]  ;;  %v394_v17 = vld [vmem:[%s7290_s14 + $0x40] sm:$0xff]  ;;  %v282_v18 = vld [vmem:[%s7289_s8 + $0x50] sm:$0xff] }
  0x60   :  { %404 = vmatpush.msra.mxu0 %v399_v9  ;;  %v281_v19 = vld [vmem:[%s7289_s8 + $0x48] sm:$0xff]  ;;  %v393_v20 = vld [vmem:[%s7290_s14 + $0x38] sm:$0xff]  ;;  %v392_v22 = vld [vmem:[%s7290_s14 + $0x30] sm:$0xff] }
  0x61   :  { %v283_v21 = vld [vmem:[%s7289_s8 + $0x58] sm:$0xff]  ;;  %v391_v23 = vld [vmem:[%s7290_s14 + $0x28] sm:$0xff]  ;;  %v390_v24 = vld [vmem:[%s7290_s14 + $0x20] sm:$0xff] }
  0x62   :  { %405 = vmatpush.msra.mxu0 %v398_v10  ;;  %v285_v25 = vld [vmem:[%s7289_s8 + $0x68] sm:$0xff]  ;;  %v284_v26 = vld [vmem:[%s7289_s8 + $0x60] sm:$0xff]  ;;  %v389_v27 = vld [vmem:[%s7290_s14 + $0x18] sm:$0xff] }
  0x63   :  { %300 = vperm.xlu1 %4778, %v275_v4   ;;  %294 = vperm.xlu0 %4777, %v273_v5   ;;  %v286_v28 = vld [vmem:[%s7289_s8 + $0x70] sm:$0xff]  ;;  %v387_v30 = vld [vmem:[%s7290_s14 + $0x8] sm:$0xff]  ;;  %v287_v31 = vld [vmem:[%s7289_s8 + $0x78] sm:$0xff]  ;;  %s7294_s8 = sld [smem:[#allocation54_spill]] }
  0x64   :  { %306 = vperm.xlu2 %4779, %v277_v6   ;;  %406 = vmatpush.msra.mxu0 %v397_v13  ;;  %v388_v29 = vld [vmem:[%s7290_s14 + $0x10] sm:$0xff]  ;;  %v386_v32 = vld [vmem:[%s7290_s14] sm:$0xff]  ;;  %v470_v48 = vld [vmem:[%s7292_s24 + $0x18] sm:$0xff]  ;;  %s4727_s14 = sld [smem:[#allocation3 + $0x3]] }
  0x65   :  { %v469_v49 = vld [vmem:[%s7292_s24 + $0x10] sm:$0xff]  ;;  %4744 = vmatpush.msra.mxu1 %v470_v48  ;;  %4745 = vmatpush.msra.mxu2 %v470_v48  ;;  %v468_v51 = vld [vmem:[%s7292_s24 + $0x8] sm:$0xff]  ;;  %v467_v52 = vld [vmem:[%s7292_s24] sm:$0xff] }
  0x66   :  { %407 = vmatpush.msra.mxu0 %v396_v15  ;;  %4746 = vmatpush.msra.mxu3 %v470_v48  ;;  %v4573_v53 = vld [vmem:[%s7293_s2 + $0x78] sm:$0xff]  ;;  %v4572_v54 = vld [vmem:[%s7293_s2 + $0x70] sm:$0xff]  ;;  %v4571_v56 = vld [vmem:[%s7293_s2 + $0x68] sm:$0xff] }
  0x67   :  { %4747 = vmatpush.msra.mxu1 %v469_v49  ;;  %4748 = vmatpush.msra.mxu2 %v469_v49  ;;  %v4570_v57 = vld [vmem:[%s7293_s2 + $0x60] sm:$0xff]  ;;  %v995_v62 = vld [vmem:[%s7293_s2 + $0x18] sm:$0xff]  ;;  %v994_v2 = vld [vmem:[%s7293_s2 + $0x10] sm:$0xff] }
  0x68   :  { %408 = vmatpush.msra.mxu0 %v395_v16  ;;  %4749 = vmatpush.msra.mxu3 %v469_v49  ;;  %v993_v6 = vld [vmem:[%s7293_s2 + $0x8] sm:$0xff]  ;;  %v992_v9 = vld [vmem:[%s7293_s2] sm:$0xff]  ;;  %v4497_v16 = vld [vmem:[%s7292_s24 + $0x58] sm:$0xff] }
  0x69   :  { %4750 = vmatpush.msra.mxu1 %v468_v51  ;;  %4751 = vmatpush.msra.mxu2 %v468_v51  ;;  %v4475_v13 = vld [vmem:[%s7292_s24 + $0x28] sm:$0xff]  ;;  %v4532_v33 = vld [vmem:[%s7293_s2 + $0x30] sm:$0xff] }
  0x6a   :  { %409 = vmatpush.msra.mxu0 %v394_v17  ;;  %4752 = vmatpush.msra.mxu3 %v468_v51  ;;  %v4496_v17 = vld [vmem:[%s7292_s24 + $0x50] sm:$0xff] }
  0x6b   :  { %312 = vperm.xlu1 %4778, %v279_v11   ;;  %309 = vperm.xlu0 %4777, %v278_v12   ;;  %v4477_v11 = vld [vmem:[%s7292_s24 + $0x38] sm:$0xff]  ;;  %v4476_v12 = vld [vmem:[%s7292_s24 + $0x30] sm:$0xff] }
  0x6c   :  { %315 = vperm.xlu2 %4779, %v280_v14   ;;  %410 = vmatpush.msra.mxu0 %v393_v20  ;;  %v4474_v14 = vld [vmem:[%s7292_s24 + $0x20] sm:$0xff] }
  0x6d   :  { %4753 = vmatpush.msra.mxu1 %v467_v52  ;;  %4754 = vmatpush.msra.mxu2 %v467_v52  ;;  %v4494_v20 = vld [vmem:[%s7292_s24 + $0x40] sm:$0xff] }
  0x6e   :  { %411 = vmatpush.msra.mxu0 %v392_v22  ;;  %4755 = vmatpush.msra.mxu3 %v467_v52  ;;  %v4648_v22 = vld [vmem:[%s7294_s8 + $0x70] sm:$0xff] }
  0x6f   :  { %1008 = vmatpush.msrb.mxu1 %v995_v62  ;;  %602 = vmatpush.msrb.mxu2 %v4477_v11 }
  0x70   :  { %412 = vmatpush.msra.mxu0 %v391_v23  ;;  %672 = vmatpush.msrb.mxu3 %v4497_v16  ;;  %v4609_v16 = vld [vmem:[%s7294_s8 + $0x38] sm:$0xff] }
  0x71   :  { %1009 = vmatpush.msrb.mxu1 %v994_v2  ;;  %603 = vmatpush.msrb.mxu2 %v4476_v12  ;;  %v1603_v2 = vld [vmem:[%s7294_s8] sm:$0xff] }
  0x72   :  { %413 = vmatpush.msra.mxu0 %v390_v24  ;;  %673 = vmatpush.msrb.mxu3 %v4496_v17  ;;  %v4647_v24 = vld [vmem:[%s7294_s8 + $0x68] sm:$0xff]  ;;  %v4629_v17 = vld [vmem:[%s7294_s8 + $0x58] sm:$0xff] }
  0x73   :  { %321 = vperm.xlu1 %4778, %v282_v18   ;;  %318 = vperm.xlu0 %4777, %v281_v19   ;;  %v4495_v18 = vld [vmem:[%s7292_s24 + $0x48] sm:$0xff] }
  0x74   :  { %324 = vperm.xlu2 %4779, %v283_v21   ;;  %414 = vmatpush.msra.mxu0 %v389_v27  ;;  %v4649_v21 = vld [vmem:[%s7294_s8 + $0x78] sm:$0xff] }
  0x75   :  { %1010 = vmatpush.msrb.mxu1 %v993_v6  ;;  %604 = vmatpush.msrb.mxu2 %v4475_v13 }
  0x76   :  { %415 = vmatpush.msra.mxu0 %v388_v29  ;;  %674 = vmatpush.msrb.mxu3 %v4495_v18  ;;  %v4553_v29 = vld [vmem:[%s7293_s2 + $0x58] sm:$0xff] }
  0x77   :  { %1011 = vmatpush.msrb.mxu1 %v992_v9  ;;  %605 = vmatpush.msrb.mxu2 %v4474_v14 }
  0x78   :  { %416 = vmatpush.msra.mxu0 %v387_v30  ;;  %675 = vmatpush.msrb.mxu3 %v4494_v20 }
  0x7a   :  { %417 = vmatpush.msra.mxu0 %v386_v32 }
  0x7b   :  { %330 = vperm.xlu1 %4778, %v285_v25   ;;  %327 = vperm.xlu0 %4777, %v284_v26   ;;  %v4646_v25 = vld [vmem:[%s7294_s8 + $0x60] sm:$0xff]  ;;  %v4533_v26 = vld [vmem:[%s7293_s2 + $0x38] sm:$0xff] }
  0x7c   :  { %333 = vperm.xlu2 %4779, %v286_v28   ;;  %532 = vmatpush.msrb.mxu0 %v470_v48  ;;  %v1606_v28 = vld [vmem:[%s7294_s8 + $0x18] sm:$0xff] }
  0x7e   :  { %533 = vmatpush.msrb.mxu0 %v469_v49 }
  0x80   :  { %534 = vmatpush.msrb.mxu0 %v468_v51 }
  0x82   :  { %535 = vmatpush.msrb.mxu0 %v467_v52 }
  0x83   :  { %336 = vperm.xlu0 %4777, %v287_v31  }
  0xb6   :  { %v304_v40 = vpop.permute.xlu2 %303 }
  0xb7   :  { %vm342_vm4 = vcmp.eq.s32.totalorder %v5627_v34, %v304_v40 }
  0xbe   :  { %v307_v41 = vpop.permute.xlu2 %306 }
  0xbf   :  { %vm343_vm5 = vcmp.eq.s32.totalorder %v5627_v34, %v307_v41 }
  0xc6   :  { %v316_v44 = vpop.permute.xlu2 %315 }
  0xc7   :  { %vm346_vm8 = vcmp.eq.s32.totalorder %v5627_v34, %v316_v44 }
  0xcd   :  { %v292_v35 = vpop.permute.xlu0 %291  ;;  %v298_v38 = vpop.permute.xlu1 %297 }
  0xce   :  { %vm338_vm0 = vcmp.eq.s32.totalorder %v5627_v34, %v292_v35  ;;  %vm340_vm2 = vcmp.eq.s32.totalorder %v5627_v34, %v298_v38  ;;  %v325_v47 = vpop.permute.xlu2 %324  ;;  %v4552_v35 = vld [vmem:[%s7293_s2 + $0x50] sm:$0xff] }
  0xcf   :  { %4442 = vmatmul.msk.f32.vlgmr.msra.gmra.mxu0 %vm338_vm0, %v5321_v36  ;;  %vm349_vm11 = vcmp.eq.s32.totalorder %v5627_v34, %v325_v47  ;;  %vm471_vm0 = vcmask 261120  }
  0xd0   :  { %1218 = vmatpush.msra.mxu0 %v4573_v53 }
  0xd2   :  { %1219 = vmatpush.msra.mxu0 %v4572_v54 }
  0xd4   :  { %1220 = vmatpush.msra.mxu0 %v4571_v56  ;;  %v4530_v56 = vld [vmem:[%s7293_s2 + $0x20] sm:$0xff] }
  0xd5   :  { %v295_v37 = vpop.permute.xlu0 %294  ;;  %v301_v39 = vpop.permute.xlu1 %300 }
  0xd6   :  { %vm339_vm1 = vcmp.eq.s32.totalorder %v5627_v34, %v295_v37  ;;  %vm341_vm3 = vcmp.eq.s32.totalorder %v5627_v34, %v301_v39  ;;  %1221 = vmatpush.msra.mxu0 %v4570_v57  ;;  %v334_v58 = vpop.permute.xlu2 %333  ;;  %v1605_v39 = vld [vmem:[%s7294_s8 + $0x10] sm:$0xff]  ;;  %v4550_v57 = vld [vmem:[%s7293_s2 + $0x40] sm:$0xff] }
  0xd7   :  { %4443 = vmatmul.msk.f32.gmra.mxu0 %vm339_vm1, %v5321_v36  ;;  %vm352_vm14 = vcmp.eq.s32.totalorder %v5627_v34, %v334_v58  ;;  %vm727_vm1 = vcmask 1046528  }
  0xdd   :  { %v310_v42 = vpop.permute.xlu0 %309  ;;  %v313_v43 = vpop.permute.xlu1 %312 }
  0xde   :  { %vm344_vm6 = vcmp.eq.s32.totalorder %v5627_v34, %v310_v42  ;;  %vm345_vm7 = vcmp.eq.s32.totalorder %v5627_v34, %v313_v43 }
  0xdf   :  { %4444 = vmatmul.msk.f32.gmra.mxu0 %vm340_vm2, %v5321_v36  ;;  %vm737_vm2 = vcmask 1045504  }
  0xe5   :  { %v319_v45 = vpop.permute.xlu0 %318  ;;  %v322_v46 = vpop.permute.xlu1 %321 }
  0xe6   :  { %vm347_vm9 = vcmp.eq.s32.totalorder %v5627_v34, %v319_v45  ;;  %vm348_vm10 = vcmp.eq.s32.totalorder %v5627_v34, %v322_v46  ;;  %v4531_v45 = vld [vmem:[%s7293_s2 + $0x28] sm:$0xff] }
  0xe7   :  { %4445 = vmatmul.msk.f32.gmra.mxu0 %vm341_vm3, %v5321_v36  ;;  %v4551_v46 = vld [vmem:[%s7293_s2 + $0x48] sm:$0xff]  ;;  %vm988_vm3 = vcmask 1044480  }
  0xed   :  { %v328_v50 = vpop.permute.xlu0 %327  ;;  %v331_v55 = vpop.permute.xlu1 %330 }
  0xee   :  { %vm350_vm12 = vcmp.eq.s32.totalorder %v5627_v34, %v328_v50  ;;  %vm351_vm13 = vcmp.eq.s32.totalorder %v5627_v34, %v331_v55  ;;  %v1604_v50 = vld [vmem:[%s7294_s8 + $0x8] sm:$0xff] }
  0xef   :  { %4446 = vmatmul.msk.f32.gmra.mxu0 %vm342_vm4, %v5321_v36  ;;  %vm754_vm4 = vcmask 259072  }
  0xf5   :  { %v337_v59 = vpop.permute.xlu0 %336 }
  0xf6   :  { %vm353_vm15 = vcmp.eq.s32.totalorder %v5627_v34, %v337_v59 }
  0xf7   :  { %4447 = vmatmul.msk.f32.gmra.mxu0 %vm343_vm5, %v5321_v36  ;;  %vm980_vm5 = vcmask 1040384  }
  0xff   :  { %4448 = vmatmul.msk.f32.gmra.mxu0 %vm344_vm6, %v5321_v36  ;;  %vm982_vm6 = vcmask 1041408  }
 0x107   :  { %4449 = vmatmul.msk.f32.gmra.mxu0 %vm345_vm7, %v5321_v36  ;;  %vm984_vm7 = vcmask 1042432  }
 0x10f   :  { %4450 = vmatmul.msk.f32.gmra.mxu0 %vm346_vm8, %v5321_v36  ;;  %vm986_vm8 = vcmask 1043456  }
 0x117   :  { %4451 = vmatmul.msk.f32.gmra.mxu0 %vm347_vm9, %v5321_v36  ;;  %vm1307_vm9 = vcmask 258048  }
 0x11f   :  { %4452 = vmatmul.msk.f32.gmra.mxu0 %vm348_vm10, %v5321_v36  ;;  %vm1997_vm10 = vcmask 257024  }
 0x127   :  { %4453 = vmatmul.msk.f32.gmra.mxu0 %vm349_vm11, %v5321_v36  ;;  %vm7268_vm11 = vcmask 523264  }
 0x12f   :  { %4454 = vmatmul.msk.f32.gmra.mxu0 %vm350_vm12, %v5321_v36  ;;  %vm2383_vm12 = vcmask 785408  }
 0x137   :  { %4455 = vmatmul.msk.f32.gmra.mxu0 %vm351_vm13, %v5321_v36 }
 0x13f   :  { %4456 = vmatmul.msk.f32.gmra.mxu0 %vm352_vm14, %v5321_v36 }
 0x147   :  { %4457 = vmatmul.msk.f32.gmra.mxu0 %vm353_vm15, %v5321_v36 }
 0x14c   :  { %v5685_v60 = vpop.f32.mrf.mxu0 }
 0x14f   :  { %4458 = vmatmul.msk.f32.vlgmr.msrb.gmra.mxu0 %vm471_vm0, %v5685_v60 }
 0x150   :  { %1829 = vmatpush.msrb.mxu0 %v4649_v21 }
 0x152   :  { %1830 = vmatpush.msrb.mxu0 %v4648_v22 }
 0x154   :  { %v5689_v61 = vpop.f32.mrf.mxu0  ;;  %1831 = vmatpush.msrb.mxu0 %v4647_v24 }
 0x155   :  { %4459 = vmatmul.msk.f32.vlgmr.msra.gmra.mxu1 %vm471_vm0, %v5689_v61 }
 0x156   :  { %1832 = vmatpush.msrb.mxu0 %v4646_v25  ;;  %1619 = vmatpush.msra.mxu1 %v1606_v28 }
 0x157   :  { %4574 = vmatmul.msk.f32.vlgmr.msra.gmra.mxu0 %vm471_vm0, %v5685_v60 }
 0x158   :  { %1620 = vmatpush.msra.mxu1 %v1605_v39 }
 0x15a   :  { %1621 = vmatpush.msra.mxu1 %v1604_v50 }
 0x15c   :  { %v5698_v63 = vpop.f32.mrf.mxu0  ;;  %1622 = vmatpush.msra.mxu1 %v1603_v2 }
 0x15d   :  { %4460 = vmatmul.msk.f32.gmra.mxu1 %vm471_vm0, %v5698_v63 }
 0x15f   :  { %4575 = vmatmul.msk.f32.gmra.mxu0 %vm471_vm0, %v5689_v61 }
 0x164   :  { %v5704_v0 = vpop.f32.mrf.mxu0 }
 0x165   :  { %4461 = vmatmul.msk.f32.gmra.mxu1 %vm471_vm0, %v5704_v0 }
 0x167   :  { %4576 = vmatmul.msk.f32.gmra.mxu0 %vm471_vm0, %v5698_v63 }
 0x16c   :  { %v5710_v1 = vpop.f32.mrf.mxu0 }
 0x16d   :  { %4462 = vmatmul.msk.f32.gmra.mxu1 %vm471_vm0, %v5710_v1 }
 0x16f   :  { %4577 = vmatmul.msk.f32.gmra.mxu0 %vm471_vm0, %v5704_v0 }
 0x174   :  { %v5719_v3 = vpop.f32.mrf.mxu0 }
 0x175   :  { %4463 = vmatmul.msk.f32.gmra.mxu1 %vm471_vm0, %v5719_v3 }
 0x177   :  { %4578 = vmatmul.msk.f32.gmra.mxu0 %vm471_vm0, %v5710_v1 }
 0x17c   :  { %v5725_v4 = vpop.f32.mrf.mxu0 }
 0x17d   :  { %4464 = vmatmul.msk.f32.gmra.mxu1 %vm471_vm0, %v5725_v4 }
 0x17f   :  { %4579 = vmatmul.msk.f32.gmra.mxu0 %vm471_vm0, %v5719_v3 }
 0x184   :  { %v5731_v5 = vpop.f32.mrf.mxu0 }
 0x185   :  { %4465 = vmatmul.msk.f32.gmra.mxu1 %vm471_vm0, %v5731_v5 }
 0x187   :  { %4580 = vmatmul.msk.f32.gmra.mxu0 %vm471_vm0, %v5725_v4 }
 0x18c   :  { %v5740_v7 = vpop.f32.mrf.mxu0 }
 0x18d   :  { %4466 = vmatmul.msk.f32.gmra.mxu1 %vm471_vm0, %v5740_v7 }
 0x18f   :  { %4581 = vmatmul.msk.f32.gmra.mxu0 %vm471_vm0, %v5731_v5 }
 0x194   :  { %v5746_v8 = vpop.f32.mrf.mxu0 }
 0x195   :  { %4467 = vmatmul.msk.f32.gmra.mxu1 %vm471_vm0, %v5746_v8 }
 0x197   :  { %4582 = vmatmul.msk.f32.gmra.mxu0 %vm471_vm0, %v5740_v7 }
 0x19c   :  { %v5755_v10 = vpop.f32.mrf.mxu0 }
 0x19d   :  { %4468 = vmatmul.msk.f32.gmra.mxu1 %vm471_vm0, %v5755_v10 }
 0x19f   :  { %4583 = vmatmul.msk.f32.gmra.mxu0 %vm471_vm0, %v5746_v8 }
 0x1a4   :  { %v5773_v15 = vpop.f32.mrf.mxu0 }
 0x1a5   :  { %4469 = vmatmul.msk.f32.gmra.mxu1 %vm471_vm0, %v5773_v15 }
 0x1a7   :  { %4584 = vmatmul.msk.f32.gmra.mxu0 %vm471_vm0, %v5755_v10 }
 0x1ac   :  { %v5788_v19 = vpop.f32.mrf.mxu0 }
 0x1ad   :  { %4470 = vmatmul.msk.f32.gmra.mxu1 %vm471_vm0, %v5788_v19 }
 0x1af   :  { %4585 = vmatmul.msk.f32.gmra.mxu0 %vm471_vm0, %v5773_v15 }
 0x1b4   :  { %v5803_v23 = vpop.f32.mrf.mxu0 }
 0x1b5   :  { %4471 = vmatmul.msk.f32.gmra.mxu1 %vm471_vm0, %v5803_v23 }
 0x1b7   :  { %4586 = vmatmul.msk.f32.gmra.mxu0 %vm471_vm0, %v5788_v19 }
 0x1bc   :  { %v5818_v27 = vpop.f32.mrf.mxu0 }
 0x1bd   :  { %4472 = vmatmul.msk.f32.vlgmr.msra.gmra.mxu2 %vm471_vm0, %v5818_v27  ;;  %4514 = vmatmul.msk.f32.vlgmr.msrb.gmra.mxu1 %vm471_vm0, %v5685_v60 }
 0x1be   :  { %1078 = vmatpush.msra.mxu2 %v4533_v26 }
 0x1bf   :  { %4587 = vmatmul.msk.f32.gmra.mxu0 %vm471_vm0, %v5803_v23 }
 0x1c0   :  { %1079 = vmatpush.msra.mxu2 %v4532_v33  ;;  %v4669_v33 = vld [vmem:[%s7294_s8 + $0x98] sm:$0xff] }
 0x1c1   :  { %1899 = vmatpush.msrb.mxu1 %v4669_v33 }
 0x1c2   :  { %1080 = vmatpush.msra.mxu2 %v4531_v45 }
 0x1c4   :  { %v5832_v30 = vpop.f32.mrf.mxu0  ;;  %1081 = vmatpush.msra.mxu2 %v4530_v56 }
 0x1c5   :  { %4473 = vmatmul.msk.f32.vlgmr.msra.gmra.mxu3 %vm471_vm0, %v5832_v30  ;;  %4478 = vmatmul.msk.f32.vlgmr.msrb.gmra.mxu2 %vm471_vm0, %v5685_v60 }
 0x1c6   :  { %4515 = vmatmul.msk.f32.gmra.mxu1 %vm471_vm0, %v5689_v61  ;;  %1148 = vmatpush.msra.mxu3 %v4553_v29 }
 0x1c7   :  { %4588 = vmatmul.msk.f32.gmra.mxu0 %vm471_vm0, %v5818_v27  ;;  %1689 = vmatpush.msrb.mxu2 %v4609_v16 }
 0x1c8   :  { %1149 = vmatpush.msra.mxu3 %v4552_v35 }
 0x1ca   :  { %1150 = vmatpush.msra.mxu3 %v4551_v46 }
 0x1cc   :  { %v5842_v31 = vpop.f32.mrf.mxu0  ;;  %1151 = vmatpush.msra.mxu3 %v4550_v57 }
 0x1cd   :  { %4479 = vmatmul.msk.f32.gmra.mxu2 %vm471_vm0, %v5689_v61  ;;  %4498 = vmatmul.msk.f32.vlgmr.msrb.gmra.mxu3 %vm471_vm0, %v5685_v60 }
 0x1ce   :  { %4516 = vmatmul.msk.f32.gmra.mxu1 %vm471_vm0, %v5698_v63  ;;  %1759 = vmatpush.msrb.mxu3 %v4629_v17 }
 0x1cf   :  { %4589 = vmatmul.msk.f32.gmra.mxu0 %vm471_vm0, %v5832_v30 }
 0x1d2   :  { %v5852_v32 = vpop.f32.mrf.mxu1 }
 0x1d4   :  { %v5860_v36 = vpop.f32.mrf.mxu0 }
 0x1d5   :  { %4480 = vmatmul.msk.f32.gmra.mxu2 %vm471_vm0, %v5698_v63  ;;  %4499 = vmatmul.msk.f32.gmra.mxu3 %vm471_vm0, %v5689_v61 }
 0x1d6   :  { %4517 = vmatmul.msk.f32.gmra.mxu1 %vm471_vm0, %v5704_v0 }
 0x1d7   :  { %4650 = vmatmul.msk.f32.vlgmr.msrb.gmra.mxu0 %vm471_vm0, %v5685_v60 }
 0x1da   :  { %v5870_v37 = vpop.f32.mrf.mxu1 }
 0x1dc   :  { %v5872_v38 = vpop.f32.mrf.mxu0 }
 0x1dd   :  { %4481 = vmatmul.msk.f32.gmra.mxu2 %vm471_vm0, %v5704_v0  ;;  %4500 = vmatmul.msk.f32.gmra.mxu3 %vm471_vm0, %v5698_v63 }
 0x1de   :  { %4518 = vmatmul.msk.f32.gmra.mxu1 %vm471_vm0, %v5710_v1 }
 0x1df   :  { %4651 = vmatmul.msk.f32.gmra.mxu0 %vm471_vm0, %v5689_v61 }
 0x1e2   :  { %v5885_v40 = vpop.f32.mrf.mxu1 }
 0x1e4   :  { %v5887_v41 = vpop.f32.mrf.mxu0 }
 0x1e5   :  { %4482 = vmatmul.msk.f32.gmra.mxu2 %vm471_vm0, %v5710_v1  ;;  %4501 = vmatmul.msk.f32.gmra.mxu3 %vm471_vm0, %v5704_v0 }
 0x1e6   :  { %4519 = vmatmul.msk.f32.gmra.mxu1 %vm471_vm0, %v5719_v3 }
 0x1e7   :  { %4652 = vmatmul.msk.f32.gmra.mxu0 %vm471_vm0, %v5698_v63 }
 0x1ea   :  { %v5897_v42 = vpop.f32.mrf.mxu1 }
 0x1ec   :  { %v5899_v43 = vpop.f32.mrf.mxu0 }
 0x1ed   :  { %4483 = vmatmul.msk.f32.gmra.mxu2 %vm471_vm0, %v5719_v3  ;;  %4502 = vmatmul.msk.f32.gmra.mxu3 %vm471_vm0, %v5710_v1 }
 0x1ee   :  { %4520 = vmatmul.msk.f32.gmra.mxu1 %vm471_vm0, %v5725_v4 }
 0x1ef   :  { %4653 = vmatmul.msk.f32.gmra.mxu0 %vm471_vm0, %v5704_v0 }
 0x1f2   :  { %v5909_v44 = vpop.f32.mrf.mxu1 }
 0x1f4   :  { %v5917_v47 = vpop.f32.mrf.mxu0 }
 0x1f5   :  { %7295 = vst [vmem:[#allocation32_spill] sm:$0xff] %v5917_v47  ;;  %4484 = vmatmul.msk.f32.gmra.mxu2 %vm471_vm0, %v5725_v4  ;;  %4503 = vmatmul.msk.f32.gmra.mxu3 %vm471_vm0, %v5719_v3 }
 0x1f6   :  { %4521 = vmatmul.msk.f32.gmra.mxu1 %vm471_vm0, %v5731_v5 }
 0x1f7   :  { %4654 = vmatmul.msk.f32.gmra.mxu0 %vm471_vm0, %v5710_v1 }
 0x1fa   :  { %v5927_v48 = vpop.f32.mrf.mxu1 }
 0x1fc   :  { %v5929_v49 = vpop.f32.mrf.mxu0 }
 0x1fd   :  { %4485 = vmatmul.msk.f32.gmra.mxu2 %vm471_vm0, %v5731_v5  ;;  %4504 = vmatmul.msk.f32.gmra.mxu3 %vm471_vm0, %v5725_v4 }
 0x1fe   :  { %4522 = vmatmul.msk.f32.gmra.mxu1 %vm471_vm0, %v5740_v7 }
 0x1ff   :  { %4655 = vmatmul.msk.f32.gmra.mxu0 %vm471_vm0, %v5719_v3 }
 0x202   :  { %v5942_v51 = vpop.f32.mrf.mxu1 }
 0x204   :  { %v5944_v52 = vpop.f32.mrf.mxu0 }
 0x205   :  { %7296 = vst [vmem:[#allocation33_spill] sm:$0xff] %v5944_v52  ;;  %4486 = vmatmul.msk.f32.gmra.mxu2 %vm471_vm0, %v5740_v7  ;;  %4505 = vmatmul.msk.f32.gmra.mxu3 %vm471_vm0, %v5731_v5 }
 0x206   :  { %4523 = vmatmul.msk.f32.gmra.mxu1 %vm471_vm0, %v5746_v8 }
 0x207   :  { %4656 = vmatmul.msk.f32.gmra.mxu0 %vm471_vm0, %v5725_v4 }
 0x20a   :  { %v5954_v53 = vpop.f32.mrf.mxu1 }
 0x20c   :  { %v5956_v54 = vpop.f32.mrf.mxu0 }
 0x20d   :  { %7297 = vst [vmem:[#allocation34_spill] sm:$0xff] %v5956_v54  ;;  %4487 = vmatmul.msk.f32.gmra.mxu2 %vm471_vm0, %v5746_v8  ;;  %4506 = vmatmul.msk.f32.gmra.mxu3 %vm471_vm0, %v5740_v7 }
 0x20e   :  { %4524 = vmatmul.msk.f32.gmra.mxu1 %vm471_vm0, %v5755_v10 }
 0x20f   :  { %4657 = vmatmul.msk.f32.gmra.mxu0 %vm471_vm0, %v5731_v5 }
 0x212   :  { %v5966_v55 = vpop.f32.mrf.mxu1 }
 0x214   :  { %v5974_v58 = vpop.f32.mrf.mxu0 }
 0x215   :  { %7298 = vst [vmem:[#allocation35_spill] sm:$0xff] %v5974_v58  ;;  %4488 = vmatmul.msk.f32.gmra.mxu2 %vm471_vm0, %v5755_v10  ;;  %4507 = vmatmul.msk.f32.gmra.mxu3 %vm471_vm0, %v5746_v8 }
 0x216   :  { %4525 = vmatmul.msk.f32.gmra.mxu1 %vm471_vm0, %v5773_v15 }
 0x217   :  { %4658 = vmatmul.msk.f32.gmra.mxu0 %vm471_vm0, %v5740_v7 }
 0x21a   :  { %v5984_v59 = vpop.f32.mrf.mxu1 }
 0x21c   :  { %v5986_v62 = vpop.f32.mrf.mxu0 }
 0x21d   :  { %7299 = vst [vmem:[#allocation36_spill] sm:$0xff] %v5986_v62  ;;  %4489 = vmatmul.msk.f32.gmra.mxu2 %vm471_vm0, %v5773_v15  ;;  %4508 = vmatmul.msk.f32.gmra.mxu3 %vm471_vm0, %v5755_v10 }
 0x21e   :  { %4526 = vmatmul.msk.f32.gmra.mxu1 %vm471_vm0, %v5788_v19 }
 0x21f   :  { %4659 = vmatmul.msk.f32.gmra.mxu0 %vm471_vm0, %v5746_v8 }
 0x222   :  { %v5999_v6 = vpop.f32.mrf.mxu1 }
 0x224   :  { %v6001_v9 = vpop.f32.mrf.mxu0 }
 0x225   :  { %7300 = vst [vmem:[#allocation37_spill] sm:$0xff] %v6001_v9  ;;  %4490 = vmatmul.msk.f32.gmra.mxu2 %vm471_vm0, %v5788_v19  ;;  %4509 = vmatmul.msk.f32.gmra.mxu3 %vm471_vm0, %v5773_v15 }
 0x226   :  { %4527 = vmatmul.msk.f32.gmra.mxu1 %vm471_vm0, %v5803_v23 }
 0x227   :  { %4660 = vmatmul.msk.f32.gmra.mxu0 %vm471_vm0, %v5755_v10 }
 0x22a   :  { %v6011_v11 = vpop.f32.mrf.mxu1 }
 0x22c   :  { %v6013_v12 = vpop.f32.mrf.mxu0 }
 0x22d   :  { %7301 = vst [vmem:[#allocation38_spill] sm:$0xff] %v6013_v12  ;;  %4491 = vmatmul.msk.f32.gmra.mxu2 %vm471_vm0, %v5803_v23  ;;  %4510 = vmatmul.msk.f32.gmra.mxu3 %vm471_vm0, %v5788_v19 }
 0x22e   :  { %4528 = vmatmul.msk.f32.gmra.mxu1 %vm471_vm0, %v5818_v27 }
 0x22f   :  { %4661 = vmatmul.msk.f32.gmra.mxu0 %vm471_vm0, %v5773_v15 }
 0x232   :  { %v6023_v13 = vpop.f32.mrf.mxu1 }
 0x234   :  { %v6025_v14 = vpop.f32.mrf.mxu0 }
 0x235   :  { %7302 = vst [vmem:[#allocation39_spill] sm:$0xff] %v6025_v14  ;;  %4492 = vmatmul.msk.f32.gmra.mxu2 %vm471_vm0, %v5818_v27  ;;  %4511 = vmatmul.msk.f32.gmra.mxu3 %vm471_vm0, %v5803_v23 }
 0x236   :  { %4529 = vmatmul.msk.f32.gmra.mxu1 %vm471_vm0, %v5832_v30 }
 0x237   :  { %4662 = vmatmul.msk.f32.gmra.mxu0 %vm471_vm0, %v5788_v19 }
 0x23a   :  { %v6041_v18 = vpop.f32.mrf.mxu1 }
 0x23c   :  { %v6043_v20 = vpop.f32.mrf.mxu0 }
 0x23d   :  { %7303 = vst [vmem:[#allocation40_spill] sm:$0xff] %v6043_v20  ;;  %4493 = vmatmul.msk.f32.gmra.mxu2 %vm471_vm0, %v5832_v30  ;;  %4512 = vmatmul.msk.f32.gmra.mxu3 %vm471_vm0, %v5818_v27 }
 0x23e   :  { %4590 = vmatmul.msk.f32.vlgmr.msra.gmra.mxu1 %vm471_vm0, %v5685_v60 }
 0x23f   :  { %4663 = vmatmul.msk.f32.gmra.mxu0 %vm471_vm0, %v5803_v23 }
 0x240   :  { %v6053_v21 = vpop.f32.mrf.mxu2 }
 0x243   :  { %v6055_v22 = vpop.f32.mrf.mxu1 }
 0x244   :  { %v6057_v24 = vpop.f32.mrf.mxu0 }
 0x245   :  { %7304 = vst [vmem:[#allocation41_spill] sm:$0xff] %v6057_v24  ;;  %4513 = vmatmul.msk.f32.gmra.mxu3 %vm471_vm0, %v5832_v30  ;;  %4534 = vmatmul.msk.f32.vlgmr.msra.gmra.mxu2 %vm471_vm0, %v5685_v60 }
 0x246   :  { %4591 = vmatmul.msk.f32.gmra.mxu1 %vm471_vm0, %v5689_v61 }
 0x247   :  { %4664 = vmatmul.msk.f32.gmra.mxu0 %vm471_vm0, %v5818_v27 }
 0x248   :  { %v6067_v25 = vpop.f32.mrf.mxu3  ;;  %v607_v26 = vpop.f32.mrf.mxu2 }
 0x249   :  { %v728_v45 = vrot.slane %v607_v26, 1 }
 0x24b   :  { %v6069_v28 = vpop.f32.mrf.mxu1 }
 0x24c   :  { %v6071_v29 = vpop.f32.mrf.mxu0 }
 0x24d   :  { %7305 = vst [vmem:[#allocation42_spill] sm:$0xff] %v6071_v29  ;;  %4535 = vmatmul.msk.f32.gmra.mxu2 %vm471_vm0, %v5689_v61  ;;  %4554 = vmatmul.msk.f32.vlgmr.msra.gmra.mxu3 %vm471_vm0, %v5685_v60 }
 0x24e   :  { %4592 = vmatmul.msk.f32.gmra.mxu1 %vm471_vm0, %v5698_v63 }
 0x24f   :  { %4665 = vmatmul.msk.f32.gmra.mxu0 %vm471_vm0, %v5832_v30 }
 0x250   :  { %v610_v35 = vpop.f32.mrf.mxu2  ;;  %v677_v39 = vpop.f32.mrf.mxu3 }
 0x251   :  { %v729_v46 = vrot.slane %v610_v35, 1  ;;  %v738_v26 = vrot.slane %v677_v39, 2  ;;  %v6094_v35 = vld [vmem:[#allocation4] ss:$0 sm:$0xff]  ;;  %v4628_v39 = vld [vmem:[%s7294_s8 + $0x50] sm:$0xff] }
 0x252   :  { %1760 = vmatpush.msrb.mxu3 %v4628_v39 }
 0x253   :  { %v730_v50 = vsel %vm727_vm1, %v728_v45, %v729_v46  ;;  %v6085_v56 = vpop.f32.mrf.mxu1  ;;  %v734_v17 = vadd.f32 %v729_v46, %v5852_v32 }
 0x254   :  { %v1834_v57 = vpop.f32.mrf.mxu0  ;;  %v733_v45 = vadd.f32 %v730_v50, %v5842_v31 }
 0x255   :  { %4536 = vmatmul.msk.f32.gmra.mxu2 %vm471_vm0, %v5698_v63  ;;  %4555 = vmatmul.msk.f32.gmra.mxu3 %vm471_vm0, %v5689_v61  ;;  %v1972_v9 = vrot.slane %v1834_v57, 3 }
 0x256   :  { %4593 = vmatmul.msk.f32.gmra.mxu1 %vm471_vm0, %v5704_v0 }
 0x258   :  { %v613_v2 = vpop.f32.mrf.mxu2  ;;  %v680_v16 = vpop.f32.mrf.mxu3 }
 0x259   :  { %v739_v33 = vrot.slane %v680_v16, 2  ;;  %v765_v57 = vrot.slane %v613_v2, 1 }
 0x25b   :  { %v740_v34 = vsel %vm737_vm2, %v738_v26, %v739_v33  ;;  %v744_v24 = vadd.f32 %v739_v33, %v734_v17  ;;  %v6098_v29 = vpop.f32.mrf.mxu1 }
 0x25c   :  { %v743_v14 = vadd.f32 %v740_v34, %v733_v45  ;;  %v6100_v20 = vpop.f32.mrf.mxu0 }
 0x25d   :  { %7306 = vst [vmem:[#allocation43_spill] sm:$0xff] %v6100_v20  ;;  %v750_v58 = vadd.f32 %v6094_v35, %v744_v24  ;;  %v7264_v12 = vrot.slane %v6100_v20, 3  ;;  %4537 = vmatmul.msk.f32.gmra.mxu2 %vm471_vm0, %v5704_v0  ;;  %4556 = vmatmul.msk.f32.gmra.mxu3 %vm471_vm0, %v5698_v63  ;;  %v4608_v24 = vld [vmem:[%s7294_s8 + $0x30] sm:$0xff] }
 0x25e   :  { %v749_v31 = vadd.f32 %v6094_v35, %v743_v14  ;;  %4594 = vmatmul.msk.f32.gmra.mxu1 %vm471_vm0, %v5710_v1  ;;  %1690 = vmatpush.msrb.mxu2 %v4608_v24 }
 0x25f   :  { %v752_v34 = vmax.f32 %v750_v58, 0.0  ;;  %v6114_v32 = vsel %vm988_vm3, %v1972_v9, %v7264_v12 }
 0x260   :  { %7307 = vst [vmem:[#allocation44_spill] sm:$0xff] %v6114_v32  ;;  %v751_v46 = vmax.f32 %v749_v31, 0.0  ;;  %v616_v14 = vpop.f32.mrf.mxu2  ;;  %v683_v50 = vpop.f32.mrf.mxu3 }
 0x261   :  { %v755_v58 = vsel %vm754_vm4, %v752_v34, -inf  ;;  %v766_v16 = vrot.slane %v616_v14, 1  ;;  %v774_v24 = vrot.slane %v683_v50, 2 }
 0x262   :  { %v753_v9 = vsel %vm471_vm0, %v751_v46, -inf }
 0x263   :  { %v756_v17 = vmax.f32 %v753_v9, %v755_v58  ;;  %v767_v26 = vsel %vm727_vm1, %v765_v57, %v766_v16  ;;  %v6125_v33 = vpop.f32.mrf.mxu1  ;;  %v771_v34 = vadd.f32 %v766_v16, %v5885_v40  ;;  %v4668_v16 = vld [vmem:[%s7294_s8 + $0x90] sm:$0xff] }
 0x264   :  { %v1840_v45 = vpop.f32.mrf.mxu0  ;;  %v770_v46 = vadd.f32 %v767_v26, %v5870_v37  ;;  %1900 = vmatpush.msrb.mxu1 %v4668_v16 }
 0x265   :  { %4538 = vmatmul.msk.f32.gmra.mxu2 %vm471_vm0, %v5710_v1  ;;  %4557 = vmatmul.msk.f32.gmra.mxu3 %vm471_vm0, %v5704_v0  ;;  %v757_v9 = vrot.slane %v756_v17, 4  ;;  %v2026_v20 = vrot.slane %v1840_v45, 3 }
 0x266   :  { %4595 = vmatmul.msk.f32.gmra.mxu1 %vm471_vm0, %v5719_v3 }
 0x267   :  { %v758_v26 = vmax.f32 %v756_v17, %v757_v9 }
 0x268   :  { %v619_v2 = vpop.f32.mrf.mxu2  ;;  %v686_v31 = vpop.f32.mrf.mxu3 }
 0x269   :  { %v775_v39 = vrot.slane %v686_v31, 2 }
 0x26b   :  { %v776_v14 = vsel %vm737_vm2, %v774_v24, %v775_v39  ;;  %v780_v57 = vadd.f32 %v775_v39, %v771_v34  ;;  %v6136_v58 = vpop.f32.mrf.mxu1  ;;  %v796_v24 = vrot.slane %v619_v2, 1 }
 0x26c   :  { %7308 = vst [vmem:[#allocation45_spill] sm:$0xff] %v6136_v58  ;;  %v779_v12 = vadd.f32 %v776_v14, %v770_v46  ;;  %v6138_v32 = vpop.f32.mrf.mxu0 }
 0x26d   :  { %7309 = vst [vmem:[#allocation46_spill] sm:$0xff] %v6138_v32  ;;  %v782_v62 = vadd.f32 %v6094_v35, %v780_v57  ;;  %v7266_v52 = vrot.slane %v6138_v32, 3  ;;  %4539 = vmatmul.msk.f32.gmra.mxu2 %vm471_vm0, %v5719_v3  ;;  %4558 = vmatmul.msk.f32.gmra.mxu3 %vm471_vm0, %v5710_v1  ;;  %v759_v57 = vrot.slane %v758_v26, 2 }
 0x26e   :  { %v781_v37 = vadd.f32 %v6094_v35, %v779_v12  ;;  %4596 = vmatmul.msk.f32.gmra.mxu1 %vm471_vm0, %v5725_v4 }
 0x26f   :  { %v784_v40 = vmax.f32 %v782_v62, 0.0  ;;  %v6152_v50 = vsel %vm988_vm3, %v2026_v20, %v7266_v52  ;;  %v760_v2 = vmax.f32 %v758_v26, %v759_v57 }
 0x270   :  { %7310 = vst [vmem:[#allocation47_spill] sm:$0xff] %v6152_v50  ;;  %v783_v45 = vmax.f32 %v781_v37, 0.0  ;;  %v622_v31 = vpop.f32.mrf.mxu2  ;;  %v689_v34 = vpop.f32.mrf.mxu3 }
 0x271   :  { %v786_v12 = vsel %vm754_vm4, %v784_v40, -inf  ;;  %v797_v39 = vrot.slane %v622_v31, 1 }
 0x272   :  { %v785_v62 = vsel %vm471_vm0, %v783_v45, -inf  ;;  %v805_v45 = vrot.slane %v689_v34, 2 }
 0x273   :  { %v787_v46 = vmax.f32 %v785_v62, %v786_v12  ;;  %v798_v14 = vsel %vm727_vm1, %v796_v24, %v797_v39  ;;  %v6160_v20 = vpop.f32.mrf.mxu1  ;;  %v802_v16 = vadd.f32 %v797_v39, %v5909_v44 }
 0x274   :  { %7311 = vst [vmem:[#allocation48_spill] sm:$0xff] %v6160_v20  ;;  %v1846_v52 = vpop.f32.mrf.mxu0  ;;  %v801_v24 = vadd.f32 %v798_v14, %v5897_v42  ;;  %v761_v20 = vrot.slane %v760_v2, 1  ;;  %v4627_v14 = vld [vmem:[%s7294_s8 + $0x48] sm:$0xff] }
 0x275   :  { %v788_v50 = vrot.slane %v787_v46, 4  ;;  %4540 = vmatmul.msk.f32.gmra.mxu2 %vm471_vm0, %v5725_v4  ;;  %4559 = vmatmul.msk.f32.gmra.mxu3 %vm471_vm0, %v5719_v3  ;;  %v2075_v26 = vrot.slane %v1846_v52, 3 }
 0x276   :  { %4597 = vmatmul.msk.f32.gmra.mxu1 %vm471_vm0, %v5731_v5  ;;  %1761 = vmatpush.msrb.mxu3 %v4627_v14 }
 0x277   :  { %v789_v17 = vmax.f32 %v787_v46, %v788_v50 }
 0x278   :  { %v625_v9 = vpop.f32.mrf.mxu2  ;;  %v692_v37 = vpop.f32.mrf.mxu3 }
 0x279   :  { %v790_v40 = vrot.slane %v789_v17, 2  ;;  %v806_v31 = vrot.slane %v692_v37, 2 }
 0x27b   :  { %v791_v12 = vmax.f32 %v789_v17, %v790_v40  ;;  %v807_v62 = vsel %vm737_vm2, %v805_v45, %v806_v31  ;;  %v811_v32 = vadd.f32 %v806_v31, %v802_v16  ;;  %v6171_v58 = vpop.f32.mrf.mxu1  ;;  %v827_v40 = vrot.slane %v625_v9, 1 }
 0x27c   :  { %v810_v54 = vadd.f32 %v807_v62, %v801_v24  ;;  %v6173_v47 = vpop.f32.mrf.mxu0 }
 0x27d   :  { %v792_v50 = vrot.slane %v791_v12, 1  ;;  %v813_v46 = vadd.f32 %v6094_v35, %v811_v32  ;;  %v2076_v44 = vrot.slane %v6173_v47, 3  ;;  %4541 = vmatmul.msk.f32.gmra.mxu2 %vm471_vm0, %v5731_v5  ;;  %4560 = vmatmul.msk.f32.gmra.mxu3 %vm471_vm0, %v5725_v4  ;;  %v4607_v32 = vld [vmem:[%s7294_s8 + $0x28] sm:$0xff] }
 0x27e   :  { %v812_v42 = vadd.f32 %v6094_v35, %v810_v54  ;;  %4598 = vmatmul.msk.f32.gmra.mxu1 %vm471_vm0, %v5740_v7  ;;  %v762_v54 = vmax.f32 %v760_v2, %v761_v20  ;;  %1691 = vmatpush.msrb.mxu2 %v4607_v32 }
 0x27f   :  { %v793_v34 = vmax.f32 %v791_v12, %v792_v50  ;;  %v815_v39 = vmax.f32 %v813_v46, 0.0  ;;  %v6187_v52 = vsel %vm988_vm3, %v2075_v26, %v2076_v44 }
 0x280   :  { %v814_v57 = vmax.f32 %v812_v42, 0.0  ;;  %v628_v17 = vpop.f32.mrf.mxu2  ;;  %v695_v37 = vpop.f32.mrf.mxu3 }
 0x281   :  { %v817_v16 = vsel %vm754_vm4, %v815_v39, -inf  ;;  %v828_v45 = vrot.slane %v628_v17, 1  ;;  %v981_v24 = vsel %vm980_vm5, %v762_v54, %v793_v34  ;;  %v836_v34 = vrot.slane %v695_v37, 2 }
 0x282   :  { %v816_v31 = vsel %vm471_vm0, %v814_v57, -inf }
 0x283   :  { %v818_v12 = vmax.f32 %v816_v31, %v817_v16  ;;  %v829_v62 = vsel %vm727_vm1, %v827_v40, %v828_v45  ;;  %v6199_v50 = vpop.f32.mrf.mxu1  ;;  %v833_v42 = vadd.f32 %v828_v45, %v5942_v51 }
 0x284   :  { %v832_v32 = vadd.f32 %v829_v62, %v5927_v48  ;;  %v4667_v48 = vld [vmem:[%s7294_s8 + $0x88] sm:$0xff] }
 0x285   :  { %v819_v26 = vrot.slane %v818_v12, 4  ;;  %4542 = vmatmul.msk.f32.gmra.mxu2 %vm471_vm0, %v5740_v7  ;;  %4561 = vmatmul.msk.f32.gmra.mxu3 %vm471_vm0, %v5731_v5 }
 0x286   :  { %4599 = vmatmul.msk.f32.gmra.mxu1 %vm471_vm0, %v5746_v8 }
 0x287   :  { %v820_v20 = vmax.f32 %v818_v12, %v819_v26  ;;  %1901 = vmatpush.msrb.mxu1 %v4667_v48 }
 0x288   :  { %v631_v2 = vpop.f32.mrf.mxu2  ;;  %v698_v9 = vpop.f32.mrf.mxu3 }
 0x289   :  { %v821_v46 = vrot.slane %v820_v20, 2  ;;  %v837_v39 = vrot.slane %v698_v9, 2 }
 0x28b   :  { %v822_v14 = vmax.f32 %v820_v20, %v821_v46  ;;  %v838_v54 = vsel %vm737_vm2, %v836_v34, %v837_v39  ;;  %v842_v57 = vadd.f32 %v837_v39, %v833_v42  ;;  %v6210_v17 = vpop.f32.mrf.mxu1  ;;  %v858_v20 = vrot.slane %v631_v2, 1 }
 0x28c   :  { %v841_v40 = vadd.f32 %v838_v54, %v832_v32 }
 0x28d   :  { %v823_v16 = vrot.slane %v822_v14, 1  ;;  %v844_v31 = vadd.f32 %v6094_v35, %v842_v57  ;;  %4543 = vmatmul.msk.f32.gmra.mxu2 %vm471_vm0, %v5746_v8  ;;  %4562 = vmatmul.msk.f32.gmra.mxu3 %vm471_vm0, %v5740_v7 }
 0x28e   :  { %v843_v51 = vadd.f32 %v6094_v35, %v841_v40  ;;  %4600 = vmatmul.msk.f32.gmra.mxu1 %vm471_vm0, %v5755_v10 }
 0x28f   :  { %v824_v37 = vmax.f32 %v822_v14, %v823_v16  ;;  %v846_v45 = vmax.f32 %v844_v31, 0.0 }
 0x290   :  { %v845_v12 = vmax.f32 %v843_v51, 0.0  ;;  %v634_v62 = vpop.f32.mrf.mxu2  ;;  %v701_v26 = vpop.f32.mrf.mxu3 }
 0x291   :  { %v848_v9 = vsel %vm754_vm4, %v846_v45, -inf  ;;  %v859_v46 = vrot.slane %v634_v62, 1  ;;  %v983_v34 = vsel %vm982_vm6, %v981_v24, %v824_v37  ;;  %v867_v31 = vrot.slane %v701_v26, 2 }
 0x292   :  { %v847_v42 = vsel %vm471_vm0, %v845_v12, -inf }
 0x293   :  { %v849_v39 = vmax.f32 %v847_v42, %v848_v9  ;;  %v860_v32 = vsel %vm727_vm1, %v858_v20, %v859_v46  ;;  %v6227_v54 = vpop.f32.mrf.mxu1  ;;  %v864_v24 = vadd.f32 %v859_v46, %v5966_v55  ;;  %v4606_v20 = vld [vmem:[%s7294_s8 + $0x20] sm:$0xff] }
 0x294   :  { %v863_v51 = vadd.f32 %v860_v32, %v5954_v53  ;;  %v4626_v9 = vld [vmem:[%s7294_s8 + $0x40] sm:$0xff]  ;;  %1692 = vmatpush.msrb.mxu2 %v4606_v20 }
 0x295   :  { %v850_v14 = vrot.slane %v849_v39, 4  ;;  %4544 = vmatmul.msk.f32.gmra.mxu2 %vm471_vm0, %v5755_v10  ;;  %4563 = vmatmul.msk.f32.gmra.mxu3 %vm471_vm0, %v5746_v8  ;;  %v4666_v53 = vld [vmem:[%s7294_s8 + $0x80] sm:$0xff]  ;;  %s5322_s8 = smov 32  }
 0x296   :  { %4601 = vmatmul.msk.f32.gmra.mxu1 %vm471_vm0, %v5773_v15  ;;  %1762 = vmatpush.msrb.mxu3 %v4626_v9 }
 0x297   :  { %v851_v2 = vmax.f32 %v849_v39, %v850_v14  ;;  %1902 = vmatpush.msrb.mxu1 %v4666_v53 }
 0x298   :  { %v637_v57 = vpop.f32.mrf.mxu2  ;;  %v704_v40 = vpop.f32.mrf.mxu3 }
 0x299   :  { %v852_v16 = vrot.slane %v851_v2, 2  ;;  %v868_v48 = vrot.slane %v704_v40, 2 }
 0x29b   :  { %v853_v37 = vmax.f32 %v851_v2, %v852_v16  ;;  %v869_v45 = vsel %vm737_vm2, %v867_v31, %v868_v48  ;;  %v873_v12 = vadd.f32 %v868_v48, %v864_v24  ;;  %v6238_v62 = vpop.f32.mrf.mxu1  ;;  %v889_v16 = vrot.slane %v637_v57, 1 }
 0x29c   :  { %v872_v42 = vadd.f32 %v869_v45, %v863_v51 }
 0x29d   :  { %v854_v55 = vrot.slane %v853_v37, 1  ;;  %v875_v26 = vadd.f32 %v6094_v35, %v873_v12  ;;  %4545 = vmatmul.msk.f32.gmra.mxu2 %vm471_vm0, %v5773_v15  ;;  %4564 = vmatmul.msk.f32.gmra.mxu3 %vm471_vm0, %v5755_v10 }
 0x29e   :  { %v874_v46 = vadd.f32 %v6094_v35, %v872_v42  ;;  %4602 = vmatmul.msk.f32.gmra.mxu1 %vm471_vm0, %v5788_v19 }
 0x29f   :  { %v855_v39 = vmax.f32 %v853_v37, %v854_v55  ;;  %v877_v32 = vmax.f32 %v875_v26, 0.0 }
 0x2a0   :  { %v876_v14 = vmax.f32 %v874_v46, 0.0  ;;  %v640_v2 = vpop.f32.mrf.mxu2  ;;  %v707_v40 = vpop.f32.mrf.mxu3 }
 0x2a1   :  { %v879_v24 = vsel %vm754_vm4, %v877_v32, -inf  ;;  %v890_v31 = vrot.slane %v640_v2, 1  ;;  %v985_v48 = vsel %vm984_vm7, %v983_v34, %v855_v39  ;;  %v898_v55 = vrot.slane %v707_v40, 2 }
 0x2a2   :  { %v878_v51 = vsel %vm471_vm0, %v876_v14, -inf }
 0x2a3   :  { %v880_v45 = vmax.f32 %v878_v51, %v879_v24  ;;  %v891_v12 = vsel %vm727_vm1, %v889_v16, %v890_v31  ;;  %v6261_v20 = vpop.f32.mrf.mxu1  ;;  %v895_v53 = vadd.f32 %v890_v31, %v5999_v6 }
 0x2a4   :  { %v894_v46 = vadd.f32 %v891_v12, %v5984_v59 }
 0x2a5   :  { %v881_v9 = vrot.slane %v880_v45, 4  ;;  %4546 = vmatmul.msk.f32.gmra.mxu2 %vm471_vm0, %v5788_v19  ;;  %4565 = vmatmul.msk.f32.gmra.mxu3 %vm471_vm0, %v5773_v15 }
 0x2a6   :  { %4603 = vmatmul.msk.f32.gmra.mxu1 %vm471_vm0, %v5803_v23 }
 0x2a7   :  { %v882_v57 = vmax.f32 %v880_v45, %v881_v9 }
 0x2a8   :  { %v643_v37 = vpop.f32.mrf.mxu2  ;;  %v710_v34 = vpop.f32.mrf.mxu3 }
 0x2a9   :  { %v883_v42 = vrot.slane %v882_v57, 2  ;;  %v899_v26 = vrot.slane %v710_v34, 2  ;;  %v920_v9 = vrot.slane %v643_v37, 1 }
 0x2ab   :  { %v884_v39 = vmax.f32 %v882_v57, %v883_v42  ;;  %v900_v32 = vsel %vm737_vm2, %v898_v55, %v899_v26  ;;  %v904_v14 = vadd.f32 %v899_v26, %v895_v53  ;;  %v6272_v2 = vpop.f32.mrf.mxu1 }
 0x2ac   :  { %v903_v16 = vadd.f32 %v900_v32, %v894_v46 }
 0x2ad   :  { %v885_v24 = vrot.slane %v884_v39, 1  ;;  %v906_v51 = vadd.f32 %v6094_v35, %v904_v14  ;;  %4547 = vmatmul.msk.f32.gmra.mxu2 %vm471_vm0, %v5803_v23  ;;  %4566 = vmatmul.msk.f32.gmra.mxu3 %vm471_vm0, %v5788_v19 }
 0x2ae   :  { %v905_v6 = vadd.f32 %v6094_v35, %v903_v16  ;;  %4604 = vmatmul.msk.f32.gmra.mxu1 %vm471_vm0, %v5818_v27 }
 0x2af   :  { %v908_v59 = vmax.f32 %v906_v51, 0.0  ;;  %v886_v40 = vmax.f32 %v884_v39, %v885_v24 }
 0x2b0   :  { %v907_v31 = vmax.f32 %v905_v6, 0.0  ;;  %v646_v45 = vpop.f32.mrf.mxu2  ;;  %v713_v12 = vpop.f32.mrf.mxu3 }
 0x2b1   :  { %v910_v57 = vsel %vm754_vm4, %v908_v59, -inf  ;;  %v921_v34 = vrot.slane %v646_v45, 1  ;;  %v987_v42 = vsel %vm986_vm8, %v985_v48, %v886_v40  ;;  %v929_v24 = vrot.slane %v713_v12, 2 }
 0x2b2   :  { %v909_v53 = vsel %vm471_vm0, %v907_v31, -inf }
 0x2b3   :  { %v911_v55 = vmax.f32 %v909_v53, %v910_v57  ;;  %v922_v26 = vsel %vm727_vm1, %v920_v9, %v921_v34  ;;  %v6286_v46 = vpop.f32.mrf.mxu1  ;;  %v926_v16 = vadd.f32 %v921_v34, %v6023_v13 }
 0x2b4   :  { %v925_v6 = vadd.f32 %v922_v26, %v6011_v11 }
 0x2b5   :  { %v912_v32 = vrot.slane %v911_v55, 4  ;;  %4548 = vmatmul.msk.f32.gmra.mxu2 %vm471_vm0, %v5818_v27  ;;  %4567 = vmatmul.msk.f32.gmra.mxu3 %vm471_vm0, %v5803_v23 }
 0x2b6   :  { %4605 = vmatmul.msk.f32.gmra.mxu1 %vm471_vm0, %v5832_v30 }
 0x2b7   :  { %v913_v37 = vmax.f32 %v911_v55, %v912_v32 }
 0x2b8   :  { %v649_v39 = vpop.f32.mrf.mxu2  ;;  %v716_v48 = vpop.f32.mrf.mxu3 }
 0x2b9   :  { %v914_v14 = vrot.slane %v913_v37, 2  ;;  %v930_v51 = vrot.slane %v716_v48, 2  ;;  %v951_v32 = vrot.slane %v649_v39, 1 }
 0x2bb   :  { %v915_v59 = vmax.f32 %v913_v37, %v914_v14  ;;  %v931_v40 = vsel %vm737_vm2, %v929_v24, %v930_v51  ;;  %v935_v31 = vadd.f32 %v930_v51, %v926_v16  ;;  %v6297_v45 = vpop.f32.mrf.mxu1 }
 0x2bc   :  { %v934_v9 = vadd.f32 %v931_v40, %v925_v6 }
 0x2bd   :  { %v937_v57 = vadd.f32 %v6094_v35, %v935_v31  ;;  %4549 = vmatmul.msk.f32.gmra.mxu2 %vm471_vm0, %v5832_v30  ;;  %4568 = vmatmul.msk.f32.gmra.mxu3 %vm471_vm0, %v5818_v27  ;;  %v916_v13 = vrot.slane %v915_v59, 1 }
 0x2be   :  { %v936_v12 = vadd.f32 %v6094_v35, %v934_v9  ;;  %4670 = vmatmul.msk.f32.vlgmr.msrb.gmra.mxu1 %vm471_vm0, %v5685_v60 }
 0x2bf   :  { %v939_v11 = vmax.f32 %v937_v57, 0.0  ;;  %v917_v34 = vmax.f32 %v915_v59, %v916_v13 }
 0x2c0   :  { %v938_v53 = vmax.f32 %v936_v12, 0.0  ;;  %v652_v55 = vpop.f32.mrf.mxu2  ;;  %v719_v26 = vpop.f32.mrf.mxu3 }
 0x2c1   :  { %v941_v37 = vsel %vm754_vm4, %v939_v11, -inf  ;;  %v952_v48 = vrot.slane %v652_v55, 1  ;;  %v989_v14 = vsel %vm988_vm3, %v987_v42, %v917_v34  ;;  %v960_v57 = vrot.slane %v719_v26, 2 }
 0x2c2   :  { %v940_v16 = vsel %vm471_vm0, %v938_v53, -inf }
 0x2c3   :  { %v942_v24 = vmax.f32 %v940_v16, %v941_v37  ;;  %v953_v51 = vsel %vm727_vm1, %v951_v32, %v952_v48  ;;  %v6311_v6 = vpop.f32.mrf.mxu1  ;;  %v957_v9 = vadd.f32 %v952_v48, %v6067_v25 }
 0x2c4   :  { %v956_v12 = vadd.f32 %v953_v51, %v6053_v21 }
 0x2c5   :  { %v943_v40 = vrot.slane %v942_v24, 4  ;;  %4569 = vmatmul.msk.f32.gmra.mxu3 %vm471_vm0, %v5832_v30  ;;  %4610 = vmatmul.msk.f32.vlgmr.msrb.gmra.mxu2 %vm471_vm0, %v5685_v60 }
 0x2c6   :  { %4671 = vmatmul.msk.f32.gmra.mxu1 %vm471_vm0, %v5689_v61 }
 0x2c7   :  { %v944_v39 = vmax.f32 %v942_v24, %v943_v40 }
 0x2c8   :  { %v722_v59 = vpop.f32.mrf.mxu3  ;;  %v1083_v42 = vpop.f32.mrf.mxu2 }
 0x2c9   :  { %v945_v31 = vrot.slane %v944_v39, 2  ;;  %v961_v13 = vrot.slane %v722_v59, 2 }
 0x2cb   :  { %v962_v11 = vsel %vm737_vm2, %v960_v57, %v961_v13  ;;  %v966_v34 = vadd.f32 %v961_v13, %v957_v9  ;;  %v6322_v53 = vpop.f32.mrf.mxu1  ;;  %v946_v55 = vmax.f32 %v944_v39, %v945_v31  ;;  %v1273_v39 = vrot.slane %v1083_v42, 1 }
 0x2cc   :  { %v965_v32 = vadd.f32 %v962_v11, %v956_v12 }
 0x2cd   :  { %v968_v37 = vadd.f32 %v6094_v35, %v966_v34  ;;  %4611 = vmatmul.msk.f32.gmra.mxu2 %vm471_vm0, %v5689_v61  ;;  %4630 = vmatmul.msk.f32.vlgmr.msrb.gmra.mxu3 %vm471_vm0, %v5685_v60  ;;  %v947_v25 = vrot.slane %v946_v55, 1 }
 0x2ce   :  { %v967_v26 = vadd.f32 %v6094_v35, %v965_v32  ;;  %4672 = vmatmul.msk.f32.gmra.mxu1 %vm471_vm0, %v5698_v63 }
 0x2cf   :  { %v970_v21 = vmax.f32 %v968_v37, 0.0  ;;  %v948_v48 = vmax.f32 %v946_v55, %v947_v25 }
 0x2d0   :  { %v969_v16 = vmax.f32 %v967_v26, 0.0  ;;  %v1086_v24 = vpop.f32.mrf.mxu2  ;;  %v1153_v51 = vpop.f32.mrf.mxu3  ;;  %v1291_v26 = vrot.slane %v5860_v36, 3 }
 0x2d1   :  { %v972_v40 = vsel %vm754_vm4, %v970_v21, -inf  ;;  %v1274_v59 = vrot.slane %v1086_v24, 1  ;;  %v990_v31 = vsel %vm737_vm2, %v989_v14, %v948_v48  ;;  %v1292_v14 = vrot.slane %v5872_v38, 3  ;;  %v6349_v48 = vld [vmem:[#allocation6] ss:$0 sm:$0xff] }
 0x2d2   :  { %v971_v9 = vsel %vm471_vm0, %v969_v16, -inf  ;;  %v1282_v55 = vrot.slane %v1153_v51, 2 }
 0x2d3   :  { %v973_v60 = vmax.f32 %v971_v9, %v972_v40  ;;  %v1275_v57 = vsel %vm727_vm1, %v1273_v39, %v1274_v59  ;;  %v6336_v35 = vpop.f32.mrf.mxu1  ;;  %v1279_v34 = vadd.f32 %v1274_v59, %v6055_v22  ;;  %v1293_v40 = vsel %vm988_vm3, %v1291_v26, %v1292_v14 }
 0x2d4   :  { %v1278_v25 = vadd.f32 %v1275_v57, %v6041_v18 }
 0x2d5   :  { %v974_v13 = vrot.slane %v973_v60, 4  ;;  %4612 = vmatmul.msk.f32.gmra.mxu2 %vm471_vm0, %v5698_v63  ;;  %4631 = vmatmul.msk.f32.gmra.mxu3 %vm471_vm0, %v5689_v61 }
 0x2d6   :  { %4673 = vmatmul.msk.f32.gmra.mxu1 %vm471_vm0, %v5704_v0 }
 0x2d7   :  { %v975_v42 = vmax.f32 %v973_v60, %v974_v13 }
 0x2d8   :  { %v1089_v12 = vpop.f32.mrf.mxu2  ;;  %v1156_v11 = vpop.f32.mrf.mxu3 }
 0x2d9   :  { %v1283_v32 = vrot.slane %v1156_v11, 2  ;;  %v976_v37 = vrot.slane %v975_v42, 2  ;;  %v1318_v57 = vrot.slane %v1089_v12, 1 }
 0x2db   :  { %v1284_v21 = vsel %vm737_vm2, %v1282_v55, %v1283_v32  ;;  %v1288_v61 = vadd.f32 %v1283_v32, %v1279_v34  ;;  %v6351_v16 = vpop.f32.mrf.mxu1  ;;  %v977_v24 = vmax.f32 %v975_v42, %v976_v37 }
 0x2dc   :  { %v1287_v38 = vadd.f32 %v1284_v21, %v1278_v25  ;;  %v1337_v25 = vrot.slane %v5899_v43, 3 }
 0x2dd   :  { %v1297_v39 = vadd.f32 %v1292_v14, %v1288_v61  ;;  %4613 = vmatmul.msk.f32.gmra.mxu2 %vm471_vm0, %v5704_v0  ;;  %4632 = vmatmul.msk.f32.gmra.mxu3 %vm471_vm0, %v5698_v63  ;;  %v978_v18 = vrot.slane %v977_v24, 1 }
 0x2de   :  { %v1296_v36 = vadd.f32 %v1293_v40, %v1287_v38  ;;  %4674 = vmatmul.msk.f32.gmra.mxu1 %vm471_vm0, %v5710_v1  ;;  %v1336_v38 = vrot.slane %v5887_v41, 3 }
 0x2df   :  { %v1303_v22 = vadd.f32 %v6349_v48, %v1297_v39  ;;  %v979_v51 = vmax.f32 %v977_v24, %v978_v18 }
 0x2e0   :  { %v1302_v59 = vadd.f32 %v6349_v48, %v1296_v36  ;;  %v1092_v9 = vpop.f32.mrf.mxu2  ;;  %v1159_v60 = vpop.f32.mrf.mxu3 }
 0x2e1   :  { %v1305_v13 = vmax.f32 %v1303_v22, 0.0  ;;  %v1319_v42 = vrot.slane %v1092_v9, 1  ;;  %v6363_v14 = vsel %vm727_vm1, %v990_v31, %v979_v51  ;;  %v1327_v21 = vrot.slane %v1159_v60, 2 }
 0x2e2   :  { %v1304_v63 = vmax.f32 %v1302_v59, 0.0  ;;  %v1338_v22 = vsel %vm988_vm3, %v1336_v38, %v1337_v25 }
 0x2e3   :  { %v1308_v11 = vsel %vm1307_vm9, %v1305_v13, -inf  ;;  %v1320_v34 = vsel %vm727_vm1, %v1318_v57, %v1319_v42  ;;  %v6367_v55 = vpop.f32.mrf.mxu1  ;;  %v1324_v26 = vadd.f32 %v1319_v42, %v6085_v56 }
 0x2e4   :  { %v1306_v32 = vsel %vm471_vm0, %v1304_v63, -inf  ;;  %v1323_v24 = vadd.f32 %v1320_v34, %v6069_v28 }
 0x2e5   :  { %v1309_v37 = vmax.f32 %v1306_v32, %v1308_v11  ;;  %4614 = vmatmul.msk.f32.gmra.mxu2 %vm471_vm0, %v5710_v1  ;;  %4633 = vmatmul.msk.f32.gmra.mxu3 %vm471_vm0, %v5704_v0 }
 0x2e6   :  { %4675 = vmatmul.msk.f32.gmra.mxu1 %vm471_vm0, %v5719_v3 }
 0x2e7   :  { %v1310_v0 = vrot.slane %v1309_v37, 4 }
 0x2e8   :  { %v1095_v31 = vpop.f32.mrf.mxu2  ;;  %v1162_v12 = vpop.f32.mrf.mxu3 }
 0x2e9   :  { %v1328_v61 = vrot.slane %v1162_v12, 2  ;;  %v1311_v28 = vmax.f32 %v1309_v37, %v1310_v0  ;;  %v1358_v60 = vrot.slane %v1095_v31, 1  ;;  %v1377_v31 = vrot.slane %v5929_v49, 3  ;;  %v7312_v0 = vld [vmem:[#allocation32_spill] sm:$0xff] }
 0x2eb   :  { %v1329_v40 = vsel %vm737_vm2, %v1327_v21, %v1328_v61  ;;  %v1333_v39 = vadd.f32 %v1328_v61, %v1324_v26  ;;  %v6381_v18 = vpop.f32.mrf.mxu1  ;;  %v1312_v34 = vrot.slane %v1311_v28, 2 }
 0x2ec   :  { %v1332_v36 = vadd.f32 %v1329_v40, %v1323_v24 }
 0x2ed   :  { %v1342_v51 = vadd.f32 %v1337_v25, %v1333_v39  ;;  %4615 = vmatmul.msk.f32.gmra.mxu2 %vm471_vm0, %v5719_v3  ;;  %4634 = vmatmul.msk.f32.gmra.mxu3 %vm471_vm0, %v5710_v1  ;;  %v1313_v25 = vmax.f32 %v1311_v28, %v1312_v34 }
 0x2ee   :  { %v1341_v43 = vadd.f32 %v1338_v22, %v1332_v36  ;;  %4676 = vmatmul.msk.f32.gmra.mxu1 %vm471_vm0, %v5725_v4  ;;  %v1376_v36 = vrot.slane %v7312_v0, 3 }
 0x2ef   :  { %v1344_v41 = vadd.f32 %v6349_v48, %v1342_v51  ;;  %v1314_v28 = vrot.slane %v1313_v25, 1 }
 0x2f0   :  { %v1343_v56 = vadd.f32 %v6349_v48, %v1341_v43  ;;  %v1098_v59 = vpop.f32.mrf.mxu2  ;;  %v1165_v9 = vpop.f32.mrf.mxu3  ;;  %v1378_v49 = vsel %vm988_vm3, %v1376_v36, %v1377_v31 }
 0x2f1   :  { %v1346_v57 = vmax.f32 %v1344_v41, 0.0  ;;  %v1359_v13 = vrot.slane %v1098_v59, 1  ;;  %v1367_v38 = vrot.slane %v1165_v9, 2 }
 0x2f2   :  { %v1345_v42 = vmax.f32 %v1343_v56, 0.0 }
 0x2f3   :  { %v1348_v63 = vsel %vm1307_vm9, %v1346_v57, -inf  ;;  %v1360_v11 = vsel %vm727_vm1, %v1358_v60, %v1359_v13  ;;  %v6394_v1 = vpop.f32.mrf.mxu1  ;;  %v1364_v24 = vadd.f32 %v1359_v13, %v6125_v33 }
 0x2f4   :  { %v1347_v32 = vsel %vm471_vm0, %v1345_v42, -inf  ;;  %v1363_v39 = vadd.f32 %v1360_v11, %v6098_v29  ;;  %v1315_v42 = vmax.f32 %v1313_v25, %v1314_v28  ;;  %v7316_v28 = vld [vmem:[#allocation33_spill] sm:$0xff] }
 0x2f5   :  { %v1349_v12 = vmax.f32 %v1347_v32, %v1348_v63  ;;  %4616 = vmatmul.msk.f32.gmra.mxu2 %vm471_vm0, %v5725_v4  ;;  %4635 = vmatmul.msk.f32.gmra.mxu3 %vm471_vm0, %v5719_v3 }
 0x2f6   :  { %4677 = vmatmul.msk.f32.gmra.mxu1 %vm471_vm0, %v5731_v5 }
 0x2f7   :  { %v1350_v37 = vrot.slane %v1349_v12, 4 }
 0x2f8   :  { %v1101_v26 = vpop.f32.mrf.mxu2  ;;  %v1168_v21 = vpop.f32.mrf.mxu3 }
 0x2f9   :  { %v1351_v61 = vmax.f32 %v1349_v12, %v1350_v37  ;;  %v1368_v40 = vrot.slane %v1168_v21, 2  ;;  %v1398_v21 = vrot.slane %v1101_v26, 1  ;;  %v7314_v26 = vld [vmem:[#allocation48_spill] sm:$0xff] }
 0x2fb   :  { %v1352_v22 = vrot.slane %v1351_v61, 2  ;;  %v1369_v3 = vsel %vm737_vm2, %v1367_v38, %v1368_v40  ;;  %v1373_v51 = vadd.f32 %v1368_v40, %v1364_v24  ;;  %v6408_v43 = vpop.f32.mrf.mxu1  ;;  %v7313_v38 = vld [vmem:[#allocation34_spill] sm:$0xff] }
 0x2fc   :  { %v1372_v41 = vadd.f32 %v1369_v3, %v1363_v39  ;;  %v1417_v40 = vrot.slane %v7313_v38, 3 }
 0x2fd   :  { %v1353_v56 = vmax.f32 %v1351_v61, %v1352_v22  ;;  %v1382_v59 = vadd.f32 %v1377_v31, %v1373_v51  ;;  %4617 = vmatmul.msk.f32.gmra.mxu2 %vm471_vm0, %v5731_v5  ;;  %4636 = vmatmul.msk.f32.gmra.mxu3 %vm471_vm0, %v5725_v4 }
 0x2fe   :  { %v1381_v29 = vadd.f32 %v1378_v49, %v1372_v41  ;;  %4678 = vmatmul.msk.f32.gmra.mxu1 %vm471_vm0, %v5740_v7  ;;  %v7315_v41 = vld [vmem:[#allocation45_spill] sm:$0xff] }
 0x2ff   :  { %v1354_v33 = vrot.slane %v1353_v56, 1  ;;  %v1384_v9 = vadd.f32 %v6349_v48, %v1382_v59 }
 0x300   :  { %v1383_v60 = vadd.f32 %v6349_v48, %v1381_v29  ;;  %v1104_v57 = vpop.f32.mrf.mxu2  ;;  %v1171_v13 = vpop.f32.mrf.mxu3 }
 0x301   :  { %v1355_v63 = vmax.f32 %v1353_v56, %v1354_v33  ;;  %v1386_v11 = vmax.f32 %v1384_v9, 0.0  ;;  %v1399_v12 = vrot.slane %v1104_v57, 1  ;;  %v1407_v3 = vrot.slane %v1171_v13, 2 }
 0x302   :  { %v1385_v34 = vmax.f32 %v1383_v60, 0.0 }
 0x303   :  { %v1388_v32 = vsel %vm1307_vm9, %v1386_v11, -inf  ;;  %v6420_v37 = vpop.f32.mrf.mxu1  ;;  %v1596_v4 = vsel %vm980_vm5, %v1315_v42, %v1355_v63  ;;  %v1400_v24 = vsel %vm727_vm1, %v1398_v21, %v1399_v12  ;;  %v1404_v22 = vadd.f32 %v1399_v12, %v7314_v26 }
 0x304   :  { %v1387_v31 = vsel %vm471_vm0, %v1385_v34, -inf  ;;  %v1403_v49 = vadd.f32 %v1400_v24, %v7315_v41 }
 0x305   :  { %v1389_v61 = vmax.f32 %v1387_v31, %v1388_v32  ;;  %4618 = vmatmul.msk.f32.gmra.mxu2 %vm471_vm0, %v5740_v7  ;;  %4637 = vmatmul.msk.f32.gmra.mxu3 %vm471_vm0, %v5731_v5  ;;  %v1416_v5 = vrot.slane %v7316_v28, 3 }
 0x306   :  { %4679 = vmatmul.msk.f32.gmra.mxu1 %vm471_vm0, %v5746_v8 }
 0x307   :  { %v1390_v25 = vrot.slane %v1389_v61, 4  ;;  %v1418_v60 = vsel %vm988_vm3, %v1416_v5, %v1417_v40 }
 0x308   :  { %v6432_v39 = vpop.f32.mrf.mxu2  ;;  %v1174_v0 = vpop.f32.mrf.mxu3 }
 0x309   :  { %v1391_v36 = vmax.f32 %v1389_v61, %v1390_v25  ;;  %v1408_v51 = vrot.slane %v1174_v0, 2 }
 0x30b   :  { %v1392_v56 = vrot.slane %v1391_v36, 2  ;;  %v1409_v59 = vsel %vm737_vm2, %v1407_v3, %v1408_v51  ;;  %v1413_v29 = vadd.f32 %v1408_v51, %v1404_v22  ;;  %v6438_v33 = vpop.f32.mrf.mxu1 }
 0x30c   :  { %v1412_v9 = vadd.f32 %v1409_v59, %v1403_v49 }
 0x30d   :  { %v1393_v57 = vmax.f32 %v1391_v36, %v1392_v56  ;;  %v1422_v42 = vadd.f32 %v1417_v40, %v1413_v29  ;;  %4619 = vmatmul.msk.f32.gmra.mxu2 %vm471_vm0, %v5746_v8  ;;  %4638 = vmatmul.msk.f32.gmra.mxu3 %vm471_vm0, %v5740_v7 }
 0x30e   :  { %v1421_v13 = vadd.f32 %v1418_v60, %v1412_v9  ;;  %4680 = vmatmul.msk.f32.gmra.mxu1 %vm471_vm0, %v5755_v10  ;;  %v1438_v60 = vrot.slane %v6432_v39, 1 }
 0x30f   :  { %v1394_v63 = vrot.slane %v1393_v57, 1  ;;  %v1424_v11 = vadd.f32 %v6349_v48, %v1422_v42 }
 0x310   :  { %v1423_v34 = vadd.f32 %v6349_v48, %v1421_v13  ;;  %v1110_v32 = vpop.f32.mrf.mxu2  ;;  %v1177_v12 = vpop.f32.mrf.mxu3 }
 0x311   :  { %v1395_v31 = vmax.f32 %v1393_v57, %v1394_v63  ;;  %v1426_v21 = vmax.f32 %v1424_v11, 0.0  ;;  %v1447_v11 = vrot.slane %v1177_v12, 2 }
 0x312   :  { %v1425_v61 = vmax.f32 %v1423_v34, 0.0 }
 0x313   :  { %v1428_v25 = vsel %vm1307_vm9, %v1426_v21, -inf  ;;  %v6450_v24 = vpop.f32.mrf.mxu1  ;;  %v1597_v7 = vsel %vm982_vm6, %v1596_v4, %v1395_v31 }
 0x314   :  { %v1427_v38 = vsel %vm471_vm0, %v1425_v61, -inf }
 0x315   :  { %v1429_v40 = vmax.f32 %v1427_v38, %v1428_v25  ;;  %4620 = vmatmul.msk.f32.gmra.mxu2 %vm471_vm0, %v5755_v10  ;;  %4639 = vmatmul.msk.f32.gmra.mxu3 %vm471_vm0, %v5746_v8  ;;  %v7317_v25 = vld [vmem:[#allocation36_spill] sm:$0xff] }
 0x316   :  { %4681 = vmatmul.msk.f32.gmra.mxu1 %vm471_vm0, %v5773_v15 }
 0x317   :  { %v1430_v0 = vrot.slane %v1429_v40, 4 }
 0x318   :  { %v1113_v36 = vpop.f32.mrf.mxu2  ;;  %v1180_v26 = vpop.f32.mrf.mxu3 }
 0x319   :  { %v1431_v22 = vmax.f32 %v1429_v40, %v1430_v0  ;;  %v1448_v57 = vrot.slane %v1180_v26, 2  ;;  %v1478_v42 = vrot.slane %v1113_v36, 1  ;;  %v7318_v40 = vld [vmem:[#allocation38_spill] sm:$0xff] }
 0x31a   :  { %v1497_v0 = vrot.slane %v7318_v40, 3 }
 0x31b   :  { %v1432_v3 = vrot.slane %v1431_v22, 2  ;;  %v6460_v51 = vpop.f32.mrf.mxu1  ;;  %v1449_v21 = vsel %vm737_vm2, %v1447_v11, %v1448_v57 }
 0x31d   :  { %v1433_v4 = vmax.f32 %v1431_v22, %v1432_v3  ;;  %4621 = vmatmul.msk.f32.gmra.mxu2 %vm471_vm0, %v5773_v15  ;;  %4640 = vmatmul.msk.f32.gmra.mxu3 %vm471_vm0, %v5755_v10  ;;  %v1439_v10 = vrot.slane %v1110_v32, 1  ;;  %v7319_v3 = vld [vmem:[#allocation35_spill] sm:$0xff] }
 0x31e   :  { %4682 = vmatmul.msk.f32.gmra.mxu1 %vm471_vm0, %v5788_v19 }
 0x31f   :  { %v1434_v8 = vrot.slane %v1433_v4, 1  ;;  %v1440_v63 = vsel %vm727_vm1, %v1438_v60, %v1439_v10  ;;  %v1444_v32 = vadd.f32 %v1439_v10, %v6199_v50  ;;  %v1456_v50 = vrot.slane %v7319_v3, 3 }
 0x320   :  { %v1116_v41 = vpop.f32.mrf.mxu2  ;;  %v1183_v49 = vpop.f32.mrf.mxu3  ;;  %v1443_v39 = vadd.f32 %v1440_v63, %v6171_v58 }
 0x321   :  { %v1435_v28 = vmax.f32 %v1433_v4, %v1434_v8  ;;  %v1479_v59 = vrot.slane %v1116_v41, 1  ;;  %v1453_v26 = vadd.f32 %v1448_v57, %v1444_v32 }
 0x322   :  { %v1452_v36 = vadd.f32 %v1449_v21, %v1443_v39 }
 0x323   :  { %v6468_v5 = vpop.f32.mrf.mxu1  ;;  %v6471_v56 = vsel %vm984_vm7, %v1597_v7, %v1435_v28  ;;  %v1480_v31 = vsel %vm727_vm1, %v1478_v42, %v1479_v59  ;;  %v1484_v61 = vadd.f32 %v1479_v59, %v6227_v54  ;;  %v1457_v7 = vrot.slane %v7317_v25, 3  ;;  %v7320_v54 = vld [vmem:[#allocation37_spill] sm:$0xff]  ;;  %v7322_v25 = vld [vmem:[#allocation39_spill] sm:$0xff] }
 0x324   :  { %v1483_v38 = vadd.f32 %v1480_v31, %v6210_v17  ;;  %v1496_v8 = vrot.slane %v7320_v54, 3 }
 0x325   :  { %4622 = vmatmul.msk.f32.gmra.mxu2 %vm471_vm0, %v5788_v19  ;;  %4641 = vmatmul.msk.f32.gmra.mxu3 %vm471_vm0, %v5773_v15  ;;  %v1487_v15 = vrot.slane %v1183_v49, 2  ;;  %v1458_v41 = vsel %vm988_vm3, %v1456_v50, %v1457_v7  ;;  %v1462_v59 = vadd.f32 %v1457_v7, %v1453_v26  ;;  %v1536_v7 = vrot.slane %v7322_v25, 3 }
 0x326   :  { %4683 = vmatmul.msk.f32.gmra.mxu1 %vm471_vm0, %v5803_v23  ;;  %v1498_v10 = vsel %vm988_vm3, %v1496_v8, %v1497_v0  ;;  %v1461_v17 = vadd.f32 %v1458_v41, %v1452_v36 }
 0x327   :  { %v1464_v31 = vadd.f32 %v6349_v48, %v1462_v59 }
 0x328   :  { %v1119_v29 = vpop.f32.mrf.mxu2  ;;  %v1186_v9 = vpop.f32.mrf.mxu3  ;;  %v1463_v11 = vadd.f32 %v6349_v48, %v1461_v17 }
 0x329   :  { %v1488_v13 = vrot.slane %v1186_v9, 2  ;;  %v1518_v60 = vrot.slane %v1119_v29, 1  ;;  %v1466_v26 = vmax.f32 %v1464_v31, 0.0 }
 0x32a   :  { %v1465_v36 = vmax.f32 %v1463_v11, 0.0 }
 0x32b   :  { %v6481_v34 = vpop.f32.mrf.mxu1  ;;  %v1489_v12 = vsel %vm737_vm2, %v1487_v15, %v1488_v13  ;;  %v1468_v54 = vsel %vm1307_vm9, %v1466_v26, -inf  ;;  %v7324_v26 = vld [vmem:[#allocation41_spill] sm:$0xff] }
 0x32c   :  { %v1492_v4 = vadd.f32 %v1489_v12, %v1483_v38 }
 0x32d   :  { %4623 = vmatmul.msk.f32.gmra.mxu2 %vm471_vm0, %v5803_v23  ;;  %4642 = vmatmul.msk.f32.gmra.mxu3 %vm471_vm0, %v5788_v19  ;;  %v1493_v19 = vadd.f32 %v1488_v13, %v1484_v61  ;;  %v7321_v13 = vld [vmem:[#allocation40_spill] sm:$0xff] }
 0x32e   :  { %4684 = vmatmul.msk.f32.gmra.mxu1 %vm471_vm0, %v5818_v27  ;;  %v1501_v57 = vadd.f32 %v1498_v10, %v1492_v4  ;;  %v1537_v63 = vrot.slane %v7321_v13, 3 }
 0x32f   :  { %v1502_v9 = vadd.f32 %v1497_v0, %v1493_v19 }
 0x330   :  { %v1122_v22 = vpop.f32.mrf.mxu2  ;;  %v1189_v58 = vpop.f32.mrf.mxu3  ;;  %v1503_v39 = vadd.f32 %v6349_v48, %v1501_v57 }
 0x331   :  { %v1519_v49 = vrot.slane %v1122_v22, 1  ;;  %v1504_v29 = vadd.f32 %v6349_v48, %v1502_v9  ;;  %v1538_v22 = vsel %vm988_vm3, %v1536_v7, %v1537_v63  ;;  %v7323_v7 = vld [vmem:[#allocation42_spill] sm:$0xff] }
 0x332   :  { %v1505_v3 = vmax.f32 %v1503_v39, 0.0 }
 0x333   :  { %v6501_v28 = vpop.f32.mrf.mxu1  ;;  %v1520_v42 = vsel %vm727_vm1, %v1518_v60, %v1519_v49  ;;  %v1524_v32 = vadd.f32 %v1519_v49, %v6261_v20  ;;  %v1506_v50 = vmax.f32 %v1504_v29, 0.0 }
 0x334   :  { %v1523_v12 = vadd.f32 %v1520_v42, %v6238_v62  ;;  %v1507_v10 = vsel %vm471_vm0, %v1505_v3, -inf }
 0x335   :  { %4624 = vmatmul.msk.f32.gmra.mxu2 %vm471_vm0, %v5818_v27  ;;  %4643 = vmatmul.msk.f32.gmra.mxu3 %vm471_vm0, %v5803_v23  ;;  %v1527_v23 = vrot.slane %v1189_v58, 2  ;;  %v1467_v58 = vsel %vm471_vm0, %v1465_v36, -inf  ;;  %v1508_v17 = vsel %vm1307_vm9, %v1506_v50, -inf }
 0x336   :  { %4685 = vmatmul.msk.f32.gmra.mxu1 %vm471_vm0, %v5832_v30  ;;  %v1469_v60 = vmax.f32 %v1467_v58, %v1468_v54  ;;  %v1509_v13 = vmax.f32 %v1507_v10, %v1508_v17 }
 0x338   :  { %v1125_v15 = vpop.f32.mrf.mxu2  ;;  %v1192_v21 = vpop.f32.mrf.mxu3 }
 0x339   :  { %v1528_v61 = vrot.slane %v1192_v21, 2  ;;  %v1558_v29 = vrot.slane %v1125_v15, 1 }
 0x33b   :  { %v1529_v38 = vsel %vm737_vm2, %v1527_v23, %v1528_v61  ;;  %v1533_v40 = vadd.f32 %v1528_v61, %v1524_v32  ;;  %v1904_v0 = vpop.f32.mrf.mxu1  ;;  %v1470_v32 = vrot.slane %v1469_v60, 4  ;;  %v1510_v61 = vrot.slane %v1509_v13, 4 }
 0x33c   :  { %v1532_v19 = vadd.f32 %v1529_v38, %v1523_v12  ;;  %v1981_v11 = vrot.slane %v1904_v0, 4  ;;  %v1577_v38 = vrot.slane %v7323_v7, 3 }
 0x33d   :  { %v1542_v4 = vadd.f32 %v1537_v63, %v1533_v40  ;;  %4625 = vmatmul.msk.f32.gmra.mxu2 %vm471_vm0, %v5832_v30  ;;  %4644 = vmatmul.msk.f32.gmra.mxu3 %vm471_vm0, %v5818_v27 }
 0x33e   :  { %v1541_v62 = vadd.f32 %v1538_v22, %v1532_v19  ;;  %v1576_v19 = vrot.slane %v7324_v26, 3  ;;  %v1471_v22 = vmax.f32 %v1469_v60, %v1470_v32 }
 0x33f   :  { %v1544_v20 = vadd.f32 %v6349_v48, %v1542_v4 }
 0x340   :  { %v1543_v8 = vadd.f32 %v6349_v48, %v1541_v62  ;;  %v1128_v41 = vpop.f32.mrf.mxu2  ;;  %v1195_v49 = vpop.f32.mrf.mxu3  ;;  %v1511_v62 = vmax.f32 %v1509_v13, %v1510_v61  ;;  %v1578_v58 = vsel %vm988_vm3, %v1576_v19, %v1577_v38 }
 0x341   :  { %v1546_v59 = vmax.f32 %v1544_v20, 0.0  ;;  %v1559_v57 = vrot.slane %v1128_v41, 1  ;;  %v1567_v15 = vrot.slane %v1195_v49, 2 }
 0x342   :  { %v1545_v9 = vmax.f32 %v1543_v8, 0.0 }
 0x343   :  { %v1548_v27 = vsel %vm1307_vm9, %v1546_v59, -inf  ;;  %v6532_v42 = vpop.f32.mrf.mxu1  ;;  %v1560_v23 = vsel %vm727_vm1, %v1558_v29, %v1559_v57  ;;  %v1564_v40 = vadd.f32 %v1559_v57, %v6286_v46  ;;  %v1472_v46 = vrot.slane %v1471_v22, 2 }
 0x344   :  { %v1547_v63 = vsel %vm471_vm0, %v1545_v9, -inf  ;;  %v1982_v31 = vrot.slane %v6532_v42, 4  ;;  %v1512_v59 = vrot.slane %v1511_v62, 2 }
 0x345   :  { %4645 = vmatmul.msk.f32.gmra.mxu3 %vm471_vm0, %v5832_v30  ;;  %v1549_v21 = vmax.f32 %v1547_v63, %v1548_v27  ;;  %v1563_v30 = vadd.f32 %v1560_v23, %v6272_v2 }
 0x346   :  { %v6541_v39 = vsel %vm986_vm8, %v1981_v11, %v1982_v31  ;;  %v1473_v11 = vmax.f32 %v1471_v22, %v1472_v46  ;;  %v1513_v23 = vmax.f32 %v1511_v62, %v1512_v59 }
 0x347   :  { %v1550_v36 = vrot.slane %v1549_v21, 4 }
 0x348   :  { %v1198_v12 = vpop.f32.mrf.mxu3  ;;  %v1694_v25 = vpop.f32.mrf.mxu2 }
 0x349   :  { %v1568_v0 = vrot.slane %v1198_v12, 2  ;;  %v1551_v41 = vmax.f32 %v1549_v21, %v1550_v36  ;;  %v1474_v36 = vrot.slane %v1473_v11, 1 }
 0x34b   :  { %v1569_v3 = vsel %vm737_vm2, %v1567_v15, %v1568_v0  ;;  %v1573_v50 = vadd.f32 %v1568_v0, %v1564_v40  ;;  %v1910_v4 = vpop.f32.mrf.mxu1  ;;  %v1552_v27 = vrot.slane %v1551_v41, 2 }
 0x34c   :  { %v1572_v20 = vadd.f32 %v1569_v3, %v1563_v30  ;;  %v2035_v21 = vrot.slane %v1910_v4, 4  ;;  %v1514_v30 = vrot.slane %v1513_v23, 1 }
 0x34d   :  { %v1582_v54 = vadd.f32 %v1577_v38, %v1573_v50  ;;  %v1553_v7 = vmax.f32 %v1551_v41, %v1552_v27  ;;  %v7325_v41 = vld [vmem:[#allocation43_spill] sm:$0xff] }
 0x34e   :  { %v1581_v8 = vadd.f32 %v1578_v58, %v1572_v20  ;;  %v7326_v46 = vrot.slane %v7325_v41, 3  ;;  %v7328_v41 = vld [vmem:[#allocation46_spill] sm:$0xff] }
 0x34f   :  { %v1584_v49 = vadd.f32 %v6349_v48, %v1582_v54  ;;  %v1554_v50 = vrot.slane %v1553_v7, 1 }
 0x350   :  { %v1583_v10 = vadd.f32 %v6349_v48, %v1581_v8  ;;  %v1697_v2 = vpop.f32.mrf.mxu2  ;;  %v1764_v17 = vpop.f32.mrf.mxu3  ;;  %v1954_v48 = vrot.slane %v1694_v25, 1  ;;  %v1475_v8 = vmax.f32 %v1473_v11, %v1474_v36 }
 0x351   :  { %v1586_v9 = vmax.f32 %v1584_v49, 0.0  ;;  %v1955_v13 = vrot.slane %v1697_v2, 1  ;;  %v1963_v19 = vrot.slane %v1764_v17, 2  ;;  %v1515_v2 = vmax.f32 %v1513_v23, %v1514_v30  ;;  %v7327_v17 = vld [vmem:[#allocation44_spill] sm:$0xff] }
 0x352   :  { %v1585_v60 = vmax.f32 %v1583_v10, 0.0  ;;  %v6568_v10 = vld [vmem:[#allocation8] ss:$0 sm:$0xff]  ;;  %v1599_v11 = vsel %vm986_vm8, %v6471_v56, %v1475_v8 }
 0x353   :  { %v1588_v57 = vsel %vm1307_vm9, %v1586_v9, -inf  ;;  %v6553_v63 = vpop.f32.mrf.mxu1  ;;  %v1956_v38 = vsel %vm727_vm1, %v1954_v48, %v1955_v13  ;;  %v1960_v26 = vadd.f32 %v1955_v13, %v6311_v6  ;;  %v1555_v9 = vmax.f32 %v1553_v7, %v1554_v50 }
 0x354   :  { %v1587_v29 = vsel %vm471_vm0, %v1585_v60, -inf  ;;  %v2036_v32 = vrot.slane %v6553_v63, 4  ;;  %v1959_v25 = vadd.f32 %v1956_v38, %v6297_v45  ;;  %v1600_v23 = vsel %vm988_vm3, %v1599_v11, %v1515_v2 }
 0x355   :  { %v1589_v61 = vmax.f32 %v1587_v29, %v1588_v57  ;;  %v1601_v48 = vsel %vm737_vm2, %v1600_v23, %v1555_v9 }
 0x356   :  { %v6560_v12 = vsel %vm986_vm8, %v2035_v21, %v2036_v32 }
 0x357   :  { %v1590_v40 = vrot.slane %v1589_v61, 4 }
 0x358   :  { %v1700_v15 = vpop.f32.mrf.mxu2  ;;  %v1767_v0 = vpop.f32.mrf.mxu3 }
 0x359   :  { %v1964_v22 = vrot.slane %v1767_v0, 2  ;;  %v1591_v3 = vmax.f32 %v1589_v61, %v1590_v40  ;;  %v2008_v0 = vrot.slane %v1700_v15, 1 }
 0x35b   :  { %v1965_v4 = vsel %vm737_vm2, %v1963_v19, %v1964_v22  ;;  %v1969_v62 = vadd.f32 %v1964_v22, %v1960_v26  ;;  %v1916_v20 = vpop.f32.mrf.mxu1  ;;  %v1592_v58 = vrot.slane %v1591_v3, 2 }
 0x35c   :  { %v1968_v54 = vadd.f32 %v1965_v4, %v1959_v25  ;;  %v2084_v40 = vrot.slane %v1916_v20, 4 }
 0x35d   :  { %v1978_v49 = vadd.f32 %v7326_v46, %v1969_v62  ;;  %v1593_v6 = vmax.f32 %v1591_v3, %v1592_v58  ;;  %v6591_v58 = vpop.f32.mrf.mxu0  ;;  %v7329_v46 = vrot.slane %v7328_v41, 3 }
 0x35e   :  { %v1977_v59 = vadd.f32 %v7327_v17, %v1968_v54 }
 0x35f   :  { %v1987_v45 = vadd.f32 %v1982_v31, %v1978_v49  ;;  %v1594_v60 = vrot.slane %v1593_v6, 1 }
 0x360   :  { %v1986_v27 = vadd.f32 %v6541_v39, %v1977_v59  ;;  %v1703_v57 = vpop.f32.mrf.mxu2  ;;  %v1770_v13 = vpop.f32.mrf.mxu3 }
 0x361   :  { %v1993_v29 = vadd.f32 %v6568_v10, %v1987_v45  ;;  %v1595_v21 = vmax.f32 %v1593_v6, %v1594_v60  ;;  %v2009_v31 = vrot.slane %v1703_v57, 1  ;;  %v2017_v4 = vrot.slane %v1770_v13, 2  ;;  %v7330_v6 = vld [vmem:[#allocation47_spill] sm:$0xff] }
 0x362   :  { %v1992_v61 = vadd.f32 %v6568_v10, %v1986_v27 }
 0x363   :  { %v1995_v42 = vmax.f32 %v1993_v29, 0.0  ;;  %v6580_v7 = vpop.f32.mrf.mxu1  ;;  %v1602_v39 = vsel %vm727_vm1, %v1601_v48, %v1595_v21  ;;  %v2010_v22 = vsel %vm727_vm1, %v2008_v0, %v2009_v31  ;;  %v2014_v50 = vadd.f32 %v2009_v31, %v6336_v35 }
 0x364   :  { %v1994_v38 = vmax.f32 %v1992_v61, 0.0  ;;  %v2085_v56 = vrot.slane %v6580_v7, 4  ;;  %2357 = vrot.lane.b32.xlu1 %v1602_v39, %s5322_s8  ;;  %v2013_v20 = vadd.f32 %v2010_v22, %v6322_v53 }
 0x365   :  { %v1998_v36 = vsel %vm1997_vm10, %v1995_v42, -inf  ;;  %v6605_v61 = vpop.f32.mrf.mxu0 }
 0x366   :  { %v1996_v30 = vsel %vm471_vm0, %v1994_v38, -inf  ;;  %v2086_v26 = vsel %vm986_vm8, %v2084_v40, %v2085_v56 }
 0x367   :  { %v1999_v19 = vmax.f32 %v1996_v30, %v1998_v36 }
 0x368   :  { %v1706_v3 = vpop.f32.mrf.mxu2  ;;  %v1773_v25 = vpop.f32.mrf.mxu3 }
 0x369   :  { %v2018_v62 = vrot.slane %v1773_v25, 2  ;;  %v2000_v59 = vrot.slane %v1999_v19, 4  ;;  %v2057_v60 = vrot.slane %v1706_v3, 1 }
 0x36b   :  { %v2019_v15 = vsel %vm737_vm2, %v2017_v4, %v2018_v62  ;;  %v2023_v54 = vadd.f32 %v2018_v62, %v2014_v50  ;;  %v6596_v2 = vpop.f32.mrf.mxu1  ;;  %v2001_v11 = vmax.f32 %v1999_v19, %v2000_v59 }
 0x36c   :  { %v2022_v8 = vadd.f32 %v2019_v15, %v2013_v20 }
 0x36d   :  { %v2032_v49 = vadd.f32 %v7329_v46, %v2023_v54  ;;  %v6615_v20 = vpop.f32.mrf.mxu0 }
 0x36e   :  { %v2031_v17 = vadd.f32 %v7330_v6, %v2022_v8 }
 0x36f   :  { %v2041_v35 = vadd.f32 %v2036_v32, %v2032_v49 }
 0x370   :  { %v2040_v9 = vadd.f32 %v6560_v12, %v2031_v17  ;;  %v1709_v53 = vpop.f32.mrf.mxu2  ;;  %v1776_v45 = vpop.f32.mrf.mxu3  ;;  %v2002_v12 = vrot.slane %v2001_v11, 2 }
 0x371   :  { %v2043_v27 = vadd.f32 %v6568_v10, %v2041_v35  ;;  %v2058_v57 = vrot.slane %v1709_v53, 1  ;;  %v2066_v40 = vrot.slane %v1776_v45, 2 }
 0x372   :  { %v2042_v13 = vadd.f32 %v6568_v10, %v2040_v9  ;;  %v2003_v30 = vmax.f32 %v2001_v11, %v2002_v12 }
 0x373   :  { %v2045_v29 = vmax.f32 %v2043_v27, 0.0  ;;  %v2059_v21 = vsel %vm727_vm1, %v2057_v60, %v2058_v57  ;;  %v1925_v42 = vpop.f32.mrf.mxu1  ;;  %v2063_v38 = vadd.f32 %v2058_v57, %v6367_v55  ;;  %v2125_v27 = vrot.slane %v6605_v61, 3 }
 0x374   :  { %v2044_v23 = vmax.f32 %v2042_v13, 0.0  ;;  %v2062_v36 = vadd.f32 %v2059_v21, %v6351_v16  ;;  %v2004_v15 = vrot.slane %v2003_v30, 1 }
 0x375   :  { %v2047_v63 = vsel %vm1997_vm10, %v2045_v29, -inf  ;;  %v6626_v11 = vpop.f32.mrf.mxu0 }
 0x376   :  { %v2046_v32 = vsel %vm471_vm0, %v2044_v23, -inf  ;;  %v2005_v59 = vmax.f32 %v2003_v30, %v2004_v15 }
 0x377   :  { %v2048_v48 = vmax.f32 %v2046_v32, %v2047_v63  ;;  %v2124_v32 = vrot.slane %v6591_v58, 3 }
 0x378   :  { %v1712_v31 = vpop.f32.mrf.mxu2  ;;  %v1779_v7 = vpop.f32.mrf.mxu3 }
 0x379   :  { %v2049_v39 = vrot.slane %v2048_v48, 4  ;;  %v2067_v0 = vrot.slane %v1779_v7, 2  ;;  %v2106_v9 = vrot.slane %v1712_v31, 1 }
 0x37b   :  { %v2050_v19 = vmax.f32 %v2048_v48, %v2049_v39  ;;  %v2068_v22 = vsel %vm737_vm2, %v2066_v40, %v2067_v0  ;;  %v2072_v3 = vadd.f32 %v2067_v0, %v2063_v38  ;;  %v6618_v6 = vpop.f32.mrf.mxu1  ;;  %v2134_v48 = vrot.slane %v1925_v42, 4 }
 0x37c   :  { %v2071_v25 = vadd.f32 %v2068_v22, %v2062_v36  ;;  %v2126_v40 = vsel %vm988_vm3, %v2124_v32, %v2125_v27  ;;  %v2133_v0 = vrot.slane %v6596_v2, 4 }
 0x37d   :  { %v2051_v50 = vrot.slane %v2050_v19, 2  ;;  %v2081_v4 = vadd.f32 %v2076_v44, %v2072_v3 }
 0x37e   :  { %v2080_v62 = vadd.f32 %v6187_v52, %v2071_v25 }
 0x37f   :  { %v2052_v55 = vmax.f32 %v2050_v19, %v2051_v50  ;;  %v2090_v54 = vadd.f32 %v2085_v56, %v2081_v4  ;;  %v2135_v19 = vsel %vm986_vm8, %v2133_v0, %v2134_v48 }
 0x380   :  { %v2089_v8 = vadd.f32 %v2086_v26, %v2080_v62  ;;  %v1715_v41 = vpop.f32.mrf.mxu2  ;;  %v1782_v16 = vpop.f32.mrf.mxu3 }
 0x381   :  { %v2053_v46 = vrot.slane %v2052_v55, 1  ;;  %v2092_v49 = vadd.f32 %v6568_v10, %v2090_v54  ;;  %v2107_v35 = vrot.slane %v1715_v41, 1  ;;  %v2115_v23 = vrot.slane %v1782_v16, 2  ;;  %v1864_v62 = vpop.f32.mrf.mxu0 }
 0x382   :  { %v2091_v17 = vadd.f32 %v6568_v10, %v2089_v8 }
 0x383   :  { %v2054_v47 = vmax.f32 %v2052_v55, %v2053_v46  ;;  %v2094_v44 = vmax.f32 %v2092_v49, 0.0  ;;  %v2108_v60 = vsel %vm727_vm1, %v2106_v9, %v2107_v35  ;;  %v2112_v21 = vadd.f32 %v2107_v35, %v6394_v1  ;;  %v6631_v7 = vpop.f32.mrf.mxu1 }
 0x384   :  { %v2093_v52 = vmax.f32 %v2091_v17, 0.0  ;;  %v2111_v12 = vadd.f32 %v2108_v60, %v6381_v18 }
 0x385   :  { %v2096_v53 = vsel %vm1997_vm10, %v2094_v44, -inf  ;;  %v2349_v56 = vsel %vm980_vm5, %v2005_v59, %v2054_v47 }
 0x386   :  { %v2095_v26 = vsel %vm471_vm0, %v2093_v52, -inf }
 0x387   :  { %v2097_v45 = vmax.f32 %v2095_v26, %v2096_v53 }
 0x388   :  { %v1718_v57 = vpop.f32.mrf.mxu2  ;;  %v1785_v13 = vpop.f32.mrf.mxu3 }
 0x389   :  { %v2098_v29 = vrot.slane %v2097_v45, 4  ;;  %v2116_v63 = vrot.slane %v1785_v13, 2  ;;  %v1867_v44 = vpop.f32.mrf.mxu0 }
 0x38b   :  { %v2099_v31 = vmax.f32 %v2097_v45, %v2098_v29  ;;  %v2117_v39 = vsel %vm737_vm2, %v2115_v23, %v2116_v63  ;;  %v2121_v61 = vadd.f32 %v2116_v63, %v2112_v21  ;;  %v6640_v8 = vpop.f32.mrf.mxu1  ;;  %v2155_v21 = vrot.slane %v1718_v57, 1 }
 0x38c   :  { %v2120_v38 = vadd.f32 %v2117_v39, %v2111_v12 }
 0x38d   :  { %v2100_v36 = vrot.slane %v2099_v31, 2  ;;  %v2130_v1 = vadd.f32 %v2125_v27, %v2121_v61 }
 0x38e   :  { %v2129_v30 = vadd.f32 %v2126_v40, %v2120_v38 }
 0x38f   :  { %v2101_v58 = vmax.f32 %v2099_v31, %v2100_v36  ;;  %v2139_v22 = vadd.f32 %v2134_v48, %v2130_v1 }
 0x390   :  { %v2138_v18 = vadd.f32 %v2135_v19, %v2129_v30  ;;  %v1721_v42 = vpop.f32.mrf.mxu2  ;;  %v1788_v3 = vpop.f32.mrf.mxu3  ;;  %v2174_v30 = vrot.slane %v6626_v11, 3 }
 0x391   :  { %v2102_v25 = vrot.slane %v2101_v58, 1  ;;  %v2141_v50 = vadd.f32 %v6568_v10, %v2139_v22  ;;  %v2156_v13 = vrot.slane %v1721_v42, 1  ;;  %v2164_v39 = vrot.slane %v1788_v3, 2 }
 0x392   :  { %v2140_v4 = vadd.f32 %v6568_v10, %v2138_v18  ;;  %v2223_v18 = vrot.slane %v1867_v44, 3  ;;  %v2173_v3 = vrot.slane %v6615_v20, 3 }
 0x393   :  { %v2143_v15 = vmax.f32 %v2141_v50, 0.0  ;;  %v2103_v55 = vmax.f32 %v2101_v58, %v2102_v25  ;;  %v1937_v9 = vpop.f32.mrf.mxu1  ;;  %v2157_v31 = vsel %vm727_vm1, %v2155_v21, %v2156_v13  ;;  %v2161_v0 = vadd.f32 %v2156_v13, %v6420_v37  ;;  %v2417_v13 = vld [vmem:[#allocation11 + $0x50] sm:$0xff] }
 0x394   :  { %v2142_v54 = vmax.f32 %v2140_v4, 0.0  ;;  %v2160_v1 = vadd.f32 %v2157_v31, %v6408_v43  ;;  %v2175_v43 = vsel %vm988_vm3, %v2173_v3, %v2174_v30 }
 0x395   :  { %v2145_v2 = vsel %vm1997_vm10, %v2143_v15, -inf  ;;  %v2350_v41 = vsel %vm982_vm6, %v2349_v56, %v2103_v55  ;;  %v6647_v56 = vpop.f32.mrf.mxu0  ;;  %v2222_v15 = vrot.slane %v1864_v62, 3 }
 0x396   :  { %v2144_v16 = vsel %vm471_vm0, %v2142_v54, -inf  ;;  %v2183_v54 = vrot.slane %v6631_v7, 4 }
 0x397   :  { %v2146_v46 = vmax.f32 %v2144_v16, %v2145_v2  ;;  %v2224_v2 = vsel %vm988_vm3, %v2222_v15, %v2223_v18  ;;  %v2182_v16 = vrot.slane %v6618_v6, 4 }
 0x398   :  { %v1724_v49 = vpop.f32.mrf.mxu2  ;;  %v1791_v17 = vpop.f32.mrf.mxu3 }
 0x399   :  { %v2147_v59 = vrot.slane %v2146_v46, 4  ;;  %v2165_v23 = vrot.slane %v1791_v17, 2  ;;  %v2204_v12 = vrot.slane %v1724_v49, 1  ;;  %v2231_v17 = vrot.slane %v6640_v8, 4 }
 0x39a   :  { %v2184_v62 = vsel %vm986_vm8, %v2182_v16, %v2183_v54 }
 0x39b   :  { %v2148_v47 = vmax.f32 %v2146_v46, %v2147_v59  ;;  %v6650_v61 = vpop.f32.mrf.mxu1  ;;  %v2166_v36 = vsel %vm737_vm2, %v2164_v39, %v2165_v23  ;;  %v2170_v19 = vadd.f32 %v2165_v23, %v2161_v0 }
 0x39c   :  { %v2169_v42 = vadd.f32 %v2166_v36, %v2160_v1 }
 0x39d   :  { %v2149_v35 = vrot.slane %v2148_v47, 2  ;;  %v1873_v55 = vpop.f32.mrf.mxu0  ;;  %v2179_v11 = vadd.f32 %v2174_v30, %v2170_v19 }
 0x39e   :  { %v2272_v8 = vrot.slane %v1873_v55, 3 }
 0x39f   :  { %v2150_v52 = vmax.f32 %v2148_v47, %v2149_v35  ;;  %v2188_v47 = vadd.f32 %v2183_v54, %v2179_v11 }
 0x3a0   :  { %v1727_v53 = vpop.f32.mrf.mxu2  ;;  %v1794_v26 = vpop.f32.mrf.mxu3 }
 0x3a1   :  { %v2151_v45 = vrot.slane %v2150_v52, 1  ;;  %v2205_v29 = vrot.slane %v1727_v53, 1  ;;  %v2213_v40 = vrot.slane %v1794_v26, 2  ;;  %v2418_v53 = vld [vmem:[#allocation11 + $0x58] sm:$0xff] }
 0x3a2   :  { %2427 = vmatpush.msra.mxu3 %v2418_v53  ;;  %v2373_v53 = vld [vmem:[#allocation9 + $0x30] sm:$0xff] }
 0x3a3   :  { %v2152_v60 = vmax.f32 %v2150_v52, %v2151_v45  ;;  %v2206_v38 = vsel %vm727_vm1, %v2204_v12, %v2205_v29  ;;  %v2210_v22 = vadd.f32 %v2205_v29, %v6450_v24  ;;  %v1943_v46 = vpop.f32.mrf.mxu1  ;;  %v2378_v52 = vld [vmem:[#allocation9 + $0x58] sm:$0xff]  ;;  %v2190_v12 = vadd.f32 %v6568_v10, %v2188_v47 }
 0x3a4   :  { %v2209_v58 = vadd.f32 %v2206_v38, %v6438_v33  ;;  %v2232_v33 = vrot.slane %v1937_v9, 4  ;;  %v2377_v9 = vld [vmem:[#allocation9 + $0x50] sm:$0xff]  ;;  %2391 = vmatpush.msra.mxu2 %v2378_v52  ;;  %2428 = vmatpush.msra.mxu3 %v2417_v13  ;;  %v2281_v39 = vrot.slane %v1943_v46, 4 }
 0x3a5   :  { %v6645_v27 = vsel %vm984_vm7, %v2350_v41, %v2152_v60  ;;  %v2178_v41 = vadd.f32 %v2175_v43, %v2169_v42  ;;  %v6675_v0 = vpop.f32.mrf.mxu0 }
 0x3a6   :  { %v2233_v44 = vsel %vm986_vm8, %v2231_v17, %v2232_v33  ;;  %2392 = vmatpush.msra.mxu2 %v2377_v9  ;;  %v2375_v17 = vld [vmem:[#allocation9 + $0x40] sm:$0xff] }
 0x3a7   :  { %v2187_v7 = vadd.f32 %v2184_v62, %v2178_v41  ;;  %v2374_v62 = vld [vmem:[#allocation9 + $0x38] sm:$0xff] }
 0x3a8   :  { %v1730_v63 = vpop.f32.mrf.mxu2  ;;  %v1797_v32 = vpop.f32.mrf.mxu3 }
 0x3a9   :  { %v2214_v48 = vrot.slane %v1797_v32, 2  ;;  %v2253_v59 = vrot.slane %v1730_v63, 1  ;;  %v2376_v63 = vld [vmem:[#allocation9 + $0x48] sm:$0xff]  ;;  %v2271_v32 = vrot.slane %v6647_v56, 3  ;;  %v2189_v31 = vadd.f32 %v6568_v10, %v2187_v7  ;;  %v2415_v7 = vld [vmem:[#allocation11 + $0x40] sm:$0xff] }
 0x3aa   :  { %2393 = vmatpush.msra.mxu2 %v2376_v63  ;;  %v2413_v63 = vld [vmem:[#allocation11 + $0x30] sm:$0xff] }
 0x3ab   :  { %v2215_v57 = vsel %vm737_vm2, %v2213_v40, %v2214_v48  ;;  %v2219_v50 = vadd.f32 %v2214_v48, %v2210_v22  ;;  %v2273_v56 = vsel %vm988_vm3, %v2271_v32, %v2272_v8  ;;  %v6681_v30 = vpop.f32.mrf.mxu1  ;;  %v2192_v22 = vmax.f32 %v2190_v12, 0.0 }
 0x3ac   :  { %v2218_v25 = vadd.f32 %v2215_v57, %v2209_v58  ;;  %v2191_v58 = vmax.f32 %v2189_v31, 0.0  ;;  %2394 = vmatpush.msra.mxu2 %v2375_v17 }
 0x3ad   :  { %v2228_v49 = vadd.f32 %v2223_v18, %v2219_v50  ;;  %v2194_v55 = vsel %vm1997_vm10, %v2192_v22, -inf  ;;  %v1879_v46 = vpop.f32.mrf.mxu0 }
 0x3ae   :  { %v2227_v20 = vadd.f32 %v2224_v2, %v2218_v25  ;;  %2395 = vmatpush.msra.mxu2 %v2374_v62 }
 0x3af   :  { %v2237_v45 = vadd.f32 %v2232_v33, %v2228_v49 }
 0x3b0   :  { %v1733_v37 = vpop.f32.mrf.mxu2  ;;  %v1800_v4 = vpop.f32.mrf.mxu3  ;;  %v2236_v26 = vadd.f32 %v2233_v44, %v2227_v20  ;;  %2396 = vmatpush.msra.mxu2 %v2373_v53 }
 0x3b1   :  { %v2254_v24 = vrot.slane %v1733_v37, 1  ;;  %v2262_v21 = vrot.slane %v1800_v4, 2  ;;  %v2239_v36 = vadd.f32 %v6568_v10, %v2237_v45  ;;  %v2321_v45 = vrot.slane %v1879_v46, 3 }
 0x3b3   :  { %v2255_v35 = vsel %vm727_vm1, %v2253_v59, %v2254_v24  ;;  %v2259_v29 = vadd.f32 %v2254_v24, %v6468_v5  ;;  %v2238_v5 = vadd.f32 %v6568_v10, %v2236_v26  ;;  %v2241_v25 = vmax.f32 %v2239_v36, 0.0  ;;  %v2416_v59 = vld [vmem:[#allocation11 + $0x48] sm:$0xff]  ;;  %v2414_v26 = vld [vmem:[#allocation11 + $0x38] sm:$0xff] }
 0x3b4   :  { %v2258_v48 = vadd.f32 %v2255_v35, %v6460_v51  ;;  %v2280_v51 = vrot.slane %v6650_v61, 4  ;;  %v2193_v61 = vsel %vm471_vm0, %v2191_v58, -inf  ;;  %2429 = vmatpush.msra.mxu3 %v2416_v59  ;;  %v1949_v35 = vpop.f32.mrf.mxu1 }
 0x3b5   :  { %v2240_v3 = vmax.f32 %v2238_v5, 0.0  ;;  %v2243_v33 = vsel %vm1997_vm10, %v2241_v25, -inf  ;;  %v2195_v20 = vmax.f32 %v2193_v61, %v2194_v55  ;;  %v2330_v12 = vrot.slane %v1949_v35, 4 }
 0x3b6   :  { %v2282_v18 = vsel %vm986_vm8, %v2280_v51, %v2281_v39  ;;  %2430 = vmatpush.msra.mxu3 %v2415_v7  ;;  %v2411_v51 = vld [vmem:[#allocation11 + $0x20] sm:$0xff] }
 0x3b7   :  { %v2242_v2 = vsel %vm471_vm0, %v2240_v3, -inf  ;;  %v2410_v3 = vld [vmem:[#allocation11 + $0x18] sm:$0xff] }
 0x3b8   :  { %v1736_v6 = vpop.f32.mrf.mxu2  ;;  %v1803_v60 = vpop.f32.mrf.mxu3  ;;  %v2244_v47 = vmax.f32 %v2242_v2, %v2243_v33  ;;  %2431 = vmatpush.msra.mxu3 %v2414_v26 }
 0x3b9   :  { %v2263_v23 = vrot.slane %v1803_v60, 2  ;;  %v2302_v24 = vrot.slane %v1736_v6, 1 }
 0x3ba   :  { %v2245_v32 = vrot.slane %v2244_v47, 4  ;;  %2432 = vmatpush.msra.mxu3 %v2413_v63  ;;  %v6739_v63 = vld [vmem:[%s7331_s13] sm:$0xff] }
 0x3bb   :  { %v2264_v38 = vsel %vm737_vm2, %v2262_v21, %v2263_v23  ;;  %v2268_v40 = vadd.f32 %v2263_v23, %v2259_v29  ;;  %v2196_v29 = vrot.slane %v2195_v20, 4  ;;  %v2372_v23 = vld [vmem:[#allocation9 + $0x28] sm:$0xff] }
 0x3bc   :  { %v2267_v1 = vadd.f32 %v2264_v38, %v2258_v48  ;;  %v2371_v38 = vld [vmem:[#allocation9 + $0x20] sm:$0xff]  ;;  %2397 = vmatpush.msra.mxu2 %v2372_v23  ;;  %v6731_v23 = vld [vmem:[#allocation12 + $0x8] sm:$0xff] }
 0x3bd   :  { %v2277_v57 = vadd.f32 %v2272_v8, %v2268_v40  ;;  %v2320_v8 = vrot.slane %v6675_v0, 3  ;;  %v2412_v40 = vld [vmem:[#allocation11 + $0x28] sm:$0xff]  ;;  %v2329_v0 = vrot.slane %v6681_v30, 4 }
 0x3be   :  { %v2276_v19 = vadd.f32 %v2273_v56, %v2267_v1  ;;  %v2370_v56 = vld [vmem:[#allocation9 + $0x18] sm:$0xff]  ;;  %2398 = vmatpush.msra.mxu2 %v2371_v38  ;;  %2433 = vmatpush.msra.mxu3 %v2412_v40 }
 0x3bf   :  { %v2286_v42 = vadd.f32 %v2281_v39, %v2277_v57  ;;  %v2322_v5 = vsel %vm988_vm3, %v2320_v8, %v2321_v45  ;;  %v2246_v57 = vmax.f32 %v2244_v47, %v2245_v32  ;;  %v6715_v8 = vld [vmem:[#allocation12 + $0x18] sm:$0xff]  ;;  %v6741_v32 = vld [vmem:[#allocation12] sm:$0xff] }
 0x3c0   :  { %v2285_v50 = vadd.f32 %v2282_v18, %v2276_v19  ;;  %v1739_v37 = vpop.f32.mrf.mxu2  ;;  %v1806_v4 = vpop.f32.mrf.mxu3  ;;  %v2331_v19 = vsel %vm986_vm8, %v2329_v0, %v2330_v12  ;;  %2399 = vmatpush.msra.mxu2 %v2370_v56  ;;  %2434 = vmatpush.msra.mxu3 %v2411_v51  ;;  %v2451_v40 = vld [vmem:[%s7242_s15] sm:$0x1] }
 0x3c1   :  { %v2288_v15 = vadd.f32 %v6568_v10, %v2286_v42  ;;  %v2303_v11 = vrot.slane %v1739_v37, 1  ;;  %v2311_v60 = vrot.slane %v1806_v4, 2  ;;  %v2369_v42 = vld [vmem:[#allocation9 + $0x10] sm:$0xff]  ;;  %v2368_v37 = vld [vmem:[#allocation9 + $0x8] sm:$0xff] }
 0x3c2   :  { %v2287_v43 = vadd.f32 %v6568_v10, %v2285_v50  ;;  %v2409_v4 = vld [vmem:[#allocation11 + $0x10] sm:$0xff]  ;;  %2400 = vmatpush.msra.mxu2 %v2369_v42  ;;  %2435 = vmatpush.msra.mxu3 %v2410_v3  ;;  %v2452_v3 = vld [vmem:[%s7243_s16] sm:$0x1] }
 0x3c3   :  { %v2290_v54 = vmax.f32 %v2288_v15, 0.0  ;;  %v2304_v44 = vsel %vm727_vm1, %v2302_v24, %v2303_v11  ;;  %v2308_v6 = vadd.f32 %v2303_v11, %v6501_v28  ;;  %v2408_v11 = vld [vmem:[#allocation11 + $0x8] sm:$0xff] }
 0x3c4   :  { %v2289_v41 = vmax.f32 %v2287_v43, 0.0  ;;  %v2307_v21 = vadd.f32 %v2304_v44, %v6481_v34  ;;  %v2197_v34 = vmax.f32 %v2195_v20, %v2196_v29  ;;  %v2247_v43 = vrot.slane %v2246_v57, 2  ;;  %2401 = vmatpush.msra.mxu2 %v2368_v37  ;;  %2436 = vmatpush.msra.mxu3 %v2409_v4  ;;  %v6724_v29 = vld [vmem:[#allocation12 + $0x10] sm:$0xff] }
 0x3c5   :  { %v2292_v16 = vsel %vm1997_vm10, %v2290_v54, -inf  ;;  %v2367_v54 = vld [vmem:[#allocation9] sm:$0xff] }
 0x3c6   :  { %v2291_v49 = vsel %vm471_vm0, %v2289_v41, -inf  ;;  %v2198_v30 = vrot.slane %v2197_v34, 2  ;;  %2402 = vmatpush.msra.mxu2 %v2367_v54  ;;  %2437 = vmatpush.msra.mxu3 %v2408_v11 }
 0x3c7   :  { %v2293_v52 = vmax.f32 %v2291_v49, %v2292_v16  ;;  %v2248_v16 = vmax.f32 %v2246_v57, %v2247_v43 }
 0x3c8   :  { %v1809_v9 = vpop.f32.mrf.mxu3  ;;  %v2199_v41 = vmax.f32 %v2197_v34, %v2198_v30  ;;  %v4784_v34 = vld [vmem:[#allocation14] ss:$0 sm:$0xff] }
 0x3c9   :  { %v2312_v13 = vrot.slane %v1809_v9, 2  ;;  %v2294_v39 = vrot.slane %v2293_v52, 4  ;;  %v2249_v49 = vrot.slane %v2248_v16, 1 }
 0x3ca   :  { %v2200_v20 = vrot.slane %v2199_v41, 1 }
 0x3cb   :  { %v2313_v48 = vsel %vm737_vm2, %v2311_v60, %v2312_v13  ;;  %v2317_v31 = vadd.f32 %v2312_v13, %v2308_v6  ;;  %v2295_v18 = vmax.f32 %v2293_v52, %v2294_v39  ;;  %v2250_v44 = vmax.f32 %v2248_v16, %v2249_v49  ;;  %v2407_v60 = vld [vmem:[#allocation11] sm:$0xff]  ;;  %v6713_v13 = vld [vmem:[%s7331_s13 + $0x18] sm:$0xff] }
 0x3cc   :  { %v2316_v28 = vadd.f32 %v2313_v48, %v2307_v21  ;;  %v2201_v47 = vmax.f32 %v2199_v41, %v2200_v20  ;;  %2438 = vmatpush.msra.mxu3 %v2407_v60  ;;  %2470 = vmatpush.msrb.mxu2 %v6713_v13  ;;  %v6729_v21 = vld [vmem:[%s7331_s13 + $0x8] sm:$0xff] }
 0x3cd   :  { %v2326_v36 = vadd.f32 %v2321_v45, %v2317_v31  ;;  %v2296_v55 = vrot.slane %v2295_v18, 2  ;;  %2746 = vmatpush.msra.mxu0 %v6713_v13 }
 0x3ce   :  { %v2325_v1 = vadd.f32 %v2322_v5, %v2316_v28  ;;  %v2352_v9 = vsel %vm986_vm8, %v6645_v27, %v2201_v47  ;;  %v6720_v27 = vld [vmem:[%s7331_s13 + $0x10] sm:$0xff]  ;;  %2535 = vmatpush.msrb.mxu3 %v6715_v8 }
 0x3cf   :  { %v2335_v58 = vadd.f32 %v2330_v12, %v2326_v36  ;;  %v2353_v26 = vsel %vm988_vm3, %v2352_v9, %v2250_v44  ;;  %2471 = vmatpush.msrb.mxu2 %v6720_v27  ;;  %2747 = vmatpush.msra.mxu0 %v6720_v27  ;;  %v2454_v12 = vld [vmem:[%s7243_s16 + $0x1] sm:$0x1]  ;;  %v4783_v36 = vld [vmem:[%s7332_s21] ss:$0 sm:$0xff]  ;;  %s5324_s16 = smov 96  }
 0x3d0   :  { %v2334_v22 = vadd.f32 %v2331_v19, %v2325_v1  ;;  %2536 = vmatpush.msrb.mxu3 %v6724_v29  ;;  %v2568_v48 = vrot.slane %v2454_v12, 1 }
 0x3d1   :  { %v2337_v25 = vadd.f32 %v6568_v10, %v2335_v58  ;;  %2472 = vmatpush.msrb.mxu2 %v6729_v21  ;;  %2748 = vmatpush.msra.mxu0 %v6729_v21 }
 0x3d2   :  { %v2336_v50 = vadd.f32 %v6568_v10, %v2334_v22  ;;  %v2297_v10 = vmax.f32 %v2295_v18, %v2296_v55  ;;  %2537 = vmatpush.msrb.mxu3 %v6731_v23 }
 0x3d3   :  { %v2339_v15 = vmax.f32 %v2337_v25, 0.0  ;;  %2473 = vmatpush.msrb.mxu2 %v6739_v63  ;;  %2749 = vmatpush.msra.mxu0 %v6739_v63 }
 0x3d4   :  { %v2338_v61 = vmax.f32 %v2336_v50, 0.0  ;;  %v2298_v59 = vrot.slane %v2297_v10, 1  ;;  %2538 = vmatpush.msrb.mxu3 %v6741_v32 }
 0x3d5   :  { %v2341_v2 = vsel %vm1997_vm10, %v2339_v15, -inf  ;;  %2956 = vmatpush.msrb.mxu0 %v6715_v8 }
 0x3d6   :  { %v2340_v33 = vsel %vm471_vm0, %v2338_v61, -inf  ;;  %v2299_v35 = vmax.f32 %v2297_v10, %v2298_v59  ;;  %v2358_v31 = vpop.permute.xlu1 %2357 }
 0x3d7   :  { %v2342_v24 = vmax.f32 %v2340_v33, %v2341_v2  ;;  %2957 = vmatpush.msrb.mxu0 %v6724_v29  ;;  %v2364_v39 = vsel %vm471_vm0, %v6363_v14, %v2358_v31  ;;  %v2453_v14 = vld [vmem:[%s7242_s15 + $0x1] sm:$0x1] }
 0x3d8   :  { %v2354_v45 = vsel %vm737_vm2, %v2353_v26, %v2299_v35 }
 0x3d9   :  { %v2343_v46 = vrot.slane %v2342_v24, 4  ;;  %2958 = vmatpush.msrb.mxu0 %v6731_v23 }
 0x3db   :  { %v2344_v17 = vmax.f32 %v2342_v24, %v2343_v46  ;;  %2959 = vmatpush.msrb.mxu0 %v6741_v32 }
 0x3dd   :  { %v2345_v62 = vrot.slane %v2344_v17, 2 }
 0x3df   :  { %v2346_v7 = vmax.f32 %v2344_v17, %v2345_v62 }
 0x3e1   :  { %v2347_v52 = vrot.slane %v2346_v7, 1 }
 0x3e3   :  { %v2348_v53 = vmax.f32 %v2346_v7, %v2347_v52 }
 0x3e5   :  { %v2355_v6 = vsel %vm727_vm1, %v2354_v45, %v2348_v53 }
 0x3e6   :  { %2361 = vrot.lane.b32.xlu2 %v2355_v6, %s5323_s29 }
 0x3ee   :  { %2569 = vrot.lane.b32.xlu2 %v2568_v48, %s5322_s8 }
 0x440   :  { %v2362_v28 = vpop.permute.xlu2 %2361 }
 0x441   :  { %v2366_v38 = vsel %vm7268_vm11, %v2364_v39, %v2362_v28 }
 0x442   :  { %4686 = vmatmul.msk.f32.vlgmr.msra.gmra.mxu2 %vm2383_vm12, %v2366_v38  ;;  %4687 = vmatmul.msk.f32.vlgmr.msra.gmra.mxu3 %vm2383_vm12, %v2366_v38 }
 0x443   :  { %2606 = vmatpush.msra.mxu2 %v6713_v13  ;;  %2676 = vmatpush.msra.mxu3 %v6715_v8 }
 0x445   :  { %2607 = vmatpush.msra.mxu2 %v6720_v27  ;;  %2677 = vmatpush.msra.mxu3 %v6724_v29 }
 0x447   :  { %2608 = vmatpush.msra.mxu2 %v6729_v21  ;;  %2678 = vmatpush.msra.mxu3 %v6731_v23 }
 0x448   :  { %v2570_v26 = vpop.permute.xlu2 %2569 }
 0x449   :  { %2609 = vmatpush.msra.mxu2 %v6739_v63  ;;  %2679 = vmatpush.msra.mxu3 %v6741_v32 }
 0x44a   :  { %4688 = vmatmul.msk.f32.vlgmr.msrb.gmra.mxu2 %vm471_vm0, %v2451_v40  ;;  %4690 = vmatmul.msk.f32.vlgmr.msrb.gmra.mxu3 %vm471_vm0, %v2453_v14 }
 0x44b   :  { %2816 = vmatpush.msrb.mxu2 %v6715_v8  ;;  %2886 = vmatpush.msrb.mxu3 %v6713_v13 }
 0x44d   :  { %2817 = vmatpush.msrb.mxu2 %v6724_v29  ;;  %2887 = vmatpush.msrb.mxu3 %v6720_v27 }
 0x44f   :  { %2818 = vmatpush.msrb.mxu2 %v6731_v23  ;;  %2888 = vmatpush.msrb.mxu3 %v6729_v21 }
 0x451   :  { %2819 = vmatpush.msrb.mxu2 %v6741_v32  ;;  %2889 = vmatpush.msrb.mxu3 %v6739_v63 }
 0x4c5   :  { %v2404_v5 = vpop.f32.mrf.mxu2  ;;  %v2440_v0 = vpop.f32.mrf.mxu3 }
 0x4c6   :  { %v6788_v1 = vadd.f32 %v4783_v36, %v2404_v5  ;;  %v6790_v57 = vadd.f32 %v4784_v34, %v2440_v0 }
 0x4cd   :  { %v2475_v56 = vpop.f32.mrf.mxu2  ;;  %v2540_v51 = vpop.f32.mrf.mxu3 }
 0x4ce   :  { %v2478_v19 = vadd.f32 %v2475_v56, %v6788_v1  ;;  %v2544_v58 = vrot.slane %v2540_v51, 1 }
 0x4d0   :  { %4789 = vtanh.f32 %v2478_v19  ;;  %v2546_v22 = vadd.f32 %v2544_v58, %v6790_v57  ;;  %v4689_v25 = vmul.f32 -1.442695, %v2478_v19 }
 0x4d2   :  { %4791 = vtanh.f32 %v2546_v22  ;;  %v4691_v30 = vmul.f32 -1.442695, %v2546_v22 }
 0x4d3   :  { %4793 = vpow2.f32 %v4689_v25 }
 0x4d4   :  { %4795 = vpow2.f32 %v4691_v30 }
 0x4d6   :  { %v4790_v18 = vpop.eup %4789 }
 0x4d7   :  { %2505 = vrot.lane.b32.xlu1 %v4790_v18, %s5322_s8 }
 0x4d8   :  { %v4792_v42 = vpop.eup %4791 }
 0x4d9   :  { %2574 = vrot.lane.b32.xlu0 %v4792_v42, %s5322_s8  ;;  %v4794_v50 = vpop.eup %4793 }
 0x4da   :  { %v4796_v37 = vpop.eup %4795  ;;  %v2482_v4 = vadd.f32 1.0, %v4794_v50 }
 0x4db   :  { %v2550_v15 = vadd.f32 1.0, %v4796_v37 }
 0x4dc   :  { %4797 = vrcp.f32 %v2482_v4  ;;  %v2494_v16 = vand.u32 2147483648, %v2482_v4  ;;  %vm2488_vm14 = vweird.f32 %v2482_v4  ;;  %v2492_v10 = vand.u32 2147483647, %v2482_v4 }
 0x4dd   :  { %4799 = vrcp.f32 %v2550_v15  ;;  %v2562_v20 = vand.u32 2147483648, %v2550_v15  ;;  %vm2556_vm9 = vweird.f32 %v2550_v15  ;;  %v2560_v17 = vand.u32 2147483647, %v2550_v15 }
 0x4de   :  { %v2495_v59 = vor.u32 1.1754944e-38, %v2494_v16  ;;  %vm2493_vm12 = vcmp.eq.f32.partialorder %v2492_v10, 8.507059e+37 }
 0x4df   :  { %2500 = vrot.lane.b32.xlu1 %v2452_v3, %s5322_s8  ;;  %v2563_v7 = vor.u32 1.1754944e-38, %v2562_v20  ;;  %vm2561_vm11 = vcmp.eq.f32.partialorder %v2560_v17, 8.507059e+37 }
 0x4e2   :  { %v4798_v43 = vpop.eup %4797 }
 0x4e3   :  { %v4800_v61 = vpop.eup %4799  ;;  %v2484_v55 = vmul.f32 %v4798_v43, %v2482_v4  ;;  %vm2489_vm13 = vweird.f32 %v4798_v43 }
 0x4e4   :  { %v2552_v54 = vmul.f32 %v4800_v61, %v2550_v15  ;;  %vm2557_vm15 = vweird.f32 %v4800_v61  ;;  %vm2490_vm4 = vmor %vm2488_vm14, %vm2489_vm13 }
 0x4e5   :  { %v2485_v11 = vsub.f32 1.0, %v2484_v55  ;;  %vm2558_vm10 = vmor %vm2556_vm9, %vm2557_vm15 }
 0x4e6   :  { %v2553_v2 = vsub.f32 1.0, %v2552_v54 }
 0x4e7   :  { %v2486_v33 = vmul.f32 %v4798_v43, %v2485_v11 }
 0x4e8   :  { %v2554_v41 = vmul.f32 %v4800_v61, %v2553_v2 }
 0x4e9   :  { %v2487_v24 = vadd.f32 %v4798_v43, %v2486_v33 }
 0x4ea   :  { %v2555_v46 = vadd.f32 %v4800_v61, %v2554_v41 }
 0x4eb   :  { %v2491_v49 = vsel %vm2490_vm4, %v4798_v43, %v2487_v24 }
 0x4ec   :  { %v2559_v62 = vsel %vm2558_vm10, %v4800_v61, %v2555_v46  ;;  %v2496_v44 = vsel %vm2493_vm12, %v2495_v59, %v2491_v49 }
 0x4ed   :  { %v2564_v52 = vsel %vm2561_vm11, %v2563_v7, %v2559_v62 }
 0x4ee   :  { %v2572_v31 = vmul.f32 %v2570_v26, %v2564_v52 }
 0x549   :  { %v2506_v47 = vpop.permute.xlu1 %2505 }
 0x54a   :  { %v2508_v35 = vmul.f32 %v2506_v47, %v2496_v44 }
 0x54b   :  { %v2575_v9 = vpop.permute.xlu0 %2574 }
 0x54c   :  { %2510 = vrot.lane.b32.xlu2 %v2508_v35, %s5322_s8  ;;  %v2577_v53 = vmul.f32 %v2575_v9, %v2564_v52 }
 0x54e   :  { %2579 = vrot.lane.b32.xlu0 %v2577_v53, %s5322_s8 }
 0x551   :  { %v2501_v45 = vpop.permute.xlu1 %2500 }
 0x552   :  { %v2503_v6 = vmul.f32 %v2501_v45, %v2496_v44 }
 0x5a6   :  { %v2511_v60 = vpop.permute.xlu2 %2510 }
 0x5a7   :  { %v6802_v12 = vadd.f32 %v2511_v60, %v2503_v6 }
 0x5a9   :  { %4801 = vtanh.f32 %v6802_v12  ;;  %v2639_v45 = vrot.slane %v6802_v12, 7 }
 0x5af   :  { %v4802_v48 = vpop.eup %4801 }
 0x5b0   :  { %2516 = vrot.lane.b32.xlu1 %v4802_v48, %s5322_s8 }
 0x5c0   :  { %v2580_v39 = vpop.permute.xlu0 %2579 }
 0x5c1   :  { %v6806_v28 = vadd.f32 %v2580_v39, %v2572_v31 }
 0x5c3   :  { %4803 = vtanh.f32 %v6806_v28  ;;  %v2709_v39 = vrot.slane %v6806_v28, 1 }
 0x5c9   :  { %v4804_v38 = vpop.eup %4803 }
 0x5ca   :  { %2585 = vrot.lane.b32.xlu0 %v4804_v38, %s5322_s8 }
 0x622   :  { %v2517_v40 = vpop.permute.xlu1 %2516 }
 0x623   :  { %v6810_v14 = vmul.f32 %v2517_v40, %v2496_v44 }
 0x625   :  { %2590 = vrot.lane.b32.xlu0 %v6810_v14, %s5323_s29 }
 0x63c   :  { %v2586_v5 = vpop.permute.xlu0 %2585 }
 0x63d   :  { %v6814_v0 = vmul.f32 %v2586_v5, %v2564_v52 }
 0x63f   :  { %v2659_v36 = vrot.slane %v6814_v0, 7 }
 0x641   :  { %2660 = vrot.lane.b32.xlu2 %v2659_v36, %s5323_s29 }
 0x697   :  { %v2591_v34 = vpop.permute.xlu0 %2590 }
 0x698   :  { %4692 = vmatmul.msk.f32.vlgmr.msra.gmra.mxu2 %vm471_vm0, %v2591_v34 }
 0x699   :  { %3026 = vmatpush.msra.mxu2 %v6713_v13 }
 0x69b   :  { %3027 = vmatpush.msra.mxu2 %v6720_v27  ;;  %v2661_v56 = vpop.permute.xlu2 %2660 }
 0x69c   :  { %4694 = vmatmul.msk.f32.vlgmr.msra.gmra.mxu3 %vm471_vm0, %v2661_v56 }
 0x69d   :  { %3028 = vmatpush.msra.mxu2 %v6729_v21  ;;  %3096 = vmatpush.msra.mxu3 %v6715_v8 }
 0x69f   :  { %3029 = vmatpush.msra.mxu2 %v6739_v63  ;;  %3097 = vmatpush.msra.mxu3 %v6724_v29 }
 0x6a1   :  { %3098 = vmatpush.msra.mxu3 %v6731_v23 }
 0x6a3   :  { %3099 = vmatpush.msra.mxu3 %v6741_v32 }
 0x71b   :  { %v2611_v51 = vpop.f32.mrf.mxu2 }
 0x71c   :  { %v2615_v19 = vrot.slane %v2611_v51, 7 }
 0x71e   :  { %v2617_v58 = vadd.f32 %v2615_v19, %v6788_v1 }
 0x71f   :  { %v2681_v22 = vpop.f32.mrf.mxu3 }
 0x720   :  { %4805 = vtanh.f32 %v2617_v58  ;;  %v2685_v18 = vrot.slane %v2681_v22, 2  ;;  %v4693_v30 = vmul.f32 -1.442695, %v2617_v58 }
 0x722   :  { %v2687_v42 = vadd.f32 %v2685_v18, %v6790_v57 }
 0x724   :  { %4807 = vtanh.f32 %v2687_v42  ;;  %v4695_v43 = vmul.f32 -1.442695, %v2687_v42 }
 0x725   :  { %4809 = vpow2.f32 %v4693_v30 }
 0x726   :  { %v4806_v3 = vpop.eup %4805 }
 0x727   :  { %2643 = vrot.lane.b32.xlu2 %v4806_v3, %s5322_s8 }
 0x72a   :  { %v4808_v25 = vpop.eup %4807 }
 0x72b   :  { %2713 = vrot.lane.b32.xlu1 %v4808_v25, %s5322_s8  ;;  %v4810_v50 = vpop.eup %4809 }
 0x72c   :  { %v2621_v37 = vadd.f32 1.0, %v4810_v50 }
 0x72e   :  { %4811 = vrcp.f32 %v2621_v37  ;;  %v2633_v2 = vand.u32 2147483648, %v2621_v37  ;;  %vm2627_vm13 = vweird.f32 %v2621_v37  ;;  %v2631_v33 = vand.u32 2147483647, %v2621_v37 }
 0x72f   :  { %4813 = vpow2.f32 %v4695_v43 }
 0x730   :  { %v2634_v16 = vor.u32 1.1754944e-38, %v2633_v2  ;;  %vm2632_vm15 = vcmp.eq.f32.partialorder %v2631_v33, 8.507059e+37 }
 0x734   :  { %v4812_v4 = vpop.eup %4811 }
 0x735   :  { %v2623_v15 = vmul.f32 %v4812_v4, %v2621_v37  ;;  %vm2628_vm11 = vweird.f32 %v4812_v4  ;;  %v4814_v11 = vpop.eup %4813 }
 0x736   :  { %vm2629_vm14 = vmor %vm2627_vm13, %vm2628_vm11  ;;  %v2691_v41 = vadd.f32 1.0, %v4814_v11 }
 0x737   :  { %v2624_v61 = vsub.f32 1.0, %v2623_v15 }
 0x738   :  { %4815 = vrcp.f32 %v2691_v41  ;;  %v2703_v44 = vand.u32 2147483648, %v2691_v41  ;;  %vm2697_vm9 = vweird.f32 %v2691_v41  ;;  %v2701_v7 = vand.u32 2147483647, %v2691_v41 }
 0x739   :  { %v2625_v55 = vmul.f32 %v4812_v4, %v2624_v61 }
 0x73a   :  { %v2704_v52 = vor.u32 1.1754944e-38, %v2703_v44  ;;  %vm2702_vm12 = vcmp.eq.f32.partialorder %v2701_v7, 8.507059e+37 }
 0x73b   :  { %v2626_v54 = vadd.f32 %v4812_v4, %v2625_v55 }
 0x73d   :  { %v2630_v24 = vsel %vm2629_vm14, %v4812_v4, %v2626_v54 }
 0x73e   :  { %v2635_v46 = vsel %vm2632_vm15, %v2634_v16, %v2630_v24  ;;  %v4816_v49 = vpop.eup %4815 }
 0x73f   :  { %v2693_v17 = vmul.f32 %v4816_v49, %v2691_v41  ;;  %vm2698_vm4 = vweird.f32 %v4816_v49  ;;  %v2641_v6 = vmul.f32 %v2639_v45, %v2635_v46 }
 0x740   :  { %vm2699_vm10 = vmor %vm2697_vm9, %vm2698_vm4 }
 0x741   :  { %v2694_v59 = vsub.f32 1.0, %v2693_v17 }
 0x743   :  { %v2695_v62 = vmul.f32 %v4816_v49, %v2694_v59 }
 0x745   :  { %v2696_v47 = vadd.f32 %v4816_v49, %v2695_v62 }
 0x747   :  { %v2700_v35 = vsel %vm2699_vm10, %v4816_v49, %v2696_v47 }
 0x748   :  { %v2705_v9 = vsel %vm2702_vm12, %v2704_v52, %v2700_v35 }
 0x749   :  { %v2711_v38 = vmul.f32 %v2709_v39, %v2705_v9 }
 0x781   :  { %v2644_v10 = vpop.permute.xlu2 %2643 }
 0x782   :  { %v2646_v20 = vmul.f32 %v2644_v10, %v2635_v46 }
 0x784   :  { %2648 = vrot.lane.b32.xlu1 %v2646_v20, %s5322_s8 }
 0x79d   :  { %v2714_v53 = vpop.permute.xlu1 %2713 }
 0x79e   :  { %v2716_v26 = vmul.f32 %v2714_v53, %v2705_v9 }
 0x7a0   :  { %2718 = vrot.lane.b32.xlu0 %v2716_v26, %s5322_s8 }
 0x7f6   :  { %v2649_v60 = vpop.permute.xlu1 %2648 }
 0x7f7   :  { %v6835_v48 = vadd.f32 %v2649_v60, %v2641_v6 }
 0x7f9   :  { %4817 = vtanh.f32 %v6835_v48  ;;  %v2779_v39 = vrot.slane %v6835_v48, 7 }
 0x7ff   :  { %v4818_v31 = vpop.eup %4817 }
 0x800   :  { %2654 = vrot.lane.b32.xlu0 %v4818_v31, %s5322_s8 }
 0x812   :  { %v2719_v40 = vpop.permute.xlu0 %2718 }
 0x813   :  { %v6840_v5 = vadd.f32 %v2719_v40, %v2711_v38 }
 0x815   :  { %4819 = vtanh.f32 %v6840_v5 }
 0x81b   :  { %v4820_v36 = vpop.eup %4819 }
 0x81c   :  { %2724 = vrot.lane.b32.xlu2 %v4820_v36, %s5322_s8 }
 0x872   :  { %v2655_v12 = vpop.permute.xlu0 %2654 }
 0x873   :  { %v6844_v34 = vmul.f32 %v2655_v12, %v2635_v46 }
 0x875   :  { %v2729_v56 = vrot.slane %v6844_v34, 1 }
 0x876   :  { %v2725_v51 = vpop.permute.xlu2 %2724 }
 0x877   :  { %2730 = vrot.lane.b32.xlu2 %v2729_v56, %s5323_s29  ;;  %v6848_v19 = vmul.f32 %v2725_v51, %v2705_v9  ;;  %v2849_v56 = vrot.slane %v6840_v5, 1 }
 0x879   :  { %v2799_v28 = vrot.slane %v6848_v19, 6 }
 0x87b   :  { %2800 = vrot.lane.b32.xlu1 %v2799_v28, %s5323_s29 }
 0x8d1   :  { %v2731_v58 = vpop.permute.xlu2 %2730 }
 0x8d2   :  { %4696 = vmatmul.msk.f32.vlgmr.msra.gmra.mxu0 %vm471_vm0, %v2731_v58 }
 0x8d3   :  { %3166 = vmatpush.msra.mxu0 %v6713_v13 }
 0x8d5   :  { %3167 = vmatpush.msra.mxu0 %v6720_v27 }
 0x8d7   :  { %3168 = vmatpush.msra.mxu0 %v6729_v21 }
 0x8d9   :  { %3169 = vmatpush.msra.mxu0 %v6739_v63 }
 0x8ed   :  { %v2801_v22 = vpop.permute.xlu1 %2800 }
 0x8ee   :  { %4698 = vmatmul.msk.f32.vlgmr.msrb.gmra.mxu2 %vm471_vm0, %v2801_v22 }
 0x8ef   :  { %3236 = vmatpush.msrb.mxu2 %v6715_v8 }
 0x8f1   :  { %3237 = vmatpush.msrb.mxu2 %v6724_v29 }
 0x8f3   :  { %3238 = vmatpush.msrb.mxu2 %v6731_v23 }
 0x8f5   :  { %3239 = vmatpush.msrb.mxu2 %v6741_v32 }
 0x94f   :  { %v2751_v18 = vpop.f32.mrf.mxu0 }
 0x950   :  { %v2755_v42 = vrot.slane %v2751_v18, 6 }
 0x952   :  { %v2757_v3 = vadd.f32 %v2755_v42, %v6788_v1  ;;  %v3565_v42 = vsel %vm980_vm5, %v6810_v14, %v6844_v34 }
 0x954   :  { %4821 = vtanh.f32 %v2757_v3  ;;  %v4697_v15 = vmul.f32 -1.442695, %v2757_v3 }
 0x95a   :  { %v4822_v25 = vpop.eup %4821 }
 0x95b   :  { %2783 = vrot.lane.b32.xlu0 %v4822_v25, %s5322_s8 }
 0x971   :  { %v2821_v30 = vpop.f32.mrf.mxu2 }
 0x972   :  { %v2825_v50 = vrot.slane %v2821_v30, 3 }
 0x974   :  { %v2827_v37 = vadd.f32 %v2825_v50, %v6790_v57 }
 0x976   :  { %4823 = vtanh.f32 %v2827_v37  ;;  %v4699_v33 = vmul.f32 -1.442695, %v2827_v37 }
 0x977   :  { %4825 = vpow2.f32 %v4697_v15 }
 0x97c   :  { %v4824_v4 = vpop.eup %4823 }
 0x97d   :  { %2853 = vrot.lane.b32.xlu1 %v4824_v4, %s5322_s8  ;;  %v4826_v43 = vpop.eup %4825 }
 0x97e   :  { %v2761_v61 = vadd.f32 1.0, %v4826_v43 }
 0x980   :  { %4827 = vrcp.f32 %v2761_v61  ;;  %v2773_v24 = vand.u32 2147483648, %v2761_v61  ;;  %vm2767_vm13 = vweird.f32 %v2761_v61  ;;  %v2771_v16 = vand.u32 2147483647, %v2761_v61 }
 0x981   :  { %4829 = vpow2.f32 %v4699_v33 }
 0x982   :  { %v2774_v46 = vor.u32 1.1754944e-38, %v2773_v24  ;;  %vm2772_vm15 = vcmp.eq.f32.partialorder %v2771_v16, 8.507059e+37 }
 0x986   :  { %v4828_v55 = vpop.eup %4827 }
 0x987   :  { %v2763_v54 = vmul.f32 %v4828_v55, %v2761_v61  ;;  %vm2768_vm11 = vweird.f32 %v4828_v55  ;;  %v4830_v20 = vpop.eup %4829 }
 0x988   :  { %vm2769_vm14 = vmor %vm2767_vm13, %vm2768_vm11  ;;  %v2831_v62 = vadd.f32 1.0, %v4830_v20 }
 0x989   :  { %v2764_v11 = vsub.f32 1.0, %v2763_v54 }
 0x98a   :  { %4831 = vrcp.f32 %v2831_v62  ;;  %v2843_v9 = vand.u32 2147483648, %v2831_v62  ;;  %vm2837_vm9 = vweird.f32 %v2831_v62  ;;  %v2841_v53 = vand.u32 2147483647, %v2831_v62 }
 0x98b   :  { %v2765_v2 = vmul.f32 %v4828_v55, %v2764_v11 }
 0x98c   :  { %v2844_v45 = vor.u32 1.1754944e-38, %v2843_v9  ;;  %vm2842_vm12 = vcmp.eq.f32.partialorder %v2841_v53, 8.507059e+37 }
 0x98d   :  { %v2766_v41 = vadd.f32 %v4828_v55, %v2765_v2 }
 0x98f   :  { %v2770_v10 = vsel %vm2769_vm14, %v4828_v55, %v2766_v41 }
 0x990   :  { %v2775_v17 = vsel %vm2772_vm15, %v2774_v46, %v2770_v10  ;;  %v4832_v47 = vpop.eup %4831 }
 0x991   :  { %v2833_v44 = vmul.f32 %v4832_v47, %v2831_v62  ;;  %vm2838_vm4 = vweird.f32 %v4832_v47  ;;  %v2781_v38 = vmul.f32 %v2779_v39, %v2775_v17 }
 0x992   :  { %vm2839_vm10 = vmor %vm2837_vm9, %vm2838_vm4 }
 0x993   :  { %v2834_v7 = vsub.f32 1.0, %v2833_v44 }
 0x995   :  { %v2835_v35 = vmul.f32 %v4832_v47, %v2834_v7 }
 0x997   :  { %v2836_v52 = vadd.f32 %v4832_v47, %v2835_v35 }
 0x999   :  { %v2840_v26 = vsel %vm2839_vm10, %v4832_v47, %v2836_v52 }
 0x99a   :  { %v2845_v60 = vsel %vm2842_vm12, %v2844_v45, %v2840_v26 }
 0x99b   :  { %v2851_v51 = vmul.f32 %v2849_v56, %v2845_v60 }
 0x9cd   :  { %v2784_v49 = vpop.permute.xlu0 %2783 }
 0x9ce   :  { %v2786_v59 = vmul.f32 %v2784_v49, %v2775_v17 }
 0x9d0   :  { %2788 = vrot.lane.b32.xlu2 %v2786_v59, %s5322_s8 }
 0x9ef   :  { %v2854_v6 = vpop.permute.xlu1 %2853 }
 0x9f0   :  { %v2856_v31 = vmul.f32 %v2854_v6, %v2845_v60 }
 0x9f2   :  { %2858 = vrot.lane.b32.xlu0 %v2856_v31, %s5322_s8 }
 0xa2a   :  { %v2789_v40 = vpop.permute.xlu2 %2788 }
 0xa2b   :  { %v6869_v36 = vadd.f32 %v2789_v40, %v2781_v38 }
 0xa2d   :  { %4833 = vtanh.f32 %v6869_v36 }
 0xa33   :  { %v4834_v12 = vpop.eup %4833 }
 0xa34   :  { %2794 = vrot.lane.b32.xlu1 %v4834_v12, %s5322_s8 }
 0xa64   :  { %v2859_v28 = vpop.permute.xlu0 %2858 }
 0xa65   :  { %v6874_v58 = vadd.f32 %v2859_v28, %v2851_v51  ;;  %v2919_v28 = vrot.slane %v6869_v36, 7 }
 0xa67   :  { %4835 = vtanh.f32 %v6874_v58 }
 0xa6d   :  { %v4836_v22 = vpop.eup %4835 }
 0xa6e   :  { %2864 = vrot.lane.b32.xlu2 %v4836_v22, %s5322_s8 }
 0xaa6   :  { %v2795_v48 = vpop.permute.xlu1 %2794 }
 0xaa7   :  { %v2797_v18 = vmul.f32 %v2795_v48, %v2775_v17 }
 0xaa9   :  { %v2869_v3 = vrot.slane %v2797_v18, 2  ;;  %v6882_v25 = vsel %vm982_vm6, %v3565_v42, %v2797_v18 }
 0xaab   :  { %2870 = vrot.lane.b32.xlu0 %v2869_v3, %s5323_s29  ;;  %v2989_v3 = vrot.slane %v6874_v58, 1 }
 0xac8   :  { %v2865_v5 = vpop.permute.xlu2 %2864 }
 0xac9   :  { %v6885_v30 = vmul.f32 %v2865_v5, %v2845_v60 }
 0xacb   :  { %v2939_v50 = vrot.slane %v6885_v30, 5 }
 0xacd   :  { %2940 = vrot.lane.b32.xlu1 %v2939_v50, %s5323_s29 }
 0xb1d   :  { %v2871_v37 = vpop.permute.xlu0 %2870 }
 0xb1e   :  { %4700 = vmatmul.msk.f32.vlgmr.msrb.gmra.mxu3 %vm471_vm0, %v2871_v37 }
 0xb1f   :  { %3306 = vmatpush.msrb.mxu3 %v6713_v13 }
 0xb21   :  { %3307 = vmatpush.msrb.mxu3 %v6720_v27 }
 0xb23   :  { %3308 = vmatpush.msrb.mxu3 %v6729_v21 }
 0xb25   :  { %3309 = vmatpush.msrb.mxu3 %v6739_v63 }
 0xb3f   :  { %v2941_v14 = vpop.permute.xlu1 %2940 }
 0xb40   :  { %4702 = vmatmul.msk.f32.vlgmr.msrb.gmra.mxu0 %vm471_vm0, %v2941_v14 }
 0xb41   :  { %3376 = vmatpush.msrb.mxu0 %v6715_v8 }
 0xb43   :  { %3377 = vmatpush.msrb.mxu0 %v6724_v29 }
 0xb45   :  { %3378 = vmatpush.msrb.mxu0 %v6731_v23 }
 0xb47   :  { %3379 = vmatpush.msrb.mxu0 %v6741_v32 }
 0xba1   :  { %v2891_v34 = vpop.f32.mrf.mxu3 }
 0xba2   :  { %v2895_v4 = vrot.slane %v2891_v34, 5 }
 0xba4   :  { %v2897_v15 = vadd.f32 %v2895_v4, %v6788_v1 }
 0xba6   :  { %4837 = vtanh.f32 %v2897_v15  ;;  %v4701_v2 = vmul.f32 -1.442695, %v2897_v15 }
 0xbac   :  { %v4838_v43 = vpop.eup %4837 }
 0xbad   :  { %2923 = vrot.lane.b32.xlu0 %v4838_v43, %s5322_s8 }
 0xbbd   :  { %v2961_v61 = vpop.f32.mrf.mxu0 }
 0xbbe   :  { %v2965_v55 = vrot.slane %v2961_v61, 4 }
 0xbc0   :  { %v2967_v54 = vadd.f32 %v2965_v55, %v6790_v57 }
 0xbc2   :  { %4839 = vtanh.f32 %v2967_v54  ;;  %v4703_v33 = vmul.f32 -1.442695, %v2967_v54 }
 0xbc3   :  { %4841 = vpow2.f32 %v4701_v2 }
 0xbc4   :  { %4843 = vpow2.f32 %v4703_v33 }
 0xbc8   :  { %v4840_v11 = vpop.eup %4839 }
 0xbc9   :  { %2993 = vrot.lane.b32.xlu2 %v4840_v11, %s5322_s8  ;;  %v4842_v41 = vpop.eup %4841 }
 0xbca   :  { %v2901_v24 = vadd.f32 1.0, %v4842_v41  ;;  %v4844_v16 = vpop.eup %4843 }
 0xbcb   :  { %v2971_v10 = vadd.f32 1.0, %v4844_v16 }
 0xbcc   :  { %4845 = vrcp.f32 %v2901_v24  ;;  %v2913_v7 = vand.u32 2147483648, %v2901_v24  ;;  %vm2907_vm13 = vweird.f32 %v2901_v24  ;;  %v2911_v52 = vand.u32 2147483647, %v2901_v24 }
 0xbcd   :  { %4847 = vrcp.f32 %v2971_v10  ;;  %v2983_v45 = vand.u32 2147483648, %v2971_v10  ;;  %vm2977_vm9 = vweird.f32 %v2971_v10  ;;  %v2981_v31 = vand.u32 2147483647, %v2971_v10 }
 0xbce   :  { %v2914_v53 = vor.u32 1.1754944e-38, %v2913_v7  ;;  %vm2912_vm4 = vcmp.eq.f32.partialorder %v2911_v52, 8.507059e+37 }
 0xbcf   :  { %v2984_v40 = vor.u32 1.1754944e-38, %v2983_v45  ;;  %vm2982_vm12 = vcmp.eq.f32.partialorder %v2981_v31, 8.507059e+37 }
 0xbd2   :  { %v4846_v46 = vpop.eup %4845 }
 0xbd3   :  { %v2903_v20 = vmul.f32 %v4846_v46, %v2901_v24  ;;  %v4848_v49 = vpop.eup %4847  ;;  %vm2908_vm11 = vweird.f32 %v4846_v46 }
 0xbd4   :  { %v2973_v59 = vmul.f32 %v4848_v49, %v2971_v10  ;;  %vm2909_vm14 = vmor %vm2907_vm13, %vm2908_vm11  ;;  %vm2978_vm15 = vweird.f32 %v4848_v49 }
 0xbd5   :  { %v2904_v17 = vsub.f32 1.0, %v2903_v20  ;;  %vm2979_vm10 = vmor %vm2977_vm9, %vm2978_vm15 }
 0xbd6   :  { %v2974_v47 = vsub.f32 1.0, %v2973_v59 }
 0xbd7   :  { %v2905_v62 = vmul.f32 %v4846_v46, %v2904_v17 }
 0xbd8   :  { %v2975_v35 = vmul.f32 %v4848_v49, %v2974_v47 }
 0xbd9   :  { %v2906_v44 = vadd.f32 %v4846_v46, %v2905_v62 }
 0xbda   :  { %v2976_v26 = vadd.f32 %v4848_v49, %v2975_v35 }
 0xbdb   :  { %v2910_v9 = vsel %vm2909_vm14, %v4846_v46, %v2906_v44 }
 0xbdc   :  { %v2915_v60 = vsel %vm2912_vm4, %v2914_v53, %v2910_v9  ;;  %v2980_v38 = vsel %vm2979_vm10, %v4848_v49, %v2976_v26 }
 0xbdd   :  { %v2985_v56 = vsel %vm2982_vm12, %v2984_v40, %v2980_v38  ;;  %v2921_v22 = vmul.f32 %v2919_v28, %v2915_v60 }
 0xbde   :  { %v2991_v5 = vmul.f32 %v2989_v3, %v2985_v56 }
 0xc1f   :  { %v2924_v6 = vpop.permute.xlu0 %2923 }
 0xc20   :  { %v2926_v39 = vmul.f32 %v2924_v6, %v2915_v60 }
 0xc22   :  { %2928 = vrot.lane.b32.xlu2 %v2926_v39, %s5322_s8 }
 0xc23   :  { %v2994_v12 = vpop.permute.xlu2 %2993 }
 0xc24   :  { %v2996_v51 = vmul.f32 %v2994_v12, %v2985_v56 }
 0xc26   :  { %2998 = vrot.lane.b32.xlu1 %v2996_v51, %s5322_s8 }
 0xc7c   :  { %v2929_v48 = vpop.permute.xlu2 %2928 }
 0xc7d   :  { %v6906_v18 = vadd.f32 %v2929_v48, %v2921_v22 }
 0xc7f   :  { %4849 = vtanh.f32 %v6906_v18 }
 0xc85   :  { %v4850_v42 = vpop.eup %4849 }
 0xc86   :  { %2934 = vrot.lane.b32.xlu1 %v4850_v42, %s5322_s8 }
 0xc98   :  { %v2999_v50 = vpop.permute.xlu1 %2998 }
 0xc99   :  { %v6911_v37 = vadd.f32 %v2999_v50, %v2991_v5 }
 0xc9b   :  { %4851 = vtanh.f32 %v6911_v37  ;;  %v3129_v42 = vrot.slane %v6911_v37, 1 }
 0xca1   :  { %v4852_v14 = vpop.eup %4851 }
 0xca2   :  { %3004 = vrot.lane.b32.xlu0 %v4852_v14, %s5322_s8 }
 0xcf8   :  { %v2935_v36 = vpop.permute.xlu1 %2934 }
 0xcf9   :  { %v2937_v34 = vmul.f32 %v2935_v36, %v2915_v60 }
 0xcfb   :  { %v3009_v4 = vrot.slane %v2937_v34, 3  ;;  %v6917_v15 = vsel %vm984_vm7, %v6882_v25, %v2937_v34 }
 0xcfd   :  { %3010 = vrot.lane.b32.xlu0 %v3009_v4, %s5323_s29 }
 0xd14   :  { %v3005_v43 = vpop.permute.xlu0 %3004 }
 0xd15   :  { %v6920_v58 = vmul.f32 %v3005_v43, %v2985_v56  ;;  %v3059_v56 = vrot.slane %v6906_v18, 7 }
 0xd17   :  { %v3079_v61 = vrot.slane %v6920_v58, 4 }
 0xd19   :  { %3080 = vrot.lane.b32.xlu2 %v3079_v61, %s5323_s29 }
 0xd6f   :  { %v3011_v55 = vpop.permute.xlu0 %3010 }
 0xd70   :  { %4704 = vmatmul.msk.f32.vlgmr.msra.gmra.mxu2 %vm471_vm0, %v3011_v55 }
 0xd71   :  { %3446 = vmatpush.msra.mxu2 %v6713_v13 }
 0xd73   :  { %3447 = vmatpush.msra.mxu2 %v6720_v27  ;;  %v3081_v54 = vpop.permute.xlu2 %3080 }
 0xd74   :  { %4706 = vmatmul.msk.f32.vlgmr.msra.gmra.mxu3 %vm471_vm0, %v3081_v54 }
 0xd75   :  { %3448 = vmatpush.msra.mxu2 %v6729_v21  ;;  %3516 = vmatpush.msra.mxu3 %v6715_v8 }
 0xd77   :  { %3449 = vmatpush.msra.mxu2 %v6739_v63  ;;  %3517 = vmatpush.msra.mxu3 %v6724_v29 }
 0xd79   :  { %3518 = vmatpush.msra.mxu3 %v6731_v23 }
 0xd7b   :  { %3519 = vmatpush.msra.mxu3 %v6741_v32 }
 0xdf3   :  { %v3031_v25 = vpop.f32.mrf.mxu2 }
 0xdf4   :  { %v3035_v11 = vrot.slane %v3031_v25, 4 }
 0xdf6   :  { %v3037_v13 = vadd.f32 %v3035_v11, %v6788_v1 }
 0xdf7   :  { %v3101_v27 = vpop.f32.mrf.mxu3 }
 0xdf8   :  { %4853 = vtanh.f32 %v3037_v13  ;;  %v3105_v2 = vrot.slane %v3101_v27, 5  ;;  %v4705_v29 = vmul.f32 -1.442695, %v3037_v13 }
 0xdfa   :  { %v3107_v33 = vadd.f32 %v3105_v2, %v6790_v57 }
 0xdfc   :  { %4855 = vtanh.f32 %v3107_v33  ;;  %v4707_v24 = vmul.f32 -1.442695, %v3107_v33 }
 0xdfd   :  { %4857 = vpow2.f32 %v4705_v29 }
 0xdfe   :  { %v4854_v21 = vpop.eup %4853 }
 0xdff   :  { %3063 = vrot.lane.b32.xlu2 %v4854_v21, %s5322_s8 }
 0xe02   :  { %v4856_v8 = vpop.eup %4855 }
 0xe03   :  { %3133 = vrot.lane.b32.xlu1 %v4856_v8, %s5322_s8  ;;  %v4858_v23 = vpop.eup %4857 }
 0xe04   :  { %v3041_v63 = vadd.f32 1.0, %v4858_v23 }
 0xe06   :  { %4859 = vrcp.f32 %v3041_v63  ;;  %v3053_v49 = vand.u32 2147483648, %v3041_v63  ;;  %vm3047_vm13 = vweird.f32 %v3041_v63  ;;  %v3051_v17 = vand.u32 2147483647, %v3041_v63 }
 0xe07   :  { %4861 = vpow2.f32 %v4707_v24 }
 0xe08   :  { %v3054_v47 = vor.u32 1.1754944e-38, %v3053_v49  ;;  %vm3052_vm15 = vcmp.eq.f32.partialorder %v3051_v17, 8.507059e+37 }
 0xe0c   :  { %v4860_v32 = vpop.eup %4859 }
 0xe0d   :  { %v3043_v41 = vmul.f32 %v4860_v32, %v3041_v63  ;;  %vm3048_vm11 = vweird.f32 %v4860_v32  ;;  %v4862_v20 = vpop.eup %4861 }
 0xe0e   :  { %vm3049_vm14 = vmor %vm3047_vm13, %vm3048_vm11  ;;  %v3111_v59 = vadd.f32 1.0, %v4862_v20 }
 0xe0f   :  { %v3044_v16 = vsub.f32 1.0, %v3043_v41 }
 0xe10   :  { %4863 = vrcp.f32 %v3111_v59  ;;  %v3123_v6 = vand.u32 2147483648, %v3111_v59  ;;  %vm3117_vm9 = vweird.f32 %v3111_v59  ;;  %v3121_v60 = vand.u32 2147483647, %v3111_v59 }
 0xe11   :  { %v3045_v10 = vmul.f32 %v4860_v32, %v3044_v16 }
 0xe12   :  { %v3124_v39 = vor.u32 1.1754944e-38, %v3123_v6  ;;  %vm3122_vm12 = vcmp.eq.f32.partialorder %v3121_v60, 8.507059e+37 }
 0xe13   :  { %v3046_v46 = vadd.f32 %v4860_v32, %v3045_v10 }
 0xe15   :  { %v3050_v62 = vsel %vm3049_vm14, %v4860_v32, %v3046_v46 }
 0xe16   :  { %v3055_v7 = vsel %vm3052_vm15, %v3054_v47, %v3050_v62  ;;  %v4864_v52 = vpop.eup %4863 }
 0xe17   :  { %v3113_v9 = vmul.f32 %v4864_v52, %v3111_v59  ;;  %vm3118_vm4 = vweird.f32 %v4864_v52  ;;  %v3061_v51 = vmul.f32 %v3059_v56, %v3055_v7 }
 0xe18   :  { %vm3119_vm10 = vmor %vm3117_vm9, %vm3118_vm4 }
 0xe19   :  { %v3114_v53 = vsub.f32 1.0, %v3113_v9 }
 0xe1b   :  { %v3115_v26 = vmul.f32 %v4864_v52, %v3114_v53 }
 0xe1d   :  { %v3116_v45 = vadd.f32 %v4864_v52, %v3115_v26 }
 0xe1f   :  { %v3120_v31 = vsel %vm3119_vm10, %v4864_v52, %v3116_v45 }
 0xe20   :  { %v3125_v40 = vsel %vm3122_vm12, %v3124_v39, %v3120_v31 }
 0xe21   :  { %v3131_v3 = vmul.f32 %v3129_v42, %v3125_v40 }
 0xe59   :  { %v3064_v44 = vpop.permute.xlu2 %3063 }
 0xe5a   :  { %v3066_v35 = vmul.f32 %v3064_v44, %v3055_v7 }
 0xe5c   :  { %3068 = vrot.lane.b32.xlu1 %v3066_v35, %s5322_s8 }
 0xe75   :  { %v3134_v38 = vpop.permute.xlu1 %3133 }
 0xe76   :  { %v3136_v12 = vmul.f32 %v3134_v38, %v3125_v40 }
 0xe78   :  { %3138 = vrot.lane.b32.xlu0 %v3136_v12, %s5322_s8 }
 0xece   :  { %v3069_v28 = vpop.permute.xlu1 %3068 }
 0xecf   :  { %v6941_v22 = vadd.f32 %v3069_v28, %v3061_v51 }
 0xed1   :  { %4865 = vtanh.f32 %v6941_v22  ;;  %v3199_v12 = vrot.slane %v6941_v22, 7 }
 0xed7   :  { %v4866_v48 = vpop.eup %4865 }
 0xed8   :  { %3074 = vrot.lane.b32.xlu0 %v4866_v48, %s5322_s8 }
 0xeea   :  { %v3139_v5 = vpop.permute.xlu0 %3138 }
 0xeeb   :  { %v6946_v50 = vadd.f32 %v3139_v5, %v3131_v3 }
 0xeed   :  { %4867 = vtanh.f32 %v6946_v50  ;;  %v3269_v42 = vrot.slane %v6946_v50, 1 }
 0xef3   :  { %v4868_v14 = vpop.eup %4867 }
 0xef4   :  { %3144 = vrot.lane.b32.xlu2 %v4868_v14, %s5322_s8 }
 0xf4a   :  { %v3075_v18 = vpop.permute.xlu0 %3074 }
 0xf4b   :  { %v3077_v36 = vmul.f32 %v3075_v18, %v3055_v7 }
 0xf4d   :  { %v3149_v34 = vrot.slane %v3077_v36, 4  ;;  %v6952_v4 = vsel %vm986_vm8, %v6917_v15, %v3077_v36 }
 0xf4e   :  { %v3145_v43 = vpop.permute.xlu2 %3144 }
 0xf4f   :  { %3150 = vrot.lane.b32.xlu2 %v3149_v34, %s5323_s29  ;;  %v6955_v37 = vmul.f32 %v3145_v43, %v3125_v40 }
 0xf51   :  { %v3219_v61 = vrot.slane %v6955_v37, 3 }
 0xf53   :  { %3220 = vrot.lane.b32.xlu1 %v3219_v61, %s5323_s29 }
 0xfa9   :  { %v3151_v55 = vpop.permute.xlu2 %3150 }
 0xfaa   :  { %4708 = vmatmul.msk.f32.vlgmr.msra.gmra.mxu0 %vm471_vm0, %v3151_v55 }
 0xfc5   :  { %v3221_v54 = vpop.permute.xlu1 %3220 }
 0xfc6   :  { %4710 = vmatmul.msk.f32.vlgmr.msrb.gmra.mxu2 %vm471_vm0, %v3221_v54 }
0x1027   :  { %v3171_v25 = vpop.f32.mrf.mxu0 }
0x1028   :  { %v3175_v11 = vrot.slane %v3171_v25, 3 }
0x102a   :  { %v3177_v15 = vadd.f32 %v3175_v11, %v6788_v1 }
0x102c   :  { %4869 = vtanh.f32 %v3177_v15  ;;  %v4709_v8 = vmul.f32 -1.442695, %v3177_v15 }
0x1032   :  { %v4870_v13 = vpop.eup %4869 }
0x1033   :  { %3203 = vrot.lane.b32.xlu0 %v4870_v13, %s5322_s8 }
0x1049   :  { %v3241_v27 = vpop.f32.mrf.mxu2 }
0x104a   :  { %v3245_v2 = vrot.slane %v3241_v27, 6 }
0x104c   :  { %v3247_v33 = vadd.f32 %v3245_v2, %v6790_v57 }
0x104e   :  { %4871 = vtanh.f32 %v3247_v33  ;;  %v4711_v16 = vmul.f32 -1.442695, %v3247_v33 }
0x104f   :  { %4873 = vpow2.f32 %v4709_v8 }
0x1054   :  { %v4872_v21 = vpop.eup %4871 }
0x1055   :  { %3273 = vrot.lane.b32.xlu1 %v4872_v21, %s5322_s8  ;;  %v4874_v29 = vpop.eup %4873 }
0x1056   :  { %v3181_v23 = vadd.f32 1.0, %v4874_v29 }
0x1058   :  { %4875 = vrcp.f32 %v3181_v23  ;;  %v3193_v46 = vand.u32 2147483648, %v3181_v23  ;;  %vm3187_vm13 = vweird.f32 %v3181_v23  ;;  %v3191_v20 = vand.u32 2147483647, %v3181_v23 }
0x1059   :  { %4877 = vpow2.f32 %v4711_v16 }
0x105a   :  { %v3194_v17 = vor.u32 1.1754944e-38, %v3193_v46  ;;  %vm3192_vm15 = vcmp.eq.f32.partialorder %v3191_v20, 8.507059e+37 }
0x105e   :  { %v4876_v63 = vpop.eup %4875 }
0x105f   :  { %v3183_v32 = vmul.f32 %v4876_v63, %v3181_v23  ;;  %vm3188_vm11 = vweird.f32 %v4876_v63  ;;  %v4878_v59 = vpop.eup %4877 }
0x1060   :  { %vm3189_vm14 = vmor %vm3187_vm13, %vm3188_vm11  ;;  %v3251_v7 = vadd.f32 1.0, %v4878_v59 }
0x1061   :  { %v3184_v41 = vsub.f32 1.0, %v3183_v32 }
0x1062   :  { %4879 = vrcp.f32 %v3251_v7  ;;  %v3263_v45 = vand.u32 2147483648, %v3251_v7  ;;  %vm3257_vm9 = vweird.f32 %v3251_v7  ;;  %v3261_v6 = vand.u32 2147483647, %v3251_v7 }
0x1063   :  { %v3185_v24 = vmul.f32 %v4876_v63, %v3184_v41 }
0x1064   :  { %v3264_v31 = vor.u32 1.1754944e-38, %v3263_v45  ;;  %vm3262_vm12 = vcmp.eq.f32.partialorder %v3261_v6, 8.507059e+37 }
0x1065   :  { %v3186_v10 = vadd.f32 %v4876_v63, %v3185_v24 }
0x1067   :  { %v3190_v49 = vsel %vm3189_vm14, %v4876_v63, %v3186_v10 }
0x1068   :  { %v3195_v47 = vsel %vm3192_vm15, %v3194_v17, %v3190_v49  ;;  %v4880_v35 = vpop.eup %4879 }
0x1069   :  { %v3253_v52 = vmul.f32 %v4880_v35, %v3251_v7  ;;  %vm3258_vm4 = vweird.f32 %v4880_v35  ;;  %v3201_v56 = vmul.f32 %v3199_v12, %v3195_v47 }
0x106a   :  { %vm3259_vm10 = vmor %vm3257_vm9, %vm3258_vm4 }
0x106b   :  { %v3254_v9 = vsub.f32 1.0, %v3253_v52 }
0x106d   :  { %v3255_v53 = vmul.f32 %v4880_v35, %v3254_v9 }
0x106f   :  { %v3256_v26 = vadd.f32 %v4880_v35, %v3255_v53 }
0x1071   :  { %v3260_v60 = vsel %vm3259_vm10, %v4880_v35, %v3256_v26 }
0x1072   :  { %v3265_v38 = vsel %vm3262_vm12, %v3264_v31, %v3260_v60 }
0x1073   :  { %v3271_v3 = vmul.f32 %v3269_v42, %v3265_v38 }
0x10a5   :  { %v3204_v62 = vpop.permute.xlu0 %3203 }
0x10a6   :  { %v3206_v44 = vmul.f32 %v3204_v62, %v3195_v47 }
0x10a8   :  { %3208 = vrot.lane.b32.xlu2 %v3206_v44, %s5322_s8 }
0x10c7   :  { %v3274_v39 = vpop.permute.xlu1 %3273 }
0x10c8   :  { %v3276_v40 = vmul.f32 %v3274_v39, %v3265_v38 }
0x10ca   :  { %3278 = vrot.lane.b32.xlu0 %v3276_v40, %s5322_s8 }
0x1102   :  { %v3209_v51 = vpop.permute.xlu2 %3208 }
0x1103   :  { %v6968_v28 = vadd.f32 %v3209_v51, %v3201_v56 }
0x1105   :  { %4881 = vtanh.f32 %v6968_v28  ;;  %v3339_v12 = vrot.slane %v6968_v28, 7 }
0x110b   :  { %v4882_v48 = vpop.eup %4881 }
0x110c   :  { %3214 = vrot.lane.b32.xlu1 %v4882_v48, %s5322_s8 }
0x113c   :  { %v3279_v5 = vpop.permute.xlu0 %3278 }
0x113d   :  { %v6973_v14 = vadd.f32 %v3279_v5, %v3271_v3 }
0x113f   :  { %4883 = vtanh.f32 %v6973_v14  ;;  %v3409_v3 = vrot.slane %v6973_v14, 1 }
0x1145   :  { %v4884_v18 = vpop.eup %4883 }
0x1146   :  { %3284 = vrot.lane.b32.xlu2 %v4884_v18, %s5322_s8 }
0x117e   :  { %v3215_v22 = vpop.permute.xlu1 %3214 }
0x117f   :  { %v3217_v36 = vmul.f32 %v3215_v22, %v3195_v47 }
0x1181   :  { %v3289_v34 = vrot.slane %v3217_v36, 5  ;;  %v6979_v43 = vsel %vm988_vm3, %v6952_v4, %v3217_v36 }
0x1183   :  { %3290 = vrot.lane.b32.xlu0 %v3289_v34, %s5323_s29 }
0x11a0   :  { %v3285_v61 = vpop.permute.xlu2 %3284 }
0x11a1   :  { %v6982_v50 = vmul.f32 %v3285_v61, %v3265_v38 }
0x11a3   :  { %v3359_v55 = vrot.slane %v6982_v50, 2 }
0x11a5   :  { %3360 = vrot.lane.b32.xlu1 %v3359_v55, %s5323_s29 }
0x11f5   :  { %v3291_v54 = vpop.permute.xlu0 %3290 }
0x11f6   :  { %4712 = vmatmul.msk.f32.vlgmr.msrb.gmra.mxu3 %vm471_vm0, %v3291_v54 }
0x1217   :  { %v3361_v25 = vpop.permute.xlu1 %3360 }
0x1218   :  { %4714 = vmatmul.msk.f32.vlgmr.msrb.gmra.mxu0 %vm471_vm0, %v3361_v25 }
0x1279   :  { %v3311_v11 = vpop.f32.mrf.mxu3 }
0x127a   :  { %v3315_v15 = vrot.slane %v3311_v11, 2 }
0x127c   :  { %v3317_v4 = vadd.f32 %v3315_v15, %v6788_v1 }
0x127e   :  { %4885 = vtanh.f32 %v3317_v4  ;;  %v4713_v8 = vmul.f32 -1.442695, %v3317_v4 }
0x1284   :  { %v4886_v13 = vpop.eup %4885 }
0x1285   :  { %3343 = vrot.lane.b32.xlu0 %v4886_v13, %s5322_s8 }
0x1295   :  { %v3381_v27 = vpop.f32.mrf.mxu0 }
0x1296   :  { %v3385_v2 = vrot.slane %v3381_v27, 7 }
0x1298   :  { %v3387_v33 = vadd.f32 %v3385_v2, %v6790_v57 }
0x129a   :  { %4887 = vtanh.f32 %v3387_v33  ;;  %v4715_v29 = vmul.f32 -1.442695, %v3387_v33 }
0x129b   :  { %4889 = vpow2.f32 %v4713_v8 }
0x129c   :  { %4891 = vpow2.f32 %v4715_v29 }
0x12a0   :  { %v4888_v21 = vpop.eup %4887 }
0x12a1   :  { %3413 = vrot.lane.b32.xlu2 %v4888_v21, %s5322_s8  ;;  %v4890_v23 = vpop.eup %4889 }
0x12a2   :  { %v3321_v63 = vadd.f32 1.0, %v4890_v23  ;;  %v4892_v32 = vpop.eup %4891 }
0x12a3   :  { %v3391_v41 = vadd.f32 1.0, %v4892_v32 }
0x12a4   :  { %4893 = vrcp.f32 %v3321_v63  ;;  %v3333_v62 = vand.u32 2147483648, %v3321_v63  ;;  %vm3327_vm13 = vweird.f32 %v3321_v63  ;;  %v3331_v44 = vand.u32 2147483647, %v3321_v63 }
0x12a5   :  { %4895 = vrcp.f32 %v3391_v41  ;;  %v3403_v9 = vand.u32 2147483648, %v3391_v41  ;;  %vm3397_vm9 = vweird.f32 %v3391_v41  ;;  %v3401_v45 = vand.u32 2147483647, %v3391_v41 }
0x12a6   :  { %v3334_v35 = vor.u32 1.1754944e-38, %v3333_v62  ;;  %vm3332_vm4 = vcmp.eq.f32.partialorder %v3331_v44, 8.507059e+37 }
0x12a7   :  { %v3404_v31 = vor.u32 1.1754944e-38, %v3403_v9  ;;  %vm3402_vm12 = vcmp.eq.f32.partialorder %v3401_v45, 8.507059e+37 }
0x12aa   :  { %v4894_v24 = vpop.eup %4893 }
0x12ab   :  { %v3323_v16 = vmul.f32 %v4894_v24, %v3321_v63  ;;  %v4896_v10 = vpop.eup %4895  ;;  %vm3328_vm11 = vweird.f32 %v4894_v24 }
0x12ac   :  { %v3393_v20 = vmul.f32 %v4896_v10, %v3391_v41  ;;  %vm3329_vm14 = vmor %vm3327_vm13, %vm3328_vm11  ;;  %vm3398_vm15 = vweird.f32 %v4896_v10 }
0x12ad   :  { %v3324_v46 = vsub.f32 1.0, %v3323_v16  ;;  %vm3399_vm10 = vmor %vm3397_vm9, %vm3398_vm15 }
0x12ae   :  { %v3394_v17 = vsub.f32 1.0, %v3393_v20 }
0x12af   :  { %v3325_v49 = vmul.f32 %v4894_v24, %v3324_v46 }
0x12b0   :  { %v3395_v47 = vmul.f32 %v4896_v10, %v3394_v17 }
0x12b1   :  { %v3326_v59 = vadd.f32 %v4894_v24, %v3325_v49 }
0x12b2   :  { %v3396_v52 = vadd.f32 %v4896_v10, %v3395_v47 }
0x12b3   :  { %v3330_v7 = vsel %vm3329_vm14, %v4894_v24, %v3326_v59 }
0x12b4   :  { %v3335_v26 = vsel %vm3332_vm4, %v3334_v35, %v3330_v7  ;;  %v3400_v60 = vsel %vm3399_vm10, %v4896_v10, %v3396_v52 }
0x12b5   :  { %v3405_v38 = vsel %vm3402_vm12, %v3404_v31, %v3400_v60  ;;  %v3341_v56 = vmul.f32 %v3339_v12, %v3335_v26 }
0x12b6   :  { %v3411_v5 = vmul.f32 %v3409_v3, %v3405_v38 }
0x12f7   :  { %v3344_v53 = vpop.permute.xlu0 %3343 }
0x12f8   :  { %v3346_v6 = vmul.f32 %v3344_v53, %v3335_v26 }
0x12fa   :  { %3348 = vrot.lane.b32.xlu2 %v3346_v6, %s5322_s8 }
0x12fb   :  { %v3414_v39 = vpop.permute.xlu2 %3413 }
0x12fc   :  { %v3416_v40 = vmul.f32 %v3414_v39, %v3405_v38 }
0x12fe   :  { %3418 = vrot.lane.b32.xlu1 %v3416_v40, %s5322_s8 }
0x1354   :  { %v3349_v51 = vpop.permute.xlu2 %3348 }
0x1355   :  { %v6995_v48 = vadd.f32 %v3349_v51, %v3341_v56 }
0x1357   :  { %4897 = vtanh.f32 %v6995_v48 }
0x135d   :  { %v4898_v42 = vpop.eup %4897 }
0x135e   :  { %3354 = vrot.lane.b32.xlu1 %v4898_v42, %s5322_s8 }
0x1370   :  { %v3419_v18 = vpop.permute.xlu1 %3418 }
0x1371   :  { %v7000_v22 = vadd.f32 %v3419_v18, %v3411_v5 }
0x1373   :  { %4899 = vtanh.f32 %v7000_v22  ;;  %v3546_v42 = vrot.slane %v7000_v22, 1 }
0x1379   :  { %v4900_v36 = vpop.eup %4899 }
0x137a   :  { %3424 = vrot.lane.b32.xlu0 %v4900_v36, %s5322_s8 }
0x13d0   :  { %v3355_v28 = vpop.permute.xlu1 %3354 }
0x13d1   :  { %v3357_v34 = vmul.f32 %v3355_v28, %v3335_v26 }
0x13d3   :  { %v3429_v61 = vrot.slane %v3357_v34, 6  ;;  %v7006_v55 = vsel %vm737_vm2, %v6979_v43, %v3357_v34 }
0x13d5   :  { %3430 = vrot.lane.b32.xlu0 %v3429_v61, %s5323_s29 }
0x13ec   :  { %v3425_v54 = vpop.permute.xlu0 %3424 }
0x13ed   :  { %v7009_v14 = vmul.f32 %v3425_v54, %v3405_v38  ;;  %v3479_v38 = vrot.slane %v6995_v48, 7 }
0x13ef   :  { %v3499_v25 = vrot.slane %v7009_v14, 1 }
0x13f1   :  { %3500 = vrot.lane.b32.xlu2 %v3499_v25, %s5323_s29 }
0x1447   :  { %v3431_v11 = vpop.permute.xlu0 %3430 }
0x1448   :  { %4716 = vmatmul.msk.f32.vlgmr.msra.gmra.mxu2 %vm471_vm0, %v3431_v11 }
0x144b   :  { %v3501_v15 = vpop.permute.xlu2 %3500 }
0x144c   :  { %4718 = vmatmul.msk.f32.vlgmr.msra.gmra.mxu3 %vm471_vm0, %v3501_v15 }
0x14cb   :  { %v3451_v4 = vpop.f32.mrf.mxu2 }
0x14cc   :  { %v3455_v13 = vrot.slane %v3451_v4, 1 }
0x14ce   :  { %v3457_v43 = vadd.f32 %v3455_v13, %v6788_v1 }
0x14cf   :  { %v3521_v27 = vpop.f32.mrf.mxu3 }
0x14d0   :  { %4901 = vtanh.f32 %v3457_v43  ;;  %v3524_v2 = vadd.f32 %v3521_v27, %v6790_v57  ;;  %v4717_v8 = vmul.f32 -1.442695, %v3457_v43  ;;  %v3623_v43 = vld [vmem:[%s7247_s20 + $0x20] sm:$0xff]  ;;  %v3591_v27 = vld [vmem:[%s7244_s17 + $0x18] sm:$0xff] }
0x14d2   :  { %4903 = vtanh.f32 %v3524_v2  ;;  %v4719_v41 = vmul.f32 -1.442695, %v3524_v2  ;;  %v3622_v2 = vld [vmem:[%s7247_s20 + $0x18] sm:$0xff] }
0x14d3   :  { %4905 = vpow2.f32 %v4717_v8  ;;  %v3589_v8 = vld [vmem:[%s7244_s17 + $0x8] sm:$0xff] }
0x14d6   :  { %v4902_v33 = vpop.eup %4901 }
0x14d7   :  { %3483 = vrot.lane.b32.xlu2 %v4902_v33, %s5322_s8  ;;  %v3590_v33 = vld [vmem:[%s7244_s17 + $0x10] sm:$0xff] }
0x14d8   :  { %v4904_v21 = vpop.eup %4903 }
0x14d9   :  { %3550 = vrot.lane.b32.xlu1 %v4904_v21, %s5322_s8  ;;  %v4906_v29 = vpop.eup %4905  ;;  %v3621_v21 = vld [vmem:[%s7247_s20 + $0x10] sm:$0xff] }
0x14da   :  { %v3461_v23 = vadd.f32 1.0, %v4906_v29  ;;  %v3620_v29 = vld [vmem:[%s7247_s20 + $0x8] sm:$0xff] }
0x14dc   :  { %4907 = vrcp.f32 %v3461_v23  ;;  %v3473_v10 = vand.u32 2147483648, %v3461_v23  ;;  %vm3467_vm13 = vweird.f32 %v3461_v23  ;;  %v3471_v20 = vand.u32 2147483647, %v3461_v23 }
0x14dd   :  { %4909 = vpow2.f32 %v4719_v41  ;;  %v3660_v41 = vstv %s4723_s30 }
0x14de   :  { %v3474_v17 = vor.u32 1.1754944e-38, %v3473_v10  ;;  %vm3472_vm15 = vcmp.eq.f32.partialorder %v3471_v20, 8.507059e+37 }
0x14e2   :  { %v4908_v63 = vpop.eup %4907 }
0x14e3   :  { %v3463_v32 = vmul.f32 %v4908_v63, %v3461_v23  ;;  %v4910_v16 = vpop.eup %4909  ;;  %vm3468_vm11 = vweird.f32 %v4908_v63  ;;  %v3588_v23 = vld [vmem:[%s7244_s17] sm:$0xff] }
0x14e4   :  { %v3528_v46 = vadd.f32 1.0, %v4910_v16  ;;  %vm3469_vm14 = vmor %vm3467_vm13, %vm3468_vm11  ;;  %v5325_v16 = vmov 0.0   ;;  %vm3677_vm13 = vcmask 64512  }
0x14e5   :  { %v3464_v1 = vsub.f32 1.0, %v3463_v32  ;;  %v3655_v32 = vstv %s3654_s1 }
0x14e6   :  { %4911 = vrcp.f32 %v3528_v46  ;;  %v3540_v53 = vand.u32 2147483648, %v3528_v46  ;;  %vm3534_vm9 = vweird.f32 %v3528_v46  ;;  %v3538_v26 = vand.u32 2147483647, %v3528_v46 }
0x14e7   :  { %v3465_v24 = vmul.f32 %v4908_v63, %v3464_v1  ;;  %v7333_v1 = vld [vmem:[#allocation31_spill] sm:$0xff] }
0x14e8   :  { %v3541_v6 = vor.u32 1.1754944e-38, %v3540_v53  ;;  %vm3539_vm12 = vcmp.eq.f32.partialorder %v3538_v26, 8.507059e+37  ;;  %v3709_v53 = vld [vmem:[#allocation20 + $0x20] sm:$0xff]  ;;  %v3708_v26 = vld [vmem:[#allocation20 + $0x18] sm:$0xff] }
0x14e9   :  { %v3466_v57 = vadd.f32 %v4908_v63, %v3465_v24  ;;  %v3665_v24 = vstv %s4725_s23 }
0x14eb   :  { %v3470_v49 = vsel %vm3469_vm14, %v4908_v63, %v3466_v57  ;;  %v3619_v63 = vld [vmem:[%s7247_s20] sm:$0xff]  ;;  %vm7334_vm14 = vcmask 523264  }
0x14ec   :  { %v3475_v62 = vsel %vm3472_vm15, %v3474_v17, %v3470_v49  ;;  %v4912_v44 = vpop.eup %4911  ;;  %vm7335_vm15 = vmmov %vm7334_vm14 }
0x14ed   :  { %v3530_v7 = vmul.f32 %v4912_v44, %v3528_v46  ;;  %vm3535_vm4 = vweird.f32 %v4912_v44  ;;  %v3481_v40 = vmul.f32 %v3479_v38, %v3475_v62  ;;  %v3670_v46 = vstv %s4727_s14  ;;  %v4785_v38 = vld [vmem:[%s7254_s27] ss:$0 sm:$0xff] }
0x14ee   :  { %vm3536_vm10 = vmor %vm3534_vm9, %vm3535_vm4  ;;  %vm3671_vm11 = vcmp.eq.s32.totalorder %v7333_v1, %v3670_v46 }
0x14ef   :  { %v3531_v35 = vsub.f32 1.0, %v3530_v7  ;;  %v4728_v17 = vsel %vm3671_vm11, 1.0, %v5325_v16  ;;  %vm7336_vm4 = vmmov %vm7334_vm14 }
0x14f0   :  { %vm7337_vm9 = vmmov %vm7336_vm4 }
0x14f1   :  { %v3532_v52 = vmul.f32 %v4912_v44, %v3531_v35  ;;  %v3712_v35 = vld [vmem:[#allocation20 + $0x38] sm:$0xff] }
0x14f3   :  { %v3533_v9 = vadd.f32 %v4912_v44, %v3532_v52  ;;  %v3711_v52 = vld [vmem:[#allocation20 + $0x30] sm:$0xff] }
0x14f5   :  { %v3537_v45 = vsel %vm3536_vm10, %v4912_v44, %v3533_v9  ;;  %v3710_v9 = vld [vmem:[#allocation20 + $0x28] sm:$0xff] }
0x14f6   :  { %v3542_v31 = vsel %vm3539_vm12, %v3541_v6, %v3537_v45  ;;  %v3707_v45 = vld [vmem:[#allocation20 + $0x10] sm:$0xff]  ;;  %v3706_v6 = vld [vmem:[#allocation20 + $0x8] sm:$0xff] }
0x14f7   :  { %v3548_v3 = vmul.f32 %v3546_v42, %v3542_v31 }
0x1531   :  { %v3484_v59 = vpop.permute.xlu2 %3483 }
0x1532   :  { %v3486_v47 = vmul.f32 %v3484_v59, %v3475_v62 }
0x1534   :  { %3488 = vrot.lane.b32.xlu1 %v3486_v47, %s5322_s8 }
0x154b   :  { %v3551_v60 = vpop.permute.xlu1 %3550 }
0x154c   :  { %v3553_v39 = vmul.f32 %v3551_v60, %v3542_v31  ;;  %v3705_v60 = vld [vmem:[#allocation20] sm:$0xff] }
0x154e   :  { %3555 = vrot.lane.b32.xlu0 %v3553_v39, %s5322_s8  ;;  %v3742_v39 = vld [vmem:[#allocation21 + $0x10] sm:$0xff] }
0x15a6   :  { %v3489_v12 = vpop.permute.xlu1 %3488 }
0x15a7   :  { %v3491_v56 = vadd.f32 %v3489_v12, %v3481_v40  ;;  %v3741_v40 = vld [vmem:[#allocation21 + $0x8] sm:$0xff]  ;;  %v3740_v12 = vld [vmem:[#allocation21] sm:$0xff] }
0x15a9   :  { %4913 = vtanh.f32 %v3491_v56  ;;  %v3744_v56 = vld [vmem:[%s7253_s26] sm:$0x1] }
0x15af   :  { %v4914_v51 = vpop.eup %4913 }
0x15b0   :  { %3494 = vrot.lane.b32.xlu0 %v4914_v51, %s5322_s8 }
0x15c0   :  { %v3556_v5 = vpop.permute.xlu0 %3555 }
0x15c1   :  { %v3558_v18 = vadd.f32 %v3556_v5, %v3548_v3 }
0x15c3   :  { %4915 = vtanh.f32 %v3558_v18 }
0x15c9   :  { %v4916_v36 = vpop.eup %4915 }
0x15ca   :  { %3561 = vrot.lane.b32.xlu2 %v4916_v36, %s5322_s8 }
0x1622   :  { %v3495_v28 = vpop.permute.xlu0 %3494 }
0x1623   :  { %v3497_v34 = vmul.f32 %v3495_v28, %v3475_v62 }
0x1624   :  { %v3562_v61 = vpop.permute.xlu2 %3561 }
0x1625   :  { %v3571_v48 = vsel %vm727_vm1, %v7006_v55, %v3497_v34  ;;  %v3564_v54 = vmul.f32 %v3562_v61, %v3542_v31  ;;  %v3743_v31 = vld [vmem:[#allocation21 + $0x18] sm:$0xff] }
0x1626   :  { %3580 = vrot.lane.b32.xlu1 %v3571_v48, %s5323_s29 }
0x1627   :  { %v3572_v25 = vsel %vm980_vm5, %v3564_v54, %v7009_v14  ;;  %v3592_v14 = vld [vmem:[%s7244_s17 + $0x20] sm:$0xff] }
0x1628   :  { %v3573_v22 = vsel %vm982_vm6, %v3572_v25, %v6982_v50  ;;  %v3595_v50 = vld [vmem:[%s7244_s17 + $0x38] sm:$0xff]  ;;  %v4786_v25 = vld [vmem:[%s7252_s25] ss:$0 sm:$0xff] }
0x1629   :  { %v3574_v11 = vsel %vm984_vm7, %v3573_v22, %v6955_v37  ;;  %v3626_v37 = vld [vmem:[%s7247_s20 + $0x38] sm:$0xff]  ;;  %3607 = vmatpush.msra.mxu0 %v3595_v50 }
0x162a   :  { %v3575_v15 = vsel %vm986_vm8, %v3574_v11, %v6920_v58  ;;  %3635 = vmatpush.msrb.mxu2 %v3626_v37  ;;  %v3624_v58 = vld [vmem:[%s7247_s20 + $0x28] sm:$0xff] }
0x162b   :  { %v3576_v4 = vsel %vm988_vm3, %v3575_v15, %v6885_v30  ;;  %v3594_v30 = vld [vmem:[%s7244_s17 + $0x30] sm:$0xff]  ;;  %vm3666_vm3 = vcmp.eq.s32.totalorder %v7333_v1, %v3665_v24 }
0x162c   :  { %v3577_v55 = vsel %vm737_vm2, %v3576_v4, %v6848_v19  ;;  %v3593_v19 = vld [vmem:[%s7244_s17 + $0x28] sm:$0xff]  ;;  %3608 = vmatpush.msra.mxu0 %v3594_v30  ;;  %vm3661_vm2 = vcmp.eq.s32.totalorder %v7333_v1, %v3660_v41  ;;  %v4726_v20 = vsel %vm3666_vm3, 1.0, %v5325_v16 }
0x162d   :  { %v3578_v13 = vsel %vm727_vm1, %v3577_v55, %v6814_v0  ;;  %v3625_v0 = vld [vmem:[%s7247_s20 + $0x30] sm:$0xff]  ;;  %vm3656_vm1 = vcmp.eq.s32.totalorder %v7333_v1, %v3655_v32  ;;  %v4724_v10 = vsel %vm3661_vm2, 1.0, %v5325_v16 }
0x162e   :  { %3584 = vrot.lane.b32.xlu2 %v3578_v13, %s5324_s16  ;;  %3636 = vmatpush.msrb.mxu2 %v3625_v0  ;;  %v4722_v57 = vsel %vm3656_vm1, 1.0, %v5325_v16 }
0x162f   :  { %3609 = vmatpush.msra.mxu0 %v3593_v19  ;;  %v3674_v49 = vsel %vm980_vm5, %v4722_v57, %v4724_v10  ;;  %3792 = vrot.lane.b32.xlu1 %v4785_v38, %s5322_s8 }
0x1630   :  { %3637 = vmatpush.msrb.mxu2 %v3624_v58  ;;  %v3675_v59 = vsel %vm982_vm6, %v3674_v49, %v4726_v20 }
0x1631   :  { %3610 = vmatpush.msra.mxu0 %v3592_v14  ;;  %v3676_v7 = vsel %vm984_vm7, %v3675_v59, %v4728_v17 }
0x1632   :  { %3638 = vmatpush.msrb.mxu2 %v3623_v43 }
0x1633   :  { %3611 = vmatpush.msra.mxu0 %v3591_v27 }
0x1634   :  { %3639 = vmatpush.msrb.mxu2 %v3622_v2 }
0x1635   :  { %3612 = vmatpush.msra.mxu0 %v3590_v33 }
0x1636   :  { %3640 = vmatpush.msrb.mxu2 %v3621_v21 }
0x1637   :  { %3613 = vmatpush.msra.mxu0 %v3589_v8 }
0x1638   :  { %3641 = vmatpush.msrb.mxu2 %v3620_v29 }
0x1639   :  { %3614 = vmatpush.msra.mxu0 %v3588_v23 }
0x163a   :  { %3642 = vmatpush.msrb.mxu2 %v3619_v63 }
0x163b   :  { %3761 = vmatpush.msrb.mxu0 %v3743_v31 }
0x163c   :  { %3829 = vmatpush.msra.mxu2 %v3743_v31 }
0x163d   :  { %3762 = vmatpush.msrb.mxu0 %v3742_v39 }
0x163e   :  { %3830 = vmatpush.msra.mxu2 %v3742_v39 }
0x163f   :  { %3763 = vmatpush.msrb.mxu0 %v3741_v40 }
0x1640   :  { %3831 = vmatpush.msra.mxu2 %v3741_v40 }
0x1641   :  { %3764 = vmatpush.msrb.mxu0 %v3740_v12 }
0x1642   :  { %3832 = vmatpush.msra.mxu2 %v3740_v12 }
0x1688   :  { %v3585_v62 = vpop.permute.xlu2 %3584 }
0x1698   :  { %v3581_v47 = vpop.permute.xlu1 %3580 }
0x1699   :  { %v3587_v44 = vsel %vm471_vm0, %v3581_v47, %v3585_v62 }
0x169a   :  { %4720 = vmatmul.msk.f32.vlgmr.msra.gmra.mxu0 %vm7334_vm14, %v3587_v44  ;;  %4721 = vmatmul.msk.f32.vlgmr.msrb.gmra.mxu2 %vm7335_vm15, %v3587_v44  ;;  %v3647_v51 = vsel %vm7336_vm4, %v3587_v44, -inf }
0x169b   :  { %3696 = vmatpush.msrb.mxu3 %v3587_v44  ;;  %v3648_v42 = vrot.slane %v3647_v51, 4  ;;  %3969 = vmatpush.msrb.mxu2 %v3743_v31 }
0x169c   :  { %4729 = vmatmul.msk.f32.vlgmr.msrb.gmra.mxu3 %vm3677_vm13, %v3676_v7  ;;  %3899 = vmatpush.msra.mxu0 %v3743_v31 }
0x169d   :  { %3728 = vmatpush.msra.mxu3 %v3712_v35  ;;  %3970 = vmatpush.msrb.mxu2 %v3742_v39  ;;  %v3649_v3 = vmax.f32 %v3647_v51, %v3648_v42 }
0x169e   :  { %3900 = vmatpush.msra.mxu0 %v3742_v39 }
0x169f   :  { %3729 = vmatpush.msra.mxu3 %v3711_v52  ;;  %3971 = vmatpush.msrb.mxu2 %v3741_v40  ;;  %v3650_v5 = vrot.slane %v3649_v3, 2 }
0x16a0   :  { %3901 = vmatpush.msra.mxu0 %v3741_v40 }
0x16a1   :  { %3730 = vmatpush.msra.mxu3 %v3710_v9  ;;  %3972 = vmatpush.msrb.mxu2 %v3740_v12  ;;  %v3651_v18 = vmax.f32 %v3649_v3, %v3650_v5  ;;  %v3793_v23 = vpop.permute.xlu1 %3792 }
0x16a2   :  { %4731 = vmatmul.msk.f32.vlgmr.msrb.gmra.mxu0 %vm471_vm0, %v3744_v56 }
0x16a3   :  { %3731 = vmatpush.msra.mxu3 %v3709_v53  ;;  %3902 = vmatpush.msra.mxu0 %v3740_v12  ;;  %v3652_v36 = vrot.slane %v3651_v18, 1 }
0x16a5   :  { %3732 = vmatpush.msra.mxu3 %v3708_v26  ;;  %v3653_v34 = vmax.f32 %v3651_v18, %v3652_v36 }
0x16a7   :  { %3733 = vmatpush.msra.mxu3 %v3707_v45 }
0x16a9   :  { %3734 = vmatpush.msra.mxu3 %v3706_v6 }
0x16ab   :  { %3735 = vmatpush.msra.mxu3 %v3705_v60 }
0x16ad   :  { %4039 = vmatpush.msrb.mxu3 %v3743_v31 }
0x16af   :  { %4040 = vmatpush.msrb.mxu3 %v3742_v39 }
0x16b1   :  { %4041 = vmatpush.msrb.mxu3 %v3741_v40 }
0x16b3   :  { %4042 = vmatpush.msrb.mxu3 %v3740_v12 }
0x1717   :  { %v7112_v54 = vpop.f32.mrf.mxu0 }
0x171d   :  { %v7127_v46 = vpop.f32.mrf.mxu2 }
0x171f   :  { %v3698_v28 = vpop.f32.mrf.mxu3  ;;  %v3766_v11 = vpop.f32.mrf.mxu0 }
0x1720   :  { %v3702_v61 = vrot.slane %v3698_v28, 7 }
0x1722   :  { %v3704_v48 = vsel %vm980_vm5, %v3653_v34, %v3702_v61 }
0x1723   :  { %4730 = vmatmul.msk.f32.vlgmr.msra.gmra.mxu3 %vm7337_vm9, %v3704_v48 }
0x17a6   :  { %v3737_v22 = vpop.f32.mrf.mxu3 }
0x17a7   :  { %v7117_v15 = vadd.f32 %v4786_v25, %v3737_v22 }
0x17a9   :  { %v3769_v4 = vadd.f32 %v3766_v11, %v7117_v15 }
0x17ab   :  { %4917 = vtanh.f32 %v3769_v4  ;;  %v4732_v13 = vmul.f32 -1.442695, %v3769_v4 }
0x17ad   :  { %4919 = vpow2.f32 %v4732_v13 }
0x17b1   :  { %v4918_v55 = vpop.eup %4917 }
0x17b2   :  { %3797 = vrot.lane.b32.xlu0 %v4918_v55, %s5322_s8 }
0x17b3   :  { %v4920_v50 = vpop.eup %4919 }
0x17b4   :  { %v3773_v37 = vadd.f32 1.0, %v4920_v50 }
0x17b6   :  { %4921 = vrcp.f32 %v3773_v37  ;;  %v3785_v43 = vand.u32 2147483648, %v3773_v37  ;;  %vm3779_vm12 = vweird.f32 %v3773_v37  ;;  %v3783_v27 = vand.u32 2147483647, %v3773_v37 }
0x17b8   :  { %v3786_v33 = vor.u32 1.1754944e-38, %v3785_v43  ;;  %vm3784_vm2 = vcmp.eq.f32.partialorder %v3783_v27, 8.507059e+37 }
0x17bc   :  { %v4922_v30 = vpop.eup %4921 }
0x17bd   :  { %v3775_v0 = vmul.f32 %v4922_v30, %v3773_v37  ;;  %vm3780_vm10 = vweird.f32 %v4922_v30 }
0x17be   :  { %vm3781_vm1 = vmor %vm3779_vm12, %vm3780_vm10 }
0x17bf   :  { %v3776_v19 = vsub.f32 1.0, %v3775_v0 }
0x17c1   :  { %v3777_v58 = vmul.f32 %v4922_v30, %v3776_v19 }
0x17c3   :  { %v3778_v14 = vadd.f32 %v4922_v30, %v3777_v58 }
0x17c5   :  { %v3782_v2 = vsel %vm3781_vm1, %v4922_v30, %v3778_v14 }
0x17c6   :  { %v3787_v21 = vsel %vm3784_vm2, %v3786_v33, %v3782_v2 }
0x17c7   :  { %v3795_v63 = vmul.f32 %v3793_v23, %v3787_v21 }
0x1824   :  { %v3798_v8 = vpop.permute.xlu0 %3797 }
0x1825   :  { %v3800_v29 = vmul.f32 %v3798_v8, %v3787_v21 }
0x1827   :  { %3802 = vrot.lane.b32.xlu2 %v3800_v29, %s5322_s8 }
0x1881   :  { %v3803_v32 = vpop.permute.xlu2 %3802 }
0x1882   :  { %v3805_v41 = vadd.f32 %v3803_v32, %v3795_v63 }
0x1884   :  { %4923 = vtanh.f32 %v3805_v41  ;;  %v3862_v40 = vrot.slane %v3805_v41, 7 }
0x188a   :  { %v4924_v24 = vpop.eup %4923 }
0x188b   :  { %3808 = vrot.lane.b32.xlu0 %v4924_v24, %s5322_s8 }
0x18fd   :  { %v3809_v16 = vpop.permute.xlu0 %3808 }
0x18fe   :  { %v7123_v57 = vmul.f32 %v3809_v16, %v3787_v21 }
0x1900   :  { %3813 = vrot.lane.b32.xlu1 %v7123_v57, %s5323_s29 }
0x1972   :  { %v3814_v10 = vpop.permute.xlu1 %3813 }
0x1973   :  { %4733 = vmatmul.msk.f32.vlgmr.msra.gmra.mxu2 %vm471_vm0, %v3814_v10 }
0x1974   :  { %4318 = vmatpush.msra.mxu2 %v7127_v46 }
0x19f6   :  { %v3834_v20 = vpop.f32.mrf.mxu2 }
0x19f7   :  { %v3838_v49 = vrot.slane %v3834_v20, 7 }
0x19f9   :  { %v3840_v17 = vadd.f32 %v3838_v49, %v7117_v15 }
0x19fb   :  { %4925 = vtanh.f32 %v3840_v17  ;;  %v4734_v62 = vmul.f32 -1.442695, %v3840_v17 }
0x19fd   :  { %4927 = vpow2.f32 %v4734_v62 }
0x1a01   :  { %v4926_v59 = vpop.eup %4925 }
0x1a02   :  { %3866 = vrot.lane.b32.xlu2 %v4926_v59, %s5322_s8 }
0x1a03   :  { %v4928_v47 = vpop.eup %4927 }
0x1a04   :  { %v3844_v44 = vadd.f32 1.0, %v4928_v47 }
0x1a06   :  { %4929 = vrcp.f32 %v3844_v44  ;;  %v3856_v26 = vand.u32 2147483648, %v3844_v44  ;;  %vm3850_vm11 = vweird.f32 %v3844_v44  ;;  %v3854_v45 = vand.u32 2147483647, %v3844_v44 }
0x1a08   :  { %v3857_v60 = vor.u32 1.1754944e-38, %v3856_v26  ;;  %vm3855_vm15 = vcmp.eq.f32.partialorder %v3854_v45, 8.507059e+37 }
0x1a0c   :  { %v4930_v7 = vpop.eup %4929 }
0x1a0d   :  { %v3846_v35 = vmul.f32 %v4930_v7, %v3844_v44  ;;  %vm3851_vm3 = vweird.f32 %v4930_v7 }
0x1a0e   :  { %vm3852_vm14 = vmor %vm3850_vm11, %vm3851_vm3 }
0x1a0f   :  { %v3847_v52 = vsub.f32 1.0, %v3846_v35 }
0x1a11   :  { %v3848_v9 = vmul.f32 %v4930_v7, %v3847_v52 }
0x1a13   :  { %v3849_v53 = vadd.f32 %v4930_v7, %v3848_v9 }
0x1a15   :  { %v3853_v6 = vsel %vm3852_vm14, %v4930_v7, %v3849_v53 }
0x1a16   :  { %v3858_v39 = vsel %vm3855_vm15, %v3857_v60, %v3853_v6  ;;  %vm4185_vm15 = vcmask 1042434  }
0x1a17   :  { %v3864_v12 = vmul.f32 %v3862_v40, %v3858_v39 }
0x1a5c   :  { %v3867_v31 = vpop.permute.xlu2 %3866 }
0x1a5d   :  { %v3869_v38 = vmul.f32 %v3867_v31, %v3858_v39 }
0x1a5f   :  { %3871 = vrot.lane.b32.xlu0 %v3869_v38, %s5322_s8 }
0x1ad1   :  { %v3872_v56 = vpop.permute.xlu0 %3871 }
0x1ad2   :  { %v3874_v51 = vadd.f32 %v3872_v56, %v3864_v12 }
0x1ad4   :  { %4931 = vtanh.f32 %v3874_v51  ;;  %v3932_v2 = vrot.slane %v3874_v51, 7 }
0x1ada   :  { %v4932_v42 = vpop.eup %4931 }
0x1adb   :  { %3877 = vrot.lane.b32.xlu1 %v4932_v42, %s5322_s8 }
0x1b4d   :  { %v3878_v3 = vpop.permute.xlu1 %3877 }
0x1b4e   :  { %v3880_v5 = vmul.f32 %v3878_v3, %v3858_v39 }
0x1b50   :  { %v3882_v18 = vrot.slane %v3880_v5, 1  ;;  %v4091_v32 = vsel %vm980_vm5, %v7123_v57, %v3880_v5 }
0x1b52   :  { %3883 = vrot.lane.b32.xlu2 %v3882_v18, %s5323_s29 }
0x1bac   :  { %v3884_v36 = vpop.permute.xlu2 %3883 }
0x1bad   :  { %4735 = vmatmul.msk.f32.vlgmr.msra.gmra.mxu0 %vm471_vm0, %v3884_v36 }
0x1c2a   :  { %v3904_v28 = vpop.f32.mrf.mxu0 }
0x1c2b   :  { %v3908_v34 = vrot.slane %v3904_v28, 6 }
0x1c2d   :  { %v3910_v61 = vadd.f32 %v3908_v34, %v7117_v15 }
0x1c2f   :  { %4933 = vtanh.f32 %v3910_v61  ;;  %v4736_v25 = vmul.f32 -1.442695, %v3910_v61 }
0x1c31   :  { %4935 = vpow2.f32 %v4736_v25 }
0x1c35   :  { %v4934_v48 = vpop.eup %4933 }
0x1c36   :  { %3936 = vrot.lane.b32.xlu0 %v4934_v48, %s5322_s8 }
0x1c37   :  { %v4936_v22 = vpop.eup %4935 }
0x1c38   :  { %v3914_v11 = vadd.f32 1.0, %v4936_v22 }
0x1c3a   :  { %4937 = vrcp.f32 %v3914_v11  ;;  %v3926_v30 = vand.u32 2147483648, %v3914_v11  ;;  %vm3920_vm9 = vweird.f32 %v3914_v11  ;;  %v3924_v0 = vand.u32 2147483647, %v3914_v11 }
0x1c3c   :  { %v3927_v58 = vor.u32 1.1754944e-38, %v3926_v30  ;;  %vm3925_vm12 = vcmp.eq.f32.partialorder %v3924_v0, 8.507059e+37 }
0x1c40   :  { %v4938_v4 = vpop.eup %4937 }
0x1c41   :  { %v3916_v55 = vmul.f32 %v4938_v4, %v3914_v11  ;;  %vm3921_vm4 = vweird.f32 %v4938_v4 }
0x1c42   :  { %vm3922_vm10 = vmor %vm3920_vm9, %vm3921_vm4  ;;  %vm4187_vm4 = vcmask 1043459   ;;  %vm4189_vm9 = vcmask 1044484  }
0x1c43   :  { %v3917_v13 = vsub.f32 1.0, %v3916_v55 }
0x1c45   :  { %v3918_v50 = vmul.f32 %v4938_v4, %v3917_v13 }
0x1c47   :  { %v3919_v37 = vadd.f32 %v4938_v4, %v3918_v50 }
0x1c49   :  { %v3923_v19 = vsel %vm3922_vm10, %v4938_v4, %v3919_v37  ;;  %vm4192_vm10 = vcmask 61440  }
0x1c4a   :  { %v3928_v43 = vsel %vm3925_vm12, %v3927_v58, %v3923_v19 }
0x1c4b   :  { %v3934_v33 = vmul.f32 %v3932_v2, %v3928_v43 }
0x1ca8   :  { %v3937_v14 = vpop.permute.xlu0 %3936 }
0x1ca9   :  { %v3939_v27 = vmul.f32 %v3937_v14, %v3928_v43 }
0x1cab   :  { %3941 = vrot.lane.b32.xlu1 %v3939_v27, %s5322_s8 }
0x1d1d   :  { %v3942_v21 = vpop.permute.xlu1 %3941 }
0x1d1e   :  { %v3944_v8 = vadd.f32 %v3942_v21, %v3934_v33 }
0x1d20   :  { %4939 = vtanh.f32 %v3944_v8  ;;  %v4002_v39 = vrot.slane %v3944_v8, 7  ;;  %v4098_v8 = vld [vmem:[#allocation18 + $0x18] sm:$0xff] }
0x1d21   :  { %4117 = vmatpush.msrb.mxu0 %v4098_v8 }
0x1d26   :  { %v4940_v29 = vpop.eup %4939 }
0x1d27   :  { %3947 = vrot.lane.b32.xlu2 %v4940_v29, %s5322_s8  ;;  %v4097_v29 = vld [vmem:[#allocation18 + $0x10] sm:$0xff] }
0x1d28   :  { %4118 = vmatpush.msrb.mxu0 %v4097_v29 }
0x1d81   :  { %v3948_v23 = vpop.permute.xlu2 %3947 }
0x1d82   :  { %v3950_v63 = vmul.f32 %v3948_v23, %v3928_v43  ;;  %v4096_v23 = vld [vmem:[#allocation18 + $0x8] sm:$0xff] }
0x1d83   :  { %4119 = vmatpush.msrb.mxu0 %v4096_v23 }
0x1d84   :  { %v3952_v41 = vrot.slane %v3950_v63, 2  ;;  %v4092_v24 = vsel %vm982_vm6, %v4091_v32, %v3950_v63  ;;  %v4095_v63 = vld [vmem:[#allocation18] sm:$0xff] }
0x1d85   :  { %4120 = vmatpush.msrb.mxu0 %v4095_v63 }
0x1d86   :  { %3953 = vrot.lane.b32.xlu0 %v3952_v41, %s5323_s29 }
0x1df8   :  { %v3954_v16 = vpop.permute.xlu0 %3953 }
0x1df9   :  { %4737 = vmatmul.msk.f32.vlgmr.msrb.gmra.mxu2 %vm471_vm0, %v3954_v16 }
0x1e7c   :  { %v3974_v10 = vpop.f32.mrf.mxu2 }
0x1e7d   :  { %v3978_v20 = vrot.slane %v3974_v10, 5 }
0x1e7f   :  { %v3980_v49 = vadd.f32 %v3978_v20, %v7117_v15 }
0x1e81   :  { %4941 = vtanh.f32 %v3980_v49  ;;  %v4738_v59 = vmul.f32 -1.442695, %v3980_v49 }
0x1e83   :  { %4943 = vpow2.f32 %v4738_v59 }
0x1e87   :  { %v4942_v17 = vpop.eup %4941 }
0x1e88   :  { %4006 = vrot.lane.b32.xlu1 %v4942_v17, %s5322_s8 }
0x1e89   :  { %v4944_v62 = vpop.eup %4943 }
0x1e8a   :  { %v3984_v57 = vadd.f32 1.0, %v4944_v62 }
0x1e8c   :  { %4945 = vrcp.f32 %v3984_v57  ;;  %v3996_v9 = vand.u32 2147483648, %v3984_v57  ;;  %vm3990_vm6 = vweird.f32 %v3984_v57  ;;  %v3994_v53 = vand.u32 2147483647, %v3984_v57 }
0x1e8e   :  { %v3997_v45 = vor.u32 1.1754944e-38, %v3996_v9  ;;  %vm3995_vm2 = vcmp.eq.f32.partialorder %v3994_v53, 8.507059e+37 }
0x1e92   :  { %v4946_v47 = vpop.eup %4945 }
0x1e93   :  { %v3986_v44 = vmul.f32 %v4946_v47, %v3984_v57  ;;  %vm3991_vm5 = vweird.f32 %v4946_v47 }
0x1e94   :  { %vm3992_vm1 = vmor %vm3990_vm6, %vm3991_vm5 }
0x1e95   :  { %v3987_v7 = vsub.f32 1.0, %v3986_v44 }
0x1e97   :  { %v3988_v35 = vmul.f32 %v4946_v47, %v3987_v7 }
0x1e99   :  { %v3989_v52 = vadd.f32 %v4946_v47, %v3988_v35 }
0x1e9b   :  { %v3993_v26 = vsel %vm3992_vm1, %v4946_v47, %v3989_v52 }
0x1e9c   :  { %v3998_v60 = vsel %vm3995_vm2, %v3997_v45, %v3993_v26 }
0x1e9d   :  { %v4004_v38 = vmul.f32 %v4002_v39, %v3998_v60 }
0x1efa   :  { %v4007_v6 = vpop.permute.xlu1 %4006 }
0x1efb   :  { %v4009_v31 = vmul.f32 %v4007_v6, %v3998_v60 }
0x1efd   :  { %4011 = vrot.lane.b32.xlu2 %v4009_v31, %s5322_s8 }
0x1f57   :  { %v4012_v40 = vpop.permute.xlu2 %4011 }
0x1f58   :  { %v4014_v12 = vadd.f32 %v4012_v40, %v4004_v38 }
0x1f5a   :  { %4947 = vtanh.f32 %v4014_v12  ;;  %v4072_v43 = vrot.slane %v4014_v12, 7 }
0x1f60   :  { %v4948_v56 = vpop.eup %4947 }
0x1f61   :  { %4017 = vrot.lane.b32.xlu0 %v4948_v56, %s5322_s8 }
0x1fd3   :  { %v4018_v51 = vpop.permute.xlu0 %4017 }
0x1fd4   :  { %v4020_v42 = vmul.f32 %v4018_v51, %v3998_v60 }
0x1fd6   :  { %v4022_v3 = vrot.slane %v4020_v42, 3  ;;  %v4093_v5 = vsel %vm984_vm7, %v4092_v24, %v4020_v42 }
0x1fd8   :  { %4023 = vrot.lane.b32.xlu1 %v4022_v3, %s5323_s29 }
0x204a   :  { %v4024_v18 = vpop.permute.xlu1 %4023 }
0x204b   :  { %4739 = vmatmul.msk.f32.vlgmr.msrb.gmra.mxu3 %vm471_vm0, %v4024_v18 }
0x20ce   :  { %v4044_v36 = vpop.f32.mrf.mxu3 }
0x20cf   :  { %v4048_v28 = vrot.slane %v4044_v36, 4 }
0x20d1   :  { %v4050_v34 = vadd.f32 %v4048_v28, %v7117_v15 }
0x20d3   :  { %4949 = vtanh.f32 %v4050_v34  ;;  %v4740_v48 = vmul.f32 -1.442695, %v4050_v34 }
0x20d5   :  { %4951 = vpow2.f32 %v4740_v48 }
0x20d9   :  { %v4950_v61 = vpop.eup %4949 }
0x20da   :  { %4076 = vrot.lane.b32.xlu2 %v4950_v61, %s5322_s8 }
0x20db   :  { %v4952_v25 = vpop.eup %4951 }
0x20dc   :  { %v4054_v22 = vadd.f32 1.0, %v4952_v25 }
0x20de   :  { %4953 = vrcp.f32 %v4054_v22  ;;  %v4066_v37 = vand.u32 2147483648, %v4054_v22  ;;  %vm4060_vm3 = vweird.f32 %v4054_v22  ;;  %v4064_v30 = vand.u32 2147483647, %v4054_v22 }
0x20e0   :  { %v4067_v0 = vor.u32 1.1754944e-38, %v4066_v37  ;;  %vm4065_vm14 = vcmp.eq.f32.partialorder %v4064_v30, 8.507059e+37 }
0x20e4   :  { %v4954_v11 = vpop.eup %4953 }
0x20e5   :  { %v4056_v4 = vmul.f32 %v4954_v11, %v4054_v22  ;;  %vm4061_vm7 = vweird.f32 %v4954_v11 }
0x20e6   :  { %vm4062_vm11 = vmor %vm4060_vm3, %vm4061_vm7 }
0x20e7   :  { %v4057_v55 = vsub.f32 1.0, %v4056_v4 }
0x20e9   :  { %v4058_v13 = vmul.f32 %v4954_v11, %v4057_v55 }
0x20eb   :  { %v4059_v50 = vadd.f32 %v4954_v11, %v4058_v13 }
0x20ed   :  { %v4063_v15 = vsel %vm4062_vm11, %v4954_v11, %v4059_v50 }
0x20ee   :  { %v4068_v58 = vsel %vm4065_vm14, %v4067_v0, %v4063_v15 }
0x20ef   :  { %v4074_v27 = vmul.f32 %v4072_v43, %v4068_v58 }
0x2134   :  { %v4077_v19 = vpop.permute.xlu2 %4076 }
0x2135   :  { %v4079_v14 = vmul.f32 %v4077_v19, %v4068_v58 }
0x2137   :  { %4081 = vrot.lane.b32.xlu0 %v4079_v14, %s5322_s8 }
0x21a9   :  { %v4082_v2 = vpop.permute.xlu0 %4081 }
0x21aa   :  { %v4084_v33 = vadd.f32 %v4082_v2, %v4074_v27 }
0x21ac   :  { %4955 = vtanh.f32 %v4084_v33 }
0x21b2   :  { %v4956_v21 = vpop.eup %4955 }
0x21b3   :  { %4087 = vrot.lane.b32.xlu1 %v4956_v21, %s5322_s8 }
0x2225   :  { %v4088_v32 = vpop.permute.xlu1 %4087 }
0x2226   :  { %v4090_v41 = vmul.f32 %v4088_v32, %v4068_v58 }
0x2228   :  { %v4094_v24 = vsel %vm986_vm8, %v4093_v5, %v4090_v41  ;;  %vm4183_vm8 = vcmask 1041409  }
0x2229   :  { %4101 = vrot.lane.b32.xlu2 %v4094_v24, %s5323_s29  ;;  %s7338_s29 = sld [smem:[#allocation62_spill]] }
0x222f   :  { %v4787_v45 = vld [vmem:[%s7338_s29] ss:$0 sm:$0xff] }
0x2283   :  { %v4102_v16 = vpop.permute.xlu2 %4101 }
0x2284   :  { %4741 = vmatmul.msk.f32.vlgmr.msrb.gmra.mxu0 %vm471_vm0, %v4102_v16 }
0x2301   :  { %v4122_v10 = vpop.f32.mrf.mxu0 }
0x2302   :  { %v4126_v20 = vrot.slane %v4122_v10, 1  ;;  %v4127_v49 = vrot.slane %v4122_v10, 2  ;;  %v4128_v17 = vrot.slane %v4122_v10, 3  ;;  %v4129_v59 = vrot.slane %v4122_v10, 4 }
0x2303   :  { %v4130_v62 = vperm.slane %v4122_v10, 0 }
0x2304   :  { %v4131_v57 = vperm.slane %v4126_v20, 0  ;;  %v4132_v47 = vperm.slane %v4127_v49, 0  ;;  %v4134_v44 = vperm.slane %v4129_v59, 0  ;;  %v4133_v7 = vperm.slane %v4128_v17, 0 }
0x2305   :  { %v4140_v35 = vadd.f32 %v4130_v62, %v7127_v46 }
0x2306   :  { %v4141_v52 = vadd.f32 %v4131_v57, %v7127_v46  ;;  %v4142_v9 = vadd.f32 %v4132_v47, %v7127_v46  ;;  %v4144_v53 = vadd.f32 %v4134_v44, %v7127_v46  ;;  %v4143_v26 = vadd.f32 %v4133_v7, %v7127_v46 }
0x2307   :  { %4957 = vtanh.f32 %v4140_v35 }
0x2308   :  { %4959 = vtanh.f32 %v4141_v52 }
0x2309   :  { %4961 = vtanh.f32 %v4142_v9 }
0x230a   :  { %4963 = vtanh.f32 %v4144_v53 }
0x230b   :  { %4965 = vtanh.f32 %v4143_v26 }
0x230d   :  { %v4958_v6 = vpop.eup %4957 }
0x230e   :  { %v4960_v60 = vpop.eup %4959  ;;  %v4153_v31 = vmul.f32 %v4958_v6, %v4787_v45 }
0x230f   :  { %v4962_v39 = vpop.eup %4961  ;;  %v4154_v38 = vmul.f32 %v4960_v60, %v4787_v45 }
0x2310   :  { %v4158_v40 = vsel %vm471_vm0, %v4153_v31, 0.0  ;;  %v4155_v12 = vmul.f32 %v4962_v39, %v4787_v45  ;;  %v4964_v56 = vpop.eup %4963 }
0x2311   :  { %4159 = vadd.xlane.f32.xlu0 %v4158_v40  ;;  %v4161_v51 = vsel %vm471_vm0, %v4154_v38, 0.0  ;;  %v4966_v42 = vpop.eup %4965  ;;  %v4157_v3 = vmul.f32 %v4964_v56, %v4787_v45 }
0x2312   :  { %v4164_v46 = vsel %vm471_vm0, %v4155_v12, 0.0  ;;  %4162 = vadd.xlane.f32.xlu1 %v4161_v51  ;;  %v4156_v5 = vmul.f32 %v4966_v42, %v4787_v45 }
0x2313   :  { %4165 = vadd.xlane.f32.xlu2 %v4164_v46  ;;  %v4170_v18 = vsel %vm471_vm0, %v4157_v3, 0.0 }
0x2314   :  { %v4167_v36 = vsel %vm471_vm0, %v4156_v5, 0.0 }
0x2319   :  { %4171 = vadd.xlane.f32.xlu0 %v4170_v18 }
0x231b   :  { %4168 = vadd.xlane.f32.xlu2 %v4167_v36 }
0x2384   :  { %v4160_v28 = vpop.xlane.xlu0 %4159 }
0x2385   :  { %v4163_v61 = vpop.xlane.xlu1 %4162  ;;  %v4178_v25 = vperm.slane %v4160_v28, %v7333_v1 }
0x2386   :  { %v4166_v34 = vpop.xlane.xlu2 %4165  ;;  %v4179_v48 = vperm.slane %v4163_v61, %v7333_v1 }
0x2387   :  { %v4180_v22 = vperm.slane %v4166_v34, %v7333_v1 }
0x2388   :  { %v4184_v11 = vsel %vm4183_vm8, %v4179_v48, %v4178_v25  ;;  %v4324_v48 = vld [vmem:[#allocation15 + $0x8] sm:$0xff] }
0x2389   :  { %v4186_v37 = vsel %vm4185_vm15, %v4180_v22, %v4184_v11 }
0x238c   :  { %v4172_v4 = vpop.xlane.xlu0 %4171 }
0x238d   :  { %v4182_v50 = vperm.slane %v4172_v4, %v7333_v1 }
0x238e   :  { %v4169_v55 = vpop.xlane.xlu2 %4168 }
0x238f   :  { %v4181_v13 = vperm.slane %v4169_v55, %v7333_v1 }
0x2391   :  { %v4188_v30 = vsel %vm4187_vm4, %v4181_v13, %v4186_v37 }
0x2392   :  { %v4190_v15 = vsel %vm4189_vm9, %v4182_v50, %v4188_v30 }
0x2393   :  { %v4193_v0 = vsel %vm4192_vm10, %v4190_v15, -inf }
0x2394   :  { %4194 = vmax.xlane.f32.xlu1 %v4193_v0 }
0x2407   :  { %v4195_v19 = vpop.xlane.xlu1 %4194 }
0x2408   :  { %v4197_v58 = vperm.slane %v4195_v19, 0  ;;  %v4198_v14 = vperm.slane %v4195_v19, 1  ;;  %v4199_v43 = vperm.slane %v4195_v19, 2  ;;  %v4201_v27 = vperm.slane %v4195_v19, 4 }
0x2409   :  { %v4200_v8 = vperm.slane %v4195_v19, 3 }
0x240a   :  { %v4207_v2 = vsub.f32 %v4160_v28, %v4197_v58  ;;  %v4208_v33 = vsub.f32 %v4163_v61, %v4198_v14  ;;  %v4209_v21 = vsub.f32 %v4166_v34, %v4199_v43  ;;  %v4211_v32 = vsub.f32 %v4172_v4, %v4201_v27  ;;  %v4326_v34 = vld [vmem:[#allocation15 + $0x18] sm:$0xff]  ;;  %v4325_v61 = vld [vmem:[#allocation15 + $0x10] sm:$0xff]  ;;  %v4323_v43 = vld [vmem:[#allocation15] sm:$0xff] }
0x240b   :  { %v4210_v41 = vsub.f32 %v4169_v55, %v4200_v8  ;;  %4343 = vmatpush.msra.mxu3 %v4326_v34 }
0x240c   :  { %v4212_v29 = vmul.f32 1.442695, %v4207_v2  ;;  %v4214_v23 = vmul.f32 1.442695, %v4208_v33  ;;  %v4216_v63 = vmul.f32 1.442695, %v4209_v21 }
0x240d   :  { %v4220_v24 = vmul.f32 1.442695, %v4211_v32  ;;  %v4218_v16 = vmul.f32 1.442695, %v4210_v41  ;;  %4344 = vmatpush.msra.mxu3 %v4325_v61 }
0x240e   :  { %4967 = vpow2.f32 %v4212_v29 }
0x240f   :  { %4969 = vpow2.f32 %v4214_v23  ;;  %4345 = vmatpush.msra.mxu3 %v4324_v48 }
0x2410   :  { %4971 = vpow2.f32 %v4216_v63 }
0x2411   :  { %4973 = vpow2.f32 %v4220_v24  ;;  %4346 = vmatpush.msra.mxu3 %v4323_v43 }
0x2412   :  { %4975 = vpow2.f32 %v4218_v16 }
0x2414   :  { %v4968_v10 = vpop.eup %4967 }
0x2415   :  { %v4970_v20 = vpop.eup %4969  ;;  %4228 = vperm.xlu2 %4779, %v4968_v10  }
0x2416   :  { %v4972_v49 = vpop.eup %4971  ;;  %4231 = vperm.xlu0 %4777, %v4970_v20  }
0x2417   :  { %4234 = vperm.xlu1 %4778, %v4972_v49   ;;  %v4974_v17 = vpop.eup %4973 }
0x2418   :  { %v4976_v59 = vpop.eup %4975 }
0x241d   :  { %4240 = vperm.xlu2 %4779, %v4974_v17  }
0x241e   :  { %4237 = vperm.xlu0 %4777, %v4976_v59  }
0x246f   :  { %v4229_v62 = vpop.permute.xlu2 %4228 }
0x2470   :  { %v4242_v7 = vperm.slane %v4229_v62, %v7333_v1 }
0x2477   :  { %v4241_v52 = vpop.permute.xlu2 %4240 }
0x2478   :  { %v4246_v45 = vperm.slane %v4241_v52, %v7333_v1 }
0x2488   :  { %v4232_v57 = vpop.permute.xlu0 %4231 }
0x2489   :  { %v4235_v47 = vpop.permute.xlu1 %4234  ;;  %v4243_v44 = vperm.slane %v4232_v57, %v7333_v1 }
0x248a   :  { %v4244_v35 = vperm.slane %v4235_v47, %v7333_v1 }
0x248b   :  { %v4247_v9 = vsel %vm4183_vm8, %v4243_v44, %v4242_v7 }
0x248c   :  { %v4248_v6 = vsel %vm4185_vm15, %v4244_v35, %v4247_v9 }
0x2490   :  { %v4238_v53 = vpop.permute.xlu0 %4237 }
0x2491   :  { %v4245_v26 = vperm.slane %v4238_v53, %v7333_v1 }
0x2493   :  { %v4249_v60 = vsel %vm4187_vm4, %v4245_v26, %v4248_v6 }
0x2494   :  { %v4250_v31 = vsel %vm4189_vm9, %v4246_v45, %v4249_v60 }
0x2495   :  { %v4252_v39 = vsel %vm4192_vm10, %v4250_v31, 0.0 }
0x2496   :  { %4253 = vadd.xlane.f32.xlu1 %v4252_v39 }
0x2509   :  { %v4254_v38 = vpop.xlane.xlu1 %4253 }
0x250a   :  { %4977 = vrcp.f32 %v4254_v38 }
0x2510   :  { %v4978_v40 = vpop.eup %4977 }
0x2511   :  { %v4258_v12 = vperm.slane %v4978_v40, 1  ;;  %v4257_v56 = vperm.slane %v4978_v40, 0  ;;  %v4260_v42 = vperm.slane %v4978_v40, 3  ;;  %v4259_v3 = vperm.slane %v4978_v40, 2 }
0x2512   :  { %v4261_v36 = vperm.slane %v4978_v40, 4 }
0x2513   :  { %v4268_v51 = vmul.f32 %v4970_v20, %v4258_v12  ;;  %v4267_v46 = vmul.f32 %v4968_v10, %v4257_v56  ;;  %v4270_v5 = vmul.f32 %v4976_v59, %v4260_v42  ;;  %v4269_v18 = vmul.f32 %v4972_v49, %v4259_v3  ;;  %v4788_v49 = vld [vmem:[#allocation17] ss:$0 sm:$0xff] }
0x2514   :  { %v4271_v28 = vmul.f32 %v4974_v17, %v4261_v36 }
0x2515   :  { %4281 = vperm.xlu2 %4779, %v4268_v51   ;;  %4278 = vperm.xlu0 %4777, %v4267_v46  }
0x251d   :  { %4287 = vperm.xlu2 %4779, %v4270_v5   ;;  %4284 = vperm.xlu0 %4777, %v4269_v18  }
0x2525   :  { %4290 = vperm.xlu0 %4777, %v4271_v28  }
0x256f   :  { %v4282_v22 = vpop.permute.xlu2 %4281 }
0x2570   :  { %v4293_v13 = vperm.slane %v4282_v22, %v7333_v1 }
0x2577   :  { %v4288_v50 = vpop.permute.xlu2 %4287 }
0x2578   :  { %v4295_v15 = vperm.slane %v4288_v50, %v7333_v1 }
0x2587   :  { %v4279_v25 = vpop.permute.xlu0 %4278 }
0x2588   :  { %v4292_v4 = vperm.slane %v4279_v25, %v7333_v1 }
0x258a   :  { %v4297_v37 = vsel %vm4183_vm8, %v4293_v13, %v4292_v4 }
0x258f   :  { %v4285_v11 = vpop.permute.xlu0 %4284 }
0x2590   :  { %v4294_v55 = vperm.slane %v4285_v11, %v7333_v1 }
0x2592   :  { %v4298_v30 = vsel %vm4185_vm15, %v4294_v55, %v4297_v37 }
0x2593   :  { %v4299_v58 = vsel %vm4187_vm4, %v4295_v15, %v4298_v30 }
0x2597   :  { %v4291_v0 = vpop.permute.xlu0 %4290 }
0x2598   :  { %v4296_v19 = vperm.slane %v4291_v0, %v7333_v1 }
0x259a   :  { %v4300_v14 = vsel %vm4189_vm9, %v4296_v19, %v4299_v58 }
0x259b   :  { %4742 = vmatmul.msk.f32.vlgmr.msra.gmra.mxu2 %vm3677_vm13, %v4300_v14 }
0x261e   :  { %v4320_v27 = vpop.f32.mrf.mxu2 }
0x261f   :  { %4743 = vmatmul.msk.f32.vlgmr.msra.gmra.mxu3 %vm471_vm0, %v4320_v27 }
0x26a2   :  { %v4348_v2 = vpop.f32.mrf.mxu3 }
0x26a3   :  { %v4352_v33 = vrot.slane %v4348_v2, 1  ;;  %v4353_v21 = vrot.slane %v4348_v2, 2  ;;  %v4354_v8 = vrot.slane %v4348_v2, 3  ;;  %v4356_v29 = vperm.slane %v4348_v2, 0 }
0x26a4   :  { %v4355_v10 = vrot.slane %v4348_v2, 4 }
0x26a5   :  { %v4357_v23 = vperm.slane %v4352_v33, 0  ;;  %v4358_v63 = vperm.slane %v4353_v21, 0  ;;  %v4359_v32 = vperm.slane %v4354_v8, 0  ;;  %v4366_v41 = vadd.f32 %v4356_v29, %v7112_v54 }
0x26a6   :  { %v4360_v59 = vperm.slane %v4355_v10, 0 }
0x26a7   :  { %v4367_v24 = vadd.f32 %v4357_v23, %v7112_v54  ;;  %v4368_v16 = vadd.f32 %v4358_v63, %v7112_v54  ;;  %4979 = vtanh.f32 %v4366_v41  ;;  %v4369_v20 = vadd.f32 %v4359_v32, %v7112_v54 }
0x26a8   :  { %v4370_v52 = vadd.f32 %v4360_v59, %v7112_v54 }
0x26a9   :  { %4981 = vtanh.f32 %v4367_v24 }
0x26aa   :  { %4983 = vtanh.f32 %v4368_v16 }
0x26ab   :  { %4985 = vtanh.f32 %v4369_v20 }
0x26ac   :  { %4987 = vtanh.f32 %v4370_v52 }
0x26ad   :  { %v4980_v17 = vpop.eup %4979 }
0x26ae   :  { %v4379_v57 = vmul.f32 %v4980_v17, %v4788_v49 }
0x26af   :  { %v4982_v62 = vpop.eup %4981 }
0x26b0   :  { %v4984_v47 = vpop.eup %4983  ;;  %v4380_v44 = vmul.f32 %v4982_v62, %v4788_v49  ;;  %v4384_v7 = vsel %vm471_vm0, %v4379_v57, 0.0 }
0x26b1   :  { %v4381_v35 = vmul.f32 %v4984_v47, %v4788_v49  ;;  %4385 = vadd.xlane.f32.xlu2 %v4384_v7  ;;  %v4986_v26 = vpop.eup %4985 }
0x26b2   :  { %v4387_v9 = vsel %vm471_vm0, %v4380_v44, 0.0  ;;  %v4382_v45 = vmul.f32 %v4986_v26, %v4788_v49  ;;  %v4988_v60 = vpop.eup %4987 }
0x26b3   :  { %v4390_v53 = vsel %vm471_vm0, %v4381_v35, 0.0  ;;  %4388 = vadd.xlane.f32.xlu0 %v4387_v9  ;;  %v4383_v31 = vmul.f32 %v4988_v60, %v4788_v49 }
0x26b4   :  { %4391 = vadd.xlane.f32.xlu1 %v4390_v53  ;;  %v4393_v6 = vsel %vm471_vm0, %v4382_v45, 0.0 }
0x26b5   :  { %v4396_v39 = vsel %vm471_vm0, %v4383_v31, 0.0 }
0x26bc   :  { %4394 = vadd.xlane.f32.xlu1 %v4393_v6 }
0x26c4   :  { %4397 = vadd.xlane.f32.xlu1 %v4396_v39 }
0x2724   :  { %v4386_v12 = vpop.xlane.xlu2 %4385 }
0x2725   :  { %v4404_v51 = vperm.slane %v4386_v12, %v7333_v1 }
0x2726   :  { %v4389_v54 = vpop.xlane.xlu0 %4388 }
0x2727   :  { %v4392_v38 = vpop.xlane.xlu1 %4391  ;;  %v4405_v56 = vperm.slane %v4389_v54, %v7333_v1 }
0x2728   :  { %v4406_v46 = vperm.slane %v4392_v38, %v7333_v1 }
0x2729   :  { %v4409_v42 = vsel %vm4183_vm8, %v4405_v56, %v4404_v51 }
0x272a   :  { %v4410_v18 = vsel %vm4185_vm15, %v4406_v46, %v4409_v42 }
0x272f   :  { %v4395_v40 = vpop.xlane.xlu1 %4394 }
0x2730   :  { %v4407_v3 = vperm.slane %v4395_v40, %v7333_v1 }
0x2732   :  { %v4411_v28 = vsel %vm4187_vm4, %v4407_v3, %v4410_v18 }
0x2737   :  { %v4398_v5 = vpop.xlane.xlu1 %4397 }
0x2738   :  { %v4408_v36 = vperm.slane %v4398_v5, %v7333_v1 }
0x273a   :  { %v4412_v34 = vsel %vm4189_vm9, %v4408_v36, %v4411_v28 }
0x273b   :  { %4414 = vst.msk [vmem:[%s7255_s28] sm:$0x1f] %vm4192_vm10, %v4412_v34 }
0x273c   :  { %4419 = vsyncpa [#allocation5], 1 }
0x273d   :  { %4420 = vsyncpa [#allocation7], 1 }
0x273e   :  { %4421 = vsyncpa [#allocation10], 1 }
0x273f   :  { %4422 = vsyncpa [#allocation13], 1 }
0x2740   :  { %4423 = vsyncpa [#allocation16], 1 }
0x2741   :  { %4424 = vsyncpa [#allocation19], 1 }
0x2742   :  { %4425 = vsyncpa [#allocation22], 1 }

</bundles_post_ra>
